<compile_context>
chip_gen: v7x
topology: tpu7x:2x2x1
jax: 0.10.0
libtpu: 0.0.40
codegen_flags: <defaults>
</compile_context>

<pallas_src>
import functools
import math

import jax
import jax.numpy as jnp
from jax.experimental import pallas as pl
from jax.experimental.pallas import tpu as pltpu

# ----------------------------- small BERT config ----------------------------
VOCAB = 128
HIDDEN = 768            # fixed by nn.Linear(768, 256) in the head
LAYERS = 2              # small synthetic encoder depth
HEADS = 12
HEAD_DIM = HIDDEN // HEADS
INTER = 3072
FFN_TILES = 4           # 3072 = 4 x 768 slabs of wi / wo2
PHASES = 2 + FFN_TILES  # per layer: [Wq|Wk], [Wv|Wo]+attn+LN1, 4 FFN slabs
NSTEPS = LAYERS * PHASES
MAX_POS = 32
TYPE_VOCAB = 2
LN_EPS = 1e-12
CLS1 = 256
HEAD_PAD = 128          # lane-pad the 3-wide classifier output
COMPUTE_DTYPE = jnp.bfloat16


def _ln(v, g, b):
    """f32 LayerNorm over the last axis (used in-kernel and in the reference)."""
    mean = jnp.mean(v, axis=-1, keepdims=True)
    cen = v - mean
    var = jnp.mean(cen * cen, axis=-1, keepdims=True)
    return cen * jax.lax.rsqrt(var + LN_EPS) * g + b


# ----------------------------- fused BERT kernel ----------------------------
def _bert_kernel(emb_ref, mask_ref, w_ref, aux_ref,
                 l1w_ref, l1b_ref, l2w_ref, l2b_ref,
                 out_ref,
                 x_ref, qkv_ref, ctx_ref, acc_ref,
                 *, scale):
    step = pl.program_id(0)
    phase = step % PHASES
    aux = aux_ref[0]                      # (4, HIDDEN) f32 bias/LN rows, per step

    # -- step-0 prologue: embedding LayerNorm into the resident f32 activation --
    @pl.when(step == 0)
    def _():
        x_ref[...] = _ln(emb_ref[...], aux[2:3, :], aux[3:4, :])

    # -- phase 0: Q and K projections (weight tile = [Wq | Wk]) -----------------
    @pl.when(phase == 0)
    def _():
        xb = x_ref[...].astype(COMPUTE_DTYPE)
        qkv_ref[:, 0:HIDDEN] = (
            jnp.dot(xb, w_ref[0, 0], preferred_element_type=jnp.float32)
            + aux[0:1, :])
        qkv_ref[:, HIDDEN:2 * HIDDEN] = (
            jnp.dot(xb, w_ref[0, 1], preferred_element_type=jnp.float32)
            + aux[1:2, :])

    # -- phase 1: V projection, attention, out-proj, residual, LayerNorm1 ------
    @pl.when(phase == 1)
    def _():
        xb = x_ref[...].astype(COMPUTE_DTYPE)
        qkv_ref[:, 2 * HIDDEN:3 * HIDDEN] = (
            jnp.dot(xb, w_ref[0, 0], preferred_element_type=jnp.float32)
            + aux[0:1, :])
        m = mask_ref[...]                                  # (M, M) additive mask
        for h in range(HEADS):
            lo = h * HEAD_DIM
            qh = qkv_ref[:, lo:lo + HEAD_DIM]
            kh = qkv_ref[:, HIDDEN + lo:HIDDEN + lo + HEAD_DIM]
            vh = qkv_ref[:, 2 * HIDDEN + lo:2 * HIDDEN + lo + HEAD_DIM]
            sc = jax.lax.dot_general(qh, kh, (((1,), (1,)), ((), ())),
                                     preferred_element_type=jnp.float32)
            sc = sc * scale + m
            sc = sc - jnp.max(sc, axis=-1, keepdims=True)
            p = jnp.exp(sc)
            p = p / jnp.sum(p, axis=-1, keepdims=True)
            ctx_ref[:, lo:lo + HEAD_DIM] = jnp.dot(
                p, vh, preferred_element_type=jnp.float32)
        attn = (jnp.dot(ctx_ref[...].astype(COMPUTE_DTYPE), w_ref[0, 1],
                        preferred_element_type=jnp.float32) + aux[1:2, :])
        x_ref[...] = _ln(attn + x_ref[...], aux[2:3, :], aux[3:4, :])

    # -- phases 2..5: FFN slabs (x@wi_p -> GELU -> @wo2_p), f32 accumulation ----
    @pl.when(phase >= 2)
    def _():
        @pl.when(phase == 2)
        def _():
            acc_ref[...] = jnp.zeros_like(acc_ref)

        xb = x_ref[...].astype(COMPUTE_DTYPE)
        inter = (jnp.dot(xb, w_ref[0, 0], preferred_element_type=jnp.float32)
                 + aux[0:1, :])
        inter = jax.nn.gelu(inter, approximate=True)       # tanh GELU (EUP)
        acc_ref[...] += jnp.dot(inter.astype(COMPUTE_DTYPE), w_ref[0, 1],
                                preferred_element_type=jnp.float32)

        @pl.when(phase == PHASES - 1)
        def _():
            hres = acc_ref[...] + aux[1:2, :] + x_ref[...]
            x_ref[...] = _ln(hres, aux[2:3, :], aux[3:4, :])

    # -- final step epilogue: fused classification head -------------------------
    @pl.when(step == NSTEPS - 1)
    def _():
        y = x_ref[...]                                     # sequence_output rows
        h1 = (jnp.dot(y.astype(COMPUTE_DTYPE), l1w_ref[...],
                      preferred_element_type=jnp.float32) + l1b_ref[...])
        out_ref[...] = (jnp.dot(h1.astype(COMPUTE_DTYPE), l2w_ref[...],
                                preferred_element_type=jnp.float32)
                        + l2b_ref[...])


# ----------------------------- parameters -----------------------------------
def init_params(key):
    def normal(k, shape, std=0.02):
        return std * jax.random.normal(k, shape, dtype=jnp.float32)

    def ln_pair(k):
        kg, kb = jax.random.split(k)
        g = 1.0 + 0.1 * jax.random.normal(kg, (HIDDEN,), dtype=jnp.float32)
        return g, normal(kb, (HIDDEN,))

    keys = iter(jax.random.split(key, 64))
    emb_g, emb_b = ln_pair(next(keys))
    params = {
        "word_emb": normal(next(keys), (VOCAB, HIDDEN)),
        "pos_emb": normal(next(keys), (MAX_POS, HIDDEN)),
        "type_emb": normal(next(keys), (TYPE_VOCAB, HIDDEN)),
        "emb_ln_g": emb_g, "emb_ln_b": emb_b,
        "layers": [],
        "l1_w": normal(next(keys), (HIDDEN, CLS1)),
        "l1_b": normal(next(keys), (CLS1,)),
        "l2_w": normal(next(keys), (CLS1, 3)),
        "l2_b": normal(next(keys), (3,)),
    }
    for _ in range(LAYERS):
        g1, b1 = ln_pair(next(keys))
        g2, b2 = ln_pair(next(keys))
        params["layers"].append({
            "wqkv": normal(next(keys), (HIDDEN, 3 * HIDDEN)),
            "bqkv": normal(next(keys), (3 * HIDDEN,)),
            "wo": normal(next(keys), (HIDDEN, HIDDEN)),
            "bo": normal(next(keys), (HIDDEN,)),
            "ln1_g": g1, "ln1_b": b1,
            "wi": normal(next(keys), (HIDDEN, INTER)),
            "bi": normal(next(keys), (INTER,)),
            "wo2": normal(next(keys), (INTER, HIDDEN)),
            "bo2": normal(next(keys), (HIDDEN,)),
            "ln2_g": g2, "ln2_b": b2,
        })
    return params


def pack_params(params):
    """Pack weights into the uniform [NSTEPS,2,768,768] bf16 stream + aux rows."""
    H = HIDDEN
    tiles = []
    aux = jnp.zeros((NSTEPS, 4, H), jnp.float32)
    for l, layer in enumerate(params["layers"]):
        wqkv = layer["wqkv"].astype(COMPUTE_DTYPE)
        wo = layer["wo"].astype(COMPUTE_DTYPE)
        wi = layer["wi"].astype(COMPUTE_DTYPE)
        wo2 = layer["wo2"].astype(COMPUTE_DTYPE)
        tiles.append(jnp.stack([wqkv[:, 0:H], wqkv[:, H:2 * H]]))      # phase 0
        tiles.append(jnp.stack([wqkv[:, 2 * H:3 * H], wo]))            # phase 1
        for p in range(FFN_TILES):                                     # phases 2..5
            tiles.append(jnp.stack([wi[:, p * H:(p + 1) * H],
                                    wo2[p * H:(p + 1) * H, :]]))
        base = l * PHASES
        aux = aux.at[base + 0, 0].set(layer["bqkv"][0:H])
        aux = aux.at[base + 0, 1].set(layer["bqkv"][H:2 * H])
        aux = aux.at[base + 1, 0].set(layer["bqkv"][2 * H:3 * H])
        aux = aux.at[base + 1, 1].set(layer["bo"])
        aux = aux.at[base + 1, 2].set(layer["ln1_g"])
        aux = aux.at[base + 1, 3].set(layer["ln1_b"])
        for p in range(FFN_TILES):
            aux = aux.at[base + 2 + p, 0].set(layer["bi"][p * H:(p + 1) * H])
        aux = aux.at[base + PHASES - 1, 1].set(layer["bo2"])
        aux = aux.at[base + PHASES - 1, 2].set(layer["ln2_g"])
        aux = aux.at[base + PHASES - 1, 3].set(layer["ln2_b"])
    # embedding LN params ride in the (unused) rows 2/3 of step 0.
    aux = aux.at[0, 2].set(params["emb_ln_g"])
    aux = aux.at[0, 3].set(params["emb_ln_b"])

    l2_w_pad = jnp.zeros((CLS1, HEAD_PAD), jnp.float32).at[:, :3].set(params["l2_w"])
    l2_b_pad = jnp.zeros((HEAD_PAD,), jnp.float32).at[:3].set(params["l2_b"])
    return {
        "word_emb": params["word_emb"],
        "pos_emb": params["pos_emb"],
        "type_emb": params["type_emb"],
        "wstream": jnp.stack(tiles),                   # [NSTEPS, 2, H, H] bf16
        "aux": aux,                                    # [NSTEPS, 4, H]    f32
        "l1_w": params["l1_w"].astype(COMPUTE_DTYPE),
        "l1_b": params["l1_b"].reshape(1, CLS1),
        "l2_w": l2_w_pad.astype(COMPUTE_DTYPE),
        "l2_b": l2_b_pad.reshape(1, HEAD_PAD),
    }


# ----------------------------- forward pass ---------------------------------
@jax.jit
def custom_bert_forward(packed, ids, mask):
    B, S = ids.shape
    M = B * S

    # Embeddings: word + position + token-type(0) (gather is plain-JAX glue).
    emb = (jnp.take(packed["word_emb"], ids, axis=0)
           + packed["pos_emb"][None, :S, :]
           + packed["type_emb"][0][None, None, :])
    emb = emb.reshape(M, HIDDEN).astype(jnp.float32)

    # Additive [M, M] mask: HF-style -10000 on padded keys, -1e9 cross-batch
    # (lets the kernel run all B*S rows in one block).
    addm = (1.0 - mask.astype(jnp.float32)) * -10000.0
    bidx = jnp.arange(M, dtype=jnp.int32) // S
    fullmask = jnp.where(bidx[:, None] == bidx[None, :],
                         addm.reshape(-1)[None, :], -1e9).astype(jnp.float32)

    out = pl.pallas_call(
        functools.partial(_bert_kernel, scale=1.0 / math.sqrt(HEAD_DIM)),
        out_shape=jax.ShapeDtypeStruct((M, HEAD_PAD), jnp.float32),
        grid=(NSTEPS,),
        in_specs=[
            pl.BlockSpec((M, HIDDEN), lambda s: (0, 0)),                   # emb
            pl.BlockSpec((M, M), lambda s: (0, 0)),                        # mask
            pl.BlockSpec((1, 2, HIDDEN, HIDDEN), lambda s: (s, 0, 0, 0)),  # weights
            pl.BlockSpec((1, 4, HIDDEN), lambda s: (s, 0, 0)),             # bias/LN
            pl.BlockSpec((HIDDEN, CLS1), lambda s: (0, 0)),                # l1_w
            pl.BlockSpec((1, CLS1), lambda s: (0, 0)),                     # l1_b
            pl.BlockSpec((CLS1, HEAD_PAD), lambda s: (0, 0)),              # l2_w
            pl.BlockSpec((1, HEAD_PAD), lambda s: (0, 0)),                 # l2_b
        ],
        out_specs=pl.BlockSpec((M, HEAD_PAD), lambda s: (0, 0)),
        scratch_shapes=[
            pltpu.VMEM((M, HIDDEN), jnp.float32),        # resident activation x
            pltpu.VMEM((M, 3 * HIDDEN), jnp.float32),    # QKV
            pltpu.VMEM((M, HIDDEN), jnp.float32),        # attention context
            pltpu.VMEM((M, HIDDEN), jnp.float32),        # FFN accumulator
        ],
        compiler_params=pltpu.CompilerParams(
            dimension_semantics=("arbitrary",)),
    )(emb, fullmask, packed["wstream"], packed["aux"],
      packed["l1_w"], packed["l1_b"], packed["l2_w"], packed["l2_b"])

    # logits = linear2(linear1(sequence_output[:, 0, :]))
    return out.reshape(B, S, HEAD_PAD)[:, 0, :3]


# ----------------------------- pure-JAX reference ----------------------------
def reference_forward(params, ids, mask):
    B, S = ids.shape
    r32 = lambda w: w.astype(COMPUTE_DTYPE).astype(jnp.float32)
    x = (jnp.take(params["word_emb"], ids, axis=0)
         + params["pos_emb"][None, :S, :]
         + params["type_emb"][0][None, None, :]).astype(jnp.float32)
    x = _ln(x, params["emb_ln_g"], params["emb_ln_b"])
    addm = ((1.0 - mask.astype(jnp.float32)) * -10000.0)[:, None, None, :]
    for layer in params["layers"]:
        qkv = x @ r32(layer["wqkv"]) + layer["bqkv"]
        q = qkv[..., 0:HIDDEN].reshape(B, S, HEADS, HEAD_DIM)
        k = qkv[..., HIDDEN:2 * HIDDEN].reshape(B, S, HEADS, HEAD_DIM)
        v = qkv[..., 2 * HIDDEN:].reshape(B, S, HEADS, HEAD_DIM)
        sc = jnp.einsum("bqhd,bkhd->bhqk", q, k) / math.sqrt(HEAD_DIM) + addm
        p = jax.nn.softmax(sc, axis=-1)
        ctx = jnp.einsum("bhqk,bkhd->bqhd", p, v).reshape(B, S, HIDDEN)
        x = _ln(ctx @ r32(layer["wo"]) + layer["bo"] + x,
                layer["ln1_g"], layer["ln1_b"])
        inter = jax.nn.gelu(x @ r32(layer["wi"]) + layer["bi"], approximate=True)
        x = _ln(inter @ r32(layer["wo2"]) + layer["bo2"] + x,
                layer["ln2_g"], layer["ln2_b"])
    cls = x[:, 0, :]
    h1 = cls @ r32(params["l1_w"]) + params["l1_b"]
    return h1 @ r32(params["l2_w"]) + params["l2_b"]


# ----------------------------- main ------------------------------------------
if __name__ == "__main__":
    key = jax.random.PRNGKey(0)
    pkey, ikey = jax.random.split(key)

    params = init_params(pkey)
    packed = pack_params(params)

    B, S = 2, 8
    ids = jax.random.randint(ikey, (B, S), 0, VOCAB, dtype=jnp.int32)
    mask = jnp.array([[1, 1, 1, 1, 1, 1, 0, 0],
                      [1, 1, 1, 1, 1, 1, 1, 1]], dtype=jnp.int32)

    logits = custom_bert_forward(packed, ids, mask)
    jax.block_until_ready(logits)
    assert logits.shape == (B, 3) and logits.dtype == jnp.float32

    ref = reference_forward(params, ids, mask)
    max_diff = float(jnp.max(jnp.abs(logits - ref)))
    assert bool(jnp.all(jnp.isfinite(logits))) and max_diff < 7.5e-2
    print("KERNEL_OK")
</pallas_src>

<mosaic_0001>
module attributes {stable_mosaic.version = 11 : i64} {
  func.func @_bert_kernel(%arg0: i32, %arg1: memref<16x768xf32, #tpu.memory_space<vmem>>, %arg2: memref<16x16xf32, #tpu.memory_space<vmem>>, %arg3: memref<1x2x768x768xbf16, #tpu.memory_space<vmem>>, %arg4: memref<1x4x768xf32, #tpu.memory_space<vmem>>, %arg5: memref<768x256xbf16, #tpu.memory_space<vmem>>, %arg6: memref<1x256xf32, #tpu.memory_space<vmem>>, %arg7: memref<256x128xbf16, #tpu.memory_space<vmem>>, %arg8: memref<1x128xf32, #tpu.memory_space<vmem>>, %arg9: memref<16x128xf32, #tpu.memory_space<vmem>>, %arg10: memref<16x768xf32, #tpu.memory_space<vmem>>, %arg11: memref<16x2304xf32, #tpu.memory_space<vmem>>, %arg12: memref<16x768xf32, #tpu.memory_space<vmem>>, %arg13: memref<16x768xf32, #tpu.memory_space<vmem>>) attributes {dimension_semantics = [#tpu.dimension_semantics<arbitrary>], iteration_bounds = array<i64: 12>, scalar_prefetch = 0 : i64, scratch_operands = 4 : i64, tpu.core_type = #tpu.core_type<tc>, window_params = [{pipeline_mode = #tpu.pipeline_mode<synchronous>, transform_indices = @transform_0, window_bounds = array<i64: 16, 768>}, {pipeline_mode = #tpu.pipeline_mode<synchronous>, transform_indices = @transform_1, window_bounds = array<i64: 16, 16>}, {transform_indices = @transform_2, window_bounds = array<i64: 1, 2, 768, 768>}, {transform_indices = @transform_3, window_bounds = array<i64: 1, 4, 768>}, {pipeline_mode = #tpu.pipeline_mode<synchronous>, transform_indices = @transform_4, window_bounds = array<i64: 768, 256>}, {pipeline_mode = #tpu.pipeline_mode<synchronous>, transform_indices = @transform_5, window_bounds = array<i64: 1, 256>}, {pipeline_mode = #tpu.pipeline_mode<synchronous>, transform_indices = @transform_6, window_bounds = array<i64: 256, 128>}, {pipeline_mode = #tpu.pipeline_mode<synchronous>, transform_indices = @transform_7, window_bounds = array<i64: 1, 128>}, {pipeline_mode = #tpu.pipeline_mode<synchronous>, transform_indices = @transform_8, window_bounds = array<i64: 16, 128>}]} {
    %c6_i32 = arith.constant 6 : i32
    %c0_i32 = arith.constant 0 : i32
    %0 = arith.cmpi eq, %c6_i32, %c0_i32 : i32
    %c1_i32 = arith.constant 1 : i32
    %1 = arith.select %0, %c1_i32, %c6_i32 : i32
    %2 = arith.remsi %arg0, %1 : i32
    %c0_i32_0 = arith.constant 0 : i32
    %3 = arith.cmpi ne, %2, %c0_i32_0 : i32
    %c0_i32_1 = arith.constant 0 : i32
    %4 = arith.cmpi slt, %2, %c0_i32_1 : i32
    %c0_i32_2 = arith.constant 0 : i32
    %5 = arith.cmpi slt, %1, %c0_i32_2 : i32
    %6 = arith.xori %4, %5 : i1
    %7 = arith.andi %6, %3 : i1
    %8 = arith.addi %2, %1 : i32
    %9 = arith.select %7, %8, %2 : i32
    %c0 = arith.constant 0 : index
    %c0_3 = arith.constant 0 : index
    %c0_4 = arith.constant 0 : index
    %10 = vector.load %arg4[%c0, %c0_3, %c0_4] : memref<1x4x768xf32, #tpu.memory_space<vmem>>, vector<1x4x768xf32>
    %11 = vector.shape_cast %10 : vector<1x4x768xf32> to vector<4x768xf32>
    %c0_i32_5 = arith.constant 0 : i32
    %12 = arith.cmpi eq, %arg0, %c0_i32_5 : i32
    %13 = arith.extui %12 : i1 to i32
    %c0_i32_6 = arith.constant 0 : i32
    %14 = arith.cmpi ne, %13, %c0_i32_6 : i32
    scf.if %14 {
      %c0_13 = arith.constant 0 : index
      %c0_14 = arith.constant 0 : index
      %27 = vector.load %arg1[%c0_13, %c0_14] : memref<16x768xf32, #tpu.memory_space<vmem>>, vector<16x768xf32>
      %28 = vector.extract_strided_slice %11 {offsets = [2, 0], sizes = [1, 768], strides = [1, 1]} : vector<4x768xf32> to vector<1x768xf32>
      %29 = vector.extract_strided_slice %11 {offsets = [3, 0], sizes = [1, 768], strides = [1, 1]} : vector<4x768xf32> to vector<1x768xf32>
      %cst = arith.constant dense<0.000000e+00> : vector<16xf32>
      %30 = vector.multi_reduction <add>, %27, %cst [1] : vector<16x768xf32> to vector<16xf32>
      %31 = vector.shape_cast %30 : vector<16xf32> to vector<16x1xf32>
      %cst_15 = arith.constant 7.680000e+02 : f32
      %32 = vector.broadcast %cst_15 : f32 to vector<16x1xf32>
      %33 = arith.divf %31, %32 : vector<16x1xf32>
      %34 = vector.broadcast %33 : vector<16x1xf32> to vector<16x768xf32>
      %35 = arith.subf %27, %34 : vector<16x768xf32>
      %36 = arith.mulf %35, %35 : vector<16x768xf32>
      %cst_16 = arith.constant dense<0.000000e+00> : vector<16xf32>
      %37 = vector.multi_reduction <add>, %36, %cst_16 [1] : vector<16x768xf32> to vector<16xf32>
      %38 = vector.shape_cast %37 : vector<16xf32> to vector<16x1xf32>
      %cst_17 = arith.constant 7.680000e+02 : f32
      %39 = vector.broadcast %cst_17 : f32 to vector<16x1xf32>
      %40 = arith.divf %38, %39 : vector<16x1xf32>
      %cst_18 = arith.constant 9.99999996E-13 : f32
      %41 = vector.broadcast %cst_18 : f32 to vector<16x1xf32>
      %42 = arith.addf %40, %41 : vector<16x1xf32>
      %43 = math.rsqrt %42 : vector<16x1xf32>
      %44 = vector.broadcast %43 : vector<16x1xf32> to vector<16x768xf32>
      %45 = arith.mulf %35, %44 : vector<16x768xf32>
      %46 = vector.broadcast %28 : vector<1x768xf32> to vector<16x768xf32>
      %47 = arith.mulf %45, %46 : vector<16x768xf32>
      %48 = vector.broadcast %29 : vector<1x768xf32> to vector<16x768xf32>
      %49 = arith.addf %47, %48 : vector<16x768xf32>
      %c0_19 = arith.constant 0 : index
      %c0_20 = arith.constant 0 : index
      %50 = vector.load %arg10[%c0_19, %c0_20] : memref<16x768xf32, #tpu.memory_space<vmem>>, vector<16x768xf32>
      tpu.vector_store %arg10[%c0_19, %c0_20], %49 {strides = array<i32>} : memref<16x768xf32, #tpu.memory_space<vmem>>, vector<16x768xf32>,
    } else {
    }
    %c0_i32_7 = arith.constant 0 : i32
    %15 = arith.cmpi eq, %9, %c0_i32_7 : i32
    %16 = arith.extui %15 : i1 to i32
    %c0_i32_8 = arith.constant 0 : i32
    %17 = arith.cmpi ne, %16, %c0_i32_8 : i32
    scf.if %17 {
      %c0_13 = arith.constant 0 : index
      %c0_14 = arith.constant 0 : index
      %27 = vector.load %arg10[%c0_13, %c0_14] : memref<16x768xf32, #tpu.memory_space<vmem>>, vector<16x768xf32>
      %28 = arith.truncf %27 : vector<16x768xf32> to vector<16x768xbf16>
      %c0_15 = arith.constant 0 : index
      %c0_16 = arith.constant 0 : index
      %c0_17 = arith.constant 0 : index
      %c0_18 = arith.constant 0 : index
      %29 = vector.load %arg3[%c0_15, %c0_16, %c0_17, %c0_18] : memref<1x2x768x768xbf16, #tpu.memory_space<vmem>>, vector<1x1x768x768xbf16>
      %30 = vector.shape_cast %29 : vector<1x1x768x768xbf16> to vector<768x768xbf16>
      %cst = arith.constant dense<0.000000e+00> : vector<16x768xf32>
      %31 = tpu.matmul %28, %30, %cst {dimension_numbers = #tpu.dot_dimension_numbers<[1], [0], [0], [1], [0, 0, 1, 1], [], []>} : vector<16x768xbf16>, vector<768x768xbf16>, vector<16x768xf32> -> vector<16x768xf32>
      %32 = vector.extract_strided_slice %11 {offsets = [0, 0], sizes = [1, 768], strides = [1, 1]} : vector<4x768xf32> to vector<1x768xf32>
      %33 = vector.broadcast %32 : vector<1x768xf32> to vector<16x768xf32>
      %34 = arith.addf %31, %33 : vector<16x768xf32>
      %c0_19 = arith.constant 0 : index
      %c0_20 = arith.constant 0 : index
      %35 = vector.load %arg11[%c0_19, %c0_20] : memref<16x2304xf32, #tpu.memory_space<vmem>>, vector<16x768xf32>
      tpu.vector_store %arg11[%c0_19, %c0_20], %34 {strides = array<i32>} : memref<16x2304xf32, #tpu.memory_space<vmem>>, vector<16x768xf32>,
      %c0_21 = arith.constant 0 : index
      %c1 = arith.constant 1 : index
      %c0_22 = arith.constant 0 : index
      %c0_23 = arith.constant 0 : index
      %36 = vector.load %arg3[%c0_21, %c1, %c0_22, %c0_23] : memref<1x2x768x768xbf16, #tpu.memory_space<vmem>>, vector<1x1x768x768xbf16>
      %37 = vector.shape_cast %36 : vector<1x1x768x768xbf16> to vector<768x768xbf16>
      %cst_24 = arith.constant dense<0.000000e+00> : vector<16x768xf32>
      %38 = tpu.matmul %28, %37, %cst_24 {dimension_numbers = #tpu.dot_dimension_numbers<[1], [0], [0], [1], [0, 0, 1, 1], [], []>} : vector<16x768xbf16>, vector<768x768xbf16>, vector<16x768xf32> -> vector<16x768xf32>
      %39 = vector.extract_strided_slice %11 {offsets = [1, 0], sizes = [1, 768], strides = [1, 1]} : vector<4x768xf32> to vector<1x768xf32>
      %40 = vector.broadcast %39 : vector<1x768xf32> to vector<16x768xf32>
      %41 = arith.addf %38, %40 : vector<16x768xf32>
      %c0_25 = arith.constant 0 : index
      %c768 = arith.constant 768 : index
      %42 = vector.load %arg11[%c0_25, %c768] : memref<16x2304xf32, #tpu.memory_space<vmem>>, vector<16x768xf32>
      tpu.vector_store %arg11[%c0_25, %c768], %41 {strides = array<i32>} : memref<16x2304xf32, #tpu.memory_space<vmem>>, vector<16x768xf32>,
    } else {
    }
    %c1_i32_9 = arith.constant 1 : i32
    %18 = arith.cmpi eq, %9, %c1_i32_9 : i32
    %19 = arith.extui %18 : i1 to i32
    %c0_i32_10 = arith.constant 0 : i32
    %20 = arith.cmpi ne, %19, %c0_i32_10 : i32
    scf.if %20 {
      %c0_13 = arith.constant 0 : index
      %c0_14 = arith.constant 0 : index
      %27 = vector.load %arg10[%c0_13, %c0_14] : memref<16x768xf32, #tpu.memory_space<vmem>>, vector<16x768xf32>
      %28 = arith.truncf %27 : vector<16x768xf32> to vector<16x768xbf16>
      %c0_15 = arith.constant 0 : index
      %c0_16 = arith.constant 0 : index
      %c0_17 = arith.constant 0 : index
      %c0_18 = arith.constant 0 : index
      %29 = vector.load %arg3[%c0_15, %c0_16, %c0_17, %c0_18] : memref<1x2x768x768xbf16, #tpu.memory_space<vmem>>, vector<1x1x768x768xbf16>
      %30 = vector.shape_cast %29 : vector<1x1x768x768xbf16> to vector<768x768xbf16>
      %cst = arith.constant dense<0.000000e+00> : vector<16x768xf32>
      %31 = tpu.matmul %28, %30, %cst {dimension_numbers = #tpu.dot_dimension_numbers<[1], [0], [0], [1], [0, 0, 1, 1], [], []>} : vector<16x768xbf16>, vector<768x768xbf16>, vector<16x768xf32> -> vector<16x768xf32>
      %32 = vector.extract_strided_slice %11 {offsets = [0, 0], sizes = [1, 768], strides = [1, 1]} : vector<4x768xf32> to vector<1x768xf32>
      %33 = vector.broadcast %32 : vector<1x768xf32> to vector<16x768xf32>
      %34 = arith.addf %31, %33 : vector<16x768xf32>
      %c0_19 = arith.constant 0 : index
      %c1536 = arith.constant 1536 : index
      %35 = vector.load %arg11[%c0_19, %c1536] : memref<16x2304xf32, #tpu.memory_space<vmem>>, vector<16x768xf32>
      tpu.vector_store %arg11[%c0_19, %c1536], %34 {strides = array<i32>} : memref<16x2304xf32, #tpu.memory_space<vmem>>, vector<16x768xf32>,
      %c0_20 = arith.constant 0 : index
      %c0_21 = arith.constant 0 : index
      %36 = vector.load %arg2[%c0_20, %c0_21] : memref<16x16xf32, #tpu.memory_space<vmem>>, vector<16x16xf32>
      %c0_22 = arith.constant 0 : index
      %c0_23 = arith.constant 0 : index
      %37 = vector.load %arg11[%c0_22, %c0_23] : memref<16x2304xf32, #tpu.memory_space<vmem>>, vector<16x64xf32>
      %c0_24 = arith.constant 0 : index
      %c768 = arith.constant 768 : index
      %38 = vector.load %arg11[%c0_24, %c768] : memref<16x2304xf32, #tpu.memory_space<vmem>>, vector<16x64xf32>
      %c0_25 = arith.constant 0 : index
      %c1536_26 = arith.constant 1536 : index
      %39 = vector.load %arg11[%c0_25, %c1536_26] : memref<16x2304xf32, #tpu.memory_space<vmem>>, vector<16x64xf32>
      %cst_27 = arith.constant dense<0.000000e+00> : vector<16x16xf32>
      %40 = tpu.matmul %37, %38, %cst_27 {dimension_numbers = #tpu.dot_dimension_numbers<[1], [1], [0], [0], [0, 0, 1, 0], [], []>} : vector<16x64xf32>, vector<16x64xf32>, vector<16x16xf32> -> vector<16x16xf32>
      %cst_28 = arith.constant 1.250000e-01 : f32
      %41 = vector.broadcast %cst_28 : f32 to vector<16x16xf32>
      %42 = arith.mulf %40, %41 : vector<16x16xf32>
      %43 = arith.addf %42, %36 : vector<16x16xf32>
      %cst_29 = arith.constant dense<0xFF800000> : vector<16xf32>
      %44 = vector.multi_reduction <maximumf>, %43, %cst_29 [1] : vector<16x16xf32> to vector<16xf32>
      %45 = vector.shape_cast %44 : vector<16xf32> to vector<16x1xf32>
      %46 = vector.broadcast %45 : vector<16x1xf32> to vector<16x16xf32>
      %47 = arith.subf %43, %46 : vector<16x16xf32>
      %48 = math.exp %47 : vector<16x16xf32>
      %cst_30 = arith.constant dense<0.000000e+00> : vector<16xf32>
      %49 = vector.multi_reduction <add>, %48, %cst_30 [1] : vector<16x16xf32> to vector<16xf32>
      %50 = vector.shape_cast %49 : vector<16xf32> to vector<16x1xf32>
      %51 = vector.broadcast %50 : vector<16x1xf32> to vector<16x16xf32>
      %52 = arith.divf %48, %51 : vector<16x16xf32>
      %cst_31 = arith.constant dense<0.000000e+00> : vector<16x64xf32>
      %53 = tpu.matmul %52, %39, %cst_31 {dimension_numbers = #tpu.dot_dimension_numbers<[1], [0], [0], [1], [0, 0, 1, 1], [], []>} : vector<16x16xf32>, vector<16x64xf32>, vector<16x64xf32> -> vector<16x64xf32>
      %c0_32 = arith.constant 0 : index
      %c0_33 = arith.constant 0 : index
      %54 = vector.load %arg12[%c0_32, %c0_33] : memref<16x768xf32, #tpu.memory_space<vmem>>, vector<16x64xf32>
      tpu.vector_store %arg12[%c0_32, %c0_33], %53 {strides = array<i32>} : memref<16x768xf32, #tpu.memory_space<vmem>>, vector<16x64xf32>,
      %c0_34 = arith.constant 0 : index
      %c64 = arith.constant 64 : index
      %55 = vector.load %arg11[%c0_34, %c64] : memref<16x2304xf32, #tpu.memory_space<vmem>>, vector<16x64xf32>
      %c0_35 = arith.constant 0 : index
      %c832 = arith.constant 832 : index
      %56 = vector.load %arg11[%c0_35, %c832] : memref<16x2304xf32, #tpu.memory_space<vmem>>, vector<16x64xf32>
      %c0_36 = arith.constant 0 : index
      %c1600 = arith.constant 1600 : index
      %57 = vector.load %arg11[%c0_36, %c1600] : memref<16x2304xf32, #tpu.memory_space<vmem>>, vector<16x64xf32>
      %cst_37 = arith.constant dense<0.000000e+00> : vector<16x16xf32>
      %58 = tpu.matmul %55, %56, %cst_37 {dimension_numbers = #tpu.dot_dimension_numbers<[1], [1], [0], [0], [0, 0, 1, 0], [], []>} : vector<16x64xf32>, vector<16x64xf32>, vector<16x16xf32> -> vector<16x16xf32>
      %cst_38 = arith.constant 1.250000e-01 : f32
      %59 = vector.broadcast %cst_38 : f32 to vector<16x16xf32>
      %60 = arith.mulf %58, %59 : vector<16x16xf32>
      %61 = arith.addf %60, %36 : vector<16x16xf32>
      %cst_39 = arith.constant dense<0xFF800000> : vector<16xf32>
      %62 = vector.multi_reduction <maximumf>, %61, %cst_39 [1] : vector<16x16xf32> to vector<16xf32>
      %63 = vector.shape_cast %62 : vector<16xf32> to vector<16x1xf32>
      %64 = vector.broadcast %63 : vector<16x1xf32> to vector<16x16xf32>
      %65 = arith.subf %61, %64 : vector<16x16xf32>
      %66 = math.exp %65 : vector<16x16xf32>
      %cst_40 = arith.constant dense<0.000000e+00> : vector<16xf32>
      %67 = vector.multi_reduction <add>, %66, %cst_40 [1] : vector<16x16xf32> to vector<16xf32>
      %68 = vector.shape_cast %67 : vector<16xf32> to vector<16x1xf32>
      %69 = vector.broadcast %68 : vector<16x1xf32> to vector<16x16xf32>
      %70 = arith.divf %66, %69 : vector<16x16xf32>
      %cst_41 = arith.constant dense<0.000000e+00> : vector<16x64xf32>
      %71 = tpu.matmul %70, %57, %cst_41 {dimension_numbers = #tpu.dot_dimension_numbers<[1], [0], [0], [1], [0, 0, 1, 1], [], []>} : vector<16x16xf32>, vector<16x64xf32>, vector<16x64xf32> -> vector<16x64xf32>
      %c0_42 = arith.constant 0 : index
      %c64_43 = arith.constant 64 : index
      %72 = vector.load %arg12[%c0_42, %c64_43] : memref<16x768xf32, #tpu.memory_space<vmem>>, vector<16x64xf32>
      tpu.vector_store %arg12[%c0_42, %c64_43], %71 {strides = array<i32>} : memref<16x768xf32, #tpu.memory_space<vmem>>, vector<16x64xf32>,
      %c0_44 = arith.constant 0 : index
      %c128 = arith.constant 128 : index
      %73 = vector.load %arg11[%c0_44, %c128] : memref<16x2304xf32, #tpu.memory_space<vmem>>, vector<16x64xf32>
      %c0_45 = arith.constant 0 : index
      %c896 = arith.constant 896 : index
      %74 = vector.load %arg11[%c0_45, %c896] : memref<16x2304xf32, #tpu.memory_space<vmem>>, vector<16x64xf32>
      %c0_46 = arith.constant 0 : index
      %c1664 = arith.constant 1664 : index
      %75 = vector.load %arg11[%c0_46, %c1664] : memref<16x2304xf32, #tpu.memory_space<vmem>>, vector<16x64xf32>
      %cst_47 = arith.constant dense<0.000000e+00> : vector<16x16xf32>
      %76 = tpu.matmul %73, %74, %cst_47 {dimension_numbers = #tpu.dot_dimension_numbers<[1], [1], [0], [0], [0, 0, 1, 0], [], []>} : vector<16x64xf32>, vector<16x64xf32>, vector<16x16xf32> -> vector<16x16xf32>
      %cst_48 = arith.constant 1.250000e-01 : f32
      %77 = vector.broadcast %cst_48 : f32 to vector<16x16xf32>
      %78 = arith.mulf %76, %77 : vector<16x16xf32>
      %79 = arith.addf %78, %36 : vector<16x16xf32>
      %cst_49 = arith.constant dense<0xFF800000> : vector<16xf32>
      %80 = vector.multi_reduction <maximumf>, %79, %cst_49 [1] : vector<16x16xf32> to vector<16xf32>
      %81 = vector.shape_cast %80 : vector<16xf32> to vector<16x1xf32>
      %82 = vector.broadcast %81 : vector<16x1xf32> to vector<16x16xf32>
      %83 = arith.subf %79, %82 : vector<16x16xf32>
      %84 = math.exp %83 : vector<16x16xf32>
      %cst_50 = arith.constant dense<0.000000e+00> : vector<16xf32>
      %85 = vector.multi_reduction <add>, %84, %cst_50 [1] : vector<16x16xf32> to vector<16xf32>
      %86 = vector.shape_cast %85 : vector<16xf32> to vector<16x1xf32>
      %87 = vector.broadcast %86 : vector<16x1xf32> to vector<16x16xf32>
      %88 = arith.divf %84, %87 : vector<16x16xf32>
      %cst_51 = arith.constant dense<0.000000e+00> : vector<16x64xf32>
      %89 = tpu.matmul %88, %75, %cst_51 {dimension_numbers = #tpu.dot_dimension_numbers<[1], [0], [0], [1], [0, 0, 1, 1], [], []>} : vector<16x16xf32>, vector<16x64xf32>, vector<16x64xf32> -> vector<16x64xf32>
      %c0_52 = arith.constant 0 : index
      %c128_53 = arith.constant 128 : index
      %90 = vector.load %arg12[%c0_52, %c128_53] : memref<16x768xf32, #tpu.memory_space<vmem>>, vector<16x64xf32>
      tpu.vector_store %arg12[%c0_52, %c128_53], %89 {strides = array<i32>} : memref<16x768xf32, #tpu.memory_space<vmem>>, vector<16x64xf32>,
      %c0_54 = arith.constant 0 : index
      %c192 = arith.constant 192 : index
      %91 = vector.load %arg11[%c0_54, %c192] : memref<16x2304xf32, #tpu.memory_space<vmem>>, vector<16x64xf32>
      %c0_55 = arith.constant 0 : index
      %c960 = arith.constant 960 : index
      %92 = vector.load %arg11[%c0_55, %c960] : memref<16x2304xf32, #tpu.memory_space<vmem>>, vector<16x64xf32>
      %c0_56 = arith.constant 0 : index
      %c1728 = arith.constant 1728 : index
      %93 = vector.load %arg11[%c0_56, %c1728] : memref<16x2304xf32, #tpu.memory_space<vmem>>, vector<16x64xf32>
      %cst_57 = arith.constant dense<0.000000e+00> : vector<16x16xf32>
      %94 = tpu.matmul %91, %92, %cst_57 {dimension_numbers = #tpu.dot_dimension_numbers<[1], [1], [0], [0], [0, 0, 1, 0], [], []>} : vector<16x64xf32>, vector<16x64xf32>, vector<16x16xf32> -> vector<16x16xf32>
      %cst_58 = arith.constant 1.250000e-01 : f32
      %95 = vector.broadcast %cst_58 : f32 to vector<16x16xf32>
      %96 = arith.mulf %94, %95 : vector<16x16xf32>
      %97 = arith.addf %96, %36 : vector<16x16xf32>
      %cst_59 = arith.constant dense<0xFF800000> : vector<16xf32>
      %98 = vector.multi_reduction <maximumf>, %97, %cst_59 [1] : vector<16x16xf32> to vector<16xf32>
      %99 = vector.shape_cast %98 : vector<16xf32> to vector<16x1xf32>
      %100 = vector.broadcast %99 : vector<16x1xf32> to vector<16x16xf32>
      %101 = arith.subf %97, %100 : vector<16x16xf32>
      %102 = math.exp %101 : vector<16x16xf32>
      %cst_60 = arith.constant dense<0.000000e+00> : vector<16xf32>
      %103 = vector.multi_reduction <add>, %102, %cst_60 [1] : vector<16x16xf32> to vector<16xf32>
      %104 = vector.shape_cast %103 : vector<16xf32> to vector<16x1xf32>
      %105 = vector.broadcast %104 : vector<16x1xf32> to vector<16x16xf32>
      %106 = arith.divf %102, %105 : vector<16x16xf32>
      %cst_61 = arith.constant dense<0.000000e+00> : vector<16x64xf32>
      %107 = tpu.matmul %106, %93, %cst_61 {dimension_numbers = #tpu.dot_dimension_numbers<[1], [0], [0], [1], [0, 0, 1, 1], [], []>} : vector<16x16xf32>, vector<16x64xf32>, vector<16x64xf32> -> vector<16x64xf32>
      %c0_62 = arith.constant 0 : index
      %c192_63 = arith.constant 192 : index
      %108 = vector.load %arg12[%c0_62, %c192_63] : memref<16x768xf32, #tpu.memory_space<vmem>>, vector<16x64xf32>
      tpu.vector_store %arg12[%c0_62, %c192_63], %107 {strides = array<i32>} : memref<16x768xf32, #tpu.memory_space<vmem>>, vector<16x64xf32>,
      %c0_64 = arith.constant 0 : index
      %c256 = arith.constant 256 : index
      %109 = vector.load %arg11[%c0_64, %c256] : memref<16x2304xf32, #tpu.memory_space<vmem>>, vector<16x64xf32>
      %c0_65 = arith.constant 0 : index
      %c1024 = arith.constant 1024 : index
      %110 = vector.load %arg11[%c0_65, %c1024] : memref<16x2304xf32, #tpu.memory_space<vmem>>, vector<16x64xf32>
      %c0_66 = arith.constant 0 : index
      %c1792 = arith.constant 1792 : index
      %111 = vector.load %arg11[%c0_66, %c1792] : memref<16x2304xf32, #tpu.memory_space<vmem>>, vector<16x64xf32>
      %cst_67 = arith.constant dense<0.000000e+00> : vector<16x16xf32>
      %112 = tpu.matmul %109, %110, %cst_67 {dimension_numbers = #tpu.dot_dimension_numbers<[1], [1], [0], [0], [0, 0, 1, 0], [], []>} : vector<16x64xf32>, vector<16x64xf32>, vector<16x16xf32> -> vector<16x16xf32>
      %cst_68 = arith.constant 1.250000e-01 : f32
      %113 = vector.broadcast %cst_68 : f32 to vector<16x16xf32>
      %114 = arith.mulf %112, %113 : vector<16x16xf32>
      %115 = arith.addf %114, %36 : vector<16x16xf32>
      %cst_69 = arith.constant dense<0xFF800000> : vector<16xf32>
      %116 = vector.multi_reduction <maximumf>, %115, %cst_69 [1] : vector<16x16xf32> to vector<16xf32>
      %117 = vector.shape_cast %116 : vector<16xf32> to vector<16x1xf32>
      %118 = vector.broadcast %117 : vector<16x1xf32> to vector<16x16xf32>
      %119 = arith.subf %115, %118 : vector<16x16xf32>
      %120 = math.exp %119 : vector<16x16xf32>
      %cst_70 = arith.constant dense<0.000000e+00> : vector<16xf32>
      %121 = vector.multi_reduction <add>, %120, %cst_70 [1] : vector<16x16xf32> to vector<16xf32>
      %122 = vector.shape_cast %121 : vector<16xf32> to vector<16x1xf32>
      %123 = vector.broadcast %122 : vector<16x1xf32> to vector<16x16xf32>
      %124 = arith.divf %120, %123 : vector<16x16xf32>
      %cst_71 = arith.constant dense<0.000000e+00> : vector<16x64xf32>
      %125 = tpu.matmul %124, %111, %cst_71 {dimension_numbers = #tpu.dot_dimension_numbers<[1], [0], [0], [1], [0, 0, 1, 1], [], []>} : vector<16x16xf32>, vector<16x64xf32>, vector<16x64xf32> -> vector<16x64xf32>
      %c0_72 = arith.constant 0 : index
      %c256_73 = arith.constant 256 : index
      %126 = vector.load %arg12[%c0_72, %c256_73] : memref<16x768xf32, #tpu.memory_space<vmem>>, vector<16x64xf32>
      tpu.vector_store %arg12[%c0_72, %c256_73], %125 {strides = array<i32>} : memref<16x768xf32, #tpu.memory_space<vmem>>, vector<16x64xf32>,
      %c0_74 = arith.constant 0 : index
      %c320 = arith.constant 320 : index
      %127 = vector.load %arg11[%c0_74, %c320] : memref<16x2304xf32, #tpu.memory_space<vmem>>, vector<16x64xf32>
      %c0_75 = arith.constant 0 : index
      %c1088 = arith.constant 1088 : index
      %128 = vector.load %arg11[%c0_75, %c1088] : memref<16x2304xf32, #tpu.memory_space<vmem>>, vector<16x64xf32>
      %c0_76 = arith.constant 0 : index
      %c1856 = arith.constant 1856 : index
      %129 = vector.load %arg11[%c0_76, %c1856] : memref<16x2304xf32, #tpu.memory_space<vmem>>, vector<16x64xf32>
      %cst_77 = arith.constant dense<0.000000e+00> : vector<16x16xf32>
      %130 = tpu.matmul %127, %128, %cst_77 {dimension_numbers = #tpu.dot_dimension_numbers<[1], [1], [0], [0], [0, 0, 1, 0], [], []>} : vector<16x64xf32>, vector<16x64xf32>, vector<16x16xf32> -> vector<16x16xf32>
      %cst_78 = arith.constant 1.250000e-01 : f32
      %131 = vector.broadcast %cst_78 : f32 to vector<16x16xf32>
      %132 = arith.mulf %130, %131 : vector<16x16xf32>
      %133 = arith.addf %132, %36 : vector<16x16xf32>
      %cst_79 = arith.constant dense<0xFF800000> : vector<16xf32>
      %134 = vector.multi_reduction <maximumf>, %133, %cst_79 [1] : vector<16x16xf32> to vector<16xf32>
      %135 = vector.shape_cast %134 : vector<16xf32> to vector<16x1xf32>
      %136 = vector.broadcast %135 : vector<16x1xf32> to vector<16x16xf32>
      %137 = arith.subf %133, %136 : vector<16x16xf32>
      %138 = math.exp %137 : vector<16x16xf32>
      %cst_80 = arith.constant dense<0.000000e+00> : vector<16xf32>
      %139 = vector.multi_reduction <add>, %138, %cst_80 [1] : vector<16x16xf32> to vector<16xf32>
      %140 = vector.shape_cast %139 : vector<16xf32> to vector<16x1xf32>
      %141 = vector.broadcast %140 : vector<16x1xf32> to vector<16x16xf32>
      %142 = arith.divf %138, %141 : vector<16x16xf32>
      %cst_81 = arith.constant dense<0.000000e+00> : vector<16x64xf32>
      %143 = tpu.matmul %142, %129, %cst_81 {dimension_numbers = #tpu.dot_dimension_numbers<[1], [0], [0], [1], [0, 0, 1, 1], [], []>} : vector<16x16xf32>, vector<16x64xf32>, vector<16x64xf32> -> vector<16x64xf32>
      %c0_82 = arith.constant 0 : index
      %c320_83 = arith.constant 320 : index
      %144 = vector.load %arg12[%c0_82, %c320_83] : memref<16x768xf32, #tpu.memory_space<vmem>>, vector<16x64xf32>
      tpu.vector_store %arg12[%c0_82, %c320_83], %143 {strides = array<i32>} : memref<16x768xf32, #tpu.memory_space<vmem>>, vector<16x64xf32>,
      %c0_84 = arith.constant 0 : index
      %c384 = arith.constant 384 : index
      %145 = vector.load %arg11[%c0_84, %c384] : memref<16x2304xf32, #tpu.memory_space<vmem>>, vector<16x64xf32>
      %c0_85 = arith.constant 0 : index
      %c1152 = arith.constant 1152 : index
      %146 = vector.load %arg11[%c0_85, %c1152] : memref<16x2304xf32, #tpu.memory_space<vmem>>, vector<16x64xf32>
      %c0_86 = arith.constant 0 : index
      %c1920 = arith.constant 1920 : index
      %147 = vector.load %arg11[%c0_86, %c1920] : memref<16x2304xf32, #tpu.memory_space<vmem>>, vector<16x64xf32>
      %cst_87 = arith.constant dense<0.000000e+00> : vector<16x16xf32>
      %148 = tpu.matmul %145, %146, %cst_87 {dimension_numbers = #tpu.dot_dimension_numbers<[1], [1], [0], [0], [0, 0, 1, 0], [], []>} : vector<16x64xf32>, vector<16x64xf32>, vector<16x16xf32> -> vector<16x16xf32>
      %cst_88 = arith.constant 1.250000e-01 : f32
      %149 = vector.broadcast %cst_88 : f32 to vector<16x16xf32>
      %150 = arith.mulf %148, %149 : vector<16x16xf32>
      %151 = arith.addf %150, %36 : vector<16x16xf32>
      %cst_89 = arith.constant dense<0xFF800000> : vector<16xf32>
      %152 = vector.multi_reduction <maximumf>, %151, %cst_89 [1] : vector<16x16xf32> to vector<16xf32>
      %153 = vector.shape_cast %152 : vector<16xf32> to vector<16x1xf32>
      %154 = vector.broadcast %153 : vector<16x1xf32> to vector<16x16xf32>
      %155 = arith.subf %151, %154 : vector<16x16xf32>
      %156 = math.exp %155 : vector<16x16xf32>
      %cst_90 = arith.constant dense<0.000000e+00> : vector<16xf32>
      %157 = vector.multi_reduction <add>, %156, %cst_90 [1] : vector<16x16xf32> to vector<16xf32>
      %158 = vector.shape_cast %157 : vector<16xf32> to vector<16x1xf32>
      %159 = vector.broadcast %158 : vector<16x1xf32> to vector<16x16xf32>
      %160 = arith.divf %156, %159 : vector<16x16xf32>
      %cst_91 = arith.constant dense<0.000000e+00> : vector<16x64xf32>
      %161 = tpu.matmul %160, %147, %cst_91 {dimension_numbers = #tpu.dot_dimension_numbers<[1], [0], [0], [1], [0, 0, 1, 1], [], []>} : vector<16x16xf32>, vector<16x64xf32>, vector<16x64xf32> -> vector<16x64xf32>
      %c0_92 = arith.constant 0 : index
      %c384_93 = arith.constant 384 : index
      %162 = vector.load %arg12[%c0_92, %c384_93] : memref<16x768xf32, #tpu.memory_space<vmem>>, vector<16x64xf32>
      tpu.vector_store %arg12[%c0_92, %c384_93], %161 {strides = array<i32>} : memref<16x768xf32, #tpu.memory_space<vmem>>, vector<16x64xf32>,
      %c0_94 = arith.constant 0 : index
      %c448 = arith.constant 448 : index
      %163 = vector.load %arg11[%c0_94, %c448] : memref<16x2304xf32, #tpu.memory_space<vmem>>, vector<16x64xf32>
      %c0_95 = arith.constant 0 : index
      %c1216 = arith.constant 1216 : index
      %164 = vector.load %arg11[%c0_95, %c1216] : memref<16x2304xf32, #tpu.memory_space<vmem>>, vector<16x64xf32>
      %c0_96 = arith.constant 0 : index
      %c1984 = arith.constant 1984 : index
      %165 = vector.load %arg11[%c0_96, %c1984] : memref<16x2304xf32, #tpu.memory_space<vmem>>, vector<16x64xf32>
      %cst_97 = arith.constant dense<0.000000e+00> : vector<16x16xf32>
      %166 = tpu.matmul %163, %164, %cst_97 {dimension_numbers = #tpu.dot_dimension_numbers<[1], [1], [0], [0], [0, 0, 1, 0], [], []>} : vector<16x64xf32>, vector<16x64xf32>, vector<16x16xf32> -> vector<16x16xf32>
      %cst_98 = arith.constant 1.250000e-01 : f32
      %167 = vector.broadcast %cst_98 : f32 to vector<16x16xf32>
      %168 = arith.mulf %166, %167 : vector<16x16xf32>
      %169 = arith.addf %168, %36 : vector<16x16xf32>
      %cst_99 = arith.constant dense<0xFF800000> : vector<16xf32>
      %170 = vector.multi_reduction <maximumf>, %169, %cst_99 [1] : vector<16x16xf32> to vector<16xf32>
      %171 = vector.shape_cast %170 : vector<16xf32> to vector<16x1xf32>
      %172 = vector.broadcast %171 : vector<16x1xf32> to vector<16x16xf32>
      %173 = arith.subf %169, %172 : vector<16x16xf32>
      %174 = math.exp %173 : vector<16x16xf32>
      %cst_100 = arith.constant dense<0.000000e+00> : vector<16xf32>
      %175 = vector.multi_reduction <add>, %174, %cst_100 [1] : vector<16x16xf32> to vector<16xf32>
      %176 = vector.shape_cast %175 : vector<16xf32> to vector<16x1xf32>
      %177 = vector.broadcast %176 : vector<16x1xf32> to vector<16x16xf32>
      %178 = arith.divf %174, %177 : vector<16x16xf32>
      %cst_101 = arith.constant dense<0.000000e+00> : vector<16x64xf32>
      %179 = tpu.matmul %178, %165, %cst_101 {dimension_numbers = #tpu.dot_dimension_numbers<[1], [0], [0], [1], [0, 0, 1, 1], [], []>} : vector<16x16xf32>, vector<16x64xf32>, vector<16x64xf32> -> vector<16x64xf32>
      %c0_102 = arith.constant 0 : index
      %c448_103 = arith.constant 448 : index
      %180 = vector.load %arg12[%c0_102, %c448_103] : memref<16x768xf32, #tpu.memory_space<vmem>>, vector<16x64xf32>
      tpu.vector_store %arg12[%c0_102, %c448_103], %179 {strides = array<i32>} : memref<16x768xf32, #tpu.memory_space<vmem>>, vector<16x64xf32>,
      %c0_104 = arith.constant 0 : index
      %c512 = arith.constant 512 : index
      %181 = vector.load %arg11[%c0_104, %c512] : memref<16x2304xf32, #tpu.memory_space<vmem>>, vector<16x64xf32>
      %c0_105 = arith.constant 0 : index
      %c1280 = arith.constant 1280 : index
      %182 = vector.load %arg11[%c0_105, %c1280] : memref<16x2304xf32, #tpu.memory_space<vmem>>, vector<16x64xf32>
      %c0_106 = arith.constant 0 : index
      %c2048 = arith.constant 2048 : index
      %183 = vector.load %arg11[%c0_106, %c2048] : memref<16x2304xf32, #tpu.memory_space<vmem>>, vector<16x64xf32>
      %cst_107 = arith.constant dense<0.000000e+00> : vector<16x16xf32>
      %184 = tpu.matmul %181, %182, %cst_107 {dimension_numbers = #tpu.dot_dimension_numbers<[1], [1], [0], [0], [0, 0, 1, 0], [], []>} : vector<16x64xf32>, vector<16x64xf32>, vector<16x16xf32> -> vector<16x16xf32>
      %cst_108 = arith.constant 1.250000e-01 : f32
      %185 = vector.broadcast %cst_108 : f32 to vector<16x16xf32>
      %186 = arith.mulf %184, %185 : vector<16x16xf32>
      %187 = arith.addf %186, %36 : vector<16x16xf32>
      %cst_109 = arith.constant dense<0xFF800000> : vector<16xf32>
      %188 = vector.multi_reduction <maximumf>, %187, %cst_109 [1] : vector<16x16xf32> to vector<16xf32>
      %189 = vector.shape_cast %188 : vector<16xf32> to vector<16x1xf32>
      %190 = vector.broadcast %189 : vector<16x1xf32> to vector<16x16xf32>
      %191 = arith.subf %187, %190 : vector<16x16xf32>
      %192 = math.exp %191 : vector<16x16xf32>
      %cst_110 = arith.constant dense<0.000000e+00> : vector<16xf32>
      %193 = vector.multi_reduction <add>, %192, %cst_110 [1] : vector<16x16xf32> to vector<16xf32>
      %194 = vector.shape_cast %193 : vector<16xf32> to vector<16x1xf32>
      %195 = vector.broadcast %194 : vector<16x1xf32> to vector<16x16xf32>
      %196 = arith.divf %192, %195 : vector<16x16xf32>
      %cst_111 = arith.constant dense<0.000000e+00> : vector<16x64xf32>
      %197 = tpu.matmul %196, %183, %cst_111 {dimension_numbers = #tpu.dot_dimension_numbers<[1], [0], [0], [1], [0, 0, 1, 1], [], []>} : vector<16x16xf32>, vector<16x64xf32>, vector<16x64xf32> -> vector<16x64xf32>
      %c0_112 = arith.constant 0 : index
      %c512_113 = arith.constant 512 : index
      %198 = vector.load %arg12[%c0_112, %c512_113] : memref<16x768xf32, #tpu.memory_space<vmem>>, vector<16x64xf32>
      tpu.vector_store %arg12[%c0_112, %c512_113], %197 {strides = array<i32>} : memref<16x768xf32, #tpu.memory_space<vmem>>, vector<16x64xf32>,
      %c0_114 = arith.constant 0 : index
      %c576 = arith.constant 576 : index
      %199 = vector.load %arg11[%c0_114, %c576] : memref<16x2304xf32, #tpu.memory_space<vmem>>, vector<16x64xf32>
      %c0_115 = arith.constant 0 : index
      %c1344 = arith.constant 1344 : index
      %200 = vector.load %arg11[%c0_115, %c1344] : memref<16x2304xf32, #tpu.memory_space<vmem>>, vector<16x64xf32>
      %c0_116 = arith.constant 0 : index
      %c2112 = arith.constant 2112 : index
      %201 = vector.load %arg11[%c0_116, %c2112] : memref<16x2304xf32, #tpu.memory_space<vmem>>, vector<16x64xf32>
      %cst_117 = arith.constant dense<0.000000e+00> : vector<16x16xf32>
      %202 = tpu.matmul %199, %200, %cst_117 {dimension_numbers = #tpu.dot_dimension_numbers<[1], [1], [0], [0], [0, 0, 1, 0], [], []>} : vector<16x64xf32>, vector<16x64xf32>, vector<16x16xf32> -> vector<16x16xf32>
      %cst_118 = arith.constant 1.250000e-01 : f32
      %203 = vector.broadcast %cst_118 : f32 to vector<16x16xf32>
      %204 = arith.mulf %202, %203 : vector<16x16xf32>
      %205 = arith.addf %204, %36 : vector<16x16xf32>
      %cst_119 = arith.constant dense<0xFF800000> : vector<16xf32>
      %206 = vector.multi_reduction <maximumf>, %205, %cst_119 [1] : vector<16x16xf32> to vector<16xf32>
      %207 = vector.shape_cast %206 : vector<16xf32> to vector<16x1xf32>
      %208 = vector.broadcast %207 : vector<16x1xf32> to vector<16x16xf32>
      %209 = arith.subf %205, %208 : vector<16x16xf32>
      %210 = math.exp %209 : vector<16x16xf32>
      %cst_120 = arith.constant dense<0.000000e+00> : vector<16xf32>
      %211 = vector.multi_reduction <add>, %210, %cst_120 [1] : vector<16x16xf32> to vector<16xf32>
      %212 = vector.shape_cast %211 : vector<16xf32> to vector<16x1xf32>
      %213 = vector.broadcast %212 : vector<16x1xf32> to vector<16x16xf32>
      %214 = arith.divf %210, %213 : vector<16x16xf32>
      %cst_121 = arith.constant dense<0.000000e+00> : vector<16x64xf32>
      %215 = tpu.matmul %214, %201, %cst_121 {dimension_numbers = #tpu.dot_dimension_numbers<[1], [0], [0], [1], [0, 0, 1, 1], [], []>} : vector<16x16xf32>, vector<16x64xf32>, vector<16x64xf32> -> vector<16x64xf32>
      %c0_122 = arith.constant 0 : index
      %c576_123 = arith.constant 576 : index
      %216 = vector.load %arg12[%c0_122, %c576_123] : memref<16x768xf32, #tpu.memory_space<vmem>>, vector<16x64xf32>
      tpu.vector_store %arg12[%c0_122, %c576_123], %215 {strides = array<i32>} : memref<16x768xf32, #tpu.memory_space<vmem>>, vector<16x64xf32>,
      %c0_124 = arith.constant 0 : index
      %c640 = arith.constant 640 : index
      %217 = vector.load %arg11[%c0_124, %c640] : memref<16x2304xf32, #tpu.memory_space<vmem>>, vector<16x64xf32>
      %c0_125 = arith.constant 0 : index
      %c1408 = arith.constant 1408 : index
      %218 = vector.load %arg11[%c0_125, %c1408] : memref<16x2304xf32, #tpu.memory_space<vmem>>, vector<16x64xf32>
      %c0_126 = arith.constant 0 : index
      %c2176 = arith.constant 2176 : index
      %219 = vector.load %arg11[%c0_126, %c2176] : memref<16x2304xf32, #tpu.memory_space<vmem>>, vector<16x64xf32>
      %cst_127 = arith.constant dense<0.000000e+00> : vector<16x16xf32>
      %220 = tpu.matmul %217, %218, %cst_127 {dimension_numbers = #tpu.dot_dimension_numbers<[1], [1], [0], [0], [0, 0, 1, 0], [], []>} : vector<16x64xf32>, vector<16x64xf32>, vector<16x16xf32> -> vector<16x16xf32>
      %cst_128 = arith.constant 1.250000e-01 : f32
      %221 = vector.broadcast %cst_128 : f32 to vector<16x16xf32>
      %222 = arith.mulf %220, %221 : vector<16x16xf32>
      %223 = arith.addf %222, %36 : vector<16x16xf32>
      %cst_129 = arith.constant dense<0xFF800000> : vector<16xf32>
      %224 = vector.multi_reduction <maximumf>, %223, %cst_129 [1] : vector<16x16xf32> to vector<16xf32>
      %225 = vector.shape_cast %224 : vector<16xf32> to vector<16x1xf32>
      %226 = vector.broadcast %225 : vector<16x1xf32> to vector<16x16xf32>
      %227 = arith.subf %223, %226 : vector<16x16xf32>
      %228 = math.exp %227 : vector<16x16xf32>
      %cst_130 = arith.constant dense<0.000000e+00> : vector<16xf32>
      %229 = vector.multi_reduction <add>, %228, %cst_130 [1] : vector<16x16xf32> to vector<16xf32>
      %230 = vector.shape_cast %229 : vector<16xf32> to vector<16x1xf32>
      %231 = vector.broadcast %230 : vector<16x1xf32> to vector<16x16xf32>
      %232 = arith.divf %228, %231 : vector<16x16xf32>
      %cst_131 = arith.constant dense<0.000000e+00> : vector<16x64xf32>
      %233 = tpu.matmul %232, %219, %cst_131 {dimension_numbers = #tpu.dot_dimension_numbers<[1], [0], [0], [1], [0, 0, 1, 1], [], []>} : vector<16x16xf32>, vector<16x64xf32>, vector<16x64xf32> -> vector<16x64xf32>
      %c0_132 = arith.constant 0 : index
      %c640_133 = arith.constant 640 : index
      %234 = vector.load %arg12[%c0_132, %c640_133] : memref<16x768xf32, #tpu.memory_space<vmem>>, vector<16x64xf32>
      tpu.vector_store %arg12[%c0_132, %c640_133], %233 {strides = array<i32>} : memref<16x768xf32, #tpu.memory_space<vmem>>, vector<16x64xf32>,
      %c0_134 = arith.constant 0 : index
      %c704 = arith.constant 704 : index
      %235 = vector.load %arg11[%c0_134, %c704] : memref<16x2304xf32, #tpu.memory_space<vmem>>, vector<16x64xf32>
      %c0_135 = arith.constant 0 : index
      %c1472 = arith.constant 1472 : index
      %236 = vector.load %arg11[%c0_135, %c1472] : memref<16x2304xf32, #tpu.memory_space<vmem>>, vector<16x64xf32>
      %c0_136 = arith.constant 0 : index
      %c2240 = arith.constant 2240 : index
      %237 = vector.load %arg11[%c0_136, %c2240] : memref<16x2304xf32, #tpu.memory_space<vmem>>, vector<16x64xf32>
      %cst_137 = arith.constant dense<0.000000e+00> : vector<16x16xf32>
      %238 = tpu.matmul %235, %236, %cst_137 {dimension_numbers = #tpu.dot_dimension_numbers<[1], [1], [0], [0], [0, 0, 1, 0], [], []>} : vector<16x64xf32>, vector<16x64xf32>, vector<16x16xf32> -> vector<16x16xf32>
      %cst_138 = arith.constant 1.250000e-01 : f32
      %239 = vector.broadcast %cst_138 : f32 to vector<16x16xf32>
      %240 = arith.mulf %238, %239 : vector<16x16xf32>
      %241 = arith.addf %240, %36 : vector<16x16xf32>
      %cst_139 = arith.constant dense<0xFF800000> : vector<16xf32>
      %242 = vector.multi_reduction <maximumf>, %241, %cst_139 [1] : vector<16x16xf32> to vector<16xf32>
      %243 = vector.shape_cast %242 : vector<16xf32> to vector<16x1xf32>
      %244 = vector.broadcast %243 : vector<16x1xf32> to vector<16x16xf32>
      %245 = arith.subf %241, %244 : vector<16x16xf32>
      %246 = math.exp %245 : vector<16x16xf32>
      %cst_140 = arith.constant dense<0.000000e+00> : vector<16xf32>
      %247 = vector.multi_reduction <add>, %246, %cst_140 [1] : vector<16x16xf32> to vector<16xf32>
      %248 = vector.shape_cast %247 : vector<16xf32> to vector<16x1xf32>
      %249 = vector.broadcast %248 : vector<16x1xf32> to vector<16x16xf32>
      %250 = arith.divf %246, %249 : vector<16x16xf32>
      %cst_141 = arith.constant dense<0.000000e+00> : vector<16x64xf32>
      %251 = tpu.matmul %250, %237, %cst_141 {dimension_numbers = #tpu.dot_dimension_numbers<[1], [0], [0], [1], [0, 0, 1, 1], [], []>} : vector<16x16xf32>, vector<16x64xf32>, vector<16x64xf32> -> vector<16x64xf32>
      %c0_142 = arith.constant 0 : index
      %c704_143 = arith.constant 704 : index
      %252 = vector.load %arg12[%c0_142, %c704_143] : memref<16x768xf32, #tpu.memory_space<vmem>>, vector<16x64xf32>
      tpu.vector_store %arg12[%c0_142, %c704_143], %251 {strides = array<i32>} : memref<16x768xf32, #tpu.memory_space<vmem>>, vector<16x64xf32>,
      %c0_144 = arith.constant 0 : index
      %c0_145 = arith.constant 0 : index
      %253 = vector.load %arg12[%c0_144, %c0_145] : memref<16x768xf32, #tpu.memory_space<vmem>>, vector<16x768xf32>
      %254 = arith.truncf %253 : vector<16x768xf32> to vector<16x768xbf16>
      %c0_146 = arith.constant 0 : index
      %c1 = arith.constant 1 : index
      %c0_147 = arith.constant 0 : index
      %c0_148 = arith.constant 0 : index
      %255 = vector.load %arg3[%c0_146, %c1, %c0_147, %c0_148] : memref<1x2x768x768xbf16, #tpu.memory_space<vmem>>, vector<1x1x768x768xbf16>
      %256 = vector.shape_cast %255 : vector<1x1x768x768xbf16> to vector<768x768xbf16>
      %cst_149 = arith.constant dense<0.000000e+00> : vector<16x768xf32>
      %257 = tpu.matmul %254, %256, %cst_149 {dimension_numbers = #tpu.dot_dimension_numbers<[1], [0], [0], [1], [0, 0, 1, 1], [], []>} : vector<16x768xbf16>, vector<768x768xbf16>, vector<16x768xf32> -> vector<16x768xf32>
      %258 = vector.extract_strided_slice %11 {offsets = [1, 0], sizes = [1, 768], strides = [1, 1]} : vector<4x768xf32> to vector<1x768xf32>
      %259 = vector.broadcast %258 : vector<1x768xf32> to vector<16x768xf32>
      %260 = arith.addf %257, %259 : vector<16x768xf32>
      %c0_150 = arith.constant 0 : index
      %c0_151 = arith.constant 0 : index
      %261 = vector.load %arg10[%c0_150, %c0_151] : memref<16x768xf32, #tpu.memory_space<vmem>>, vector<16x768xf32>
      %262 = arith.addf %260, %261 : vector<16x768xf32>
      %263 = vector.extract_strided_slice %11 {offsets = [2, 0], sizes = [1, 768], strides = [1, 1]} : vector<4x768xf32> to vector<1x768xf32>
      %264 = vector.extract_strided_slice %11 {offsets = [3, 0], sizes = [1, 768], strides = [1, 1]} : vector<4x768xf32> to vector<1x768xf32>
      %cst_152 = arith.constant dense<0.000000e+00> : vector<16xf32>
      %265 = vector.multi_reduction <add>, %262, %cst_152 [1] : vector<16x768xf32> to vector<16xf32>
      %266 = vector.shape_cast %265 : vector<16xf32> to vector<16x1xf32>
      %cst_153 = arith.constant 7.680000e+02 : f32
      %267 = vector.broadcast %cst_153 : f32 to vector<16x1xf32>
      %268 = arith.divf %266, %267 : vector<16x1xf32>
      %269 = vector.broadcast %268 : vector<16x1xf32> to vector<16x768xf32>
      %270 = arith.subf %262, %269 : vector<16x768xf32>
      %271 = arith.mulf %270, %270 : vector<16x768xf32>
      %cst_154 = arith.constant dense<0.000000e+00> : vector<16xf32>
      %272 = vector.multi_reduction <add>, %271, %cst_154 [1] : vector<16x768xf32> to vector<16xf32>
      %273 = vector.shape_cast %272 : vector<16xf32> to vector<16x1xf32>
      %cst_155 = arith.constant 7.680000e+02 : f32
      %274 = vector.broadcast %cst_155 : f32 to vector<16x1xf32>
      %275 = arith.divf %273, %274 : vector<16x1xf32>
      %cst_156 = arith.constant 9.99999996E-13 : f32
      %276 = vector.broadcast %cst_156 : f32 to vector<16x1xf32>
      %277 = arith.addf %275, %276 : vector<16x1xf32>
      %278 = math.rsqrt %277 : vector<16x1xf32>
      %279 = vector.broadcast %278 : vector<16x1xf32> to vector<16x768xf32>
      %280 = arith.mulf %270, %279 : vector<16x768xf32>
      %281 = vector.broadcast %263 : vector<1x768xf32> to vector<16x768xf32>
      %282 = arith.mulf %280, %281 : vector<16x768xf32>
      %283 = vector.broadcast %264 : vector<1x768xf32> to vector<16x768xf32>
      %284 = arith.addf %282, %283 : vector<16x768xf32>
      %c0_157 = arith.constant 0 : index
      %c0_158 = arith.constant 0 : index
      %285 = vector.load %arg10[%c0_157, %c0_158] : memref<16x768xf32, #tpu.memory_space<vmem>>, vector<16x768xf32>
      tpu.vector_store %arg10[%c0_157, %c0_158], %284 {strides = array<i32>} : memref<16x768xf32, #tpu.memory_space<vmem>>, vector<16x768xf32>,
    } else {
    }
    %c2_i32 = arith.constant 2 : i32
    %21 = arith.cmpi sge, %9, %c2_i32 : i32
    %22 = arith.extui %21 : i1 to i32
    %c0_i32_11 = arith.constant 0 : i32
    %23 = arith.cmpi ne, %22, %c0_i32_11 : i32
    scf.if %23 {
      %c2_i32_13 = arith.constant 2 : i32
      %27 = arith.cmpi eq, %9, %c2_i32_13 : i32
      %28 = arith.extui %27 : i1 to i32
      %c0_i32_14 = arith.constant 0 : i32
      %29 = arith.cmpi ne, %28, %c0_i32_14 : i32
      scf.if %29 {
        %cst_34 = arith.constant 0.000000e+00 : f32
        %61 = vector.broadcast %cst_34 : f32 to vector<16x768xf32>
        %c0_35 = arith.constant 0 : index
        %c0_36 = arith.constant 0 : index
        %62 = vector.load %arg13[%c0_35, %c0_36] : memref<16x768xf32, #tpu.memory_space<vmem>>, vector<16x768xf32>
        tpu.vector_store %arg13[%c0_35, %c0_36], %61 {strides = array<i32>} : memref<16x768xf32, #tpu.memory_space<vmem>>, vector<16x768xf32>,
      } else {
      }
      %c0_15 = arith.constant 0 : index
      %c0_16 = arith.constant 0 : index
      %30 = vector.load %arg10[%c0_15, %c0_16] : memref<16x768xf32, #tpu.memory_space<vmem>>, vector<16x768xf32>
      %31 = arith.truncf %30 : vector<16x768xf32> to vector<16x768xbf16>
      %c0_17 = arith.constant 0 : index
      %c0_18 = arith.constant 0 : index
      %c0_19 = arith.constant 0 : index
      %c0_20 = arith.constant 0 : index
      %32 = vector.load %arg3[%c0_17, %c0_18, %c0_19, %c0_20] : memref<1x2x768x768xbf16, #tpu.memory_space<vmem>>, vector<1x1x768x768xbf16>
      %33 = vector.shape_cast %32 : vector<1x1x768x768xbf16> to vector<768x768xbf16>
      %cst = arith.constant dense<0.000000e+00> : vector<16x768xf32>
      %34 = tpu.matmul %31, %33, %cst {dimension_numbers = #tpu.dot_dimension_numbers<[1], [0], [0], [1], [0, 0, 1, 1], [], []>} : vector<16x768xbf16>, vector<768x768xbf16>, vector<16x768xf32> -> vector<16x768xf32>
      %35 = vector.extract_strided_slice %11 {offsets = [0, 0], sizes = [1, 768], strides = [1, 1]} : vector<4x768xf32> to vector<1x768xf32>
      %36 = vector.broadcast %35 : vector<1x768xf32> to vector<16x768xf32>
      %37 = arith.addf %34, %36 : vector<16x768xf32>
      %38 = arith.mulf %37, %37 : vector<16x768xf32>
      %39 = arith.mulf %37, %38 : vector<16x768xf32>
      %cst_21 = arith.constant 4.471500e-02 : f32
      %40 = vector.broadcast %cst_21 : f32 to vector<16x768xf32>
      %41 = arith.mulf %40, %39 : vector<16x768xf32>
      %42 = arith.addf %37, %41 : vector<16x768xf32>
      %cst_22 = arith.constant 0.797884583 : f32
      %43 = vector.broadcast %cst_22 : f32 to vector<16x768xf32>
      %44 = arith.mulf %43, %42 : vector<16x768xf32>
      %45 = math.tanh %44 : vector<16x768xf32>
      %cst_23 = arith.constant 1.000000e+00 : f32
      %46 = vector.broadcast %cst_23 : f32 to vector<16x768xf32>
      %47 = arith.addf %46, %45 : vector<16x768xf32>
      %cst_24 = arith.constant 5.000000e-01 : f32
      %48 = vector.broadcast %cst_24 : f32 to vector<16x768xf32>
      %49 = arith.mulf %48, %47 : vector<16x768xf32>
      %50 = arith.mulf %37, %49 : vector<16x768xf32>
      %c0_25 = arith.constant 0 : index
      %c0_26 = arith.constant 0 : index
      %51 = vector.load %arg13[%c0_25, %c0_26] : memref<16x768xf32, #tpu.memory_space<vmem>>, vector<16x768xf32>
      %52 = arith.truncf %50 : vector<16x768xf32> to vector<16x768xbf16>
      %c0_27 = arith.constant 0 : index
      %c1 = arith.constant 1 : index
      %c0_28 = arith.constant 0 : index
      %c0_29 = arith.constant 0 : index
      %53 = vector.load %arg3[%c0_27, %c1, %c0_28, %c0_29] : memref<1x2x768x768xbf16, #tpu.memory_space<vmem>>, vector<1x1x768x768xbf16>
      %54 = vector.shape_cast %53 : vector<1x1x768x768xbf16> to vector<768x768xbf16>
      %cst_30 = arith.constant dense<0.000000e+00> : vector<16x768xf32>
      %55 = tpu.matmul %52, %54, %cst_30 {dimension_numbers = #tpu.dot_dimension_numbers<[1], [0], [0], [1], [0, 0, 1, 1], [], []>} : vector<16x768xbf16>, vector<768x768xbf16>, vector<16x768xf32> -> vector<16x768xf32>
      %56 = arith.addf %51, %55 : vector<16x768xf32>
      %c0_31 = arith.constant 0 : index
      %c0_32 = arith.constant 0 : index
      %57 = vector.load %arg13[%c0_31, %c0_32] : memref<16x768xf32, #tpu.memory_space<vmem>>, vector<16x768xf32>
      tpu.vector_store %arg13[%c0_31, %c0_32], %56 {strides = array<i32>} : memref<16x768xf32, #tpu.memory_space<vmem>>, vector<16x768xf32>,
      %c5_i32 = arith.constant 5 : i32
      %58 = arith.cmpi eq, %9, %c5_i32 : i32
      %59 = arith.extui %58 : i1 to i32
      %c0_i32_33 = arith.constant 0 : i32
      %60 = arith.cmpi ne, %59, %c0_i32_33 : i32
      scf.if %60 {
        %c0_34 = arith.constant 0 : index
        %c0_35 = arith.constant 0 : index
        %61 = vector.load %arg13[%c0_34, %c0_35] : memref<16x768xf32, #tpu.memory_space<vmem>>, vector<16x768xf32>
        %62 = vector.extract_strided_slice %11 {offsets = [1, 0], sizes = [1, 768], strides = [1, 1]} : vector<4x768xf32> to vector<1x768xf32>
        %63 = vector.broadcast %62 : vector<1x768xf32> to vector<16x768xf32>
        %64 = arith.addf %61, %63 : vector<16x768xf32>
        %c0_36 = arith.constant 0 : index
        %c0_37 = arith.constant 0 : index
        %65 = vector.load %arg10[%c0_36, %c0_37] : memref<16x768xf32, #tpu.memory_space<vmem>>, vector<16x768xf32>
        %66 = arith.addf %64, %65 : vector<16x768xf32>
        %67 = vector.extract_strided_slice %11 {offsets = [2, 0], sizes = [1, 768], strides = [1, 1]} : vector<4x768xf32> to vector<1x768xf32>
        %68 = vector.extract_strided_slice %11 {offsets = [3, 0], sizes = [1, 768], strides = [1, 1]} : vector<4x768xf32> to vector<1x768xf32>
        %cst_38 = arith.constant dense<0.000000e+00> : vector<16xf32>
        %69 = vector.multi_reduction <add>, %66, %cst_38 [1] : vector<16x768xf32> to vector<16xf32>
        %70 = vector.shape_cast %69 : vector<16xf32> to vector<16x1xf32>
        %cst_39 = arith.constant 7.680000e+02 : f32
        %71 = vector.broadcast %cst_39 : f32 to vector<16x1xf32>
        %72 = arith.divf %70, %71 : vector<16x1xf32>
        %73 = vector.broadcast %72 : vector<16x1xf32> to vector<16x768xf32>
        %74 = arith.subf %66, %73 : vector<16x768xf32>
        %75 = arith.mulf %74, %74 : vector<16x768xf32>
        %cst_40 = arith.constant dense<0.000000e+00> : vector<16xf32>
        %76 = vector.multi_reduction <add>, %75, %cst_40 [1] : vector<16x768xf32> to vector<16xf32>
        %77 = vector.shape_cast %76 : vector<16xf32> to vector<16x1xf32>
        %cst_41 = arith.constant 7.680000e+02 : f32
        %78 = vector.broadcast %cst_41 : f32 to vector<16x1xf32>
        %79 = arith.divf %77, %78 : vector<16x1xf32>
        %cst_42 = arith.constant 9.99999996E-13 : f32
        %80 = vector.broadcast %cst_42 : f32 to vector<16x1xf32>
        %81 = arith.addf %79, %80 : vector<16x1xf32>
        %82 = math.rsqrt %81 : vector<16x1xf32>
        %83 = vector.broadcast %82 : vector<16x1xf32> to vector<16x768xf32>
        %84 = arith.mulf %74, %83 : vector<16x768xf32>
        %85 = vector.broadcast %67 : vector<1x768xf32> to vector<16x768xf32>
        %86 = arith.mulf %84, %85 : vector<16x768xf32>
        %87 = vector.broadcast %68 : vector<1x768xf32> to vector<16x768xf32>
        %88 = arith.addf %86, %87 : vector<16x768xf32>
        %c0_43 = arith.constant 0 : index
        %c0_44 = arith.constant 0 : index
        %89 = vector.load %arg10[%c0_43, %c0_44] : memref<16x768xf32, #tpu.memory_space<vmem>>, vector<16x768xf32>
        tpu.vector_store %arg10[%c0_43, %c0_44], %88 {strides = array<i32>} : memref<16x768xf32, #tpu.memory_space<vmem>>, vector<16x768xf32>,
      } else {
      }
    } else {
    }
    %c11_i32 = arith.constant 11 : i32
    %24 = arith.cmpi eq, %arg0, %c11_i32 : i32
    %25 = arith.extui %24 : i1 to i32
    %c0_i32_12 = arith.constant 0 : i32
    %26 = arith.cmpi ne, %25, %c0_i32_12 : i32
    scf.if %26 {
      %c0_13 = arith.constant 0 : index
      %c0_14 = arith.constant 0 : index
      %27 = vector.load %arg10[%c0_13, %c0_14] : memref<16x768xf32, #tpu.memory_space<vmem>>, vector<16x768xf32>
      %28 = arith.truncf %27 : vector<16x768xf32> to vector<16x768xbf16>
      %c0_15 = arith.constant 0 : index
      %c0_16 = arith.constant 0 : index
      %29 = vector.load %arg5[%c0_15, %c0_16] : memref<768x256xbf16, #tpu.memory_space<vmem>>, vector<768x256xbf16>
      %cst = arith.constant dense<0.000000e+00> : vector<16x256xf32>
      %30 = tpu.matmul %28, %29, %cst {dimension_numbers = #tpu.dot_dimension_numbers<[1], [0], [0], [1], [0, 0, 1, 1], [], []>} : vector<16x768xbf16>, vector<768x256xbf16>, vector<16x256xf32> -> vector<16x256xf32>
      %c0_17 = arith.constant 0 : index
      %c0_18 = arith.constant 0 : index
      %31 = vector.load %arg6[%c0_17, %c0_18] : memref<1x256xf32, #tpu.memory_space<vmem>>, vector<1x256xf32>
      %32 = vector.broadcast %31 : vector<1x256xf32> to vector<16x256xf32>
      %33 = arith.addf %30, %32 : vector<16x256xf32>
      %34 = arith.truncf %33 : vector<16x256xf32> to vector<16x256xbf16>
      %c0_19 = arith.constant 0 : index
      %c0_20 = arith.constant 0 : index
      %35 = vector.load %arg7[%c0_19, %c0_20] : memref<256x128xbf16, #tpu.memory_space<vmem>>, vector<256x128xbf16>
      %cst_21 = arith.constant dense<0.000000e+00> : vector<16x128xf32>
      %36 = tpu.matmul %34, %35, %cst_21 {dimension_numbers = #tpu.dot_dimension_numbers<[1], [0], [0], [1], [0, 0, 1, 1], [], []>} : vector<16x256xbf16>, vector<256x128xbf16>, vector<16x128xf32> -> vector<16x128xf32>
      %c0_22 = arith.constant 0 : index
      %c0_23 = arith.constant 0 : index
      %37 = vector.load %arg8[%c0_22, %c0_23] : memref<1x128xf32, #tpu.memory_space<vmem>>, vector<1x128xf32>
      %38 = vector.broadcast %37 : vector<1x128xf32> to vector<16x128xf32>
      %39 = arith.addf %36, %38 : vector<16x128xf32>
      %c0_24 = arith.constant 0 : index
      %c0_25 = arith.constant 0 : index
      %40 = vector.load %arg9[%c0_24, %c0_25] : memref<16x128xf32, #tpu.memory_space<vmem>>, vector<16x128xf32>
      tpu.vector_store %arg9[%c0_24, %c0_25], %39 {strides = array<i32>} : memref<16x128xf32, #tpu.memory_space<vmem>>, vector<16x128xf32>,
    } else {
    }
    return
  }
  func.func @transform_0(%arg0: i32) -> (i32, i32) {
    %c0_i32 = arith.constant 0 : i32
    %c0_i32_0 = arith.constant 0 : i32
    %c0_i32_1 = arith.constant 0 : i32
    return %c0_i32, %c0_i32_0 : i32, i32
  }
  func.func @transform_1(%arg0: i32) -> (i32, i32) {
    %c0_i32 = arith.constant 0 : i32
    %c0_i32_0 = arith.constant 0 : i32
    %c0_i32_1 = arith.constant 0 : i32
    return %c0_i32, %c0_i32_0 : i32, i32
  }
  func.func @transform_2(%arg0: i32) -> (i32, i32, i32, i32) {
    %c0_i32 = arith.constant 0 : i32
    %c0_i32_0 = arith.constant 0 : i32
    %c0_i32_1 = arith.constant 0 : i32
    %c0_i32_2 = arith.constant 0 : i32
    return %arg0, %c0_i32, %c0_i32_0, %c0_i32_1 : i32, i32, i32, i32
  }
  func.func @transform_3(%arg0: i32) -> (i32, i32, i32) {
    %c0_i32 = arith.constant 0 : i32
    %c0_i32_0 = arith.constant 0 : i32
    %c0_i32_1 = arith.constant 0 : i32
    return %arg0, %c0_i32, %c0_i32_0 : i32, i32, i32
  }
  func.func @transform_4(%arg0: i32) -> (i32, i32) {
    %c0_i32 = arith.constant 0 : i32
    %c0_i32_0 = arith.constant 0 : i32
    %c0_i32_1 = arith.constant 0 : i32
    return %c0_i32, %c0_i32_0 : i32, i32
  }
  func.func @transform_5(%arg0: i32) -> (i32, i32) {
    %c0_i32 = arith.constant 0 : i32
    %c0_i32_0 = arith.constant 0 : i32
    %c0_i32_1 = arith.constant 0 : i32
    return %c0_i32, %c0_i32_0 : i32, i32
  }
  func.func @transform_6(%arg0: i32) -> (i32, i32) {
    %c0_i32 = arith.constant 0 : i32
    %c0_i32_0 = arith.constant 0 : i32
    %c0_i32_1 = arith.constant 0 : i32
    return %c0_i32, %c0_i32_0 : i32, i32
  }
  func.func @transform_7(%arg0: i32) -> (i32, i32) {
    %c0_i32 = arith.constant 0 : i32
    %c0_i32_0 = arith.constant 0 : i32
    %c0_i32_1 = arith.constant 0 : i32
    return %c0_i32, %c0_i32_0 : i32, i32
  }
  func.func @transform_8(%arg0: i32) -> (i32, i32) {
    %c0_i32 = arith.constant 0 : i32
    %c0_i32_0 = arith.constant 0 : i32
    %c0_i32_1 = arith.constant 0 : i32
    return %c0_i32, %c0_i32_0 : i32, i32
  }
}

</mosaic_0001>

<bundles_post_ra>
// kernel: custom_bert_forward.1
= control target key start
LH: loop header
LB: loop body
LE: loop exit
PB: predicated region body
PF: predicated region fallthrough
CT: control target
= control target key end

     0   :  { %s27806_s0 = inlined_call_operand.vmem [shape: f32[16,768], index: 0, kind: input, shape index: {}]   ;;  %s27807_s1 = inlined_call_operand.vmem [shape: f32[16,16], index: 1, kind: input, shape index: {}]   ;;  %s27808_s2 = inlined_call_operand.hbm [shape: bf16[12,2,768,768], index: 2, kind: input, shape index: {}]   ;;  %s27809_s3 = inlined_call_operand.hbm [shape: f32[12,4,768], index: 3, kind: input, shape index: {}]   ;;  %s27810_s4 = inlined_call_operand.hbm [shape: bf16[768,256], index: 4, kind: input, shape index: {}]   ;;  %s27811_s5 = inlined_call_operand.hbm [shape: f32[1,256], index: 5, kind: input, shape index: {}]   ;;  %s27812_s6 = inlined_call_operand.hbm [shape: bf16[256,128], index: 6, kind: input, shape index: {}]   ;;  %s27813_s7 = inlined_call_operand.hbm [shape: f32[1,128], index: 7, kind: input, shape index: {}]   ;;  %s27814_s8 = inlined_call_operand.vmem [shape: f32[16,128], index: 8, kind: output, shape index: {}]  }
   0x1   :  { %27818 = sst [smem:[#allocation21_spill]] %s27808_s2 }
   0x2   :  { %27819 = sst [smem:[#allocation22_spill]] %s27810_s4 }
   0x3   :  { %27820 = sst [smem:[#allocation23_spill]] %s27811_s5 }
   0x4   :  { %13 = vsyncpa [#allocation7], 0 }
   0x5   :  { %15 = vsyncpa [#allocation7 + $0x1], 0 }
   0x6   :  { %16 = vsyncpa [#allocation9], 0 }
   0x7   :  { %18 = vsyncpa [#allocation9 + $0x1], 0 }
   0x8   :  { %19 = vsyncpa [#allocation12], 0 }
   0x9   :  { %20 = vsyncpa [#allocation15], 0  ;;  %s24826_s27 = smov 0   ;;  %s24828_s28 = smov 0  }
   0xa   :  { %s24830_s29 = smov 0   ;;  %s24832_s30 = smov 0  }
   0xb LB: > { %s24845_s9 = sadd.s32 4294967295, %s24765_s30   ;;  %p88_p0 = scmp.ne.s32.totalorder %s24757_s28, %s24753_s27  ;;  %s24765_s30 = sphi %s24832_s30, %s27843_s30   ;;  %s24761_s29 = sphi %s24830_s29, %s27842_s29   ;;  %s24757_s28 = sphi %s24828_s28, %s27841_s28   ;;  %s24753_s27 = sphi %s24826_s27, %s27840_s27  }
   0xc   : > { %p27815_p1 = scmp.eq.s32.totalorder %s24845_s9, 0  ;;  %p18071_p2 = scmp.ge.s32.totalorder %s24765_s30, 1 }
   0xd   : > { %p230_p3 = scmp.lt.s32.totalorder %s24765_s30, 13  ;;  %s24767_s12 = smov [#allocation10]  }
   0xe   : > { %p24854_p5 = por %p27815_p1, %p88_p0  ;;  %s248_s13 = sshll.u32 %s24767_s12, 4  ;;  %s24862_s13 = int_to_ptr.vmem [resolvable:$true] %s248_s13 }
   0xf   : > { %p24858_p6 = pnand %p18071_p2, %p230_p3  ;;  %s24768_s15 = smov [#allocation11]  }
  0x10   : > { %s27821_s10 = scalar_select %p24854_p5, 1, 0 }
  0x11   : > { %s27822_s11 = scalar_select %p24858_p6, 1, 0 }
  0x12   : > { %p21521_p7 = pneg %p24858_p6  ;;  %s262_s16 = sshll.u32 %s24768_s15, 4  ;;  %s24872_s16 = int_to_ptr.vmem [resolvable:$true] %s262_s16 }
  0x13   : > { %s24769_s17 = smov [#allocation13]   ;;  %s27824_s4 = sld [smem:[#allocation22_spill]] }
  0x14   : > { %p24868_p8 = pnand %p21521_p7, %p27815_p1  ;;  %s24874_s18 = sshll.u32 %s24769_s17, 4  ;;  %s273_s18 = int_to_ptr.vmem [resolvable:$true] %s24874_s18 }
  0x16   : > { %p24884_p10 = pneg %p24868_p8 }
  0x19   : > { %s24543_s21 = scalar_lea.hbm %s27824_s4, 12288 }
  0x1a   : > { %p24544_p9 = scmp.ne.s32.totalorder %s27824_s4, %s24543_s21  ;;  %p24550_p13 = scmp.lt.u32.totalorder %s24543_s21, %s27824_s4 }
  0x1c   : > { %p24546_p11 = pnand %p24884_p10, %p24544_p9 }
  0x1e   : > { %p24547_p12 = pneg %p24546_p11 }
  0x20   : > { %p24552_p0 = pnand %p24550_p13, %p24547_p12 }
  0x22   : > { %24555 = shalt.err (!%p24552_p0)
}
  0x23   : > { %s24556_s27 = scalar_lea.vmem %s24862_s13, 12288  ;;  %p24564_p4 = scmp.lt.s32.totalorder %s24862_s13, %s24862_s13 }
  0x24   : > { %p24557_p2 = scmp.ne.s32.totalorder %s24862_s13, %s24556_s27  ;;  %p24565_p1 = scmp.lt.s32.totalorder %s24556_s27, %s24556_s27 }
  0x26   : > { %p24559_p3 = pnand %p24557_p2, %p24884_p10  ;;  %p24566_p9 = por %p24565_p1, %p24564_p4 }
  0x28   : > { %p24560_p7 = pneg %p24559_p3 }
  0x2a   : > { %p24567_p11 = pnand %p24566_p9, %p24560_p7 }
  0x2c   : > { %24570 = shalt.err (!%p24567_p11)
}
  0x2d   : > { %s24770_s12 = smov 128   ;;  %s24771_s15 = smov 8  }
  0x2e   : > { %21524 = dma.hbm_to_vmem [thread:$0]  (!%p24868_p8), %s27824_s4, 12288, %s24862_s13, [#allocation9], %s24770_s12, %s24770_s12, %s24771_s15  }
  0x2f   : > { %s27826_s5 = sld [smem:[#allocation23_spill]] }
  0x35   : > { %s24571_s22 = scalar_lea.hbm %s27826_s5, 32 }
  0x36   : > { %p24572_p1 = scmp.ne.s32.totalorder %s27826_s5, %s24571_s22  ;;  %p24578_p13 = scmp.lt.u32.totalorder %s24571_s22, %s27826_s5 }
  0x38   : > { %p24574_p4 = pnand %p24572_p1, %p24884_p10 }
  0x3a   : > { %p24575_p12 = pneg %p24574_p4 }
  0x3c   : > { %p24580_p0 = pnand %p24578_p13, %p24575_p12 }
  0x3e   : > { %24583 = shalt.err (!%p24580_p0)
}
  0x3f   : > { %s24584_s13 = scalar_lea.vmem %s24872_s16, 32  ;;  %p24592_p9 = scmp.lt.s32.totalorder %s24872_s16, %s24872_s16 }
  0x40   : > { %p24585_p2 = scmp.ne.s32.totalorder %s24872_s16, %s24584_s13  ;;  %p24593_p11 = scmp.lt.s32.totalorder %s24584_s13, %s24584_s13 }
  0x42   : > { %p24587_p3 = pnand %p24585_p2, %p24884_p10  ;;  %p24594_p1 = por %p24593_p11, %p24592_p9 }
  0x44   : > { %p24588_p7 = pneg %p24587_p3 }
  0x46   : > { %p24595_p4 = pnand %p24594_p1, %p24588_p7 }
  0x48   : > { %24598 = shalt.err (!%p24595_p4)
}
  0x49   : > { %21527 = dma.hbm_to_vmem [thread:$0]  (!%p24868_p8), %s27826_s5, 32, %s24872_s16, [#allocation12]  }
  0x4a   : > { %s24599_s20 = scalar_lea.hbm %s27812_s6, 2048 }
  0x4b   : > { %p24600_p12 = scmp.ne.s32.totalorder %s27812_s6, %s24599_s20  ;;  %p24606_p2 = scmp.lt.u32.totalorder %s24599_s20, %s27812_s6 }
  0x4d   : > { %p24602_p13 = pnand %p24600_p12, %p24884_p10 }
  0x4f   : > { %p24603_p0 = pneg %p24602_p13 }
  0x51   : > { %p24608_p3 = pnand %p24606_p2, %p24603_p0 }
  0x53   : > { %24611 = shalt.err (!%p24608_p3)
}
  0x54   : > { %s24612_s26 = scalar_lea.vmem %s273_s18, 2048  ;;  %p24620_p1 = scmp.lt.s32.totalorder %s273_s18, %s273_s18 }
  0x55   : > { %p24613_p7 = scmp.ne.s32.totalorder %s273_s18, %s24612_s26  ;;  %p24621_p4 = scmp.lt.s32.totalorder %s24612_s26, %s24612_s26 }
  0x57   : > { %p24615_p9 = pnand %p24613_p7, %p24884_p10  ;;  %p24622_p5 = por %p24621_p4, %p24620_p1 }
  0x59   : > { %p24616_p11 = pneg %p24615_p9 }
  0x5b   : > { %p24623_p6 = pnand %p24622_p5, %p24616_p11 }
  0x5d   : > { %24626 = shalt.err (!%p24623_p6)
}
  0x5e   : > { %s24772_s16 = smov 64   ;;  %s24773_s27 = smov 4  }
  0x5f   : > { %21530 = dma.hbm_to_vmem [thread:$0]  (!%p24868_p8), %s27812_s6, 2048, %s273_s18, [#allocation12], %s24772_s16, %s24772_s16, %s24773_s27  }
  0x60   : > { %s24774_s15 = smov [#allocation14]   ;;  %s24627_s21 = scalar_lea.hbm %s27813_s7, 16 }
  0x61   : > { %s286_s17 = sshll.u32 %s24774_s15, 4  ;;  %p24628_p5 = scmp.ne.s32.totalorder %s27813_s7, %s24627_s21  ;;  %s287_s17 = int_to_ptr.vmem [resolvable:$true] %s286_s17 }
  0x62   : > { %p24634_p13 = scmp.lt.u32.totalorder %s24627_s21, %s27813_s7 }
  0x63   : > { %p24630_p6 = pnand %p24628_p5, %p24884_p10 }
  0x65   : > { %p24631_p12 = pneg %p24630_p6 }
  0x67   : > { %p24636_p0 = pnand %p24634_p13, %p24631_p12 }
  0x69   : > { %24639 = shalt.err (!%p24636_p0)
}
  0x6a   : > { %s24640_s18 = scalar_lea.vmem %s287_s17, 16  ;;  %s24647_s16 = scalar_lea.vmem %s287_s17, 32 }
  0x6b   : > { %p24641_p2 = scmp.ne.s32.totalorder %s287_s17, %s24640_s18  ;;  %p24648_p9 = scmp.lt.s32.totalorder %s287_s17, %s287_s17 }
  0x6c   : > { %p24649_p11 = scmp.lt.s32.totalorder %s24647_s16, %s24640_s18 }
  0x6d   : > { %p24643_p3 = pnand %p24641_p2, %p24884_p10 }
  0x6e   : > { %p24650_p1 = por %p24649_p11, %p24648_p9 }
  0x6f   : > { %p24644_p7 = pneg %p24643_p3 }
  0x71   : > { %p24651_p4 = pnand %p24650_p1, %p24644_p7 }
  0x73   : > { %24654 = shalt.err (!%p24651_p4)
}
  0x74   : > { %21533 = dma.hbm_to_vmem [thread:$0]  (!%p24868_p8), %s27813_s7, 16, %s287_s17, [#allocation15]  }
  0x75   : > { %s24966_s24 = sadd.s32 1, %s24765_s30   ;;  %s75_s12 = sadd.s32 1, %s24761_s29 }
  0x76   : > { %s72_s15 = ssub.s32 %s24765_s30, %s24966_s24  ;;  %p82_p10 = scmp.ne.s32.totalorder %s24761_s29, %s24757_s28 }
  0x77   : > { %p73_p5 = scmp.eq.s32.totalorder %s72_s15, 0  ;;  %p83_p6 = scmp.eq.s32.totalorder %s24765_s30, 0 }
  0x78   : > { %p21545_p12 = scmp.lt.s32.totalorder %s24765_s30, 12  ;;  %s24976_s14 = sand.u32 1, %s24761_s29  }
  0x79   : > { %s24979_s19 = scalar_select %p73_p5, %s24761_s29, %s75_s12  }
  0x7a   : > { %p84_p13 = por %p83_p6, %p82_p10  ;;  %s21495_s20 = smul.u32 4608, %s24976_s14 }
  0x7b   : > { %s21496_s21 = smul.u32 73728, %s24765_s30  ;;  %s27828_s2 = sld [smem:[#allocation21_spill]] }
  0x7c   : > { %p24983_p0 = pnand %p21545_p12, %p84_p13  ;;  %s301_s26 = scalar_lea.vmem [#allocation6], %s21495_s20 }
  0x7d   : > { %s308_s18 = sshll.u32 %s301_s26, 4  ;;  %s298_s16 = scalar_lea.sflag [#allocation7], %s24976_s14  ;;  %s24992_s18 = int_to_ptr.vmem [resolvable:$true] %s308_s18 }
  0x7e   : > { %p24657_p2 = pneg %p24983_p0 }
  0x81   : > { %s24990_s25 = scalar_lea.hbm %s27828_s2, %s21496_s21  ;;  %s24660_s15 = scalar_lea.hbm %s27828_s2, 884736 }
  0x82   : > { %s24655_s27 = scalar_lea.hbm %s24990_s25, 73728  ;;  %p24661_p9 = scmp.lt.u32.totalorder %s24990_s25, %s27828_s2 }
  0x83   : > { %p24656_p8 = scmp.ne.s32.totalorder %s24990_s25, %s24655_s27  ;;  %p24662_p11 = scmp.lt.u32.totalorder %s24660_s15, %s24655_s27 }
  0x84   : > { %p24664_p4 = scmp.lt.u32.totalorder %s24655_s27, %s24990_s25 }
  0x85   : > { %p24658_p3 = pnand %p24657_p2, %p24656_p8  ;;  %p24663_p1 = por %p24662_p11, %p24661_p9 }
  0x87   : > { %p24659_p7 = pneg %p24658_p3  ;;  %p24665_p10 = por %p24664_p4, %p24663_p1 }
  0x89   : > { %p24666_p5 = pnand %p24665_p10, %p24659_p7 }
  0x8b   : > { %24669 = shalt.err (!%p24666_p5)
}
  0x8c   : > { %s24670_s20 = scalar_lea.vmem %s24992_s18, 73728  ;;  %s24775_s23 = smov [#allocation6]  }
  0x8d   : > { %p24671_p6 = scmp.ne.s32.totalorder %s24992_s18, %s24670_s20  ;;  %s24675_s26 = sshll.u32 %s24775_s23, 4  ;;  %s24676_s26 = int_to_ptr.vmem [resolvable:$false] %s24675_s26 }
  0x8e   : > { %s24677_s13 = scalar_lea.vmem %s24676_s26, 147456  ;;  %p24678_p8 = scmp.lt.s32.totalorder %s24992_s18, %s24676_s26 }
  0x8f   : > { %p24673_p12 = pnand %p24671_p6, %p24657_p2  ;;  %p24679_p3 = scmp.lt.s32.totalorder %s24677_s13, %s24670_s20 }
  0x91   : > { %p24674_p13 = pneg %p24673_p12  ;;  %p24680_p9 = por %p24679_p3, %p24678_p8 }
  0x93   : > { %p24681_p11 = pnand %p24680_p9, %p24674_p13 }
  0x95   : > { %24684 = shalt.err (!%p24681_p11)
}
  0x96   : > { %s24776_s27 = smov 384   ;;  %s24777_s12 = smov 24  }
  0x97   : > { %21537 = dma.hbm_to_vmem [thread:$0]  (!%p24983_p0), %s24990_s25, 73728, %s24992_s18, %s298_s16, %s24776_s27, %s24776_s27, %s24777_s12  }
  0x98   : > { %s318_s15 = sand.u32 1, %s24765_s30   ;;  %s21497_s21 = smul.u32 24, %s24976_s14 }
  0x99   : > { %s21498_s22 = smul.u32 384, %s24765_s30  ;;  %s319_s4 = scalar_lea.sflag [#allocation9], %s318_s15 }
  0x9a   : > { %s322_s13 = scalar_lea.vmem [#allocation8], %s21497_s21  ;;  %s24690_s25 = scalar_lea.hbm %s27809_s3, 4608 }
  0x9b   : > { %s25028_s26 = scalar_lea.hbm %s27809_s3, %s21498_s22  ;;  %s330_s2 = sshll.u32 %s322_s13, 4  ;;  %s331_s2 = int_to_ptr.vmem [resolvable:$true] %s330_s2 }
  0x9c   : > { %s24685_s5 = scalar_lea.hbm %s25028_s26, 384  ;;  %p24691_p10 = scmp.lt.u32.totalorder %s25028_s26, %s27809_s3 }
  0x9d   : > { %p24686_p7 = scmp.ne.s32.totalorder %s25028_s26, %s24685_s5  ;;  %p24692_p5 = scmp.lt.u32.totalorder %s24690_s25, %s24685_s5 }
  0x9e   : > { %p24694_p12 = scmp.lt.u32.totalorder %s24685_s5, %s25028_s26 }
  0x9f   : > { %p24688_p1 = pnand %p24686_p7, %p24657_p2  ;;  %p24693_p6 = por %p24692_p5, %p24691_p10 }
  0xa1   : > { %p24689_p4 = pneg %p24688_p1  ;;  %p24695_p13 = por %p24694_p12, %p24693_p6 }
  0xa3   : > { %p24696_p8 = pnand %p24695_p13, %p24689_p4 }
  0xa5   : > { %24699 = shalt.err (!%p24696_p8)
}
  0xa6   : > { %s24700_s27 = scalar_lea.vmem %s331_s2, 384  ;;  %s24778_s12 = smov [#allocation8]  }
  0xa7   : > { %p24701_p3 = scmp.ne.s32.totalorder %s331_s2, %s24700_s27  ;;  %s24705_s15 = sshll.u32 %s24778_s12, 4  ;;  %s24706_s15 = int_to_ptr.vmem [resolvable:$false] %s24705_s15 }
  0xa8   : > { %s24707_s21 = scalar_lea.vmem %s24706_s15, 768  ;;  %p24708_p7 = scmp.lt.s32.totalorder %s331_s2, %s24706_s15 }
  0xa9   : > { %p24703_p9 = pnand %p24701_p3, %p24657_p2  ;;  %p24709_p1 = scmp.lt.s32.totalorder %s24707_s21, %s24700_s27 }
  0xab   : > { %p24704_p11 = pneg %p24703_p9  ;;  %p24710_p5 = por %p24709_p1, %p24708_p7 }
  0xad   : > { %p24711_p10 = pnand %p24710_p5, %p24704_p11 }
  0xaf   : > { %24714 = shalt.err (!%p24711_p10)
}
  0xb0   : > { %21540 = dma.hbm_to_vmem [thread:$0]  (!%p24983_p0), %s25028_s26, 384, %s331_s2, %s319_s4  }
  0xb1   : > { %p27829_p4 = scmp.ne.s32.totalorder %s27822_s11, 0 }
  0xb2   : > { %s341_s5 = sand.u32 (!%p27829_p4), 1, %s24757_s28   ;;  %p27830_p2 = scmp.ne.s32.totalorder (!%p27829_p4), %s27821_s10, 0 }
  0xb3   : > { %339 = sbr.rel (%p27829_p4) target bundleno = 10856 (0x2a68), region = 52  ;;  %s342_s20 = scalar_lea.sflag (!%p27829_p4), [#allocation7], %s341_s5 }
  0xb4   : > { %s21499_s22 = smul.u32 (!%p27829_p4), 4608, %s341_s5 }
  0xb6   : > { %s25052_s23 = scalar_lea.vmem (!%p27829_p4), [#allocation6], %s21499_s22 }
  0xba   : > { %24732 = dma.done.wait (%p27830_p2), %s342_s20, 73728  }
  0xbb   : > { %24734 = vsyncadd (%p27830_p2), %s342_s20, 4294893568  ;;  %s350_s17 = sand.u32 1, %s24845_s9   ;;  %s21500_s13 = smul.u32 24, %s341_s5 }
  0xbc   : > { %s351_s2 = scalar_lea.sflag [#allocation9], %s350_s17 }
  0xbd   : > { %s354_s4 = scalar_lea.vmem [#allocation8], %s21500_s13 }
  0xbe   : > { %24736 = dma.done.wait (%p27830_p2), %s351_s2, 384  }
  0xbf   : > { %24738 = vsyncadd (%p27830_p2), %s351_s2, 4294966912  ;;  %p27831_p0 = scmp.eq.s32.totalorder %s24845_s9, 0 }
  0xc1   : > { %24740 = dma.done.wait (%p27831_p0), [#allocation9], 12288   ;;  %p27832_p6 = pmov %p27831_p0 }
  0xc2   : > { %p27833_p12 = pmov %p27831_p0 }
  0xc3   : > { %24742 = vsyncadd (%p27832_p6), [#allocation9], 4294955008 }
  0xc4   : > { %24744 = dma.done.wait (%p27833_p12), [#allocation12], 2080   ;;  %p27834_p13 = pmov %p27831_p0 }
  0xc5   : > { %p27835_p8 = pmov %p27831_p0 }
  0xc6   : > { %24746 = vsyncadd (%p27834_p13), [#allocation12], 4294965216 }
  0xc7   : > { %24748 = dma.done.wait (%p27835_p8), [#allocation15], 16   ;;  %p27836_p3 = pmov %p27831_p0 }
  0xc8   : > { %s405_s10 = ssub.s32 0, %s24845_s9  ;;  %v25077_v0 = vld [vmem:[%s354_s4] sm:$0xff]  ;;  %v25079_v1 = vld [vmem:[%s354_s4 + $0x8] sm:$0xff]  ;;  %v25081_v2 = vld [vmem:[%s354_s4 + $0x10] sm:$0xff]  ;;  %p404_p9 = scmp.lt.s32.totalorder %s24845_s9, 0 }
  0xc9   : > { %24750 = vsyncadd (%p27836_p3), [#allocation15], 4294967280  ;;  %s18084_s11 = smin.u32 %s24845_s9, %s405_s10  ;;  %p27837_p7 = scmp.ne.s32.totalorder %s24845_s9, 0 }
  0xca   : > { %21595 = sdivrem.u32 %s18084_s11, 6  ;;  %v424_v3 = vld [vmem:[%s27806_s0] sm:$0xff] (!%p27837_p7)  ;;  %v425_v4 = vld [vmem:[%s27806_s0 + $0x8] sm:$0xff] (!%p27837_p7)  ;;  %v426_v5 = vld [vmem:[%s27806_s0 + $0x10] sm:$0xff] (!%p27837_p7)  ;;  %v512_v63 = vlaneseq (!%p27837_p7) }
  0xcb   : > { %v427_v6 = vld [vmem:[%s27806_s0 + $0x18] sm:$0xff] (!%p27837_p7)  ;;  %v436_v7 = vadd.f32 (!%p27837_p7), %v425_v4, %v424_v3  ;;  %v430_v8 = vld [vmem:[%s27806_s0 + $0x30] sm:$0xff] (!%p27837_p7)  ;;  %v432_v10 = vld [vmem:[%s27806_s0 + $0x40] sm:$0xff] (!%p27837_p7) }
  0xcc   : > { %v431_v9 = vld [vmem:[%s27806_s0 + $0x38] sm:$0xff] (!%p27837_p7)  ;;  %v428_v13 = vld [vmem:[%s27806_s0 + $0x20] sm:$0xff] (!%p27837_p7)  ;;  %v433_v14 = vld [vmem:[%s27806_s0 + $0x48] sm:$0xff] (!%p27837_p7) }
  0xcd   : > { %v437_v11 = vadd.f32 (!%p27837_p7), %v436_v7, %v426_v5  ;;  %v443_v12 = vadd.f32 (!%p27837_p7), %v431_v9, %v430_v8  ;;  %v429_v17 = vld [vmem:[%s27806_s0 + $0x28] sm:$0xff] (!%p27837_p7)  ;;  %v434_v18 = vld [vmem:[%s27806_s0 + $0x50] sm:$0xff] (!%p27837_p7)  ;;  %v435_v21 = vld [vmem:[%s27806_s0 + $0x58] sm:$0xff] (!%p27837_p7) }
  0xcf   : > { %v438_v15 = vadd.f32 (!%p27837_p7), %v437_v11, %v427_v6  ;;  %v444_v16 = vadd.f32 (!%p27837_p7), %v443_v12, %v432_v10 }
  0xd1   : > { %v439_v19 = vadd.f32 (!%p27837_p7), %v438_v15, %v428_v13  ;;  %v445_v20 = vadd.f32 (!%p27837_p7), %v444_v16, %v433_v14 }
  0xd2   : > { %423 = sbr.rel (%p27837_p7) target bundleno = 542 (0x21e), region = 80 }
  0xd3   : > { %s21596_s26 = spop.drf %21595  ;;  %v440_v22 = vadd.f32 (!%p27837_p7), %v439_v19, %v429_v17  ;;  %v446_v23 = vadd.f32 (!%p27837_p7), %v445_v20, %v434_v18 }
  0xd4   : > { %s409_s30 = ssub.s32 0, %s21596_s26 }
  0xd5   : > { %s27845_s30 = smov (!%p404_p9, %s409_s30), %s21596_s26  ;;  %441 = vadd.xlane.f32.xlu0 (!%p27837_p7), %v440_v22  ;;  %v447_v24 = vadd.f32 (!%p27837_p7), %v446_v23, %v435_v21 }
  0xd6   : > { %p18086_p11 = scmp.lt.s32.totalorder %s27845_s30, 0  ;;  %s415_s14 = sadd.s32 6, %s27845_s30 }
  0xd8   : > { %s27847_s14 = smov (!%p18086_p11, %s415_s14), %s27845_s30 }
  0xd9   : > { %448 = vadd.xlane.f32.xlu0 %v447_v24 }
 0x162   : > { %v442_v25 = vpop.xlane.xlu0 %441 }
 0x163   : > { %v451_v26 = vmul.f32 0.0013020834, %v442_v25 }
 0x165   : > { %v25124_v27 = vsub.f32 %v424_v3, %v451_v26  ;;  %v25126_v28 = vsub.f32 %v425_v4, %v451_v26  ;;  %v25128_v29 = vsub.f32 %v426_v5, %v451_v26  ;;  %v25130_v31 = vsub.f32 %v427_v6, %v451_v26 }
 0x166   : > { %v449_v30 = vpop.xlane.xlu0 %448  ;;  %v25136_v35 = vsub.f32 %v428_v13, %v451_v26  ;;  %v25146_v41 = vsub.f32 %v429_v17, %v451_v26  ;;  %v513_v4 = vshrl.u32 %v512_v63, 7 }
 0x167   : > { %v452_v32 = vmul.f32 0.0013020834, %v449_v30  ;;  %v465_v33 = vmul.f32 %v25124_v27, %v25124_v27  ;;  %v466_v34 = vmul.f32 %v25126_v28, %v25126_v28  ;;  %v467_v36 = vmul.f32 %v25128_v29, %v25128_v29 }
 0x168   : > { %v468_v42 = vmul.f32 %v25130_v31, %v25130_v31  ;;  %v469_v47 = vmul.f32 %v25136_v35, %v25136_v35  ;;  %v470_v52 = vmul.f32 %v25146_v41, %v25146_v41  ;;  %v580_v11 = vsub.s32 3, %v513_v4 }
 0x169   : > { %v477_v37 = vadd.f32 %v466_v34, %v465_v33  ;;  %v25140_v38 = vsub.f32 %v430_v8, %v452_v32  ;;  %v25142_v39 = vsub.f32 %v431_v9, %v452_v32  ;;  %v25144_v40 = vsub.f32 %v432_v10, %v452_v32 }
 0x16a   : > { %v25150_v44 = vsub.f32 %v433_v14, %v452_v32  ;;  %v25158_v49 = vsub.f32 %v434_v18, %v452_v32  ;;  %v25164_v54 = vsub.f32 %v435_v21, %v452_v32  ;;  %v514_v8 = vsub.s32 2, %v513_v4 }
 0x16b   : > { %v478_v43 = vadd.f32 %v477_v37, %v467_v36  ;;  %v471_v45 = vmul.f32 %v25140_v38, %v25140_v38  ;;  %v472_v46 = vmul.f32 %v25142_v39, %v25142_v39  ;;  %v473_v50 = vmul.f32 %v25144_v40, %v25144_v40 }
 0x16c   : > { %v474_v55 = vmul.f32 %v25150_v44, %v25150_v44  ;;  %v475_v58 = vmul.f32 %v25158_v49, %v25158_v49  ;;  %v476_v60 = vmul.f32 %v25164_v54, %v25164_v54  ;;  %v518_v9 = vsub.s32 6, %v513_v4 }
 0x16d   : > { %v479_v48 = vadd.f32 %v478_v43, %v468_v42  ;;  %v484_v51 = vadd.f32 %v472_v46, %v471_v45  ;;  %v584_v12 = vsub.s32 7, %v513_v4  ;;  %v515_v14 = vrot.slane %v25077_v0, %v514_v8 }
 0x16e   : > { %v519_v15 = vrot.slane %v25077_v0, %v518_v9  ;;  %v523_v16 = vrot.slane %v25079_v1, %v514_v8  ;;  %v527_v17 = vrot.slane %v25079_v1, %v518_v9  ;;  %v531_v18 = vrot.slane %v25081_v2, %v514_v8 }
 0x16f   : > { %v480_v53 = vadd.f32 %v479_v48, %v469_v47  ;;  %v485_v56 = vadd.f32 %v484_v51, %v473_v50  ;;  %v535_v19 = vrot.slane %v25081_v2, %v518_v9  ;;  %v581_v20 = vrot.slane %v25077_v0, %v580_v11 }
 0x170   : > { %v585_v21 = vrot.slane %v25077_v0, %v584_v12  ;;  %v589_v22 = vrot.slane %v25079_v1, %v580_v11  ;;  %v593_v23 = vrot.slane %v25079_v1, %v584_v12  ;;  %v545_v24 = vrot.slane %v515_v14, %v514_v8 }
 0x171   : > { %v481_v57 = vadd.f32 %v480_v53, %v470_v52  ;;  %v486_v59 = vadd.f32 %v485_v56, %v474_v55  ;;  %v549_v25 = vrot.slane %v519_v15, %v514_v8  ;;  %v597_v26 = vrot.slane %v25081_v2, %v580_v11 }
 0x172   : > { %v601_v30 = vrot.slane %v25081_v2, %v584_v12  ;;  %v553_v32 = vrot.slane %v523_v16, %v514_v8  ;;  %v557_v33 = vrot.slane %v527_v17, %v514_v8  ;;  %v561_v34 = vrot.slane %v531_v18, %v514_v8 }
 0x173   : > { %482 = vadd.xlane.f32.xlu1 %v481_v57  ;;  %v487_v61 = vadd.f32 %v486_v59, %v475_v58  ;;  %v565_v36 = vrot.slane %v535_v19, %v514_v8  ;;  %v611_v42 = vrot.slane %v581_v20, %v580_v11  ;;  %v615_v43 = vrot.slane %v585_v21, %v580_v11 }
 0x174   : > { %v619_v45 = vrot.slane %v589_v22, %v580_v11  ;;  %v623_v46 = vrot.slane %v593_v23, %v580_v11  ;;  %v627_v52 = vrot.slane %v597_v26, %v580_v11  ;;  %v631_v53 = vrot.slane %v601_v30, %v580_v11 }
 0x175   : > { %v488_v62 = vadd.f32 %v487_v61, %v476_v60 }
 0x177   : > { %489 = vadd.xlane.f32.xlu1 %v488_v62 }
 0x200   : > { %v483_v3 = vpop.xlane.xlu1 %482 }
 0x201   : > { %v491_v5 = vmul.f32 0.0013020834, %v483_v3 }
 0x203   : > { %v493_v6 = vadd.f32 1e-12, %v491_v5 }
 0x204   : > { %v490_v7 = vpop.xlane.xlu1 %489 }
 0x205   : > { %21597 = vrsqrt.f32 %v493_v6  ;;  %v492_v10 = vmul.f32 0.0013020834, %v490_v7 }
 0x207   : > { %v494_v13 = vadd.f32 1e-12, %v492_v10 }
 0x209   : > { %21599 = vrsqrt.f32 %v494_v13 }
 0x20f   : > { %v21598_v37 = vpop.eup %21597 }
 0x210   : > { %v497_v47 = vmul.f32 %v21598_v37, %v25124_v27  ;;  %v498_v48 = vmul.f32 %v21598_v37, %v25126_v28  ;;  %v499_v50 = vmul.f32 %v21598_v37, %v25128_v29  ;;  %v500_v51 = vmul.f32 %v21598_v37, %v25130_v31 }
 0x211   : > { %v501_v55 = vmul.f32 %v21598_v37, %v25136_v35  ;;  %v502_v56 = vmul.f32 %v21598_v37, %v25146_v41 }
 0x212   : > { %v566_v57 = vmul.f32 %v545_v24, %v497_v47  ;;  %v567_v58 = vmul.f32 %v549_v25, %v498_v48  ;;  %v568_v59 = vmul.f32 %v553_v32, %v499_v50  ;;  %v569_v60 = vmul.f32 %v557_v33, %v500_v51 }
 0x213   : > { %v21600_v61 = vpop.eup %21599  ;;  %v570_v62 = vmul.f32 %v561_v34, %v501_v55  ;;  %v571_v63 = vmul.f32 %v565_v36, %v502_v56 }
 0x214   : > { %v632_v27 = vadd.f32 %v611_v42, %v566_v57  ;;  %v633_v3 = vadd.f32 %v615_v43, %v567_v58  ;;  %v634_v28 = vadd.f32 %v619_v45, %v568_v59  ;;  %v635_v4 = vadd.f32 %v623_v46, %v569_v60 }
 0x215   : > { %v636_v29 = vadd.f32 %v627_v52, %v570_v62  ;;  %v637_v5 = vadd.f32 %v631_v53, %v571_v63  ;;  %v503_v31 = vmul.f32 %v21600_v61, %v25140_v38  ;;  %v504_v6 = vmul.f32 %v21600_v61, %v25142_v39 }
 0x216   : > { %644 = vst [vmem:[#allocation2] sm:$0xff] %v632_v27  ;;  %645 = vst [vmem:[#allocation2 + $0x8] sm:$0xff] %v633_v3  ;;  %v505_v35 = vmul.f32 %v21600_v61, %v25144_v40  ;;  %v506_v41 = vmul.f32 %v21600_v61, %v25150_v44  ;;  %v507_v7 = vmul.f32 %v21600_v61, %v25158_v49 }
 0x217   : > { %646 = vst [vmem:[#allocation2 + $0x10] sm:$0xff] %v634_v28  ;;  %647 = vst [vmem:[#allocation2 + $0x18] sm:$0xff] %v635_v4  ;;  %v508_v8 = vmul.f32 %v21600_v61, %v25164_v54  ;;  %v572_v9 = vmul.f32 %v545_v24, %v503_v31  ;;  %v573_v10 = vmul.f32 %v549_v25, %v504_v6 }
 0x218   : > { %648 = vst [vmem:[#allocation2 + $0x20] sm:$0xff] %v636_v29  ;;  %649 = vst [vmem:[#allocation2 + $0x28] sm:$0xff] %v637_v5  ;;  %v574_v11 = vmul.f32 %v553_v32, %v505_v35  ;;  %v575_v38 = vmul.f32 %v557_v33, %v506_v41  ;;  %v576_v12 = vmul.f32 %v561_v34, %v507_v7 }
 0x219   : > { %v577_v39 = vmul.f32 %v565_v36, %v508_v8  ;;  %v638_v13 = vadd.f32 %v611_v42, %v572_v9  ;;  %v639_v14 = vadd.f32 %v615_v43, %v573_v10 }
 0x21a   : > { %v640_v15 = vadd.f32 %v619_v45, %v574_v11  ;;  %v641_v16 = vadd.f32 %v623_v46, %v575_v38  ;;  %v642_v17 = vadd.f32 %v627_v52, %v576_v12 }
 0x21b   : > { %v643_v40 = vadd.f32 %v631_v53, %v577_v39  ;;  %650 = vst [vmem:[#allocation2 + $0x30] sm:$0xff] %v638_v13  ;;  %651 = vst [vmem:[#allocation2 + $0x38] sm:$0xff] %v639_v14 }
 0x21c   : > { %652 = vst [vmem:[#allocation2 + $0x40] sm:$0xff] %v640_v15  ;;  %653 = vst [vmem:[#allocation2 + $0x48] sm:$0xff] %v641_v16 }
 0x21d   : > { %654 = vst [vmem:[#allocation2 + $0x50] sm:$0xff] %v642_v17  ;;  %655 = vst [vmem:[#allocation2 + $0x58] sm:$0xff] %v643_v40 }
 0x21e PF: > { %p18088_p1 = scmp.ne.s32.totalorder %s27847_s14, 0 }
 0x21f   : > { %v21601_v44 = vld [vmem:[%s25052_s23 + $0x4] ss:$24 sps:$4 sm:$0xff] (!%p18088_p1)   ;;  %v21605_v54 = vld [vmem:[%s25052_s23] ss:$24 sps:$4 sm:$0xff] (!%p18088_p1)   ;;  %v21607_v19 = vld [vmem:[%s25052_s23 + $0x34] ss:$24 sps:$4 sm:$0xff] (!%p18088_p1)  }
 0x220   : > { %659 = sbr.rel (%p18088_p1) target bundleno = 1339 (0x53b), region = 84  ;;  %v21603_v49 = vld [vmem:[%s25052_s23 + $0xc] ss:$24 sps:$4 sm:$0xff] (!%p18088_p1)   ;;  %2463 = vmatprep.subr.bf16.mxu0 (!%p18088_p1), %v21601_v44  ;;  %v21606_v18 = vld [vmem:[%s25052_s23 + $0x8] ss:$24 sps:$4 sm:$0xff] (!%p18088_p1)  }
 0x221   : > { %2592 = vmatprep.subr.bf16.mxu1 (!%p18088_p1), %v21603_v49  ;;  %2464 = vmatpush1.bf16.msra.mxu0 (!%p18088_p1), %v21605_v54  ;;  %v21609_v20 = vld [vmem:[%s25052_s23 + $0x3c] ss:$24 sps:$4 sm:$0xff] (!%p18088_p1)   ;;  %v21611_v21 = vld [vmem:[%s25052_s23 + $0x30] ss:$24 sps:$4 sm:$0xff] (!%p18088_p1)   ;;  %v21615_v24 = vld [vmem:[%s25052_s23 + $0x6c] ss:$24 sps:$4 sm:$0xff] (!%p18088_p1)  }
 0x222   : > { %2593 = vmatpush1.bf16.msra.mxu1 (!%p18088_p1), %v21606_v18  ;;  %2465 = vmatprep.subr.bf16.mxu0 (!%p18088_p1), %v21607_v19  ;;  %v21612_v22 = vld [vmem:[%s25052_s23 + $0x38] ss:$24 sps:$4 sm:$0xff] (!%p18088_p1)   ;;  %v21613_v23 = vld [vmem:[%s25052_s23 + $0x64] ss:$24 sps:$4 sm:$0xff] (!%p18088_p1)   ;;  %v21618_v26 = vld [vmem:[%s25052_s23 + $0x68] ss:$24 sps:$4 sm:$0xff] (!%p18088_p1)  }
 0x223   : > { %2594 = vmatprep.subr.bf16.mxu1 (!%p18088_p1), %v21609_v20  ;;  %v21617_v25 = vld [vmem:[%s25052_s23 + $0x60] ss:$24 sps:$4 sm:$0xff] (!%p18088_p1)   ;;  %v21619_v30 = vld [vmem:[%s25052_s23 + $0x94] ss:$24 sps:$4 sm:$0xff] (!%p18088_p1)   ;;  %v21623_v33 = vld [vmem:[%s25052_s23 + $0x90] ss:$24 sps:$4 sm:$0xff] (!%p18088_p1)  }
 0x224   : > { %v21621_v32 = vld [vmem:[%s25052_s23 + $0x9c] ss:$24 sps:$4 sm:$0xff] (!%p18088_p1)   ;;  %v21624_v34 = vld [vmem:[%s25052_s23 + $0x98] ss:$24 sps:$4 sm:$0xff] (!%p18088_p1)   ;;  %v21627_v37 = vld [vmem:[%s25052_s23 + $0xcc] ss:$24 sps:$4 sm:$0xff] (!%p18088_p1)  }
 0x225   : > { %2466 = vmatpush1.bf16.msra.mxu0 (!%p18088_p1), %v21611_v21  ;;  %v21625_v36 = vld [vmem:[%s25052_s23 + $0xc4] ss:$24 sps:$4 sm:$0xff] (!%p18088_p1)   ;;  %v21629_v42 = vld [vmem:[%s25052_s23 + $0xc0] ss:$24 sps:$4 sm:$0xff] (!%p18088_p1)   ;;  %v21631_v45 = vld [vmem:[%s25052_s23 + $0xf4] ss:$24 sps:$4 sm:$0xff] (!%p18088_p1)  }
 0x226   : > { %2595 = vmatpush1.bf16.msra.mxu1 (!%p18088_p1), %v21612_v22  ;;  %2467 = vmatprep.subr.bf16.mxu0 (!%p18088_p1), %v21613_v23  ;;  %v21630_v43 = vld [vmem:[%s25052_s23 + $0xc8] ss:$24 sps:$4 sm:$0xff] (!%p18088_p1)   ;;  %v21633_v46 = vld [vmem:[%s25052_s23 + $0xfc] ss:$24 sps:$4 sm:$0xff] (!%p18088_p1)   ;;  %v21636_v48 = vld [vmem:[%s25052_s23 + $0xf8] ss:$24 sps:$4 sm:$0xff] (!%p18088_p1)  }
 0x227   : > { %2596 = vmatprep.subr.bf16.mxu1 %v21615_v24  ;;  %v21635_v47 = vld [vmem:[%s25052_s23 + $0xf0] ss:$24 sps:$4 sm:$0xff]   ;;  %v21637_v50 = vld [vmem:[%s25052_s23 + $0x124] ss:$24 sps:$4 sm:$0xff]   ;;  %v21641_v52 = vld [vmem:[%s25052_s23 + $0x120] ss:$24 sps:$4 sm:$0xff]  }
 0x228   : > { %v21639_v51 = vld [vmem:[%s25052_s23 + $0x12c] ss:$24 sps:$4 sm:$0xff]   ;;  %v21642_v53 = vld [vmem:[%s25052_s23 + $0x128] ss:$24 sps:$4 sm:$0xff]   ;;  %v21645_v56 = vld [vmem:[%s25052_s23 + $0x15c] ss:$24 sps:$4 sm:$0xff]  }
 0x229   : > { %2468 = vmatpush1.bf16.msra.mxu0 %v21617_v25  ;;  %v21643_v55 = vld [vmem:[%s25052_s23 + $0x154] ss:$24 sps:$4 sm:$0xff]   ;;  %v21647_v57 = vld [vmem:[%s25052_s23 + $0x150] ss:$24 sps:$4 sm:$0xff]   ;;  %v21649_v59 = vld [vmem:[%s25052_s23 + $0x184] ss:$24 sps:$4 sm:$0xff]  }
 0x22a   : > { %2597 = vmatpush1.bf16.msra.mxu1 %v21618_v26  ;;  %2469 = vmatprep.subr.bf16.mxu0 %v21619_v30  ;;  %v21648_v58 = vld [vmem:[%s25052_s23 + $0x158] ss:$24 sps:$4 sm:$0xff]   ;;  %v21651_v60 = vld [vmem:[%s25052_s23 + $0x18c] ss:$24 sps:$4 sm:$0xff]   ;;  %v21654_v62 = vld [vmem:[%s25052_s23 + $0x188] ss:$24 sps:$4 sm:$0xff]  }
 0x22b   : > { %2598 = vmatprep.subr.bf16.mxu1 %v21621_v32  ;;  %v21653_v61 = vld [vmem:[%s25052_s23 + $0x180] ss:$24 sps:$4 sm:$0xff]   ;;  %v21655_v63 = vld [vmem:[%s25052_s23 + $0x1b4] ss:$24 sps:$4 sm:$0xff]   ;;  %v21659_v3 = vld [vmem:[%s25052_s23 + $0x1b0] ss:$24 sps:$4 sm:$0xff]  }
 0x22c   : > { %v21657_v27 = vld [vmem:[%s25052_s23 + $0x1bc] ss:$24 sps:$4 sm:$0xff]   ;;  %v21660_v28 = vld [vmem:[%s25052_s23 + $0x1b8] ss:$24 sps:$4 sm:$0xff]   ;;  %v21663_v29 = vld [vmem:[%s25052_s23 + $0x1ec] ss:$24 sps:$4 sm:$0xff]  }
 0x22d   : > { %2470 = vmatpush1.bf16.msra.mxu0 %v21623_v33  ;;  %v21661_v4 = vld [vmem:[%s25052_s23 + $0x1e4] ss:$24 sps:$4 sm:$0xff]   ;;  %v21665_v5 = vld [vmem:[%s25052_s23 + $0x1e0] ss:$24 sps:$4 sm:$0xff]   ;;  %v21667_v6 = vld [vmem:[%s25052_s23 + $0x214] ss:$24 sps:$4 sm:$0xff]  }
 0x22e   : > { %2599 = vmatpush1.bf16.msra.mxu1 %v21624_v34  ;;  %2471 = vmatprep.subr.bf16.mxu0 %v21625_v36  ;;  %v21666_v31 = vld [vmem:[%s25052_s23 + $0x1e8] ss:$24 sps:$4 sm:$0xff]   ;;  %v21669_v35 = vld [vmem:[%s25052_s23 + $0x21c] ss:$24 sps:$4 sm:$0xff]   ;;  %v21672_v9 = vld [vmem:[%s25052_s23 + $0x218] ss:$24 sps:$4 sm:$0xff]  }
 0x22f   : > { %2600 = vmatprep.subr.bf16.mxu1 %v21627_v37  ;;  %v661_v41 = vld [vmem:[#allocation2 + $0x8] sm:$0xff]  ;;  %v667_v7 = vld [vmem:[#allocation2 + $0x38] sm:$0xff]  ;;  %v660_v22 = vld [vmem:[#allocation2] sm:$0xff] }
 0x230   : > { %v21671_v8 = vld [vmem:[%s25052_s23 + $0x210] ss:$24 sps:$4 sm:$0xff]   ;;  %v25245_v10 = vpack.c.bf16 %v667_v7, %v661_v41  ;;  %v21673_v11 = vld [vmem:[%s25052_s23 + $0x244] ss:$24 sps:$4 sm:$0xff]   ;;  %v21677_v12 = vld [vmem:[%s25052_s23 + $0x240] ss:$24 sps:$4 sm:$0xff]  }
 0x231   : > { %2472 = vmatpush1.bf16.msra.mxu0 %v21629_v42  ;;  %v21675_v38 = vld [vmem:[%s25052_s23 + $0x24c] ss:$24 sps:$4 sm:$0xff]   ;;  %v21678_v39 = vld [vmem:[%s25052_s23 + $0x248] ss:$24 sps:$4 sm:$0xff]   ;;  %v21681_v14 = vld [vmem:[%s25052_s23 + $0x27c] ss:$24 sps:$4 sm:$0xff]  }
 0x232   : > { %2601 = vmatpush1.bf16.msra.mxu1 %v21630_v43  ;;  %2473 = vmatprep.subr.bf16.mxu0 %v21631_v45  ;;  %v21679_v13 = vld [vmem:[%s25052_s23 + $0x274] ss:$24 sps:$4 sm:$0xff]   ;;  %v21683_v15 = vld [vmem:[%s25052_s23 + $0x270] ss:$24 sps:$4 sm:$0xff]   ;;  %v21685_v17 = vld [vmem:[%s25052_s23 + $0x2a4] ss:$24 sps:$4 sm:$0xff]  }
 0x233   : > { %2602 = vmatprep.subr.bf16.mxu1 %v21633_v46  ;;  %2495 = vmatprep.mubr.bf16.mxu0 %v25245_v10  ;;  %v21684_v16 = vld [vmem:[%s25052_s23 + $0x278] ss:$24 sps:$4 sm:$0xff]   ;;  %v21687_v40 = vld [vmem:[%s25052_s23 + $0x2ac] ss:$24 sps:$4 sm:$0xff]   ;;  %v21690_v49 = vld [vmem:[%s25052_s23 + $0x2a8] ss:$24 sps:$4 sm:$0xff]  }
 0x234   : > { %2624 = vmatprep.mubr.bf16.mxu1 %v25245_v10  ;;  %v21689_v44 = vld [vmem:[%s25052_s23 + $0x2a0] ss:$24 sps:$4 sm:$0xff]   ;;  %v21691_v54 = vld [vmem:[%s25052_s23 + $0x2d4] ss:$24 sps:$4 sm:$0xff]   ;;  %v21695_v19 = vld [vmem:[%s25052_s23 + $0x2d0] ss:$24 sps:$4 sm:$0xff]  }
 0x235   : > { %2474 = vmatpush1.bf16.msra.mxu0 %v21635_v47  ;;  %v21693_v18 = vld [vmem:[%s25052_s23 + $0x2dc] ss:$24 sps:$4 sm:$0xff]   ;;  %v21696_v20 = vld [vmem:[%s25052_s23 + $0x2d8] ss:$24 sps:$4 sm:$0xff]   ;;  %v21702_v24 = vld [vmem:[%s25052_s23 + $0x30c] ss:$24 sps:$4 sm:$0xff]  }
 0x236   : > { %2603 = vmatpush1.bf16.msra.mxu1 %v21636_v48  ;;  %2475 = vmatprep.subr.bf16.mxu0 %v21637_v50  ;;  %v21699_v21 = vld [vmem:[%s25052_s23 + $0x304] ss:$24 sps:$4 sm:$0xff]   ;;  %v666_v23 = vld [vmem:[#allocation2 + $0x30] sm:$0xff]  ;;  %v21697_v25 = vld [vmem:[%s25052_s23 + $0x300] ss:$24 sps:$4 sm:$0xff]  }
 0x237   : > { %2604 = vmatprep.subr.bf16.mxu1 %v21639_v51  ;;  %v21700_v26 = vld [vmem:[%s25052_s23 + $0x308] ss:$24 sps:$4 sm:$0xff]   ;;  %v25269_v30 = vpack.c.bf16 %v666_v23, %v660_v22  ;;  %v21705_v32 = vld [vmem:[%s25052_s23 + $0x334] ss:$24 sps:$4 sm:$0xff]   ;;  %v21706_v36 = vld [vmem:[%s25052_s23 + $0x338] ss:$24 sps:$4 sm:$0xff]  }
 0x238   : > { %v21708_v33 = vld [vmem:[%s25052_s23 + $0x33c] ss:$24 sps:$4 sm:$0xff]   ;;  %v21703_v34 = vld [vmem:[%s25052_s23 + $0x330] ss:$24 sps:$4 sm:$0xff]   ;;  %v21714_v42 = vld [vmem:[%s25052_s23 + $0x36c] ss:$24 sps:$4 sm:$0xff]  }
 0x239   : > { %2476 = vmatpush1.bf16.msra.mxu0 %v21641_v52  ;;  %v21711_v37 = vld [vmem:[%s25052_s23 + $0x364] ss:$24 sps:$4 sm:$0xff]   ;;  %v21709_v43 = vld [vmem:[%s25052_s23 + $0x360] ss:$24 sps:$4 sm:$0xff]   ;;  %v21717_v46 = vld [vmem:[%s25052_s23 + $0x394] ss:$24 sps:$4 sm:$0xff]  }
 0x23a   : > { %2605 = vmatpush1.bf16.msra.mxu1 %v21642_v53  ;;  %2477 = vmatprep.subr.bf16.mxu0 %v21643_v55  ;;  %v21712_v45 = vld [vmem:[%s25052_s23 + $0x368] ss:$24 sps:$4 sm:$0xff]   ;;  %v21720_v47 = vld [vmem:[%s25052_s23 + $0x39c] ss:$24 sps:$4 sm:$0xff]   ;;  %v21718_v50 = vld [vmem:[%s25052_s23 + $0x398] ss:$24 sps:$4 sm:$0xff]  }
 0x23b   : > { %2606 = vmatprep.subr.bf16.mxu1 %v21645_v56  ;;  %v21715_v48 = vld [vmem:[%s25052_s23 + $0x390] ss:$24 sps:$4 sm:$0xff]   ;;  %v21723_v51 = vld [vmem:[%s25052_s23 + $0x3c4] ss:$24 sps:$4 sm:$0xff]   ;;  %v21721_v53 = vld [vmem:[%s25052_s23 + $0x3c0] ss:$24 sps:$4 sm:$0xff]  }
 0x23c   : > { %v21726_v52 = vld [vmem:[%s25052_s23 + $0x3cc] ss:$24 sps:$4 sm:$0xff]   ;;  %v21724_v55 = vld [vmem:[%s25052_s23 + $0x3c8] ss:$24 sps:$4 sm:$0xff]   ;;  %v21778_v22 = vld [vmem:[%s25052_s23 + $0x578] ss:$24 sps:$4 sm:$0xff]  }
 0x23d   : > { %2478 = vmatpush1.bf16.msra.mxu0 %v21647_v57  ;;  %v21729_v56 = vld [vmem:[%s25052_s23 + $0x3f4] ss:$24 sps:$4 sm:$0xff]   ;;  %v21745_v41 = vld [vmem:[%s25052_s23 + $0x480] ss:$24 sps:$4 sm:$0xff]   ;;  %v21783_v23 = vld [vmem:[%s25052_s23 + $0x5a4] ss:$24 sps:$4 sm:$0xff]  }
 0x23e   : > { %2607 = vmatpush1.bf16.msra.mxu1 %v21648_v58  ;;  %2479 = vmatprep.subr.bf16.mxu0 %v21649_v59  ;;  %v21732_v57 = vld [vmem:[%s25052_s23 + $0x3fc] ss:$24 sps:$4 sm:$0xff]   ;;  %v21727_v58 = vld [vmem:[%s25052_s23 + $0x3f0] ss:$24 sps:$4 sm:$0xff]  }
 0x23f   : > { %2608 = vmatprep.subr.bf16.mxu1 %v21651_v60  ;;  %v21730_v59 = vld [vmem:[%s25052_s23 + $0x3f8] ss:$24 sps:$4 sm:$0xff]   ;;  %v21735_v60 = vld [vmem:[%s25052_s23 + $0x424] ss:$24 sps:$4 sm:$0xff]   ;;  %v21748_v7 = vld [vmem:[%s25052_s23 + $0x488] ss:$24 sps:$4 sm:$0xff]  }
 0x241   : > { %2480 = vmatpush1.bf16.msra.mxu0 %v21653_v61  ;;  %v21738_v61 = vld [vmem:[%s25052_s23 + $0x42c] ss:$24 sps:$4 sm:$0xff]  }
 0x242   : > { %2609 = vmatpush1.bf16.msra.mxu1 %v21654_v62  ;;  %2481 = vmatprep.subr.bf16.mxu0 %v21655_v63  ;;  %v663_v62 = vld [vmem:[#allocation2 + $0x18] sm:$0xff]  ;;  %v669_v63 = vld [vmem:[#allocation2 + $0x48] sm:$0xff] }
 0x243   : > { %2610 = vmatprep.subr.bf16.mxu1 %v21657_v27  ;;  %v21733_v27 = vld [vmem:[%s25052_s23 + $0x420] ss:$24 sps:$4 sm:$0xff]  }
 0x245   : > { %2482 = vmatpush1.bf16.msra.mxu0 %v21659_v3  ;;  %v21736_v3 = vld [vmem:[%s25052_s23 + $0x428] ss:$24 sps:$4 sm:$0xff]  }
 0x246   : > { %2611 = vmatpush1.bf16.msra.mxu1 %v21660_v28  ;;  %2483 = vmatprep.subr.bf16.mxu0 %v21661_v4  ;;  %v25297_v28 = vpack.c.bf16 %v669_v63, %v663_v62  ;;  %v21741_v4 = vld [vmem:[%s25052_s23 + $0x454] ss:$24 sps:$4 sm:$0xff]  }
 0x247   : > { %2612 = vmatprep.subr.bf16.mxu1 %v21663_v29  ;;  %v21744_v29 = vld [vmem:[%s25052_s23 + $0x45c] ss:$24 sps:$4 sm:$0xff]  }
 0x248   : > { %v21813_v62 = vld [vmem:[%s25052_s23 + $0x694] ss:$24 sps:$4 sm:$0xff]  }
 0x249   : > { %2484 = vmatpush1.bf16.msra.mxu0 %v21665_v5  ;;  %v21739_v5 = vld [vmem:[%s25052_s23 + $0x450] ss:$24 sps:$4 sm:$0xff]   ;;  %v21816_v63 = vld [vmem:[%s25052_s23 + $0x69c] ss:$24 sps:$4 sm:$0xff]  }
 0x24a   : > { %2613 = vmatpush1.bf16.msra.mxu1 %v21666_v31  ;;  %2485 = vmatprep.subr.bf16.mxu0 %v21667_v6  ;;  %v21742_v31 = vld [vmem:[%s25052_s23 + $0x458] ss:$24 sps:$4 sm:$0xff]   ;;  %v21747_v6 = vld [vmem:[%s25052_s23 + $0x484] ss:$24 sps:$4 sm:$0xff]  }
 0x24b   : > { %2614 = vmatprep.subr.bf16.mxu1 %v21669_v35  ;;  %v21750_v35 = vld [vmem:[%s25052_s23 + $0x48c] ss:$24 sps:$4 sm:$0xff]  }
 0x24d   : > { %2486 = vmatpush1.bf16.msra.mxu0 %v21671_v8  ;;  %v21753_v8 = vld [vmem:[%s25052_s23 + $0x4b4] ss:$24 sps:$4 sm:$0xff]  }
 0x24e   : > { %2615 = vmatpush1.bf16.msra.mxu1 %v21672_v9  ;;  %2487 = vmatprep.subr.bf16.mxu0 %v21673_v11  ;;  %v21756_v9 = vld [vmem:[%s25052_s23 + $0x4bc] ss:$24 sps:$4 sm:$0xff]   ;;  %v21751_v11 = vld [vmem:[%s25052_s23 + $0x4b0] ss:$24 sps:$4 sm:$0xff]  }
 0x24f   : > { %2616 = vmatprep.subr.bf16.mxu1 %v21675_v38  ;;  %v21754_v38 = vld [vmem:[%s25052_s23 + $0x4b8] ss:$24 sps:$4 sm:$0xff]  }
 0x251   : > { %2488 = vmatpush1.bf16.msra.mxu0 %v21677_v12  ;;  %v21759_v12 = vld [vmem:[%s25052_s23 + $0x4e4] ss:$24 sps:$4 sm:$0xff]  }
 0x252   : > { %2617 = vmatpush1.bf16.msra.mxu1 %v21678_v39  ;;  %2489 = vmatprep.subr.bf16.mxu0 %v21679_v13  ;;  %v21762_v39 = vld [vmem:[%s25052_s23 + $0x4ec] ss:$24 sps:$4 sm:$0xff]   ;;  %v21757_v13 = vld [vmem:[%s25052_s23 + $0x4e0] ss:$24 sps:$4 sm:$0xff]  }
 0x253   : > { %2618 = vmatprep.subr.bf16.mxu1 %v21681_v14  ;;  %v21760_v14 = vld [vmem:[%s25052_s23 + $0x4e8] ss:$24 sps:$4 sm:$0xff]  }
 0x255   : > { %2490 = vmatpush1.bf16.msra.mxu0 %v21683_v15  ;;  %v21765_v15 = vld [vmem:[%s25052_s23 + $0x514] ss:$24 sps:$4 sm:$0xff]  }
 0x256   : > { %2619 = vmatpush1.bf16.msra.mxu1 %v21684_v16  ;;  %2491 = vmatprep.subr.bf16.mxu0 %v21685_v17  ;;  %v21768_v16 = vld [vmem:[%s25052_s23 + $0x51c] ss:$24 sps:$4 sm:$0xff]   ;;  %v21763_v17 = vld [vmem:[%s25052_s23 + $0x510] ss:$24 sps:$4 sm:$0xff]  }
 0x257   : > { %2620 = vmatprep.subr.bf16.mxu1 %v21687_v40  ;;  %v21766_v40 = vld [vmem:[%s25052_s23 + $0x518] ss:$24 sps:$4 sm:$0xff]  }
 0x259   : > { %2492 = vmatpush1.bf16.msra.mxu0 %v21689_v44  ;;  %v21771_v44 = vld [vmem:[%s25052_s23 + $0x544] ss:$24 sps:$4 sm:$0xff]  }
 0x25a   : > { %2621 = vmatpush1.bf16.msra.mxu1 %v21690_v49  ;;  %2493 = vmatprep.subr.bf16.mxu0 %v21691_v54  ;;  %v21774_v49 = vld [vmem:[%s25052_s23 + $0x54c] ss:$24 sps:$4 sm:$0xff]   ;;  %v21769_v54 = vld [vmem:[%s25052_s23 + $0x540] ss:$24 sps:$4 sm:$0xff]  }
 0x25b   : > { %2622 = vmatprep.subr.bf16.mxu1 %v21693_v18  ;;  %v21772_v18 = vld [vmem:[%s25052_s23 + $0x548] ss:$24 sps:$4 sm:$0xff]  }
 0x25d   : > { %2494 = vmatpush1.bf16.msra.mxu0 %v21695_v19  ;;  %v21777_v19 = vld [vmem:[%s25052_s23 + $0x574] ss:$24 sps:$4 sm:$0xff]  }
 0x25e   : > { %2623 = vmatpush1.bf16.msra.mxu1 %v21696_v20  ;;  %2506 = vmatprep.subr.bf16.mxu0 %v21699_v21  ;;  %v21780_v20 = vld [vmem:[%s25052_s23 + $0x57c] ss:$24 sps:$4 sm:$0xff]   ;;  %v21775_v21 = vld [vmem:[%s25052_s23 + $0x570] ss:$24 sps:$4 sm:$0xff]  }
 0x25f   : > { %2635 = vmatprep.subr.bf16.mxu1 %v21702_v24  ;;  %v21786_v24 = vld [vmem:[%s25052_s23 + $0x5ac] ss:$24 sps:$4 sm:$0xff]  }
 0x260   : > { %2496 = vmatmul.mubr.bf16.vlgmr.msra.gmra.mrb[0].mxu0 %v25269_v30 }
 0x261   : > { %2625 = vmatmul.mubr.bf16.vlgmr.msra.gmra.mrb[0].mxu1 %v25269_v30  ;;  %2507 = vmatpush1.bf16.msra.mxu0 %v21697_v25  ;;  %v21781_v25 = vld [vmem:[%s25052_s23 + $0x5a0] ss:$24 sps:$4 sm:$0xff]  }
 0x262   : > { %2636 = vmatpush1.bf16.msra.mxu1 %v21700_v26  ;;  %2508 = vmatprep.subr.bf16.mxu0 %v21705_v32  ;;  %v21784_v26 = vld [vmem:[%s25052_s23 + $0x5a8] ss:$24 sps:$4 sm:$0xff]   ;;  %v21789_v32 = vld [vmem:[%s25052_s23 + $0x5d4] ss:$24 sps:$4 sm:$0xff]  }
 0x263   : > { %2637 = vmatprep.subr.bf16.mxu1 %v21708_v33  ;;  %2538 = vmatprep.mubr.bf16.mxu0 %v25297_v28  ;;  %v21792_v33 = vld [vmem:[%s25052_s23 + $0x5dc] ss:$24 sps:$4 sm:$0xff]  }
 0x264   : > { %2667 = vmatprep.mubr.bf16.mxu1 %v25297_v28 }
 0x265   : > { %2509 = vmatpush1.bf16.msra.mxu0 %v21703_v34  ;;  %v21787_v34 = vld [vmem:[%s25052_s23 + $0x5d0] ss:$24 sps:$4 sm:$0xff]  }
 0x266   : > { %2638 = vmatpush1.bf16.msra.mxu1 %v21706_v36  ;;  %2510 = vmatprep.subr.bf16.mxu0 %v21711_v37  ;;  %v21790_v36 = vld [vmem:[%s25052_s23 + $0x5d8] ss:$24 sps:$4 sm:$0xff]   ;;  %v21795_v37 = vld [vmem:[%s25052_s23 + $0x604] ss:$24 sps:$4 sm:$0xff]  }
 0x267   : > { %2639 = vmatprep.subr.bf16.mxu1 %v21714_v42  ;;  %v662_v42 = vld [vmem:[#allocation2 + $0x10] sm:$0xff] }
 0x269   : > { %2511 = vmatpush1.bf16.msra.mxu0 %v21709_v43  ;;  %v668_v43 = vld [vmem:[#allocation2 + $0x40] sm:$0xff] }
 0x26a   : > { %2640 = vmatpush1.bf16.msra.mxu1 %v21712_v45  ;;  %2512 = vmatprep.subr.bf16.mxu0 %v21717_v46  ;;  %v21798_v45 = vld [vmem:[%s25052_s23 + $0x60c] ss:$24 sps:$4 sm:$0xff]   ;;  %v21793_v46 = vld [vmem:[%s25052_s23 + $0x600] ss:$24 sps:$4 sm:$0xff]  }
 0x26b   : > { %2641 = vmatprep.subr.bf16.mxu1 %v21720_v47  ;;  %v21796_v47 = vld [vmem:[%s25052_s23 + $0x608] ss:$24 sps:$4 sm:$0xff]  }
 0x26d   : > { %2513 = vmatpush1.bf16.msra.mxu0 %v21715_v48  ;;  %v25341_v48 = vpack.c.bf16 %v668_v43, %v662_v42  ;;  %v21876_v42 = vld [vmem:[%s25052_s23 + $0x87c] ss:$24 sps:$4 sm:$0xff]   ;;  %v21871_v43 = vld [vmem:[%s25052_s23 + $0x870] ss:$24 sps:$4 sm:$0xff]  }
 0x26e   : > { %2642 = vmatpush1.bf16.msra.mxu1 %v21718_v50  ;;  %2514 = vmatprep.subr.bf16.mxu0 %v21723_v51  ;;  %v21801_v50 = vld [vmem:[%s25052_s23 + $0x634] ss:$24 sps:$4 sm:$0xff]  }
 0x26f   : > { %2643 = vmatprep.subr.bf16.mxu1 %v21726_v52  ;;  %v21804_v51 = vld [vmem:[%s25052_s23 + $0x63c] ss:$24 sps:$4 sm:$0xff]   ;;  %v665_v52 = vld [vmem:[#allocation2 + $0x28] sm:$0xff] }
 0x271   : > { %2515 = vmatpush1.bf16.msra.mxu0 %v21721_v53  ;;  %v21799_v53 = vld [vmem:[%s25052_s23 + $0x630] ss:$24 sps:$4 sm:$0xff]  }
 0x272   : > { %2644 = vmatpush1.bf16.msra.mxu1 %v21724_v55  ;;  %2516 = vmatprep.subr.bf16.mxu0 %v21729_v56  ;;  %v21802_v55 = vld [vmem:[%s25052_s23 + $0x638] ss:$24 sps:$4 sm:$0xff]  }
 0x273   : > { %2645 = vmatprep.subr.bf16.mxu1 %v21732_v57  ;;  %v671_v56 = vld [vmem:[#allocation2 + $0x58] sm:$0xff] }
 0x274   : > { %v21807_v57 = vld [vmem:[%s25052_s23 + $0x664] ss:$24 sps:$4 sm:$0xff]  }
 0x275   : > { %2517 = vmatpush1.bf16.msra.mxu0 %v21727_v58  ;;  %v25350_v58 = vpack.c.bf16 %v671_v56, %v665_v52  ;;  %v21885_v52 = vld [vmem:[%s25052_s23 + $0x8d4] ss:$24 sps:$4 sm:$0xff]   ;;  %v21886_v56 = vld [vmem:[%s25052_s23 + $0x8d8] ss:$24 sps:$4 sm:$0xff]  }
 0x276   : > { %2646 = vmatpush1.bf16.msra.mxu1 %v21730_v59  ;;  %2518 = vmatprep.subr.bf16.mxu0 %v21735_v60  ;;  %v21810_v59 = vld [vmem:[%s25052_s23 + $0x66c] ss:$24 sps:$4 sm:$0xff]   ;;  %v21805_v60 = vld [vmem:[%s25052_s23 + $0x660] ss:$24 sps:$4 sm:$0xff]  }
 0x277   : > { %2647 = vmatprep.subr.bf16.mxu1 %v21738_v61  ;;  %v21808_v61 = vld [vmem:[%s25052_s23 + $0x668] ss:$24 sps:$4 sm:$0xff]  }
 0x279   : > { %2519 = vmatpush1.bf16.msra.mxu0 %v21733_v27  ;;  %v21811_v27 = vld [vmem:[%s25052_s23 + $0x690] ss:$24 sps:$4 sm:$0xff]  }
 0x27a   : > { %2648 = vmatpush1.bf16.msra.mxu1 %v21736_v3  ;;  %2520 = vmatprep.subr.bf16.mxu0 %v21741_v4  ;;  %v21814_v3 = vld [vmem:[%s25052_s23 + $0x698] ss:$24 sps:$4 sm:$0xff]   ;;  %v21819_v4 = vld [vmem:[%s25052_s23 + $0x6c4] ss:$24 sps:$4 sm:$0xff]  }
 0x27b   : > { %2649 = vmatprep.subr.bf16.mxu1 %v21744_v29  ;;  %v21822_v29 = vld [vmem:[%s25052_s23 + $0x6cc] ss:$24 sps:$4 sm:$0xff]  }
 0x27d   : > { %2521 = vmatpush1.bf16.msra.mxu0 %v21739_v5  ;;  %v21817_v5 = vld [vmem:[%s25052_s23 + $0x6c0] ss:$24 sps:$4 sm:$0xff]  }
 0x27e   : > { %2650 = vmatpush1.bf16.msra.mxu1 %v21742_v31  ;;  %2522 = vmatprep.subr.bf16.mxu0 %v21747_v6  ;;  %v21820_v31 = vld [vmem:[%s25052_s23 + $0x6c8] ss:$24 sps:$4 sm:$0xff]   ;;  %v21825_v6 = vld [vmem:[%s25052_s23 + $0x6f4] ss:$24 sps:$4 sm:$0xff]  }
 0x27f   : > { %2651 = vmatprep.subr.bf16.mxu1 %v21750_v35  ;;  %v21828_v35 = vld [vmem:[%s25052_s23 + $0x6fc] ss:$24 sps:$4 sm:$0xff]  }
 0x281   : > { %2523 = vmatpush1.bf16.msra.mxu0 %v21745_v41  ;;  %v21823_v41 = vld [vmem:[%s25052_s23 + $0x6f0] ss:$24 sps:$4 sm:$0xff]  }
 0x282   : > { %2652 = vmatpush1.bf16.msra.mxu1 %v21748_v7  ;;  %2524 = vmatprep.subr.bf16.mxu0 %v21753_v8  ;;  %v21826_v7 = vld [vmem:[%s25052_s23 + $0x6f8] ss:$24 sps:$4 sm:$0xff]   ;;  %v21831_v8 = vld [vmem:[%s25052_s23 + $0x724] ss:$24 sps:$4 sm:$0xff]  }
 0x283   : > { %2653 = vmatprep.subr.bf16.mxu1 %v21756_v9  ;;  %v21834_v9 = vld [vmem:[%s25052_s23 + $0x72c] ss:$24 sps:$4 sm:$0xff]  }
 0x285   : > { %2525 = vmatpush1.bf16.msra.mxu0 %v21751_v11  ;;  %v21829_v11 = vld [vmem:[%s25052_s23 + $0x720] ss:$24 sps:$4 sm:$0xff]  }
 0x286   : > { %2654 = vmatpush1.bf16.msra.mxu1 %v21754_v38  ;;  %2526 = vmatprep.subr.bf16.mxu0 %v21759_v12  ;;  %v21832_v38 = vld [vmem:[%s25052_s23 + $0x728] ss:$24 sps:$4 sm:$0xff]   ;;  %v21837_v12 = vld [vmem:[%s25052_s23 + $0x754] ss:$24 sps:$4 sm:$0xff]  }
 0x287   : > { %2655 = vmatprep.subr.bf16.mxu1 %v21762_v39  ;;  %v21840_v39 = vld [vmem:[%s25052_s23 + $0x75c] ss:$24 sps:$4 sm:$0xff]  }
 0x289   : > { %2527 = vmatpush1.bf16.msra.mxu0 %v21757_v13  ;;  %v21835_v13 = vld [vmem:[%s25052_s23 + $0x750] ss:$24 sps:$4 sm:$0xff]  }
 0x28a   : > { %2656 = vmatpush1.bf16.msra.mxu1 %v21760_v14  ;;  %2528 = vmatprep.subr.bf16.mxu0 %v21765_v15  ;;  %v21838_v14 = vld [vmem:[%s25052_s23 + $0x758] ss:$24 sps:$4 sm:$0xff]   ;;  %v21843_v15 = vld [vmem:[%s25052_s23 + $0x784] ss:$24 sps:$4 sm:$0xff]  }
 0x28b   : > { %2657 = vmatprep.subr.bf16.mxu1 %v21768_v16  ;;  %v21846_v16 = vld [vmem:[%s25052_s23 + $0x78c] ss:$24 sps:$4 sm:$0xff]  }
 0x28d   : > { %2529 = vmatpush1.bf16.msra.mxu0 %v21763_v17  ;;  %v21841_v17 = vld [vmem:[%s25052_s23 + $0x780] ss:$24 sps:$4 sm:$0xff]  }
 0x28e   : > { %2658 = vmatpush1.bf16.msra.mxu1 %v21766_v40  ;;  %2530 = vmatprep.subr.bf16.mxu0 %v21771_v44  ;;  %v21844_v40 = vld [vmem:[%s25052_s23 + $0x788] ss:$24 sps:$4 sm:$0xff]   ;;  %v21849_v44 = vld [vmem:[%s25052_s23 + $0x7b4] ss:$24 sps:$4 sm:$0xff]  }
 0x28f   : > { %2659 = vmatprep.subr.bf16.mxu1 %v21774_v49  ;;  %v21852_v49 = vld [vmem:[%s25052_s23 + $0x7bc] ss:$24 sps:$4 sm:$0xff]  }
 0x291   : > { %2531 = vmatpush1.bf16.msra.mxu0 %v21769_v54  ;;  %v21847_v54 = vld [vmem:[%s25052_s23 + $0x7b0] ss:$24 sps:$4 sm:$0xff]  }
 0x292   : > { %2660 = vmatpush1.bf16.msra.mxu1 %v21772_v18  ;;  %2532 = vmatprep.subr.bf16.mxu0 %v21777_v19  ;;  %v21850_v18 = vld [vmem:[%s25052_s23 + $0x7b8] ss:$24 sps:$4 sm:$0xff]   ;;  %v21855_v19 = vld [vmem:[%s25052_s23 + $0x7e4] ss:$24 sps:$4 sm:$0xff]  }
 0x293   : > { %2661 = vmatprep.subr.bf16.mxu1 %v21780_v20  ;;  %v21858_v20 = vld [vmem:[%s25052_s23 + $0x7ec] ss:$24 sps:$4 sm:$0xff]  }
 0x295   : > { %2533 = vmatpush1.bf16.msra.mxu0 %v21775_v21  ;;  %v21853_v21 = vld [vmem:[%s25052_s23 + $0x7e0] ss:$24 sps:$4 sm:$0xff]  }
 0x296   : > { %2662 = vmatpush1.bf16.msra.mxu1 %v21778_v22  ;;  %2534 = vmatprep.subr.bf16.mxu0 %v21783_v23  ;;  %v21856_v22 = vld [vmem:[%s25052_s23 + $0x7e8] ss:$24 sps:$4 sm:$0xff]   ;;  %v21861_v23 = vld [vmem:[%s25052_s23 + $0x814] ss:$24 sps:$4 sm:$0xff]  }
 0x297   : > { %2663 = vmatprep.subr.bf16.mxu1 %v21786_v24  ;;  %v21864_v24 = vld [vmem:[%s25052_s23 + $0x81c] ss:$24 sps:$4 sm:$0xff]  }
 0x299   : > { %2535 = vmatpush1.bf16.msra.mxu0 %v21781_v25  ;;  %v21859_v25 = vld [vmem:[%s25052_s23 + $0x810] ss:$24 sps:$4 sm:$0xff]  }
 0x29a   : > { %2664 = vmatpush1.bf16.msra.mxu1 %v21784_v26  ;;  %2536 = vmatprep.subr.bf16.mxu0 %v21789_v32  ;;  %v21862_v26 = vld [vmem:[%s25052_s23 + $0x818] ss:$24 sps:$4 sm:$0xff]   ;;  %v21867_v32 = vld [vmem:[%s25052_s23 + $0x844] ss:$24 sps:$4 sm:$0xff]  }
 0x29b   : > { %2665 = vmatprep.subr.bf16.mxu1 %v21792_v33  ;;  %v21870_v33 = vld [vmem:[%s25052_s23 + $0x84c] ss:$24 sps:$4 sm:$0xff]  }
 0x29d   : > { %2537 = vmatpush1.bf16.msra.mxu0 %v21787_v34  ;;  %v21865_v34 = vld [vmem:[%s25052_s23 + $0x840] ss:$24 sps:$4 sm:$0xff]  }
 0x29e   : > { %2666 = vmatpush1.bf16.msra.mxu1 %v21790_v36  ;;  %2549 = vmatprep.subr.bf16.mxu0 %v21795_v37  ;;  %v21868_v36 = vld [vmem:[%s25052_s23 + $0x848] ss:$24 sps:$4 sm:$0xff]   ;;  %v21873_v37 = vld [vmem:[%s25052_s23 + $0x874] ss:$24 sps:$4 sm:$0xff]  }
 0x29f   : > { %2678 = vmatprep.subr.bf16.mxu1 %v21798_v45  ;;  %v21874_v45 = vld [vmem:[%s25052_s23 + $0x878] ss:$24 sps:$4 sm:$0xff]  }
 0x2a0   : > { %2539 = vmatmul.mubr.bf16.vlgmr.msra.gmra.mrb[0].mxu0 %v25341_v48 }
 0x2a1   : > { %2668 = vmatmul.mubr.bf16.vlgmr.msra.gmra.mrb[0].mxu1 %v25341_v48  ;;  %2550 = vmatpush1.bf16.msra.mxu0 %v21793_v46  ;;  %v21879_v46 = vld [vmem:[%s25052_s23 + $0x8a4] ss:$24 sps:$4 sm:$0xff]  }
 0x2a2   : > { %2679 = vmatpush1.bf16.msra.mxu1 %v21796_v47  ;;  %2551 = vmatprep.subr.bf16.mxu0 %v21801_v50  ;;  %v21882_v47 = vld [vmem:[%s25052_s23 + $0x8ac] ss:$24 sps:$4 sm:$0xff]   ;;  %v21877_v50 = vld [vmem:[%s25052_s23 + $0x8a0] ss:$24 sps:$4 sm:$0xff]  }
 0x2a3   : > { %2680 = vmatprep.subr.bf16.mxu1 %v21804_v51  ;;  %2581 = vmatprep.mubr.bf16.mxu0 %v25350_v58  ;;  %v21880_v51 = vld [vmem:[%s25052_s23 + $0x8a8] ss:$24 sps:$4 sm:$0xff]  }
 0x2a4   : > { %2710 = vmatprep.mubr.bf16.mxu1 %v25350_v58 }
 0x2a5   : > { %2552 = vmatpush1.bf16.msra.mxu0 %v21799_v53  ;;  %v21888_v53 = vld [vmem:[%s25052_s23 + $0x8dc] ss:$24 sps:$4 sm:$0xff]  }
 0x2a6   : > { %2681 = vmatpush1.bf16.msra.mxu1 %v21802_v55  ;;  %2553 = vmatprep.subr.bf16.mxu0 %v21807_v57  ;;  %v21883_v55 = vld [vmem:[%s25052_s23 + $0x8d0] ss:$24 sps:$4 sm:$0xff]   ;;  %v664_v57 = vld [vmem:[#allocation2 + $0x20] sm:$0xff] }
 0x2a7   : > { %2682 = vmatprep.subr.bf16.mxu1 %v21810_v59  ;;  %v670_v59 = vld [vmem:[#allocation2 + $0x50] sm:$0xff] }
 0x2a9   : > { %2554 = vmatpush1.bf16.msra.mxu0 %v21805_v60  ;;  %v21891_v60 = vld [vmem:[%s25052_s23 + $0x14] ss:$24 sps:$4 sm:$0xff]  }
 0x2aa   : > { %2683 = vmatpush1.bf16.msra.mxu1 %v21808_v61  ;;  %2555 = vmatprep.subr.bf16.mxu0 %v21813_v62  ;;  %v21894_v61 = vld [vmem:[%s25052_s23 + $0x904] ss:$24 sps:$4 sm:$0xff]   ;;  %v25411_v62 = vpack.c.bf16 %v670_v59, %v664_v57  ;;  %v21972_v57 = vld [vmem:[%s25052_s23 + $0xb74] ss:$24 sps:$4 sm:$0xff]   ;;  %v21967_v59 = vld [vmem:[%s25052_s23 + $0x280] ss:$24 sps:$4 sm:$0xff]  }
 0x2ab   : > { %2684 = vmatprep.subr.bf16.mxu1 %v21816_v63  ;;  %v21889_v63 = vld [vmem:[%s25052_s23 + $0x10] ss:$24 sps:$4 sm:$0xff]  }
 0x2ad   : > { %2556 = vmatpush1.bf16.msra.mxu0 %v21811_v27  ;;  %v21892_v27 = vld [vmem:[%s25052_s23 + $0x900] ss:$24 sps:$4 sm:$0xff]  }
 0x2ae   : > { %2685 = vmatpush1.bf16.msra.mxu1 %v21814_v3  ;;  %2557 = vmatprep.subr.bf16.mxu0 %v21819_v4  ;;  %v21897_v3 = vld [vmem:[%s25052_s23 + $0x44] ss:$24 sps:$4 sm:$0xff]   ;;  %v21900_v4 = vld [vmem:[%s25052_s23 + $0x934] ss:$24 sps:$4 sm:$0xff]  }
 0x2af   : > { %2686 = vmatprep.subr.bf16.mxu1 %v21822_v29  ;;  %v21895_v29 = vld [vmem:[%s25052_s23 + $0x40] ss:$24 sps:$4 sm:$0xff]  }
 0x2b1   : > { %2558 = vmatpush1.bf16.msra.mxu0 %v21817_v5  ;;  %v21898_v5 = vld [vmem:[%s25052_s23 + $0x930] ss:$24 sps:$4 sm:$0xff]  }
 0x2b2   : > { %2687 = vmatpush1.bf16.msra.mxu1 %v21820_v31  ;;  %2559 = vmatprep.subr.bf16.mxu0 %v21825_v6  ;;  %v21903_v31 = vld [vmem:[%s25052_s23 + $0x74] ss:$24 sps:$4 sm:$0xff]   ;;  %v21906_v6 = vld [vmem:[%s25052_s23 + $0x964] ss:$24 sps:$4 sm:$0xff]  }
 0x2b3   : > { %2688 = vmatprep.subr.bf16.mxu1 %v21828_v35  ;;  %v21901_v35 = vld [vmem:[%s25052_s23 + $0x70] ss:$24 sps:$4 sm:$0xff]  }
 0x2b5   : > { %2560 = vmatpush1.bf16.msra.mxu0 %v21823_v41  ;;  %v21904_v41 = vld [vmem:[%s25052_s23 + $0x960] ss:$24 sps:$4 sm:$0xff]  }
 0x2b6   : > { %2689 = vmatpush1.bf16.msra.mxu1 %v21826_v7  ;;  %2561 = vmatprep.subr.bf16.mxu0 %v21831_v8  ;;  %v21909_v7 = vld [vmem:[%s25052_s23 + $0xa4] ss:$24 sps:$4 sm:$0xff]   ;;  %v21912_v8 = vld [vmem:[%s25052_s23 + $0x994] ss:$24 sps:$4 sm:$0xff]  }
 0x2b7   : > { %2690 = vmatprep.subr.bf16.mxu1 %v21834_v9  ;;  %v21907_v9 = vld [vmem:[%s25052_s23 + $0xa0] ss:$24 sps:$4 sm:$0xff]  }
 0x2b9   : > { %2562 = vmatpush1.bf16.msra.mxu0 %v21829_v11  ;;  %v21910_v11 = vld [vmem:[%s25052_s23 + $0x990] ss:$24 sps:$4 sm:$0xff]  }
 0x2ba   : > { %2691 = vmatpush1.bf16.msra.mxu1 %v21832_v38  ;;  %2563 = vmatprep.subr.bf16.mxu0 %v21837_v12  ;;  %v21915_v38 = vld [vmem:[%s25052_s23 + $0xd4] ss:$24 sps:$4 sm:$0xff]   ;;  %v21918_v12 = vld [vmem:[%s25052_s23 + $0x9c4] ss:$24 sps:$4 sm:$0xff]  }
 0x2bb   : > { %2692 = vmatprep.subr.bf16.mxu1 %v21840_v39  ;;  %v21913_v39 = vld [vmem:[%s25052_s23 + $0xd0] ss:$24 sps:$4 sm:$0xff]  }
 0x2bd   : > { %2564 = vmatpush1.bf16.msra.mxu0 %v21835_v13  ;;  %v21916_v13 = vld [vmem:[%s25052_s23 + $0x9c0] ss:$24 sps:$4 sm:$0xff]  }
 0x2be   : > { %2693 = vmatpush1.bf16.msra.mxu1 %v21838_v14  ;;  %2565 = vmatprep.subr.bf16.mxu0 %v21843_v15  ;;  %v21921_v14 = vld [vmem:[%s25052_s23 + $0x104] ss:$24 sps:$4 sm:$0xff]   ;;  %v21924_v15 = vld [vmem:[%s25052_s23 + $0x9f4] ss:$24 sps:$4 sm:$0xff]  }
 0x2bf   : > { %2694 = vmatprep.subr.bf16.mxu1 %v21846_v16  ;;  %v21919_v16 = vld [vmem:[%s25052_s23 + $0x100] ss:$24 sps:$4 sm:$0xff]  }
 0x2c1   : > { %2566 = vmatpush1.bf16.msra.mxu0 %v21841_v17  ;;  %v21922_v17 = vld [vmem:[%s25052_s23 + $0x9f0] ss:$24 sps:$4 sm:$0xff]  }
 0x2c2   : > { %2695 = vmatpush1.bf16.msra.mxu1 %v21844_v40  ;;  %2567 = vmatprep.subr.bf16.mxu0 %v21849_v44  ;;  %v21927_v40 = vld [vmem:[%s25052_s23 + $0x134] ss:$24 sps:$4 sm:$0xff]   ;;  %v21930_v44 = vld [vmem:[%s25052_s23 + $0xa24] ss:$24 sps:$4 sm:$0xff]  }
 0x2c3   : > { %2696 = vmatprep.subr.bf16.mxu1 %v21852_v49  ;;  %v21925_v49 = vld [vmem:[%s25052_s23 + $0x130] ss:$24 sps:$4 sm:$0xff]  }
 0x2c5   : > { %2568 = vmatpush1.bf16.msra.mxu0 %v21847_v54  ;;  %v21928_v54 = vld [vmem:[%s25052_s23 + $0xa20] ss:$24 sps:$4 sm:$0xff]  }
 0x2c6   : > { %2697 = vmatpush1.bf16.msra.mxu1 %v21850_v18  ;;  %2569 = vmatprep.subr.bf16.mxu0 %v21855_v19  ;;  %v21933_v18 = vld [vmem:[%s25052_s23 + $0x164] ss:$24 sps:$4 sm:$0xff]   ;;  %v21936_v19 = vld [vmem:[%s25052_s23 + $0xa54] ss:$24 sps:$4 sm:$0xff]  }
 0x2c7   : > { %2698 = vmatprep.subr.bf16.mxu1 %v21858_v20  ;;  %v21931_v20 = vld [vmem:[%s25052_s23 + $0x160] ss:$24 sps:$4 sm:$0xff]  }
 0x2c9   : > { %2570 = vmatpush1.bf16.msra.mxu0 %v21853_v21  ;;  %v21934_v21 = vld [vmem:[%s25052_s23 + $0xa50] ss:$24 sps:$4 sm:$0xff]  }
 0x2ca   : > { %2699 = vmatpush1.bf16.msra.mxu1 %v21856_v22  ;;  %2571 = vmatprep.subr.bf16.mxu0 %v21861_v23  ;;  %v21939_v22 = vld [vmem:[%s25052_s23 + $0x194] ss:$24 sps:$4 sm:$0xff]   ;;  %v21942_v23 = vld [vmem:[%s25052_s23 + $0xa84] ss:$24 sps:$4 sm:$0xff]  }
 0x2cb   : > { %2700 = vmatprep.subr.bf16.mxu1 %v21864_v24  ;;  %v21937_v24 = vld [vmem:[%s25052_s23 + $0x190] ss:$24 sps:$4 sm:$0xff]  }
 0x2cd   : > { %2572 = vmatpush1.bf16.msra.mxu0 %v21859_v25  ;;  %v21940_v25 = vld [vmem:[%s25052_s23 + $0xa80] ss:$24 sps:$4 sm:$0xff]  }
 0x2ce   : > { %2701 = vmatpush1.bf16.msra.mxu1 %v21862_v26  ;;  %2573 = vmatprep.subr.bf16.mxu0 %v21867_v32  ;;  %v21945_v26 = vld [vmem:[%s25052_s23 + $0x1c4] ss:$24 sps:$4 sm:$0xff]   ;;  %v21948_v32 = vld [vmem:[%s25052_s23 + $0xab4] ss:$24 sps:$4 sm:$0xff]  }
 0x2cf   : > { %2702 = vmatprep.subr.bf16.mxu1 %v21870_v33  ;;  %v21943_v33 = vld [vmem:[%s25052_s23 + $0x1c0] ss:$24 sps:$4 sm:$0xff]  }
 0x2d1   : > { %2574 = vmatpush1.bf16.msra.mxu0 %v21865_v34  ;;  %v21946_v34 = vld [vmem:[%s25052_s23 + $0xab0] ss:$24 sps:$4 sm:$0xff]  }
 0x2d2   : > { %2703 = vmatpush1.bf16.msra.mxu1 %v21868_v36  ;;  %2575 = vmatprep.subr.bf16.mxu0 %v21873_v37  ;;  %v21951_v36 = vld [vmem:[%s25052_s23 + $0x1f4] ss:$24 sps:$4 sm:$0xff]   ;;  %v21954_v37 = vld [vmem:[%s25052_s23 + $0xae4] ss:$24 sps:$4 sm:$0xff]  }
 0x2d3   : > { %2704 = vmatprep.subr.bf16.mxu1 %v21876_v42  ;;  %v21949_v42 = vld [vmem:[%s25052_s23 + $0x1f0] ss:$24 sps:$4 sm:$0xff]  }
 0x2d5   : > { %2576 = vmatpush1.bf16.msra.mxu0 %v21871_v43  ;;  %v21952_v43 = vld [vmem:[%s25052_s23 + $0xae0] ss:$24 sps:$4 sm:$0xff]  }
 0x2d6   : > { %2705 = vmatpush1.bf16.msra.mxu1 %v21874_v45  ;;  %2577 = vmatprep.subr.bf16.mxu0 %v21879_v46  ;;  %v21957_v45 = vld [vmem:[%s25052_s23 + $0x224] ss:$24 sps:$4 sm:$0xff]   ;;  %v21960_v46 = vld [vmem:[%s25052_s23 + $0xb14] ss:$24 sps:$4 sm:$0xff]  }
 0x2d7   : > { %2706 = vmatprep.subr.bf16.mxu1 %v21882_v47  ;;  %v21955_v47 = vld [vmem:[%s25052_s23 + $0x220] ss:$24 sps:$4 sm:$0xff]  }
 0x2d9   : > { %2578 = vmatpush1.bf16.msra.mxu0 %v21877_v50  ;;  %v21958_v50 = vld [vmem:[%s25052_s23 + $0xb10] ss:$24 sps:$4 sm:$0xff]  }
 0x2da   : > { %2707 = vmatpush1.bf16.msra.mxu1 %v21880_v51  ;;  %2579 = vmatprep.subr.bf16.mxu0 %v21885_v52  ;;  %v21963_v51 = vld [vmem:[%s25052_s23 + $0x254] ss:$24 sps:$4 sm:$0xff]   ;;  %v21966_v52 = vld [vmem:[%s25052_s23 + $0xb44] ss:$24 sps:$4 sm:$0xff]  }
 0x2db   : > { %2708 = vmatprep.subr.bf16.mxu1 %v21888_v53  ;;  %v21961_v53 = vld [vmem:[%s25052_s23 + $0x250] ss:$24 sps:$4 sm:$0xff]  }
 0x2dd   : > { %2580 = vmatpush1.bf16.msra.mxu0 %v21883_v55  ;;  %v21964_v55 = vld [vmem:[%s25052_s23 + $0xb40] ss:$24 sps:$4 sm:$0xff]  }
 0x2de   : > { %2709 = vmatpush1.bf16.msra.mxu1 %v21886_v56  ;;  %2721 = vmatprep.subr.bf16.mxu0 %v21891_v60  ;;  %v21969_v56 = vld [vmem:[%s25052_s23 + $0x284] ss:$24 sps:$4 sm:$0xff]   ;;  %v21970_v60 = vld [vmem:[%s25052_s23 + $0xb70] ss:$24 sps:$4 sm:$0xff]  }
 0x2df   : > { %4645 = vmatprep.subr.bf16.mxu1 %v21894_v61  ;;  %v21975_v61 = vld [vmem:[%s25052_s23 + $0x2b4] ss:$24 sps:$4 sm:$0xff]  }
 0x2e0   : > { %2582 = vmatmul.mubr.bf16.vlgmr.msra.gmra.mrb[0].mxu0 %v25411_v62 }
 0x2e1   : > { %2711 = vmatmul.mubr.bf16.vlgmr.msra.gmra.mrb[0].mxu1 %v25411_v62  ;;  %2722 = vmatpush1.bf16.msra.mxu0 %v21889_v63  ;;  %v21978_v63 = vld [vmem:[%s25052_s23 + $0xba4] ss:$24 sps:$4 sm:$0xff]  }
 0x2e2   : > { %4646 = vmatpush1.bf16.msra.mxu1 %v21892_v27  ;;  %2723 = vmatprep.subr.bf16.mxu0 %v21897_v3  ;;  %v21973_v27 = vld [vmem:[%s25052_s23 + $0x2b0] ss:$24 sps:$4 sm:$0xff]   ;;  %v21976_v3 = vld [vmem:[%s25052_s23 + $0xba0] ss:$24 sps:$4 sm:$0xff]  }
 0x2e3   : > { %4647 = vmatprep.subr.bf16.mxu1 %v21900_v4  ;;  %2753 = vmatprep.mubr.bf16.mxu0 %v25245_v10  ;;  %v21981_v4 = vld [vmem:[%s25052_s23 + $0x2e4] ss:$24 sps:$4 sm:$0xff]  }
 0x2e4   : > { %4677 = vmatprep.mubr.bf16.mxu1 %v25245_v10 }
 0x2e5   : > { %2724 = vmatpush1.bf16.msra.mxu0 %v21895_v29  ;;  %v21984_v29 = vld [vmem:[%s25052_s23 + $0xbd4] ss:$24 sps:$4 sm:$0xff]  }
 0x2e6   : > { %4648 = vmatpush1.bf16.msra.mxu1 %v21898_v5  ;;  %2725 = vmatprep.subr.bf16.mxu0 %v21903_v31  ;;  %v21979_v5 = vld [vmem:[%s25052_s23 + $0x2e0] ss:$24 sps:$4 sm:$0xff]   ;;  %v21982_v31 = vld [vmem:[%s25052_s23 + $0xbd0] ss:$24 sps:$4 sm:$0xff]  }
 0x2e7   : > { %4649 = vmatprep.subr.bf16.mxu1 %v21906_v6  ;;  %v21987_v6 = vld [vmem:[%s25052_s23 + $0x314] ss:$24 sps:$4 sm:$0xff]  }
 0x2e9   : > { %2726 = vmatpush1.bf16.msra.mxu0 %v21901_v35  ;;  %v21990_v35 = vld [vmem:[%s25052_s23 + $0xc04] ss:$24 sps:$4 sm:$0xff]  }
 0x2ea   : > { %4650 = vmatpush1.bf16.msra.mxu1 %v21904_v41  ;;  %2727 = vmatprep.subr.bf16.mxu0 %v21909_v7  ;;  %v21985_v41 = vld [vmem:[%s25052_s23 + $0x310] ss:$24 sps:$4 sm:$0xff]   ;;  %v21988_v7 = vld [vmem:[%s25052_s23 + $0xc00] ss:$24 sps:$4 sm:$0xff]  }
 0x2eb   : > { %4651 = vmatprep.subr.bf16.mxu1 %v21912_v8  ;;  %v21993_v8 = vld [vmem:[%s25052_s23 + $0x344] ss:$24 sps:$4 sm:$0xff]  }
 0x2ed   : > { %2728 = vmatpush1.bf16.msra.mxu0 %v21907_v9  ;;  %v21996_v9 = vld [vmem:[%s25052_s23 + $0xc34] ss:$24 sps:$4 sm:$0xff]  }
 0x2ee   : > { %4652 = vmatpush1.bf16.msra.mxu1 %v21910_v11  ;;  %2729 = vmatprep.subr.bf16.mxu0 %v21915_v38  ;;  %v21991_v11 = vld [vmem:[%s25052_s23 + $0x340] ss:$24 sps:$4 sm:$0xff]   ;;  %v21994_v38 = vld [vmem:[%s25052_s23 + $0xc30] ss:$24 sps:$4 sm:$0xff]  }
 0x2ef   : > { %4653 = vmatprep.subr.bf16.mxu1 %v21918_v12  ;;  %v21999_v12 = vld [vmem:[%s25052_s23 + $0x374] ss:$24 sps:$4 sm:$0xff]  }
 0x2f1   : > { %2730 = vmatpush1.bf16.msra.mxu0 %v21913_v39  ;;  %v22002_v39 = vld [vmem:[%s25052_s23 + $0xc64] ss:$24 sps:$4 sm:$0xff]  }
 0x2f2   : > { %4654 = vmatpush1.bf16.msra.mxu1 %v21916_v13  ;;  %2731 = vmatprep.subr.bf16.mxu0 %v21921_v14  ;;  %v21997_v13 = vld [vmem:[%s25052_s23 + $0x370] ss:$24 sps:$4 sm:$0xff]   ;;  %v22000_v14 = vld [vmem:[%s25052_s23 + $0xc60] ss:$24 sps:$4 sm:$0xff]  }
 0x2f3   : > { %4655 = vmatprep.subr.bf16.mxu1 %v21924_v15  ;;  %v22005_v15 = vld [vmem:[%s25052_s23 + $0x3a4] ss:$24 sps:$4 sm:$0xff]  }
 0x2f5   : > { %2732 = vmatpush1.bf16.msra.mxu0 %v21919_v16  ;;  %v22008_v16 = vld [vmem:[%s25052_s23 + $0xc94] ss:$24 sps:$4 sm:$0xff]  }
 0x2f6   : > { %4656 = vmatpush1.bf16.msra.mxu1 %v21922_v17  ;;  %2733 = vmatprep.subr.bf16.mxu0 %v21927_v40  ;;  %v22003_v17 = vld [vmem:[%s25052_s23 + $0x3a0] ss:$24 sps:$4 sm:$0xff]   ;;  %v22006_v40 = vld [vmem:[%s25052_s23 + $0xc90] ss:$24 sps:$4 sm:$0xff]  }
 0x2f7   : > { %4657 = vmatprep.subr.bf16.mxu1 %v21930_v44  ;;  %v22011_v44 = vld [vmem:[%s25052_s23 + $0x3d4] ss:$24 sps:$4 sm:$0xff]  }
 0x2f9   : > { %2734 = vmatpush1.bf16.msra.mxu0 %v21925_v49  ;;  %v22014_v49 = vld [vmem:[%s25052_s23 + $0xcc4] ss:$24 sps:$4 sm:$0xff]  }
 0x2fa   : > { %4658 = vmatpush1.bf16.msra.mxu1 %v21928_v54  ;;  %2735 = vmatprep.subr.bf16.mxu0 %v21933_v18  ;;  %v22009_v54 = vld [vmem:[%s25052_s23 + $0x3d0] ss:$24 sps:$4 sm:$0xff]   ;;  %v22012_v18 = vld [vmem:[%s25052_s23 + $0xcc0] ss:$24 sps:$4 sm:$0xff]  }
 0x2fb   : > { %4659 = vmatprep.subr.bf16.mxu1 %v21936_v19  ;;  %v22017_v19 = vld [vmem:[%s25052_s23 + $0x404] ss:$24 sps:$4 sm:$0xff]  }
 0x2fd   : > { %2736 = vmatpush1.bf16.msra.mxu0 %v21931_v20  ;;  %v22020_v20 = vld [vmem:[%s25052_s23 + $0xcf4] ss:$24 sps:$4 sm:$0xff]  }
 0x2fe   : > { %4660 = vmatpush1.bf16.msra.mxu1 %v21934_v21  ;;  %2737 = vmatprep.subr.bf16.mxu0 %v21939_v22  ;;  %v22015_v21 = vld [vmem:[%s25052_s23 + $0x400] ss:$24 sps:$4 sm:$0xff]   ;;  %v22018_v22 = vld [vmem:[%s25052_s23 + $0xcf0] ss:$24 sps:$4 sm:$0xff]  }
 0x2ff   : > { %4661 = vmatprep.subr.bf16.mxu1 %v21942_v23  ;;  %v22023_v23 = vld [vmem:[%s25052_s23 + $0x434] ss:$24 sps:$4 sm:$0xff]  }
 0x301   : > { %2738 = vmatpush1.bf16.msra.mxu0 %v21937_v24  ;;  %v22026_v24 = vld [vmem:[%s25052_s23 + $0xd24] ss:$24 sps:$4 sm:$0xff]  }
 0x302   : > { %4662 = vmatpush1.bf16.msra.mxu1 %v21940_v25  ;;  %2739 = vmatprep.subr.bf16.mxu0 %v21945_v26  ;;  %v22021_v25 = vld [vmem:[%s25052_s23 + $0x430] ss:$24 sps:$4 sm:$0xff]   ;;  %v22024_v26 = vld [vmem:[%s25052_s23 + $0xd20] ss:$24 sps:$4 sm:$0xff]  }
 0x303   : > { %4663 = vmatprep.subr.bf16.mxu1 %v21948_v32  ;;  %v22029_v32 = vld [vmem:[%s25052_s23 + $0x464] ss:$24 sps:$4 sm:$0xff]  }
 0x305   : > { %2740 = vmatpush1.bf16.msra.mxu0 %v21943_v33  ;;  %v22032_v33 = vld [vmem:[%s25052_s23 + $0xd54] ss:$24 sps:$4 sm:$0xff]  }
 0x306   : > { %4664 = vmatpush1.bf16.msra.mxu1 %v21946_v34  ;;  %2741 = vmatprep.subr.bf16.mxu0 %v21951_v36  ;;  %v22027_v34 = vld [vmem:[%s25052_s23 + $0x460] ss:$24 sps:$4 sm:$0xff]   ;;  %v22030_v36 = vld [vmem:[%s25052_s23 + $0xd50] ss:$24 sps:$4 sm:$0xff]  }
 0x307   : > { %4665 = vmatprep.subr.bf16.mxu1 %v21954_v37  ;;  %v22035_v37 = vld [vmem:[%s25052_s23 + $0x494] ss:$24 sps:$4 sm:$0xff]  }
 0x309   : > { %2742 = vmatpush1.bf16.msra.mxu0 %v21949_v42  ;;  %v22038_v42 = vld [vmem:[%s25052_s23 + $0xd84] ss:$24 sps:$4 sm:$0xff]  }
 0x30a   : > { %4666 = vmatpush1.bf16.msra.mxu1 %v21952_v43  ;;  %2743 = vmatprep.subr.bf16.mxu0 %v21957_v45  ;;  %v22033_v43 = vld [vmem:[%s25052_s23 + $0x490] ss:$24 sps:$4 sm:$0xff]   ;;  %v22036_v45 = vld [vmem:[%s25052_s23 + $0xd80] ss:$24 sps:$4 sm:$0xff]  }
 0x30b   : > { %4667 = vmatprep.subr.bf16.mxu1 %v21960_v46  ;;  %v22041_v46 = vld [vmem:[%s25052_s23 + $0x4c4] ss:$24 sps:$4 sm:$0xff]  }
 0x30d   : > { %2744 = vmatpush1.bf16.msra.mxu0 %v21955_v47  ;;  %v22044_v47 = vld [vmem:[%s25052_s23 + $0xdb4] ss:$24 sps:$4 sm:$0xff]  }
 0x30e   : > { %4668 = vmatpush1.bf16.msra.mxu1 %v21958_v50  ;;  %2745 = vmatprep.subr.bf16.mxu0 %v21963_v51  ;;  %v22039_v50 = vld [vmem:[%s25052_s23 + $0x4c0] ss:$24 sps:$4 sm:$0xff]   ;;  %v22042_v51 = vld [vmem:[%s25052_s23 + $0xdb0] ss:$24 sps:$4 sm:$0xff]  }
 0x30f   : > { %4669 = vmatprep.subr.bf16.mxu1 %v21966_v52  ;;  %v22047_v52 = vld [vmem:[%s25052_s23 + $0x4f4] ss:$24 sps:$4 sm:$0xff]  }
 0x311   : > { %2746 = vmatpush1.bf16.msra.mxu0 %v21961_v53  ;;  %v22050_v53 = vld [vmem:[%s25052_s23 + $0xde4] ss:$24 sps:$4 sm:$0xff]  }
 0x312   : > { %4670 = vmatpush1.bf16.msra.mxu1 %v21964_v55  ;;  %2747 = vmatprep.subr.bf16.mxu0 %v21969_v56  ;;  %v22045_v55 = vld [vmem:[%s25052_s23 + $0x4f0] ss:$24 sps:$4 sm:$0xff]   ;;  %v22048_v56 = vld [vmem:[%s25052_s23 + $0xde0] ss:$24 sps:$4 sm:$0xff]  }
 0x313   : > { %4671 = vmatprep.subr.bf16.mxu1 %v21972_v57  ;;  %v22053_v57 = vld [vmem:[%s25052_s23 + $0x524] ss:$24 sps:$4 sm:$0xff]  }
 0x315   : > { %2748 = vmatpush1.bf16.msra.mxu0 %v21967_v59  ;;  %v22056_v59 = vld [vmem:[%s25052_s23 + $0xe14] ss:$24 sps:$4 sm:$0xff]  }
 0x316   : > { %4672 = vmatpush1.bf16.msra.mxu1 %v21970_v60  ;;  %2749 = vmatprep.subr.bf16.mxu0 %v21975_v61  ;;  %v22051_v60 = vld [vmem:[%s25052_s23 + $0x520] ss:$24 sps:$4 sm:$0xff]   ;;  %v22054_v61 = vld [vmem:[%s25052_s23 + $0xe10] ss:$24 sps:$4 sm:$0xff]  }
 0x317   : > { %4673 = vmatprep.subr.bf16.mxu1 %v21978_v63  ;;  %v22059_v63 = vld [vmem:[%s25052_s23 + $0x554] ss:$24 sps:$4 sm:$0xff]  }
 0x319   : > { %2750 = vmatpush1.bf16.msra.mxu0 %v21973_v27  ;;  %v22062_v27 = vld [vmem:[%s25052_s23 + $0xe44] ss:$24 sps:$4 sm:$0xff]  }
 0x31a   : > { %4674 = vmatpush1.bf16.msra.mxu1 %v21976_v3  ;;  %2751 = vmatprep.subr.bf16.mxu0 %v21981_v4  ;;  %v22057_v3 = vld [vmem:[%s25052_s23 + $0x550] ss:$24 sps:$4 sm:$0xff]   ;;  %v22060_v4 = vld [vmem:[%s25052_s23 + $0xe40] ss:$24 sps:$4 sm:$0xff]  }
 0x31b   : > { %4675 = vmatprep.subr.bf16.mxu1 %v21984_v29  ;;  %v22065_v29 = vld [vmem:[%s25052_s23 + $0x584] ss:$24 sps:$4 sm:$0xff]  }
 0x31d   : > { %2752 = vmatpush1.bf16.msra.mxu0 %v21979_v5  ;;  %v22068_v5 = vld [vmem:[%s25052_s23 + $0xe74] ss:$24 sps:$4 sm:$0xff]  }
 0x31e   : > { %4676 = vmatpush1.bf16.msra.mxu1 %v21982_v31  ;;  %2764 = vmatprep.subr.bf16.mxu0 %v21987_v6  ;;  %v22063_v31 = vld [vmem:[%s25052_s23 + $0x580] ss:$24 sps:$4 sm:$0xff]   ;;  %v22066_v6 = vld [vmem:[%s25052_s23 + $0xe70] ss:$24 sps:$4 sm:$0xff]  }
 0x31f   : > { %4688 = vmatprep.subr.bf16.mxu1 %v21990_v35  ;;  %v22071_v35 = vld [vmem:[%s25052_s23 + $0x5b4] ss:$24 sps:$4 sm:$0xff]  }
 0x320   : > { %2754 = vmatmul.mubr.bf16.vlgmr.msra.gmra.mrb[4].mxu0 %v25269_v30 }
 0x321   : > { %4678 = vmatmul.mubr.bf16.vlgmr.msra.gmra.mrb[4].mxu1 %v25269_v30  ;;  %2765 = vmatpush1.bf16.msra.mxu0 %v21985_v41  ;;  %v22074_v41 = vld [vmem:[%s25052_s23 + $0xea4] ss:$24 sps:$4 sm:$0xff]  }
 0x322   : > { %4689 = vmatpush1.bf16.msra.mxu1 %v21988_v7  ;;  %2766 = vmatprep.subr.bf16.mxu0 %v21993_v8  ;;  %v22069_v7 = vld [vmem:[%s25052_s23 + $0x5b0] ss:$24 sps:$4 sm:$0xff]   ;;  %v22072_v8 = vld [vmem:[%s25052_s23 + $0xea0] ss:$24 sps:$4 sm:$0xff]  }
 0x323   : > { %4690 = vmatprep.subr.bf16.mxu1 %v21996_v9  ;;  %2796 = vmatprep.mubr.bf16.mxu0 %v25297_v28  ;;  %v22077_v9 = vld [vmem:[%s25052_s23 + $0x5e4] ss:$24 sps:$4 sm:$0xff]  }
 0x324   : > { %4720 = vmatprep.mubr.bf16.mxu1 %v25297_v28 }
 0x325   : > { %2767 = vmatpush1.bf16.msra.mxu0 %v21991_v11  ;;  %v22080_v11 = vld [vmem:[%s25052_s23 + $0xed4] ss:$24 sps:$4 sm:$0xff]  }
 0x326   : > { %4691 = vmatpush1.bf16.msra.mxu1 %v21994_v38  ;;  %2768 = vmatprep.subr.bf16.mxu0 %v21999_v12  ;;  %v22075_v38 = vld [vmem:[%s25052_s23 + $0x5e0] ss:$24 sps:$4 sm:$0xff]   ;;  %v22078_v12 = vld [vmem:[%s25052_s23 + $0xed0] ss:$24 sps:$4 sm:$0xff]  }
 0x327   : > { %4692 = vmatprep.subr.bf16.mxu1 %v22002_v39  ;;  %v22083_v39 = vld [vmem:[%s25052_s23 + $0x614] ss:$24 sps:$4 sm:$0xff]  }
 0x329   : > { %2769 = vmatpush1.bf16.msra.mxu0 %v21997_v13  ;;  %v22086_v13 = vld [vmem:[%s25052_s23 + $0xf04] ss:$24 sps:$4 sm:$0xff]  }
 0x32a   : > { %4693 = vmatpush1.bf16.msra.mxu1 %v22000_v14  ;;  %2770 = vmatprep.subr.bf16.mxu0 %v22005_v15  ;;  %v22081_v14 = vld [vmem:[%s25052_s23 + $0x610] ss:$24 sps:$4 sm:$0xff]   ;;  %v22084_v15 = vld [vmem:[%s25052_s23 + $0xf00] ss:$24 sps:$4 sm:$0xff]  }
 0x32b   : > { %4694 = vmatprep.subr.bf16.mxu1 %v22008_v16  ;;  %v22089_v16 = vld [vmem:[%s25052_s23 + $0x644] ss:$24 sps:$4 sm:$0xff]  }
 0x32d   : > { %2771 = vmatpush1.bf16.msra.mxu0 %v22003_v17  ;;  %v22092_v17 = vld [vmem:[%s25052_s23 + $0xf34] ss:$24 sps:$4 sm:$0xff]  }
 0x32e   : > { %4695 = vmatpush1.bf16.msra.mxu1 %v22006_v40  ;;  %2772 = vmatprep.subr.bf16.mxu0 %v22011_v44  ;;  %v22087_v40 = vld [vmem:[%s25052_s23 + $0x640] ss:$24 sps:$4 sm:$0xff]   ;;  %v22090_v44 = vld [vmem:[%s25052_s23 + $0xf30] ss:$24 sps:$4 sm:$0xff]  }
 0x32f   : > { %4696 = vmatprep.subr.bf16.mxu1 %v22014_v49  ;;  %v22095_v49 = vld [vmem:[%s25052_s23 + $0x674] ss:$24 sps:$4 sm:$0xff]  }
 0x331   : > { %2773 = vmatpush1.bf16.msra.mxu0 %v22009_v54  ;;  %v22098_v54 = vld [vmem:[%s25052_s23 + $0xf64] ss:$24 sps:$4 sm:$0xff]  }
 0x332   : > { %4697 = vmatpush1.bf16.msra.mxu1 %v22012_v18  ;;  %2774 = vmatprep.subr.bf16.mxu0 %v22017_v19  ;;  %v22093_v18 = vld [vmem:[%s25052_s23 + $0x670] ss:$24 sps:$4 sm:$0xff]   ;;  %v22096_v19 = vld [vmem:[%s25052_s23 + $0xf60] ss:$24 sps:$4 sm:$0xff]  }
 0x333   : > { %4698 = vmatprep.subr.bf16.mxu1 %v22020_v20  ;;  %v22101_v20 = vld [vmem:[%s25052_s23 + $0x6a4] ss:$24 sps:$4 sm:$0xff]  }
 0x335   : > { %2775 = vmatpush1.bf16.msra.mxu0 %v22015_v21  ;;  %v22104_v21 = vld [vmem:[%s25052_s23 + $0xf94] ss:$24 sps:$4 sm:$0xff]  }
 0x336   : > { %4699 = vmatpush1.bf16.msra.mxu1 %v22018_v22  ;;  %2776 = vmatprep.subr.bf16.mxu0 %v22023_v23  ;;  %v22099_v22 = vld [vmem:[%s25052_s23 + $0x6a0] ss:$24 sps:$4 sm:$0xff]   ;;  %v22102_v23 = vld [vmem:[%s25052_s23 + $0xf90] ss:$24 sps:$4 sm:$0xff]  }
 0x337   : > { %4700 = vmatprep.subr.bf16.mxu1 %v22026_v24  ;;  %v22107_v24 = vld [vmem:[%s25052_s23 + $0x6d4] ss:$24 sps:$4 sm:$0xff]  }
 0x339   : > { %2777 = vmatpush1.bf16.msra.mxu0 %v22021_v25  ;;  %v22110_v25 = vld [vmem:[%s25052_s23 + $0xfc4] ss:$24 sps:$4 sm:$0xff]  }
 0x33a   : > { %4701 = vmatpush1.bf16.msra.mxu1 %v22024_v26  ;;  %2778 = vmatprep.subr.bf16.mxu0 %v22029_v32  ;;  %v22105_v26 = vld [vmem:[%s25052_s23 + $0x6d0] ss:$24 sps:$4 sm:$0xff]   ;;  %v22108_v32 = vld [vmem:[%s25052_s23 + $0xfc0] ss:$24 sps:$4 sm:$0xff]  }
 0x33b   : > { %4702 = vmatprep.subr.bf16.mxu1 %v22032_v33  ;;  %v22113_v33 = vld [vmem:[%s25052_s23 + $0x704] ss:$24 sps:$4 sm:$0xff]  }
 0x33d   : > { %2779 = vmatpush1.bf16.msra.mxu0 %v22027_v34  ;;  %v22116_v34 = vld [vmem:[%s25052_s23 + $0xff4] ss:$24 sps:$4 sm:$0xff]  }
 0x33e   : > { %4703 = vmatpush1.bf16.msra.mxu1 %v22030_v36  ;;  %2780 = vmatprep.subr.bf16.mxu0 %v22035_v37  ;;  %v22111_v36 = vld [vmem:[%s25052_s23 + $0x700] ss:$24 sps:$4 sm:$0xff]   ;;  %v22114_v37 = vld [vmem:[%s25052_s23 + $0xff0] ss:$24 sps:$4 sm:$0xff]  }
 0x33f   : > { %4704 = vmatprep.subr.bf16.mxu1 %v22038_v42  ;;  %v22119_v42 = vld [vmem:[%s25052_s23 + $0x734] ss:$24 sps:$4 sm:$0xff]  }
 0x341   : > { %2781 = vmatpush1.bf16.msra.mxu0 %v22033_v43  ;;  %v22122_v43 = vld [vmem:[%s25052_s23 + $0x1024] ss:$24 sps:$4 sm:$0xff]  }
 0x342   : > { %4705 = vmatpush1.bf16.msra.mxu1 %v22036_v45  ;;  %2782 = vmatprep.subr.bf16.mxu0 %v22041_v46  ;;  %v22117_v45 = vld [vmem:[%s25052_s23 + $0x730] ss:$24 sps:$4 sm:$0xff]   ;;  %v22120_v46 = vld [vmem:[%s25052_s23 + $0x1020] ss:$24 sps:$4 sm:$0xff]  }
 0x343   : > { %4706 = vmatprep.subr.bf16.mxu1 %v22044_v47  ;;  %v22125_v47 = vld [vmem:[%s25052_s23 + $0x764] ss:$24 sps:$4 sm:$0xff]  }
 0x345   : > { %2783 = vmatpush1.bf16.msra.mxu0 %v22039_v50  ;;  %v22128_v50 = vld [vmem:[%s25052_s23 + $0x1054] ss:$24 sps:$4 sm:$0xff]  }
 0x346   : > { %4707 = vmatpush1.bf16.msra.mxu1 %v22042_v51  ;;  %2784 = vmatprep.subr.bf16.mxu0 %v22047_v52  ;;  %v22123_v51 = vld [vmem:[%s25052_s23 + $0x760] ss:$24 sps:$4 sm:$0xff]   ;;  %v22126_v52 = vld [vmem:[%s25052_s23 + $0x1050] ss:$24 sps:$4 sm:$0xff]  }
 0x347   : > { %4708 = vmatprep.subr.bf16.mxu1 %v22050_v53  ;;  %v22131_v53 = vld [vmem:[%s25052_s23 + $0x794] ss:$24 sps:$4 sm:$0xff]  }
 0x349   : > { %2785 = vmatpush1.bf16.msra.mxu0 %v22045_v55  ;;  %v22134_v55 = vld [vmem:[%s25052_s23 + $0x1084] ss:$24 sps:$4 sm:$0xff]  }
 0x34a   : > { %4709 = vmatpush1.bf16.msra.mxu1 %v22048_v56  ;;  %2786 = vmatprep.subr.bf16.mxu0 %v22053_v57  ;;  %v22129_v56 = vld [vmem:[%s25052_s23 + $0x790] ss:$24 sps:$4 sm:$0xff]   ;;  %v22132_v57 = vld [vmem:[%s25052_s23 + $0x1080] ss:$24 sps:$4 sm:$0xff]  }
 0x34b   : > { %4710 = vmatprep.subr.bf16.mxu1 %v22056_v59  ;;  %v22137_v59 = vld [vmem:[%s25052_s23 + $0x7c4] ss:$24 sps:$4 sm:$0xff]  }
 0x34d   : > { %2787 = vmatpush1.bf16.msra.mxu0 %v22051_v60  ;;  %v22140_v60 = vld [vmem:[%s25052_s23 + $0x10b4] ss:$24 sps:$4 sm:$0xff]  }
 0x34e   : > { %4711 = vmatpush1.bf16.msra.mxu1 %v22054_v61  ;;  %2788 = vmatprep.subr.bf16.mxu0 %v22059_v63  ;;  %v22135_v61 = vld [vmem:[%s25052_s23 + $0x7c0] ss:$24 sps:$4 sm:$0xff]   ;;  %v22138_v63 = vld [vmem:[%s25052_s23 + $0x10b0] ss:$24 sps:$4 sm:$0xff]  }
 0x34f   : > { %4712 = vmatprep.subr.bf16.mxu1 %v22062_v27  ;;  %v22143_v27 = vld [vmem:[%s25052_s23 + $0x7f4] ss:$24 sps:$4 sm:$0xff]  }
 0x351   : > { %2789 = vmatpush1.bf16.msra.mxu0 %v22057_v3  ;;  %v22146_v3 = vld [vmem:[%s25052_s23 + $0x10e4] ss:$24 sps:$4 sm:$0xff]  }
 0x352   : > { %4713 = vmatpush1.bf16.msra.mxu1 %v22060_v4  ;;  %2790 = vmatprep.subr.bf16.mxu0 %v22065_v29  ;;  %v22141_v4 = vld [vmem:[%s25052_s23 + $0x7f0] ss:$24 sps:$4 sm:$0xff]   ;;  %v22144_v29 = vld [vmem:[%s25052_s23 + $0x10e0] ss:$24 sps:$4 sm:$0xff]  }
 0x353   : > { %4714 = vmatprep.subr.bf16.mxu1 %v22068_v5  ;;  %v22149_v5 = vld [vmem:[%s25052_s23 + $0x824] ss:$24 sps:$4 sm:$0xff]  }
 0x355   : > { %2791 = vmatpush1.bf16.msra.mxu0 %v22063_v31  ;;  %v22152_v31 = vld [vmem:[%s25052_s23 + $0x1114] ss:$24 sps:$4 sm:$0xff]  }
 0x356   : > { %4715 = vmatpush1.bf16.msra.mxu1 %v22066_v6  ;;  %2792 = vmatprep.subr.bf16.mxu0 %v22071_v35  ;;  %v22147_v6 = vld [vmem:[%s25052_s23 + $0x820] ss:$24 sps:$4 sm:$0xff]   ;;  %v22150_v35 = vld [vmem:[%s25052_s23 + $0x1110] ss:$24 sps:$4 sm:$0xff]  }
 0x357   : > { %4716 = vmatprep.subr.bf16.mxu1 %v22074_v41  ;;  %v22155_v41 = vld [vmem:[%s25052_s23 + $0x854] ss:$24 sps:$4 sm:$0xff]  }
 0x359   : > { %2793 = vmatpush1.bf16.msra.mxu0 %v22069_v7  ;;  %v22158_v7 = vld [vmem:[%s25052_s23 + $0x1144] ss:$24 sps:$4 sm:$0xff]  }
 0x35a   : > { %4717 = vmatpush1.bf16.msra.mxu1 %v22072_v8  ;;  %2794 = vmatprep.subr.bf16.mxu0 %v22077_v9  ;;  %v22153_v8 = vld [vmem:[%s25052_s23 + $0x850] ss:$24 sps:$4 sm:$0xff]   ;;  %v22156_v9 = vld [vmem:[%s25052_s23 + $0x1140] ss:$24 sps:$4 sm:$0xff]  }
 0x35b   : > { %4718 = vmatprep.subr.bf16.mxu1 %v22080_v11  ;;  %v22161_v11 = vld [vmem:[%s25052_s23 + $0x884] ss:$24 sps:$4 sm:$0xff]  }
 0x35d   : > { %2795 = vmatpush1.bf16.msra.mxu0 %v22075_v38  ;;  %v22164_v38 = vld [vmem:[%s25052_s23 + $0x1174] ss:$24 sps:$4 sm:$0xff]  }
 0x35e   : > { %4719 = vmatpush1.bf16.msra.mxu1 %v22078_v12  ;;  %2807 = vmatprep.subr.bf16.mxu0 %v22083_v39  ;;  %v22159_v12 = vld [vmem:[%s25052_s23 + $0x880] ss:$24 sps:$4 sm:$0xff]   ;;  %v22162_v39 = vld [vmem:[%s25052_s23 + $0x1170] ss:$24 sps:$4 sm:$0xff]  }
 0x35f   : > { %4731 = vmatprep.subr.bf16.mxu1 %v22086_v13  ;;  %v22167_v13 = vld [vmem:[%s25052_s23 + $0x8b4] ss:$24 sps:$4 sm:$0xff]  }
 0x360   : > { %2797 = vmatmul.mubr.bf16.vlgmr.msra.gmra.mrb[4].mxu0 %v25341_v48 }
 0x361   : > { %4721 = vmatmul.mubr.bf16.vlgmr.msra.gmra.mrb[4].mxu1 %v25341_v48  ;;  %2808 = vmatpush1.bf16.msra.mxu0 %v22081_v14  ;;  %v22170_v14 = vld [vmem:[%s25052_s23 + $0x11a4] ss:$24 sps:$4 sm:$0xff]  }
 0x362   : > { %4732 = vmatpush1.bf16.msra.mxu1 %v22084_v15  ;;  %2809 = vmatprep.subr.bf16.mxu0 %v22089_v16  ;;  %v22165_v15 = vld [vmem:[%s25052_s23 + $0x8b0] ss:$24 sps:$4 sm:$0xff]   ;;  %v22168_v16 = vld [vmem:[%s25052_s23 + $0x11a0] ss:$24 sps:$4 sm:$0xff]  }
 0x363   : > { %4733 = vmatprep.subr.bf16.mxu1 %v22092_v17  ;;  %2839 = vmatprep.mubr.bf16.mxu0 %v25350_v58  ;;  %v22173_v17 = vld [vmem:[%s25052_s23 + $0x8e4] ss:$24 sps:$4 sm:$0xff]  }
 0x364   : > { %4763 = vmatprep.mubr.bf16.mxu1 %v25350_v58 }
 0x365   : > { %2810 = vmatpush1.bf16.msra.mxu0 %v22087_v40  ;;  %v22176_v40 = vld [vmem:[%s25052_s23 + $0x11d4] ss:$24 sps:$4 sm:$0xff]  }
 0x366   : > { %4734 = vmatpush1.bf16.msra.mxu1 %v22090_v44  ;;  %2811 = vmatprep.subr.bf16.mxu0 %v22095_v49  ;;  %v22171_v44 = vld [vmem:[%s25052_s23 + $0x8e0] ss:$24 sps:$4 sm:$0xff]   ;;  %v22174_v49 = vld [vmem:[%s25052_s23 + $0x11d0] ss:$24 sps:$4 sm:$0xff]  }
 0x367   : > { %4735 = vmatprep.subr.bf16.mxu1 %v22098_v54  ;;  %v22179_v54 = vld [vmem:[%s25052_s23 + $0x90c] ss:$24 sps:$4 sm:$0xff]  }
 0x369   : > { %2812 = vmatpush1.bf16.msra.mxu0 %v22093_v18  ;;  %v22182_v18 = vld [vmem:[%s25052_s23 + $0x914] ss:$24 sps:$4 sm:$0xff]  }
 0x36a   : > { %4736 = vmatpush1.bf16.msra.mxu1 %v22096_v19  ;;  %2813 = vmatprep.subr.bf16.mxu0 %v22101_v20  ;;  %v22177_v19 = vld [vmem:[%s25052_s23 + $0x908] ss:$24 sps:$4 sm:$0xff]  }
 0x36b   : > { %4737 = vmatprep.subr.bf16.mxu1 %v22104_v21  ;;  %v22180_v20 = vld [vmem:[%s25052_s23 + $0x910] ss:$24 sps:$4 sm:$0xff]   ;;  %v22185_v21 = vld [vmem:[%s25052_s23 + $0x93c] ss:$24 sps:$4 sm:$0xff]  }
 0x36d   : > { %2814 = vmatpush1.bf16.msra.mxu0 %v22099_v22  ;;  %v22188_v22 = vld [vmem:[%s25052_s23 + $0x944] ss:$24 sps:$4 sm:$0xff]  }
 0x36e   : > { %4738 = vmatpush1.bf16.msra.mxu1 %v22102_v23  ;;  %2815 = vmatprep.subr.bf16.mxu0 %v22107_v24  ;;  %v969_v23 = vlaneseq  ;;  %v22183_v24 = vld [vmem:[%s25052_s23 + $0x938] ss:$24 sps:$4 sm:$0xff]  }
 0x36f   : > { %4739 = vmatprep.subr.bf16.mxu1 %v22110_v25  ;;  %v22186_v25 = vld [vmem:[%s25052_s23 + $0x940] ss:$24 sps:$4 sm:$0xff]  }
 0x371   : > { %2816 = vmatpush1.bf16.msra.mxu0 %v22105_v26  ;;  %v22191_v26 = vld [vmem:[%s25052_s23 + $0x96c] ss:$24 sps:$4 sm:$0xff]  }
 0x372   : > { %4740 = vmatpush1.bf16.msra.mxu1 %v22108_v32  ;;  %2817 = vmatprep.subr.bf16.mxu0 %v22113_v33  ;;  %v22194_v32 = vld [vmem:[%s25052_s23 + $0x974] ss:$24 sps:$4 sm:$0xff]   ;;  %v25629_v33 = vshrl.u32 %v969_v23, 7  ;;  %v22225_v23 = vld [vmem:[%s25052_s23 + $0xa88] ss:$24 sps:$4 sm:$0xff]  }
 0x373   : > { %4741 = vmatprep.subr.bf16.mxu1 %v22116_v34  ;;  %v22189_v34 = vld [vmem:[%s25052_s23 + $0x968] ss:$24 sps:$4 sm:$0xff]  }
 0x375   : > { %2818 = vmatpush1.bf16.msra.mxu0 %v22111_v36  ;;  %v22192_v36 = vld [vmem:[%s25052_s23 + $0x970] ss:$24 sps:$4 sm:$0xff]  }
 0x376   : > { %4742 = vmatpush1.bf16.msra.mxu1 %v22114_v37  ;;  %2819 = vmatprep.subr.bf16.mxu0 %v22119_v42  ;;  %v22197_v37 = vld [vmem:[%s25052_s23 + $0x99c] ss:$24 sps:$4 sm:$0xff]  }
 0x377   : > { %4743 = vmatprep.subr.bf16.mxu1 %v22122_v43  ;;  %v22200_v42 = vld [vmem:[%s25052_s23 + $0x9a4] ss:$24 sps:$4 sm:$0xff]   ;;  %v25636_v43 = vsub.s32 0, %v25629_v33 }
 0x379   : > { %2820 = vmatpush1.bf16.msra.mxu0 %v22117_v45  ;;  %v22198_v45 = vld [vmem:[%s25052_s23 + $0x9a0] ss:$24 sps:$4 sm:$0xff]  }
 0x37a   : > { %4744 = vmatpush1.bf16.msra.mxu1 %v22120_v46  ;;  %2821 = vmatprep.subr.bf16.mxu0 %v22125_v47  ;;  %v25641_v46 = vsub.s32 4, %v25629_v33  ;;  %v22203_v47 = vld [vmem:[%s25052_s23 + $0x9cc] ss:$24 sps:$4 sm:$0xff]  }
 0x37b   : > { %4745 = vmatprep.subr.bf16.mxu1 %v22128_v50  ;;  %v22206_v50 = vld [vmem:[%s25052_s23 + $0x9d4] ss:$24 sps:$4 sm:$0xff]  }
 0x37d   : > { %2822 = vmatpush1.bf16.msra.mxu0 %v22123_v51  ;;  %v972_v51 = vrot.slane %v25077_v0, %v25636_v43 }
 0x37e   : > { %4746 = vmatpush1.bf16.msra.mxu1 %v22126_v52  ;;  %2823 = vmatprep.subr.bf16.mxu0 %v22131_v53  ;;  %v980_v52 = vrot.slane %v25079_v1, %v25636_v43  ;;  %v22201_v53 = vld [vmem:[%s25052_s23 + $0x9c8] ss:$24 sps:$4 sm:$0xff]  }
 0x37f   : > { %4747 = vmatprep.subr.bf16.mxu1 %v22134_v55  ;;  %v22204_v55 = vld [vmem:[%s25052_s23 + $0x9d0] ss:$24 sps:$4 sm:$0xff]  }
 0x381   : > { %2824 = vmatpush1.bf16.msra.mxu0 %v22129_v56  ;;  %v976_v56 = vrot.slane %v25077_v0, %v25641_v46 }
 0x382   : > { %4748 = vmatpush1.bf16.msra.mxu1 %v22132_v57  ;;  %2825 = vmatprep.subr.bf16.mxu0 %v22137_v59  ;;  %v984_v57 = vrot.slane %v25079_v1, %v25641_v46  ;;  %v22209_v59 = vld [vmem:[%s25052_s23 + $0x9fc] ss:$24 sps:$4 sm:$0xff]  }
 0x383   : > { %4749 = vmatprep.subr.bf16.mxu1 %v22140_v60  ;;  %v22212_v60 = vld [vmem:[%s25052_s23 + $0xa04] ss:$24 sps:$4 sm:$0xff]  }
 0x385   : > { %2826 = vmatpush1.bf16.msra.mxu0 %v22135_v61  ;;  %v1002_v61 = vrot.slane %v972_v51, %v25636_v43  ;;  %v22246_v51 = vld [vmem:[%s25052_s23 + $0xb20] ss:$24 sps:$4 sm:$0xff]  }
 0x386   : > { %4750 = vmatpush1.bf16.msra.mxu1 %v22138_v63  ;;  %2827 = vmatprep.subr.bf16.mxu0 %v22143_v27  ;;  %v1010_v63 = vrot.slane %v980_v52, %v25636_v43  ;;  %v1006_v27 = vrot.slane %v976_v56, %v25636_v43  ;;  %v22251_v52 = vld [vmem:[%s25052_s23 + $0xb4c] ss:$24 sps:$4 sm:$0xff]   ;;  %v22252_v56 = vld [vmem:[%s25052_s23 + $0xb50] ss:$24 sps:$4 sm:$0xff]  }
 0x387   : > { %4751 = vmatprep.subr.bf16.mxu1 %v22146_v3  ;;  %v1014_v3 = vrot.slane %v984_v57, %v25636_v43  ;;  %v22257_v57 = vld [vmem:[%s25052_s23 + $0xb7c] ss:$24 sps:$4 sm:$0xff]  }
 0x389   : > { %2828 = vmatpush1.bf16.msra.mxu0 %v22141_v4  ;;  %v22207_v4 = vld [vmem:[%s25052_s23 + $0x9f8] ss:$24 sps:$4 sm:$0xff]  }
 0x38a   : > { %4752 = vmatpush1.bf16.msra.mxu1 %v22144_v29  ;;  %2829 = vmatprep.subr.bf16.mxu0 %v22149_v5  ;;  %v22210_v29 = vld [vmem:[%s25052_s23 + $0xa00] ss:$24 sps:$4 sm:$0xff]   ;;  %v22215_v5 = vld [vmem:[%s25052_s23 + $0xa2c] ss:$24 sps:$4 sm:$0xff]  }
 0x38b   : > { %4753 = vmatprep.subr.bf16.mxu1 %v22152_v31  ;;  %v22218_v31 = vld [vmem:[%s25052_s23 + $0xa34] ss:$24 sps:$4 sm:$0xff]  }
 0x38d   : > { %2830 = vmatpush1.bf16.msra.mxu0 %v22147_v6 }
 0x38e   : > { %4754 = vmatpush1.bf16.msra.mxu1 %v22150_v35  ;;  %2831 = vmatprep.subr.bf16.mxu0 %v22155_v41 }
 0x38f   : > { %4755 = vmatprep.subr.bf16.mxu1 %v22158_v7 }
 0x391   : > { %2832 = vmatpush1.bf16.msra.mxu0 %v22153_v8 }
 0x392   : > { %4756 = vmatpush1.bf16.msra.mxu1 %v22156_v9  ;;  %2833 = vmatprep.subr.bf16.mxu0 %v22161_v11 }
 0x393   : > { %4757 = vmatprep.subr.bf16.mxu1 %v22164_v38 }
 0x395   : > { %2834 = vmatpush1.bf16.msra.mxu0 %v22159_v12 }
 0x396   : > { %4758 = vmatpush1.bf16.msra.mxu1 %v22162_v39  ;;  %2835 = vmatprep.subr.bf16.mxu0 %v22167_v13  ;;  %v22213_v13 = vld [vmem:[%s25052_s23 + $0xa28] ss:$24 sps:$4 sm:$0xff]  }
 0x397   : > { %4759 = vmatprep.subr.bf16.mxu1 %v22170_v14  ;;  %v22216_v14 = vld [vmem:[%s25052_s23 + $0xa30] ss:$24 sps:$4 sm:$0xff]  }
 0x399   : > { %2836 = vmatpush1.bf16.msra.mxu0 %v22165_v15 }
 0x39a   : > { %4760 = vmatpush1.bf16.msra.mxu1 %v22168_v16  ;;  %2837 = vmatprep.subr.bf16.mxu0 %v22173_v17 }
 0x39b   : > { %4761 = vmatprep.subr.bf16.mxu1 %v22176_v40 }
 0x39d   : > { %2838 = vmatpush1.bf16.msra.mxu0 %v22171_v44  ;;  %v22221_v44 = vld [vmem:[%s25052_s23 + $0xa5c] ss:$24 sps:$4 sm:$0xff]  }
 0x39e   : > { %4762 = vmatpush1.bf16.msra.mxu1 %v22174_v49  ;;  %4774 = vmatprep.subr.bf16.mxu0 %v22179_v54  ;;  %v22224_v49 = vld [vmem:[%s25052_s23 + $0xa64] ss:$24 sps:$4 sm:$0xff]  }
 0x39f   : > { %4903 = vmatprep.subr.bf16.mxu1 %v22182_v18 }
 0x3a0   : > { %2840 = vmatmul.mubr.bf16.vlgmr.msra.gmra.mrb[4].mxu0 %v25411_v62 }
 0x3a1   : > { %4764 = vmatmul.mubr.bf16.vlgmr.msra.gmra.mrb[4].mxu1 %v25411_v62  ;;  %4775 = vmatpush1.bf16.msra.mxu0 %v22177_v19  ;;  %v22219_v19 = vld [vmem:[%s25052_s23 + $0xa58] ss:$24 sps:$4 sm:$0xff]  }
 0x3a2   : > { %4904 = vmatpush1.bf16.msra.mxu1 %v22180_v20  ;;  %4776 = vmatprep.subr.bf16.mxu0 %v22185_v21  ;;  %v22222_v20 = vld [vmem:[%s25052_s23 + $0xa60] ss:$24 sps:$4 sm:$0xff]   ;;  %v22227_v21 = vld [vmem:[%s25052_s23 + $0xa8c] ss:$24 sps:$4 sm:$0xff]  }
 0x3a3   : > { %4905 = vmatprep.subr.bf16.mxu1 %v22188_v22  ;;  %4806 = vmatprep.mubr.bf16.mxu0 %v25245_v10  ;;  %v22230_v22 = vld [vmem:[%s25052_s23 + $0xa94] ss:$24 sps:$4 sm:$0xff]  }
 0x3a4   : > { %4935 = vmatprep.mubr.bf16.mxu1 %v25245_v10  ;;  %v22195_v10 = vld [vmem:[%s25052_s23 + $0x998] ss:$24 sps:$4 sm:$0xff]  }
 0x3a5   : > { %4777 = vmatpush1.bf16.msra.mxu0 %v22183_v24  ;;  %v22228_v24 = vld [vmem:[%s25052_s23 + $0xa90] ss:$24 sps:$4 sm:$0xff]  }
 0x3a6   : > { %4906 = vmatpush1.bf16.msra.mxu1 %v22186_v25  ;;  %4778 = vmatprep.subr.bf16.mxu0 %v22191_v26  ;;  %v22233_v25 = vld [vmem:[%s25052_s23 + $0xabc] ss:$24 sps:$4 sm:$0xff]  }
 0x3a7   : > { %4907 = vmatprep.subr.bf16.mxu1 %v22194_v32  ;;  %v22236_v26 = vld [vmem:[%s25052_s23 + $0xac4] ss:$24 sps:$4 sm:$0xff]   ;;  %v22231_v32 = vld [vmem:[%s25052_s23 + $0xab8] ss:$24 sps:$4 sm:$0xff]  }
 0x3a9   : > { %4779 = vmatpush1.bf16.msra.mxu0 %v22189_v34  ;;  %v22234_v34 = vld [vmem:[%s25052_s23 + $0xac0] ss:$24 sps:$4 sm:$0xff]  }
 0x3aa   : > { %4908 = vmatpush1.bf16.msra.mxu1 %v22192_v36  ;;  %4780 = vmatprep.subr.bf16.mxu0 %v22197_v37  ;;  %v22239_v36 = vld [vmem:[%s25052_s23 + $0xaec] ss:$24 sps:$4 sm:$0xff]  }
 0x3ab   : > { %4909 = vmatprep.subr.bf16.mxu1 %v22200_v42  ;;  %v22242_v37 = vld [vmem:[%s25052_s23 + $0xaf4] ss:$24 sps:$4 sm:$0xff]   ;;  %v22237_v42 = vld [vmem:[%s25052_s23 + $0xae8] ss:$24 sps:$4 sm:$0xff]  }
 0x3ad   : > { %4781 = vmatpush1.bf16.msra.mxu0 %v22195_v10  ;;  %v22240_v10 = vld [vmem:[%s25052_s23 + $0xaf0] ss:$24 sps:$4 sm:$0xff]  }
 0x3ae   : > { %4910 = vmatpush1.bf16.msra.mxu1 %v22198_v45  ;;  %4782 = vmatprep.subr.bf16.mxu0 %v22203_v47  ;;  %v22245_v45 = vld [vmem:[%s25052_s23 + $0xb1c] ss:$24 sps:$4 sm:$0xff]  }
 0x3af   : > { %4911 = vmatprep.subr.bf16.mxu1 %v22206_v50  ;;  %v22248_v47 = vld [vmem:[%s25052_s23 + $0xb24] ss:$24 sps:$4 sm:$0xff]   ;;  %v22243_v50 = vld [vmem:[%s25052_s23 + $0xb18] ss:$24 sps:$4 sm:$0xff]  }
 0x3b1   : > { %4783 = vmatpush1.bf16.msra.mxu0 %v22201_v53  ;;  %v22254_v53 = vld [vmem:[%s25052_s23 + $0xb54] ss:$24 sps:$4 sm:$0xff]  }
 0x3b2   : > { %4912 = vmatpush1.bf16.msra.mxu1 %v22204_v55  ;;  %4784 = vmatprep.subr.bf16.mxu0 %v22209_v59  ;;  %v22249_v55 = vld [vmem:[%s25052_s23 + $0xb48] ss:$24 sps:$4 sm:$0xff]   ;;  %v22260_v59 = vld [vmem:[%s25052_s23 + $0xb84] ss:$24 sps:$4 sm:$0xff]  }
 0x3b3   : > { %4913 = vmatprep.subr.bf16.mxu1 %v22212_v60  ;;  %v2583_v6 = vpop.f32.mrb[0].mxu0  ;;  %v22255_v60 = vld [vmem:[%s25052_s23 + $0xb78] ss:$24 sps:$4 sm:$0xff]  }
 0x3b4   : > { %v2712_v35 = vpop.f32.mrb[0].mxu1  ;;  %v21279_v41 = vadd.f32 %v2583_v6, %v1002_v61  ;;  %v2585_v8 = vpop.f32.mrb[1].mxu0  ;;  %v22270_v6 = vld [vmem:[%s25052_s23 + $0xbe0] ss:$24 sps:$4 sm:$0xff]  }
 0x3b5   : > { %v21283_v7 = vadd.f32 %v2712_v35, %v1010_v63  ;;  %v2714_v9 = vpop.f32.mrb[1].mxu1  ;;  %v21280_v11 = vadd.f32 %v2585_v8, %v1006_v27  ;;  %v2587_v12 = vpop.f32.mrb[2].mxu0  ;;  %4785 = vmatpush1.bf16.msra.mxu0 %v22207_v4  ;;  %v22264_v4 = vld [vmem:[%s25052_s23 + $0xbb0] ss:$24 sps:$4 sm:$0xff]   ;;  %v22275_v35 = vld [vmem:[%s25052_s23 + $0xc0c] ss:$24 sps:$4 sm:$0xff]  }
 0x3b6   : > { %v21284_v38 = vadd.f32 %v2714_v9, %v1014_v3  ;;  %v2716_v39 = vpop.f32.mrb[2].mxu1  ;;  %4914 = vmatpush1.bf16.msra.mxu1 %v22210_v29  ;;  %2850 = vst [vmem:[#allocation3] sm:$0xff] %v21279_v41  ;;  %v21281_v15 = vadd.f32 %v2587_v12, %v1002_v61  ;;  %v2589_v17 = vpop.f32.mrb[3].mxu0  ;;  %4786 = vmatprep.subr.bf16.mxu0 %v22215_v5  ;;  %v22258_v61 = vld [vmem:[%s25052_s23 + $0xb80] ss:$24 sps:$4 sm:$0xff]  }
 0x3b7   : > { %2852 = vst [vmem:[#allocation3 + $0x10] sm:$0xff] %v21283_v7  ;;  %v21285_v16 = vadd.f32 %v2716_v39, %v1010_v63  ;;  %v2718_v40 = vpop.f32.mrb[3].mxu1  ;;  %4915 = vmatprep.subr.bf16.mxu1 %v22218_v31  ;;  %2851 = vst [vmem:[#allocation3 + $0x8] sm:$0xff] %v21280_v11  ;;  %v21282_v54 = vadd.f32 %v2589_v17, %v1006_v27  ;;  %v22263_v63 = vld [vmem:[%s25052_s23 + $0xbac] ss:$24 sps:$4 sm:$0xff]  }
 0x3b8   : > { %2853 = vst [vmem:[#allocation3 + $0x18] sm:$0xff] %v21284_v38  ;;  %v21286_v18 = vadd.f32 %v2718_v40, %v1014_v3  ;;  %2856 = vst [vmem:[#allocation3 + $0x90] sm:$0xff] %v21281_v15  ;;  %v22266_v27 = vld [vmem:[%s25052_s23 + $0xbb4] ss:$24 sps:$4 sm:$0xff]   ;;  %v22261_v3 = vld [vmem:[%s25052_s23 + $0xba8] ss:$24 sps:$4 sm:$0xff]  }
 0x3b9   : > { %2858 = vst [vmem:[#allocation3 + $0xa0] sm:$0xff] %v21285_v16  ;;  %2857 = vst [vmem:[#allocation3 + $0x98] sm:$0xff] %v21282_v54  ;;  %4787 = vmatpush1.bf16.msra.mxu0 %v22213_v13  ;;  %v22269_v29 = vld [vmem:[%s25052_s23 + $0xbdc] ss:$24 sps:$4 sm:$0xff]   ;;  %v22267_v31 = vld [vmem:[%s25052_s23 + $0xbd8] ss:$24 sps:$4 sm:$0xff]  }
 0x3ba   : > { %2859 = vst [vmem:[#allocation3 + $0xa8] sm:$0xff] %v21286_v18  ;;  %4916 = vmatpush1.bf16.msra.mxu1 %v22216_v14  ;;  %4788 = vmatprep.subr.bf16.mxu0 %v22221_v44  ;;  %v22272_v5 = vld [vmem:[%s25052_s23 + $0xbe4] ss:$24 sps:$4 sm:$0xff]   ;;  %v22278_v41 = vld [vmem:[%s25052_s23 + $0xc14] ss:$24 sps:$4 sm:$0xff]  }
 0x3bb   : > { %4917 = vmatprep.subr.bf16.mxu1 %v22224_v49  ;;  %v22273_v7 = vld [vmem:[%s25052_s23 + $0xc08] ss:$24 sps:$4 sm:$0xff]   ;;  %v22281_v9 = vld [vmem:[%s25052_s23 + $0xc3c] ss:$24 sps:$4 sm:$0xff]   ;;  %v22279_v38 = vld [vmem:[%s25052_s23 + $0xc38] ss:$24 sps:$4 sm:$0xff]  }
 0x3bc   : > { %v22276_v8 = vld [vmem:[%s25052_s23 + $0xc10] ss:$24 sps:$4 sm:$0xff]   ;;  %v22284_v11 = vld [vmem:[%s25052_s23 + $0xc44] ss:$24 sps:$4 sm:$0xff]   ;;  %v22282_v12 = vld [vmem:[%s25052_s23 + $0xc40] ss:$24 sps:$4 sm:$0xff]  }
 0x3bd   : > { %4789 = vmatpush1.bf16.msra.mxu0 %v22219_v19  ;;  %v22287_v39 = vld [vmem:[%s25052_s23 + $0xc6c] ss:$24 sps:$4 sm:$0xff]   ;;  %v22288_v14 = vld [vmem:[%s25052_s23 + $0xc70] ss:$24 sps:$4 sm:$0xff]   ;;  %v22293_v15 = vld [vmem:[%s25052_s23 + $0xc9c] ss:$24 sps:$4 sm:$0xff]  }
 0x3be   : > { %4918 = vmatpush1.bf16.msra.mxu1 %v22222_v20  ;;  %4790 = vmatprep.subr.bf16.mxu0 %v22227_v21  ;;  %v22290_v13 = vld [vmem:[%s25052_s23 + $0xc74] ss:$24 sps:$4 sm:$0xff]   ;;  %v22296_v16 = vld [vmem:[%s25052_s23 + $0xca4] ss:$24 sps:$4 sm:$0xff]   ;;  %v22291_v17 = vld [vmem:[%s25052_s23 + $0xc98] ss:$24 sps:$4 sm:$0xff]  }
 0x3bf   : > { %4919 = vmatprep.subr.bf16.mxu1 %v22230_v22  ;;  %v22294_v40 = vld [vmem:[%s25052_s23 + $0xca0] ss:$24 sps:$4 sm:$0xff]   ;;  %v22302_v44 = vld [vmem:[%s25052_s23 + $0xcd4] ss:$24 sps:$4 sm:$0xff]   ;;  %v22300_v54 = vld [vmem:[%s25052_s23 + $0xcd0] ss:$24 sps:$4 sm:$0xff]  }
 0x3c0   : > { %v22297_v49 = vld [vmem:[%s25052_s23 + $0xcc8] ss:$24 sps:$4 sm:$0xff]   ;;  %v22305_v18 = vld [vmem:[%s25052_s23 + $0xcfc] ss:$24 sps:$4 sm:$0xff]   ;;  %v22303_v20 = vld [vmem:[%s25052_s23 + $0xcf8] ss:$24 sps:$4 sm:$0xff]  }
 0x3c1   : > { %4791 = vmatpush1.bf16.msra.mxu0 %v22225_v23  ;;  %v22308_v19 = vld [vmem:[%s25052_s23 + $0xd04] ss:$24 sps:$4 sm:$0xff]   ;;  %v22306_v21 = vld [vmem:[%s25052_s23 + $0xd00] ss:$24 sps:$4 sm:$0xff]   ;;  %v22314_v23 = vld [vmem:[%s25052_s23 + $0xd34] ss:$24 sps:$4 sm:$0xff]  }
 0x3c2   : > { %4920 = vmatpush1.bf16.msra.mxu1 %v22228_v24  ;;  %4792 = vmatprep.subr.bf16.mxu0 %v22233_v25  ;;  %v22311_v22 = vld [vmem:[%s25052_s23 + $0xd2c] ss:$24 sps:$4 sm:$0xff]   ;;  %v22309_v24 = vld [vmem:[%s25052_s23 + $0xd28] ss:$24 sps:$4 sm:$0xff]  }
 0x3c3   : > { %4921 = vmatprep.subr.bf16.mxu1 %v22236_v26  ;;  %v22312_v25 = vld [vmem:[%s25052_s23 + $0xd30] ss:$24 sps:$4 sm:$0xff]   ;;  %v22317_v26 = vld [vmem:[%s25052_s23 + $0xd5c] ss:$24 sps:$4 sm:$0xff]  }
 0x3c5   : > { %4793 = vmatpush1.bf16.msra.mxu0 %v22231_v32  ;;  %v22320_v32 = vld [vmem:[%s25052_s23 + $0xd64] ss:$24 sps:$4 sm:$0xff]  }
 0x3c6   : > { %4922 = vmatpush1.bf16.msra.mxu1 %v22234_v34  ;;  %4794 = vmatprep.subr.bf16.mxu0 %v22239_v36  ;;  %v22315_v34 = vld [vmem:[%s25052_s23 + $0xd58] ss:$24 sps:$4 sm:$0xff]  }
 0x3c7   : > { %4923 = vmatprep.subr.bf16.mxu1 %v22242_v37  ;;  %v22318_v36 = vld [vmem:[%s25052_s23 + $0xd60] ss:$24 sps:$4 sm:$0xff]   ;;  %v22323_v37 = vld [vmem:[%s25052_s23 + $0xd8c] ss:$24 sps:$4 sm:$0xff]  }
 0x3c9   : > { %4795 = vmatpush1.bf16.msra.mxu0 %v22237_v42  ;;  %v22326_v42 = vld [vmem:[%s25052_s23 + $0xd94] ss:$24 sps:$4 sm:$0xff]  }
 0x3ca   : > { %4924 = vmatpush1.bf16.msra.mxu1 %v22240_v10  ;;  %4796 = vmatprep.subr.bf16.mxu0 %v22245_v45  ;;  %v22321_v10 = vld [vmem:[%s25052_s23 + $0xd88] ss:$24 sps:$4 sm:$0xff]  }
 0x3cb   : > { %4925 = vmatprep.subr.bf16.mxu1 %v22248_v47  ;;  %v22324_v45 = vld [vmem:[%s25052_s23 + $0xd90] ss:$24 sps:$4 sm:$0xff]   ;;  %v22329_v47 = vld [vmem:[%s25052_s23 + $0xdbc] ss:$24 sps:$4 sm:$0xff]  }
 0x3cd   : > { %4797 = vmatpush1.bf16.msra.mxu0 %v22243_v50  ;;  %v22332_v50 = vld [vmem:[%s25052_s23 + $0xdc4] ss:$24 sps:$4 sm:$0xff]  }
 0x3ce   : > { %4926 = vmatpush1.bf16.msra.mxu1 %v22246_v51  ;;  %4798 = vmatprep.subr.bf16.mxu0 %v22251_v52  ;;  %v22327_v51 = vld [vmem:[%s25052_s23 + $0xdb8] ss:$24 sps:$4 sm:$0xff]  }
 0x3cf   : > { %4927 = vmatprep.subr.bf16.mxu1 %v22254_v53  ;;  %v22330_v52 = vld [vmem:[%s25052_s23 + $0xdc0] ss:$24 sps:$4 sm:$0xff]   ;;  %v22335_v53 = vld [vmem:[%s25052_s23 + $0xdec] ss:$24 sps:$4 sm:$0xff]  }
 0x3d1   : > { %4799 = vmatpush1.bf16.msra.mxu0 %v22249_v55  ;;  %v22338_v55 = vld [vmem:[%s25052_s23 + $0xdf4] ss:$24 sps:$4 sm:$0xff]  }
 0x3d2   : > { %4928 = vmatpush1.bf16.msra.mxu1 %v22252_v56  ;;  %4800 = vmatprep.subr.bf16.mxu0 %v22257_v57  ;;  %v22333_v56 = vld [vmem:[%s25052_s23 + $0xde8] ss:$24 sps:$4 sm:$0xff]  }
 0x3d3   : > { %4929 = vmatprep.subr.bf16.mxu1 %v22260_v59  ;;  %v22336_v57 = vld [vmem:[%s25052_s23 + $0xdf0] ss:$24 sps:$4 sm:$0xff]   ;;  %v22341_v59 = vld [vmem:[%s25052_s23 + $0xe1c] ss:$24 sps:$4 sm:$0xff]  }
 0x3d5   : > { %4801 = vmatpush1.bf16.msra.mxu0 %v22255_v60  ;;  %v22344_v60 = vld [vmem:[%s25052_s23 + $0xe24] ss:$24 sps:$4 sm:$0xff]  }
 0x3d6   : > { %4930 = vmatpush1.bf16.msra.mxu1 %v22258_v61  ;;  %4802 = vmatprep.subr.bf16.mxu0 %v22263_v63  ;;  %v22339_v61 = vld [vmem:[%s25052_s23 + $0xe18] ss:$24 sps:$4 sm:$0xff]  }
 0x3d7   : > { %4931 = vmatprep.subr.bf16.mxu1 %v22266_v27  ;;  %v22342_v63 = vld [vmem:[%s25052_s23 + $0xe20] ss:$24 sps:$4 sm:$0xff]   ;;  %v22347_v27 = vld [vmem:[%s25052_s23 + $0xe4c] ss:$24 sps:$4 sm:$0xff]  }
 0x3d9   : > { %4803 = vmatpush1.bf16.msra.mxu0 %v22261_v3  ;;  %v22350_v3 = vld [vmem:[%s25052_s23 + $0xe54] ss:$24 sps:$4 sm:$0xff]  }
 0x3da   : > { %4932 = vmatpush1.bf16.msra.mxu1 %v22264_v4  ;;  %4804 = vmatprep.subr.bf16.mxu0 %v22269_v29  ;;  %v22345_v4 = vld [vmem:[%s25052_s23 + $0xe48] ss:$24 sps:$4 sm:$0xff]  }
 0x3db   : > { %4933 = vmatprep.subr.bf16.mxu1 %v22272_v5  ;;  %v22348_v29 = vld [vmem:[%s25052_s23 + $0xe50] ss:$24 sps:$4 sm:$0xff]   ;;  %v22353_v5 = vld [vmem:[%s25052_s23 + $0xe7c] ss:$24 sps:$4 sm:$0xff]  }
 0x3dd   : > { %4805 = vmatpush1.bf16.msra.mxu0 %v22267_v31  ;;  %v22356_v31 = vld [vmem:[%s25052_s23 + $0xe84] ss:$24 sps:$4 sm:$0xff]  }
 0x3de   : > { %4934 = vmatpush1.bf16.msra.mxu1 %v22270_v6  ;;  %4817 = vmatprep.subr.bf16.mxu0 %v22275_v35  ;;  %v22351_v6 = vld [vmem:[%s25052_s23 + $0xe78] ss:$24 sps:$4 sm:$0xff]  }
 0x3df   : > { %4946 = vmatprep.subr.bf16.mxu1 %v22278_v41  ;;  %v22354_v35 = vld [vmem:[%s25052_s23 + $0xe80] ss:$24 sps:$4 sm:$0xff]   ;;  %v22359_v41 = vld [vmem:[%s25052_s23 + $0xeac] ss:$24 sps:$4 sm:$0xff]  }
 0x3e0   : > { %4807 = vmatmul.mubr.bf16.vlgmr.msra.gmra.mrb[8].mxu0 %v25269_v30 }
 0x3e1   : > { %4936 = vmatmul.mubr.bf16.vlgmr.msra.gmra.mrb[8].mxu1 %v25269_v30  ;;  %4818 = vmatpush1.bf16.msra.mxu0 %v22273_v7  ;;  %v22285_v30 = vld [vmem:[%s25052_s23 + $0xc68] ss:$24 sps:$4 sm:$0xff]   ;;  %v22362_v7 = vld [vmem:[%s25052_s23 + $0xeb4] ss:$24 sps:$4 sm:$0xff]  }
 0x3e2   : > { %4947 = vmatpush1.bf16.msra.mxu1 %v22276_v8  ;;  %4819 = vmatprep.subr.bf16.mxu0 %v22281_v9  ;;  %v22357_v8 = vld [vmem:[%s25052_s23 + $0xea8] ss:$24 sps:$4 sm:$0xff]  }
 0x3e3   : > { %4948 = vmatprep.subr.bf16.mxu1 %v22284_v11  ;;  %4849 = vmatprep.mubr.bf16.mxu0 %v25297_v28  ;;  %v22360_v9 = vld [vmem:[%s25052_s23 + $0xeb0] ss:$24 sps:$4 sm:$0xff]   ;;  %v22365_v11 = vld [vmem:[%s25052_s23 + $0xedc] ss:$24 sps:$4 sm:$0xff]  }
 0x3e4   : > { %4978 = vmatprep.mubr.bf16.mxu1 %v25297_v28  ;;  %v22299_v28 = vld [vmem:[%s25052_s23 + $0xccc] ss:$24 sps:$4 sm:$0xff]  }
 0x3e5   : > { %4820 = vmatpush1.bf16.msra.mxu0 %v22279_v38  ;;  %v22368_v38 = vld [vmem:[%s25052_s23 + $0xee4] ss:$24 sps:$4 sm:$0xff]  }
 0x3e6   : > { %4949 = vmatpush1.bf16.msra.mxu1 %v22282_v12  ;;  %4821 = vmatprep.subr.bf16.mxu0 %v22287_v39  ;;  %v22363_v12 = vld [vmem:[%s25052_s23 + $0xed8] ss:$24 sps:$4 sm:$0xff]  }
 0x3e7   : > { %4950 = vmatprep.subr.bf16.mxu1 %v22290_v13  ;;  %v22366_v39 = vld [vmem:[%s25052_s23 + $0xee0] ss:$24 sps:$4 sm:$0xff]   ;;  %v22371_v13 = vld [vmem:[%s25052_s23 + $0xf0c] ss:$24 sps:$4 sm:$0xff]  }
 0x3e9   : > { %4822 = vmatpush1.bf16.msra.mxu0 %v22285_v30  ;;  %v22374_v30 = vld [vmem:[%s25052_s23 + $0xf14] ss:$24 sps:$4 sm:$0xff]  }
 0x3ea   : > { %4951 = vmatpush1.bf16.msra.mxu1 %v22288_v14  ;;  %4823 = vmatprep.subr.bf16.mxu0 %v22293_v15  ;;  %v22369_v14 = vld [vmem:[%s25052_s23 + $0xf08] ss:$24 sps:$4 sm:$0xff]  }
 0x3eb   : > { %4952 = vmatprep.subr.bf16.mxu1 %v22296_v16  ;;  %v22372_v15 = vld [vmem:[%s25052_s23 + $0xf10] ss:$24 sps:$4 sm:$0xff]   ;;  %v22377_v16 = vld [vmem:[%s25052_s23 + $0xf3c] ss:$24 sps:$4 sm:$0xff]  }
 0x3ed   : > { %4824 = vmatpush1.bf16.msra.mxu0 %v22291_v17  ;;  %v22380_v17 = vld [vmem:[%s25052_s23 + $0xf44] ss:$24 sps:$4 sm:$0xff]  }
 0x3ee   : > { %4953 = vmatpush1.bf16.msra.mxu1 %v22294_v40  ;;  %4825 = vmatprep.subr.bf16.mxu0 %v22299_v28  ;;  %v22375_v40 = vld [vmem:[%s25052_s23 + $0xf38] ss:$24 sps:$4 sm:$0xff]  }
 0x3ef   : > { %4954 = vmatprep.subr.bf16.mxu1 %v22302_v44  ;;  %v22378_v28 = vld [vmem:[%s25052_s23 + $0xf40] ss:$24 sps:$4 sm:$0xff]   ;;  %v22383_v44 = vld [vmem:[%s25052_s23 + $0xf6c] ss:$24 sps:$4 sm:$0xff]  }
 0x3f1   : > { %4826 = vmatpush1.bf16.msra.mxu0 %v22297_v49  ;;  %v22386_v49 = vld [vmem:[%s25052_s23 + $0xf74] ss:$24 sps:$4 sm:$0xff]  }
 0x3f2   : > { %4955 = vmatpush1.bf16.msra.mxu1 %v22300_v54  ;;  %4827 = vmatprep.subr.bf16.mxu0 %v22305_v18  ;;  %v22384_v54 = vld [vmem:[%s25052_s23 + $0xf70] ss:$24 sps:$4 sm:$0xff]   ;;  %v22389_v18 = vld [vmem:[%s25052_s23 + $0xf9c] ss:$24 sps:$4 sm:$0xff]  }
 0x3f3   : > { %4956 = vmatprep.subr.bf16.mxu1 %v22308_v19  ;;  %v22392_v19 = vld [vmem:[%s25052_s23 + $0xfa4] ss:$24 sps:$4 sm:$0xff]  }
 0x3f5   : > { %4828 = vmatpush1.bf16.msra.mxu0 %v22303_v20  ;;  %v22387_v20 = vld [vmem:[%s25052_s23 + $0xf98] ss:$24 sps:$4 sm:$0xff]  }
 0x3f6   : > { %4957 = vmatpush1.bf16.msra.mxu1 %v22306_v21  ;;  %4829 = vmatprep.subr.bf16.mxu0 %v22311_v22  ;;  %v22390_v21 = vld [vmem:[%s25052_s23 + $0xfa0] ss:$24 sps:$4 sm:$0xff]   ;;  %v22398_v22 = vld [vmem:[%s25052_s23 + $0xfd4] ss:$24 sps:$4 sm:$0xff]  }
 0x3f7   : > { %4958 = vmatprep.subr.bf16.mxu1 %v22314_v23  ;;  %v22393_v23 = vld [vmem:[%s25052_s23 + $0xfc8] ss:$24 sps:$4 sm:$0xff]  }
 0x3f9   : > { %4830 = vmatpush1.bf16.msra.mxu0 %v22309_v24  ;;  %v22396_v24 = vld [vmem:[%s25052_s23 + $0xfd0] ss:$24 sps:$4 sm:$0xff]  }
 0x3fa   : > { %4959 = vmatpush1.bf16.msra.mxu1 %v22312_v25  ;;  %4831 = vmatprep.subr.bf16.mxu0 %v22317_v26  ;;  %v22401_v25 = vld [vmem:[%s25052_s23 + $0xffc] ss:$24 sps:$4 sm:$0xff]  }
 0x3fb   : > { %4960 = vmatprep.subr.bf16.mxu1 %v22320_v32  ;;  %v22404_v26 = vld [vmem:[%s25052_s23 + $0x1004] ss:$24 sps:$4 sm:$0xff]   ;;  %v22399_v32 = vld [vmem:[%s25052_s23 + $0xff8] ss:$24 sps:$4 sm:$0xff]  }
 0x3fd   : > { %4832 = vmatpush1.bf16.msra.mxu0 %v22315_v34  ;;  %v22402_v34 = vld [vmem:[%s25052_s23 + $0x1000] ss:$24 sps:$4 sm:$0xff]  }
 0x3fe   : > { %4961 = vmatpush1.bf16.msra.mxu1 %v22318_v36  ;;  %4833 = vmatprep.subr.bf16.mxu0 %v22323_v37  ;;  %v22407_v36 = vld [vmem:[%s25052_s23 + $0x102c] ss:$24 sps:$4 sm:$0xff]  }
 0x3ff   : > { %4962 = vmatprep.subr.bf16.mxu1 %v22326_v42  ;;  %v22410_v37 = vld [vmem:[%s25052_s23 + $0x1034] ss:$24 sps:$4 sm:$0xff]   ;;  %v22405_v42 = vld [vmem:[%s25052_s23 + $0x1028] ss:$24 sps:$4 sm:$0xff]  }
 0x401   : > { %4834 = vmatpush1.bf16.msra.mxu0 %v22321_v10  ;;  %v22408_v10 = vld [vmem:[%s25052_s23 + $0x1030] ss:$24 sps:$4 sm:$0xff]  }
 0x402   : > { %4963 = vmatpush1.bf16.msra.mxu1 %v22324_v45  ;;  %4835 = vmatprep.subr.bf16.mxu0 %v22329_v47  ;;  %v22413_v45 = vld [vmem:[%s25052_s23 + $0x105c] ss:$24 sps:$4 sm:$0xff]  }
 0x403   : > { %4964 = vmatprep.subr.bf16.mxu1 %v22332_v50  ;;  %v22416_v47 = vld [vmem:[%s25052_s23 + $0x1064] ss:$24 sps:$4 sm:$0xff]   ;;  %v22411_v50 = vld [vmem:[%s25052_s23 + $0x1058] ss:$24 sps:$4 sm:$0xff]  }
 0x405   : > { %4836 = vmatpush1.bf16.msra.mxu0 %v22327_v51  ;;  %v22414_v51 = vld [vmem:[%s25052_s23 + $0x1060] ss:$24 sps:$4 sm:$0xff]  }
 0x406   : > { %4965 = vmatpush1.bf16.msra.mxu1 %v22330_v52  ;;  %4837 = vmatprep.subr.bf16.mxu0 %v22335_v53  ;;  %v22419_v52 = vld [vmem:[%s25052_s23 + $0x108c] ss:$24 sps:$4 sm:$0xff]  }
 0x407   : > { %4966 = vmatprep.subr.bf16.mxu1 %v22338_v55  ;;  %v22422_v53 = vld [vmem:[%s25052_s23 + $0x1094] ss:$24 sps:$4 sm:$0xff]   ;;  %v22417_v55 = vld [vmem:[%s25052_s23 + $0x1088] ss:$24 sps:$4 sm:$0xff]  }
 0x409   : > { %4838 = vmatpush1.bf16.msra.mxu0 %v22333_v56  ;;  %v22420_v56 = vld [vmem:[%s25052_s23 + $0x1090] ss:$24 sps:$4 sm:$0xff]  }
 0x40a   : > { %4967 = vmatpush1.bf16.msra.mxu1 %v22336_v57  ;;  %4839 = vmatprep.subr.bf16.mxu0 %v22341_v59  ;;  %v22425_v57 = vld [vmem:[%s25052_s23 + $0x10bc] ss:$24 sps:$4 sm:$0xff]  }
 0x40b   : > { %4968 = vmatprep.subr.bf16.mxu1 %v22344_v60  ;;  %v22428_v59 = vld [vmem:[%s25052_s23 + $0x10c4] ss:$24 sps:$4 sm:$0xff]   ;;  %v22423_v60 = vld [vmem:[%s25052_s23 + $0x10b8] ss:$24 sps:$4 sm:$0xff]  }
 0x40d   : > { %4840 = vmatpush1.bf16.msra.mxu0 %v22339_v61  ;;  %v22426_v61 = vld [vmem:[%s25052_s23 + $0x10c0] ss:$24 sps:$4 sm:$0xff]  }
 0x40e   : > { %4969 = vmatpush1.bf16.msra.mxu1 %v22342_v63  ;;  %4841 = vmatprep.subr.bf16.mxu0 %v22347_v27  ;;  %v22431_v63 = vld [vmem:[%s25052_s23 + $0x10ec] ss:$24 sps:$4 sm:$0xff]  }
 0x40f   : > { %4970 = vmatprep.subr.bf16.mxu1 %v22350_v3  ;;  %v22434_v27 = vld [vmem:[%s25052_s23 + $0x10f4] ss:$24 sps:$4 sm:$0xff]   ;;  %v22429_v3 = vld [vmem:[%s25052_s23 + $0x10e8] ss:$24 sps:$4 sm:$0xff]  }
 0x411   : > { %4842 = vmatpush1.bf16.msra.mxu0 %v22345_v4  ;;  %v22432_v4 = vld [vmem:[%s25052_s23 + $0x10f0] ss:$24 sps:$4 sm:$0xff]  }
 0x412   : > { %4971 = vmatpush1.bf16.msra.mxu1 %v22348_v29  ;;  %4843 = vmatprep.subr.bf16.mxu0 %v22353_v5  ;;  %v22437_v29 = vld [vmem:[%s25052_s23 + $0x111c] ss:$24 sps:$4 sm:$0xff]  }
 0x413   : > { %4972 = vmatprep.subr.bf16.mxu1 %v22356_v31  ;;  %v22440_v5 = vld [vmem:[%s25052_s23 + $0x1124] ss:$24 sps:$4 sm:$0xff]   ;;  %v22435_v31 = vld [vmem:[%s25052_s23 + $0x1118] ss:$24 sps:$4 sm:$0xff]  }
 0x415   : > { %4844 = vmatpush1.bf16.msra.mxu0 %v22351_v6  ;;  %v22438_v6 = vld [vmem:[%s25052_s23 + $0x1120] ss:$24 sps:$4 sm:$0xff]  }
 0x416   : > { %4973 = vmatpush1.bf16.msra.mxu1 %v22354_v35  ;;  %4845 = vmatprep.subr.bf16.mxu0 %v22359_v41  ;;  %v22443_v35 = vld [vmem:[%s25052_s23 + $0x114c] ss:$24 sps:$4 sm:$0xff]  }
 0x417   : > { %4974 = vmatprep.subr.bf16.mxu1 %v22362_v7  ;;  %v22446_v41 = vld [vmem:[%s25052_s23 + $0x1154] ss:$24 sps:$4 sm:$0xff]   ;;  %v22441_v7 = vld [vmem:[%s25052_s23 + $0x1148] ss:$24 sps:$4 sm:$0xff]  }
 0x419   : > { %4846 = vmatpush1.bf16.msra.mxu0 %v22357_v8  ;;  %v22444_v8 = vld [vmem:[%s25052_s23 + $0x1150] ss:$24 sps:$4 sm:$0xff]  }
 0x41a   : > { %4975 = vmatpush1.bf16.msra.mxu1 %v22360_v9  ;;  %4847 = vmatprep.subr.bf16.mxu0 %v22365_v11  ;;  %v22449_v9 = vld [vmem:[%s25052_s23 + $0x117c] ss:$24 sps:$4 sm:$0xff]  }
 0x41b   : > { %4976 = vmatprep.subr.bf16.mxu1 %v22368_v38  ;;  %v22452_v11 = vld [vmem:[%s25052_s23 + $0x1184] ss:$24 sps:$4 sm:$0xff]   ;;  %v22447_v38 = vld [vmem:[%s25052_s23 + $0x1178] ss:$24 sps:$4 sm:$0xff]  }
 0x41d   : > { %4848 = vmatpush1.bf16.msra.mxu0 %v22363_v12  ;;  %v22450_v12 = vld [vmem:[%s25052_s23 + $0x1180] ss:$24 sps:$4 sm:$0xff]  }
 0x41e   : > { %4977 = vmatpush1.bf16.msra.mxu1 %v22366_v39  ;;  %4860 = vmatprep.subr.bf16.mxu0 %v22371_v13  ;;  %v22455_v39 = vld [vmem:[%s25052_s23 + $0x11ac] ss:$24 sps:$4 sm:$0xff]  }
 0x41f   : > { %4989 = vmatprep.subr.bf16.mxu1 %v22374_v30  ;;  %v22458_v13 = vld [vmem:[%s25052_s23 + $0x11b4] ss:$24 sps:$4 sm:$0xff]   ;;  %v22453_v30 = vld [vmem:[%s25052_s23 + $0x11a8] ss:$24 sps:$4 sm:$0xff]  }
 0x420   : > { %4850 = vmatmul.mubr.bf16.vlgmr.msra.gmra.mrb[8].mxu0 %v25341_v48 }
 0x421   : > { %4979 = vmatmul.mubr.bf16.vlgmr.msra.gmra.mrb[8].mxu1 %v25341_v48  ;;  %4861 = vmatpush1.bf16.msra.mxu0 %v22369_v14  ;;  %v22381_v48 = vld [vmem:[%s25052_s23 + $0xf68] ss:$24 sps:$4 sm:$0xff]  }
 0x422   : > { %4990 = vmatpush1.bf16.msra.mxu1 %v22372_v15  ;;  %4862 = vmatprep.subr.bf16.mxu0 %v22377_v16  ;;  %v22456_v14 = vld [vmem:[%s25052_s23 + $0x11b0] ss:$24 sps:$4 sm:$0xff]   ;;  %v22461_v15 = vld [vmem:[%s25052_s23 + $0x11dc] ss:$24 sps:$4 sm:$0xff]  }
 0x423   : > { %4991 = vmatprep.subr.bf16.mxu1 %v22380_v17  ;;  %4892 = vmatprep.mubr.bf16.mxu0 %v25350_v58  ;;  %v22464_v16 = vld [vmem:[%s25052_s23 + $0x11e4] ss:$24 sps:$4 sm:$0xff]   ;;  %v22459_v17 = vld [vmem:[%s25052_s23 + $0x11d8] ss:$24 sps:$4 sm:$0xff]  }
 0x424   : > { %5021 = vmatprep.mubr.bf16.mxu1 %v25350_v58  ;;  %v22395_v58 = vld [vmem:[%s25052_s23 + $0xfcc] ss:$24 sps:$4 sm:$0xff]  }
 0x425   : > { %4863 = vmatpush1.bf16.msra.mxu0 %v22375_v40  ;;  %v22462_v40 = vld [vmem:[%s25052_s23 + $0x11e0] ss:$24 sps:$4 sm:$0xff]  }
 0x426   : > { %4992 = vmatpush1.bf16.msra.mxu1 %v22378_v28  ;;  %4864 = vmatprep.subr.bf16.mxu0 %v22383_v44  ;;  %v3153_v28 = vsub.s32 1, %v25629_v33  ;;  %v3157_v44 = vsub.s32 5, %v25629_v33 }
 0x427   : > { %4993 = vmatprep.subr.bf16.mxu1 %v22386_v49  ;;  %v988_v49 = vrot.slane %v25081_v2, %v25636_v43 }
 0x429   : > { %4865 = vmatpush1.bf16.msra.mxu0 %v22381_v48  ;;  %v3154_v48 = vrot.slane %v25077_v0, %v3153_v28 }
 0x42a   : > { %4994 = vmatpush1.bf16.msra.mxu1 %v22384_v54  ;;  %4866 = vmatprep.subr.bf16.mxu0 %v22389_v18  ;;  %v992_v54 = vrot.slane %v25081_v2, %v25641_v46  ;;  %v3158_v18 = vrot.slane %v25077_v0, %v3157_v44 }
 0x42b   : > { %4995 = vmatprep.subr.bf16.mxu1 %v22392_v19  ;;  %v1018_v19 = vrot.slane %v988_v49, %v25636_v43 }
 0x42d   : > { %4867 = vmatpush1.bf16.msra.mxu0 %v22387_v20  ;;  %v3184_v20 = vrot.slane %v3154_v48, %v3153_v28 }
 0x42e   : > { %4996 = vmatpush1.bf16.msra.mxu1 %v22390_v21  ;;  %4868 = vmatprep.subr.bf16.mxu0 %v22395_v58  ;;  %v1022_v21 = vrot.slane %v992_v54, %v25636_v43 }
 0x42f   : > { %4997 = vmatprep.subr.bf16.mxu1 %v22398_v22 }
 0x431   : > { %4869 = vmatpush1.bf16.msra.mxu0 %v22393_v23 }
 0x432   : > { %4998 = vmatpush1.bf16.msra.mxu1 %v22396_v24  ;;  %4870 = vmatprep.subr.bf16.mxu0 %v22401_v25 }
 0x433   : > { %4999 = vmatprep.subr.bf16.mxu1 %v22404_v26 }
 0x435   : > { %4871 = vmatpush1.bf16.msra.mxu0 %v22399_v32 }
 0x436   : > { %5000 = vmatpush1.bf16.msra.mxu1 %v22402_v34  ;;  %4872 = vmatprep.subr.bf16.mxu0 %v22407_v36 }
 0x437   : > { %5001 = vmatprep.subr.bf16.mxu1 %v22410_v37 }
 0x439   : > { %4873 = vmatpush1.bf16.msra.mxu0 %v22405_v42 }
 0x43a   : > { %5002 = vmatpush1.bf16.msra.mxu1 %v22408_v10  ;;  %4874 = vmatprep.subr.bf16.mxu0 %v22413_v45 }
 0x43b   : > { %5003 = vmatprep.subr.bf16.mxu1 %v22416_v47  ;;  %v3162_v47 = vrot.slane %v25079_v1, %v3153_v28 }
 0x43d   : > { %4875 = vmatpush1.bf16.msra.mxu0 %v22411_v50  ;;  %v3170_v50 = vrot.slane %v25081_v2, %v3153_v28 }
 0x43e   : > { %5004 = vmatpush1.bf16.msra.mxu1 %v22414_v51  ;;  %4876 = vmatprep.subr.bf16.mxu0 %v22419_v52  ;;  %v3166_v51 = vrot.slane %v25079_v1, %v3157_v44  ;;  %v3174_v52 = vrot.slane %v25081_v2, %v3157_v44 }
 0x43f   : > { %5005 = vmatprep.subr.bf16.mxu1 %v22422_v53  ;;  %v3192_v53 = vrot.slane %v3162_v47, %v3153_v28 }
 0x441   : > { %4877 = vmatpush1.bf16.msra.mxu0 %v22417_v55  ;;  %v3200_v55 = vrot.slane %v3170_v50, %v3153_v28 }
 0x442   : > { %5006 = vmatpush1.bf16.msra.mxu1 %v22420_v56  ;;  %4878 = vmatprep.subr.bf16.mxu0 %v22425_v57  ;;  %v3196_v56 = vrot.slane %v3166_v51, %v3153_v28  ;;  %v3204_v57 = vrot.slane %v3174_v52, %v3153_v28 }
 0x443   : > { %5007 = vmatprep.subr.bf16.mxu1 %v22428_v59 }
 0x445   : > { %4879 = vmatpush1.bf16.msra.mxu0 %v22423_v60 }
 0x446   : > { %5008 = vmatpush1.bf16.msra.mxu1 %v22426_v61  ;;  %4880 = vmatprep.subr.bf16.mxu0 %v22431_v63 }
 0x447   : > { %5009 = vmatprep.subr.bf16.mxu1 %v22434_v27 }
 0x449   : > { %4881 = vmatpush1.bf16.msra.mxu0 %v22429_v3 }
 0x44a   : > { %5010 = vmatpush1.bf16.msra.mxu1 %v22432_v4  ;;  %4882 = vmatprep.subr.bf16.mxu0 %v22437_v29 }
 0x44b   : > { %5011 = vmatprep.subr.bf16.mxu1 %v22440_v5 }
 0x44d   : > { %4883 = vmatpush1.bf16.msra.mxu0 %v22435_v31 }
 0x44e   : > { %5012 = vmatpush1.bf16.msra.mxu1 %v22438_v6  ;;  %4884 = vmatprep.subr.bf16.mxu0 %v22443_v35 }
 0x44f   : > { %5013 = vmatprep.subr.bf16.mxu1 %v22446_v41 }
 0x451   : > { %4885 = vmatpush1.bf16.msra.mxu0 %v22441_v7 }
 0x452   : > { %5014 = vmatpush1.bf16.msra.mxu1 %v22444_v8  ;;  %4886 = vmatprep.subr.bf16.mxu0 %v22449_v9 }
 0x453   : > { %5015 = vmatprep.subr.bf16.mxu1 %v22452_v11 }
 0x455   : > { %4887 = vmatpush1.bf16.msra.mxu0 %v22447_v38 }
 0x456   : > { %5016 = vmatpush1.bf16.msra.mxu1 %v22450_v12  ;;  %4888 = vmatprep.subr.bf16.mxu0 %v22455_v39 }
 0x457   : > { %5017 = vmatprep.subr.bf16.mxu1 %v22458_v13 }
 0x459   : > { %4889 = vmatpush1.bf16.msra.mxu0 %v22453_v30 }
 0x45a   : > { %5018 = vmatpush1.bf16.msra.mxu1 %v22456_v14  ;;  %4890 = vmatprep.subr.bf16.mxu0 %v22461_v15 }
 0x45b   : > { %5019 = vmatprep.subr.bf16.mxu1 %v22464_v16 }
 0x45d   : > { %4891 = vmatpush1.bf16.msra.mxu0 %v22459_v17 }
 0x45e   : > { %5020 = vmatpush1.bf16.msra.mxu1 %v22462_v40 }
 0x460   : > { %4893 = vmatmul.mubr.bf16.vlgmr.msra.gmra.mrb[8].mxu0 %v25411_v62 }
 0x461   : > { %5022 = vmatmul.mubr.bf16.vlgmr.msra.gmra.mrb[8].mxu1 %v25411_v62  ;;  %v3188_v62 = vrot.slane %v3158_v18, %v3153_v28 }
 0x473   : > { %v2841_v58 = vpop.f32.mrb[4].mxu0 }
 0x474   : > { %v4765_v22 = vpop.f32.mrb[4].mxu1  ;;  %v21287_v23 = vadd.f32 %v2841_v58, %v1018_v19  ;;  %v2843_v24 = vpop.f32.mrb[5].mxu0 }
 0x475   : > { %v21291_v33 = vadd.f32 %v4765_v22, %v3184_v20  ;;  %v4767_v25 = vpop.f32.mrb[5].mxu1  ;;  %v21288_v26 = vadd.f32 %v2843_v24, %v1022_v21  ;;  %v2845_v34 = vpop.f32.mrb[6].mxu0 }
 0x476   : > { %v21292_v32 = vadd.f32 %v4767_v25, %v3188_v62  ;;  %v4769_v36 = vpop.f32.mrb[6].mxu1  ;;  %2854 = vst [vmem:[#allocation3 + $0x20] sm:$0xff] %v21287_v23  ;;  %v21289_v46 = vadd.f32 %v2845_v34, %v1018_v19  ;;  %v2847_v42 = vpop.f32.mrb[7].mxu0 }
 0x477   : > { %5032 = vst [vmem:[#allocation3 + $0x30] sm:$0xff] %v21291_v33  ;;  %v21293_v37 = vadd.f32 %v4769_v36, %v3184_v20  ;;  %v4771_v10 = vpop.f32.mrb[7].mxu1  ;;  %2855 = vst [vmem:[#allocation3 + $0x28] sm:$0xff] %v21288_v26  ;;  %v21290_v43 = vadd.f32 %v2847_v42, %v1022_v21 }
 0x478   : > { %5033 = vst [vmem:[#allocation3 + $0x38] sm:$0xff] %v21292_v32  ;;  %v21294_v45 = vadd.f32 %v4771_v10, %v3188_v62  ;;  %2860 = vst [vmem:[#allocation3 + $0xb0] sm:$0xff] %v21289_v46 }
 0x479   : > { %5038 = vst [vmem:[#allocation3 + $0xc0] sm:$0xff] %v21293_v37  ;;  %2861 = vst [vmem:[#allocation3 + $0xb8] sm:$0xff] %v21290_v43 }
 0x47a   : > { %5039 = vst [vmem:[#allocation3 + $0xc8] sm:$0xff] %v21294_v45 }
 0x533   : > { %v4894_v59 = vpop.f32.mrb[8].mxu0 }
 0x534   : > { %v5023_v60 = vpop.f32.mrb[8].mxu1  ;;  %v21295_v61 = vadd.f32 %v4894_v59, %v3192_v53  ;;  %v4896_v27 = vpop.f32.mrb[9].mxu0 }
 0x535   : > { %v21299_v63 = vadd.f32 %v5023_v60, %v3200_v55  ;;  %v5025_v3 = vpop.f32.mrb[9].mxu1  ;;  %v21296_v4 = vadd.f32 %v4896_v27, %v3196_v56  ;;  %v4898_v5 = vpop.f32.mrb[10].mxu0 }
 0x536   : > { %v21300_v29 = vadd.f32 %v5025_v3, %v3204_v57  ;;  %v5027_v31 = vpop.f32.mrb[10].mxu1  ;;  %5034 = vst [vmem:[#allocation3 + $0x40] sm:$0xff] %v21295_v61  ;;  %v21297_v6 = vadd.f32 %v4898_v5, %v3192_v53  ;;  %v4900_v41 = vpop.f32.mrb[11].mxu0 }
 0x537   : > { %5036 = vst [vmem:[#allocation3 + $0x50] sm:$0xff] %v21299_v63  ;;  %v21301_v35 = vadd.f32 %v5027_v31, %v3200_v55  ;;  %v5029_v7 = vpop.f32.mrb[11].mxu1  ;;  %5035 = vst [vmem:[#allocation3 + $0x48] sm:$0xff] %v21296_v4  ;;  %v21298_v8 = vadd.f32 %v4900_v41, %v3196_v56 }
 0x538   : > { %5037 = vst [vmem:[#allocation3 + $0x58] sm:$0xff] %v21300_v29  ;;  %v21302_v9 = vadd.f32 %v5029_v7, %v3204_v57  ;;  %5040 = vst [vmem:[#allocation3 + $0xd0] sm:$0xff] %v21297_v6 }
 0x539   : > { %5042 = vst [vmem:[#allocation3 + $0xe0] sm:$0xff] %v21301_v35  ;;  %5041 = vst [vmem:[#allocation3 + $0xd8] sm:$0xff] %v21298_v8 }
 0x53a   : > { %5043 = vst [vmem:[#allocation3 + $0xe8] sm:$0xff] %v21302_v9 }
 0x53b PF: > { %p18953_p5 = scmp.ne.s32.totalorder %s27847_s14, 1 }
 0x53c   : > { %v22525_v11 = vld [vmem:[%s25052_s23 + $0x4] ss:$24 sps:$4 sm:$0xff] (!%p18953_p5)   ;;  %v22527_v38 = vld [vmem:[%s25052_s23] ss:$24 sps:$4 sm:$0xff] (!%p18953_p5)   ;;  %v22528_v12 = vld [vmem:[%s25052_s23 + $0x34] ss:$24 sps:$4 sm:$0xff] (!%p18953_p5)  }
 0x53d   : > { %5047 = sbr.rel (%p18953_p5) target bundleno = 8887 (0x22b7), region = 88  ;;  %6851 = vmatprep.subr.bf16.mxu0 (!%p18953_p5), %v22525_v11  ;;  %v22530_v39 = vld [vmem:[%s25052_s23 + $0x30] ss:$24 sps:$4 sm:$0xff] (!%p18953_p5)   ;;  %v22531_v13 = vld [vmem:[%s25052_s23 + $0x64] ss:$24 sps:$4 sm:$0xff] (!%p18953_p5)   ;;  %vm7258_vm0 = vcmask (!%p18953_p5), 523264  }
 0x53e   : > { %6852 = vmatpush1.bf16.msra.mxu0 (!%p18953_p5), %v22527_v38  ;;  %v22533_v30 = vld [vmem:[%s25052_s23 + $0x60] ss:$24 sps:$4 sm:$0xff] (!%p18953_p5)   ;;  %v22534_v14 = vld [vmem:[%s25052_s23 + $0x94] ss:$24 sps:$4 sm:$0xff] (!%p18953_p5)   ;;  %v22536_v15 = vld [vmem:[%s25052_s23 + $0x90] ss:$24 sps:$4 sm:$0xff] (!%p18953_p5)  }
 0x53f   : > { %6853 = vmatprep.subr.bf16.mxu0 (!%p18953_p5), %v22528_v12  ;;  %v22537_v16 = vld [vmem:[%s25052_s23 + $0xc4] ss:$24 sps:$4 sm:$0xff] (!%p18953_p5)   ;;  %v22539_v17 = vld [vmem:[%s25052_s23 + $0xc0] ss:$24 sps:$4 sm:$0xff] (!%p18953_p5)   ;;  %v22540_v40 = vld [vmem:[%s25052_s23 + $0xf4] ss:$24 sps:$4 sm:$0xff] (!%p18953_p5)  }
 0x540   : > { %v22542_v28 = vld [vmem:[%s25052_s23 + $0xf0] ss:$24 sps:$4 sm:$0xff] (!%p18953_p5)   ;;  %v22543_v44 = vld [vmem:[%s25052_s23 + $0x124] ss:$24 sps:$4 sm:$0xff] (!%p18953_p5)   ;;  %v22545_v18 = vld [vmem:[%s25052_s23 + $0x120] ss:$24 sps:$4 sm:$0xff] (!%p18953_p5)  }
 0x541   : > { %v5049_v49 = vld [vmem:[#allocation2 + $0x8] sm:$0xff] (!%p18953_p5)  ;;  %v5055_v48 = vld [vmem:[#allocation2 + $0x38] sm:$0xff] (!%p18953_p5)  ;;  %v5048_v59 = vld [vmem:[#allocation2] sm:$0xff] (!%p18953_p5)  ;;  %s24779_s21 = smov (!%p18953_p5), 64   ;;  %vm7350_vm2 = vcmask (!%p18953_p5), 130048   ;;  %vm7680_vm3 = vcmask (!%p18953_p5), 1048064  }
 0x542   : > { %6854 = vmatpush1.bf16.msra.mxu0 (!%p18953_p5), %v22530_v39  ;;  %v25869_v54 = vpack.c.bf16 (!%p18953_p5), %v5055_v48, %v5049_v49  ;;  %v22546_v19 = vld [vmem:[%s25052_s23 + $0x154] ss:$24 sps:$4 sm:$0xff] (!%p18953_p5)   ;;  %v22548_v20 = vld [vmem:[%s25052_s23 + $0x150] ss:$24 sps:$4 sm:$0xff] (!%p18953_p5)   ;;  %v22549_v21 = vld [vmem:[%s25052_s23 + $0x184] ss:$24 sps:$4 sm:$0xff] (!%p18953_p5)  }
 0x543   : > { %6855 = vmatprep.subr.bf16.mxu0 (!%p18953_p5), %v22531_v13  ;;  %v22551_v62 = vld [vmem:[%s25052_s23 + $0x180] ss:$24 sps:$4 sm:$0xff] (!%p18953_p5)   ;;  %v22552_v58 = vld [vmem:[%s25052_s23 + $0x1b4] ss:$24 sps:$4 sm:$0xff] (!%p18953_p5)   ;;  %v22554_v22 = vld [vmem:[%s25052_s23 + $0x1b0] ss:$24 sps:$4 sm:$0xff] (!%p18953_p5)  }
 0x544   : > { %6883 = vmatprep.mubr.bf16.mxu0 %v25869_v54  ;;  %v22555_v23 = vld [vmem:[%s25052_s23 + $0x1e4] ss:$24 sps:$4 sm:$0xff]   ;;  %v22557_v33 = vld [vmem:[%s25052_s23 + $0x1e0] ss:$24 sps:$4 sm:$0xff]   ;;  %v22558_v24 = vld [vmem:[%s25052_s23 + $0x214] ss:$24 sps:$4 sm:$0xff]  }
 0x545   : > { %v22560_v25 = vld [vmem:[%s25052_s23 + $0x210] ss:$24 sps:$4 sm:$0xff]   ;;  %v22561_v26 = vld [vmem:[%s25052_s23 + $0x244] ss:$24 sps:$4 sm:$0xff]   ;;  %v22563_v46 = vld [vmem:[%s25052_s23 + $0x240] ss:$24 sps:$4 sm:$0xff]  }
 0x546   : > { %6856 = vmatpush1.bf16.msra.mxu0 %v22533_v30  ;;  %v5051_v32 = vld [vmem:[#allocation2 + $0x18] sm:$0xff]  ;;  %v5057_v34 = vld [vmem:[#allocation2 + $0x48] sm:$0xff]  ;;  %v5054_v61 = vld [vmem:[#allocation2 + $0x30] sm:$0xff] }
 0x547   : > { %6857 = vmatprep.subr.bf16.mxu0 %v22534_v14  ;;  %v25884_v36 = vpack.c.bf16 %v5057_v34, %v5051_v32  ;;  %v22624_v37 = vld [vmem:[%s25052_s23 + $0x30c] ss:$24 sps:$4 sm:$0xff]   ;;  %v22626_v42 = vld [vmem:[%s25052_s23 + $0x308] ss:$24 sps:$4 sm:$0xff]   ;;  %v22630_v43 = vld [vmem:[%s25052_s23 + $0x33c] ss:$24 sps:$4 sm:$0xff]   ;;  %v25904_v3 = vpack.c.bf16 %v5054_v61, %v5048_v59 }
 0x548   : > { %v22564_v10 = vld [vmem:[%s25052_s23 + $0x274] ss:$24 sps:$4 sm:$0xff]   ;;  %7023 = vmatprep.subr.bf16.mxu1 %v22624_v37  ;;  %v22632_v45 = vld [vmem:[%s25052_s23 + $0x338] ss:$24 sps:$4 sm:$0xff]   ;;  %v22567_v50 = vld [vmem:[%s25052_s23 + $0x2a4] ss:$24 sps:$4 sm:$0xff]  }
 0x549   : > { %7055 = vmatprep.mubr.bf16.mxu1 %v25884_v36  ;;  %7024 = vmatpush1.bf16.msra.mxu1 %v22626_v42  ;;  %v22566_v47 = vld [vmem:[%s25052_s23 + $0x270] ss:$24 sps:$4 sm:$0xff]   ;;  %v22636_v51 = vld [vmem:[%s25052_s23 + $0x36c] ss:$24 sps:$4 sm:$0xff]   ;;  %v22569_v53 = vld [vmem:[%s25052_s23 + $0x2a0] ss:$24 sps:$4 sm:$0xff]  }
 0x54a   : > { %6858 = vmatpush1.bf16.msra.mxu0 %v22536_v15  ;;  %7025 = vmatprep.subr.bf16.mxu1 %v22630_v43  ;;  %v22638_v52 = vld [vmem:[%s25052_s23 + $0x368] ss:$24 sps:$4 sm:$0xff]   ;;  %v22642_v55 = vld [vmem:[%s25052_s23 + $0x39c] ss:$24 sps:$4 sm:$0xff]   ;;  %v22644_v60 = vld [vmem:[%s25052_s23 + $0x398] ss:$24 sps:$4 sm:$0xff]  }
 0x54b   : > { %6859 = vmatprep.subr.bf16.mxu0 %v22537_v16  ;;  %v22570_v56 = vld [vmem:[%s25052_s23 + $0x2d4] ss:$24 sps:$4 sm:$0xff]   ;;  %v22572_v57 = vld [vmem:[%s25052_s23 + $0x2d0] ss:$24 sps:$4 sm:$0xff]   ;;  %v22575_v27 = vld [vmem:[%s25052_s23 + $0x304] ss:$24 sps:$4 sm:$0xff]  }
 0x54c   : > { %v22648_v63 = vld [vmem:[%s25052_s23 + $0x3cc] ss:$24 sps:$4 sm:$0xff]   ;;  %v22650_v4 = vld [vmem:[%s25052_s23 + $0x3c8] ss:$24 sps:$4 sm:$0xff]   ;;  %v22654_v31 = vld [vmem:[%s25052_s23 + $0x3fc] ss:$24 sps:$4 sm:$0xff]  }
 0x54d   : > { %7026 = vmatpush1.bf16.msra.mxu1 %v22632_v45  ;;  %v22573_v29 = vld [vmem:[%s25052_s23 + $0x300] ss:$24 sps:$4 sm:$0xff]   ;;  %v22578_v5 = vld [vmem:[%s25052_s23 + $0x334] ss:$24 sps:$4 sm:$0xff]   ;;  %v22576_v35 = vld [vmem:[%s25052_s23 + $0x330] ss:$24 sps:$4 sm:$0xff]  }
 0x54e   : > { %6860 = vmatpush1.bf16.msra.mxu0 %v22539_v17  ;;  %7027 = vmatprep.subr.bf16.mxu1 %v22636_v51  ;;  %v22656_v6 = vld [vmem:[%s25052_s23 + $0x3f8] ss:$24 sps:$4 sm:$0xff]   ;;  %v22660_v41 = vld [vmem:[%s25052_s23 + $0x42c] ss:$24 sps:$4 sm:$0xff]   ;;  %v22662_v8 = vld [vmem:[%s25052_s23 + $0x428] ss:$24 sps:$4 sm:$0xff]  }
 0x54f   : > { %6861 = vmatprep.subr.bf16.mxu0 %v22540_v40  ;;  %v22581_v7 = vld [vmem:[%s25052_s23 + $0x364] ss:$24 sps:$4 sm:$0xff]   ;;  %v22579_v9 = vld [vmem:[%s25052_s23 + $0x360] ss:$24 sps:$4 sm:$0xff]   ;;  %v22584_v38 = vld [vmem:[%s25052_s23 + $0x394] ss:$24 sps:$4 sm:$0xff]  }
 0x550   : > { %v22666_v11 = vld [vmem:[%s25052_s23 + $0x45c] ss:$24 sps:$4 sm:$0xff]   ;;  %v22668_v12 = vld [vmem:[%s25052_s23 + $0x458] ss:$24 sps:$4 sm:$0xff]   ;;  %v22672_v13 = vld [vmem:[%s25052_s23 + $0x48c] ss:$24 sps:$4 sm:$0xff]  }
 0x551   : > { %7028 = vmatpush1.bf16.msra.mxu1 %v22638_v52  ;;  %v22582_v39 = vld [vmem:[%s25052_s23 + $0x390] ss:$24 sps:$4 sm:$0xff]   ;;  %v22587_v30 = vld [vmem:[%s25052_s23 + $0x3c4] ss:$24 sps:$4 sm:$0xff]   ;;  %v22585_v15 = vld [vmem:[%s25052_s23 + $0x3c0] ss:$24 sps:$4 sm:$0xff]  }
 0x552   : > { %6862 = vmatpush1.bf16.msra.mxu0 %v22542_v28  ;;  %7029 = vmatprep.subr.bf16.mxu1 %v22642_v55  ;;  %v22674_v14 = vld [vmem:[%s25052_s23 + $0x488] ss:$24 sps:$4 sm:$0xff]   ;;  %v22678_v16 = vld [vmem:[%s25052_s23 + $0x4bc] ss:$24 sps:$4 sm:$0xff]   ;;  %v22680_v40 = vld [vmem:[%s25052_s23 + $0x4b8] ss:$24 sps:$4 sm:$0xff]  }
 0x553   : > { %6863 = vmatprep.subr.bf16.mxu0 %v22543_v44  ;;  %v22590_v17 = vld [vmem:[%s25052_s23 + $0x3f4] ss:$24 sps:$4 sm:$0xff]   ;;  %v22588_v28 = vld [vmem:[%s25052_s23 + $0x3f0] ss:$24 sps:$4 sm:$0xff]   ;;  %v22593_v49 = vld [vmem:[%s25052_s23 + $0x424] ss:$24 sps:$4 sm:$0xff]  }
 0x554   : > { %v22684_v44 = vld [vmem:[%s25052_s23 + $0x4ec] ss:$24 sps:$4 sm:$0xff]   ;;  %v22686_v48 = vld [vmem:[%s25052_s23 + $0x4e8] ss:$24 sps:$4 sm:$0xff]   ;;  %v22716_v51 = vld [vmem:[%s25052_s23 + $0x5d8] ss:$24 sps:$4 sm:$0xff]  }
 0x555   : > { %7030 = vmatpush1.bf16.msra.mxu1 %v22644_v60  ;;  %v22600_v32 = vld [vmem:[%s25052_s23 + $0x4b0] ss:$24 sps:$4 sm:$0xff]   ;;  %v22708_v34 = vld [vmem:[%s25052_s23 + $0x5ac] ss:$24 sps:$4 sm:$0xff]   ;;  %v22603_v42 = vld [vmem:[%s25052_s23 + $0x4e0] ss:$24 sps:$4 sm:$0xff]  }
 0x556   : > { %6864 = vmatpush1.bf16.msra.mxu0 %v22545_v18  ;;  %7031 = vmatprep.subr.bf16.mxu1 %v22648_v63  ;;  %v22591_v18 = vld [vmem:[%s25052_s23 + $0x420] ss:$24 sps:$4 sm:$0xff]   ;;  %v22608_v43 = vld [vmem:[%s25052_s23 + $0x514] ss:$24 sps:$4 sm:$0xff]   ;;  %v22606_v45 = vld [vmem:[%s25052_s23 + $0x510] ss:$24 sps:$4 sm:$0xff]  }
 0x557   : > { %6865 = vmatprep.subr.bf16.mxu0 %v22546_v19  ;;  %v22690_v19 = vld [vmem:[%s25052_s23 + $0x51c] ss:$24 sps:$4 sm:$0xff]   ;;  %v22710_v37 = vld [vmem:[%s25052_s23 + $0x5a8] ss:$24 sps:$4 sm:$0xff]   ;;  %vm26029_vm1 = vmpackc.low %vm7258_vm0, %vm7258_vm0 }
 0x558   : > { %v5056_v52 = vld [vmem:[#allocation2 + $0x40] sm:$0xff]  ;;  %v5053_v55 = vld [vmem:[#allocation2 + $0x28] sm:$0xff]  ;;  %v22728_v61 = vld [vmem:[%s25052_s23 + $0x63c] ss:$24 sps:$4 sm:$0xff]  }
 0x559   : > { %7032 = vmatpush1.bf16.msra.mxu1 %v22650_v4  ;;  %v22609_v59 = vld [vmem:[%s25052_s23 + $0x540] ss:$24 sps:$4 sm:$0xff]   ;;  %v22614_v63 = vld [vmem:[%s25052_s23 + $0x574] ss:$24 sps:$4 sm:$0xff]  }
 0x55a   : > { %6866 = vmatpush1.bf16.msra.mxu0 %v22548_v20  ;;  %7033 = vmatprep.subr.bf16.mxu1 %v22654_v31  ;;  %v22596_v20 = vld [vmem:[%s25052_s23 + $0x454] ss:$24 sps:$4 sm:$0xff]   ;;  %v22726_v4 = vld [vmem:[%s25052_s23 + $0x638] ss:$24 sps:$4 sm:$0xff]   ;;  %v22617_v31 = vld [vmem:[%s25052_s23 + $0x5a4] ss:$24 sps:$4 sm:$0xff]  }
 0x55b   : > { %6867 = vmatprep.subr.bf16.mxu0 %v22549_v21  ;;  %v22692_v21 = vld [vmem:[%s25052_s23 + $0x518] ss:$24 sps:$4 sm:$0xff]  }
 0x55d   : > { %7034 = vmatpush1.bf16.msra.mxu1 %v22656_v6  ;;  %v22732_v6 = vld [vmem:[%s25052_s23 + $0x668] ss:$24 sps:$4 sm:$0xff]  }
 0x55e   : > { %6868 = vmatpush1.bf16.msra.mxu0 %v22551_v62  ;;  %7035 = vmatprep.subr.bf16.mxu1 %v22660_v41  ;;  %v22594_v62 = vld [vmem:[%s25052_s23 + $0x450] ss:$24 sps:$4 sm:$0xff]   ;;  %v22740_v41 = vld [vmem:[%s25052_s23 + $0x69c] ss:$24 sps:$4 sm:$0xff]  }
 0x55f   : > { %6869 = vmatprep.subr.bf16.mxu0 %v22552_v58  ;;  %v22696_v58 = vld [vmem:[%s25052_s23 + $0x54c] ss:$24 sps:$4 sm:$0xff]  }
 0x561   : > { %7036 = vmatpush1.bf16.msra.mxu1 %v22662_v8  ;;  %v22738_v8 = vld [vmem:[%s25052_s23 + $0x698] ss:$24 sps:$4 sm:$0xff]  }
 0x562   : > { %6870 = vmatpush1.bf16.msra.mxu0 %v22554_v22  ;;  %7037 = vmatprep.subr.bf16.mxu1 %v22666_v11  ;;  %v22599_v22 = vld [vmem:[%s25052_s23 + $0x484] ss:$24 sps:$4 sm:$0xff]  }
 0x563   : > { %6871 = vmatprep.subr.bf16.mxu0 %v22555_v23  ;;  %v22698_v23 = vld [vmem:[%s25052_s23 + $0x548] ss:$24 sps:$4 sm:$0xff]   ;;  %v22746_v11 = vld [vmem:[%s25052_s23 + $0x6cc] ss:$24 sps:$4 sm:$0xff]  }
 0x565   : > { %7038 = vmatpush1.bf16.msra.mxu1 %v22668_v12  ;;  %v22744_v12 = vld [vmem:[%s25052_s23 + $0x6c8] ss:$24 sps:$4 sm:$0xff]  }
 0x566   : > { %6872 = vmatpush1.bf16.msra.mxu0 %v22557_v33  ;;  %7039 = vmatprep.subr.bf16.mxu1 %v22672_v13  ;;  %v22597_v33 = vld [vmem:[%s25052_s23 + $0x480] ss:$24 sps:$4 sm:$0xff]   ;;  %v22629_v13 = vld [vmem:[%s25052_s23 + $0x634] ss:$24 sps:$4 sm:$0xff]  }
 0x567   : > { %6873 = vmatprep.subr.bf16.mxu0 %v22558_v24  ;;  %v22702_v24 = vld [vmem:[%s25052_s23 + $0x57c] ss:$24 sps:$4 sm:$0xff]  }
 0x569   : > { %7040 = vmatpush1.bf16.msra.mxu1 %v22674_v14  ;;  %v22750_v14 = vld [vmem:[%s25052_s23 + $0x6f8] ss:$24 sps:$4 sm:$0xff]  }
 0x56a   : > { %6874 = vmatpush1.bf16.msra.mxu0 %v22560_v25  ;;  %7041 = vmatprep.subr.bf16.mxu1 %v22678_v16  ;;  %v22602_v25 = vld [vmem:[%s25052_s23 + $0x4b4] ss:$24 sps:$4 sm:$0xff]  }
 0x56b   : > { %6875 = vmatprep.subr.bf16.mxu0 %v22561_v26  ;;  %v22704_v26 = vld [vmem:[%s25052_s23 + $0x578] ss:$24 sps:$4 sm:$0xff]   ;;  %v22758_v16 = vld [vmem:[%s25052_s23 + $0x72c] ss:$24 sps:$4 sm:$0xff]  }
 0x56d   : > { %7042 = vmatpush1.bf16.msra.mxu1 %v22680_v40  ;;  %v22633_v40 = vld [vmem:[%s25052_s23 + $0x660] ss:$24 sps:$4 sm:$0xff]  }
 0x56e   : > { %6876 = vmatpush1.bf16.msra.mxu0 %v22563_v46  ;;  %7043 = vmatprep.subr.bf16.mxu1 %v22684_v44  ;;  %v22605_v46 = vld [vmem:[%s25052_s23 + $0x4e4] ss:$24 sps:$4 sm:$0xff]   ;;  %v22641_v44 = vld [vmem:[%s25052_s23 + $0x694] ss:$24 sps:$4 sm:$0xff]  }
 0x56f   : > { %6877 = vmatprep.subr.bf16.mxu0 %v22564_v10  ;;  %v22714_v10 = vld [vmem:[%s25052_s23 + $0x5dc] ss:$24 sps:$4 sm:$0xff]  }
 0x571   : > { %7044 = vmatpush1.bf16.msra.mxu1 %v22686_v48  ;;  %v22762_v48 = vld [vmem:[%s25052_s23 + $0x758] ss:$24 sps:$4 sm:$0xff]  }
 0x572   : > { %6878 = vmatpush1.bf16.msra.mxu0 %v22566_v47  ;;  %7045 = vmatprep.subr.bf16.mxu1 %v22690_v19  ;;  %v22611_v47 = vld [vmem:[%s25052_s23 + $0x544] ss:$24 sps:$4 sm:$0xff]  }
 0x573   : > { %6879 = vmatprep.subr.bf16.mxu0 %v22567_v50  ;;  %v5050_v50 = vld [vmem:[#allocation2 + $0x10] sm:$0xff]  ;;  %v22647_v19 = vld [vmem:[%s25052_s23 + $0x6c4] ss:$24 sps:$4 sm:$0xff]  }
 0x574   : > { %v25958_v60 = vpack.c.bf16 %v5056_v52, %v5050_v50  ;;  %v22677_v50 = vld [vmem:[%s25052_s23 + $0x7b4] ss:$24 sps:$4 sm:$0xff]   ;;  %v22798_v52 = vld [vmem:[%s25052_s23 + $0x878] ss:$24 sps:$4 sm:$0xff]  }
 0x575   : > { %7046 = vmatpush1.bf16.msra.mxu1 %v22692_v21  ;;  %v22768_v21 = vld [vmem:[%s25052_s23 + $0x788] ss:$24 sps:$4 sm:$0xff]  }
 0x576   : > { %6880 = vmatpush1.bf16.msra.mxu0 %v22569_v53  ;;  %7047 = vmatprep.subr.bf16.mxu1 %v22696_v58  ;;  %v22722_v53 = vld [vmem:[%s25052_s23 + $0x60c] ss:$24 sps:$4 sm:$0xff]  }
 0x577   : > { %6881 = vmatprep.subr.bf16.mxu0 %v22570_v56  ;;  %v5059_v56 = vld [vmem:[#allocation2 + $0x58] sm:$0xff]  ;;  %v22653_v58 = vld [vmem:[%s25052_s23 + $0x6f4] ss:$24 sps:$4 sm:$0xff]  }
 0x579   : > { %7048 = vmatpush1.bf16.msra.mxu1 %v22698_v23  ;;  %v22774_v23 = vld [vmem:[%s25052_s23 + $0x7b8] ss:$24 sps:$4 sm:$0xff]  }
 0x57a   : > { %6882 = vmatpush1.bf16.msra.mxu0 %v22572_v57  ;;  %7049 = vmatprep.subr.bf16.mxu1 %v22702_v24  ;;  %v22720_v57 = vld [vmem:[%s25052_s23 + $0x608] ss:$24 sps:$4 sm:$0xff]   ;;  %v22659_v24 = vld [vmem:[%s25052_s23 + $0x724] ss:$24 sps:$4 sm:$0xff]  }
 0x57b   : > { %6894 = vmatprep.subr.bf16.mxu0 %v22575_v27  ;;  %v25962_v27 = vpack.c.bf16 %v5059_v56, %v5053_v55  ;;  %v22683_v55 = vld [vmem:[%s25052_s23 + $0x7e4] ss:$24 sps:$4 sm:$0xff]  }
 0x57c   : > { %v22806_v56 = vld [vmem:[%s25052_s23 + $0x8ac] ss:$24 sps:$4 sm:$0xff]  }
 0x57d   : > { %6884 = vmatmul.mubr.bf16.vlgmr.msra.gmra.mrb[0].mxu0 %v25904_v3  ;;  %7050 = vmatpush1.bf16.msra.mxu1 %v22704_v26  ;;  %v22780_v26 = vld [vmem:[%s25052_s23 + $0x7e8] ss:$24 sps:$4 sm:$0xff]  }
 0x57e   : > { %6895 = vmatpush1.bf16.msra.mxu0 %v22573_v29  ;;  %6926 = vmatprep.mubr.bf16.mxu0 %v25884_v36  ;;  %v22612_v29 = vld [vmem:[%s25052_s23 + $0x570] ss:$24 sps:$4 sm:$0xff]  }
 0x57f   : > { %6896 = vmatprep.subr.bf16.mxu0 %v22578_v5  ;;  %7051 = vmatprep.subr.bf16.mxu1 %v22708_v34  ;;  %v22734_v5 = vld [vmem:[%s25052_s23 + $0x66c] ss:$24 sps:$4 sm:$0xff]  }
 0x580   : > { %v22665_v34 = vld [vmem:[%s25052_s23 + $0x754] ss:$24 sps:$4 sm:$0xff]  }
 0x581   : > { %7052 = vmatpush1.bf16.msra.mxu1 %v22710_v37  ;;  %v22786_v37 = vld [vmem:[%s25052_s23 + $0x818] ss:$24 sps:$4 sm:$0xff]  }
 0x582   : > { %6897 = vmatpush1.bf16.msra.mxu0 %v22576_v35  ;;  %7053 = vmatprep.subr.bf16.mxu1 %v22714_v10  ;;  %v22615_v35 = vld [vmem:[%s25052_s23 + $0x5a0] ss:$24 sps:$4 sm:$0xff]   ;;  %v22671_v10 = vld [vmem:[%s25052_s23 + $0x784] ss:$24 sps:$4 sm:$0xff]  }
 0x583   : > { %6898 = vmatprep.subr.bf16.mxu0 %v22581_v7  ;;  %v22620_v7 = vld [vmem:[%s25052_s23 + $0x5d4] ss:$24 sps:$4 sm:$0xff]  }
 0x585   : > { %7054 = vmatpush1.bf16.msra.mxu1 %v22716_v51  ;;  %v22800_v51 = vld [vmem:[%s25052_s23 + $0x87c] ss:$24 sps:$4 sm:$0xff]  }
 0x586   : > { %6899 = vmatpush1.bf16.msra.mxu0 %v22579_v9  ;;  %7066 = vmatprep.subr.bf16.mxu1 %v22722_v53  ;;  %v22618_v9 = vld [vmem:[%s25052_s23 + $0x5d0] ss:$24 sps:$4 sm:$0xff]  }
 0x587   : > { %6900 = vmatprep.subr.bf16.mxu0 %v22584_v38  ;;  %v22623_v38 = vld [vmem:[%s25052_s23 + $0x604] ss:$24 sps:$4 sm:$0xff]   ;;  %v22675_v53 = vld [vmem:[%s25052_s23 + $0x7b0] ss:$24 sps:$4 sm:$0xff]  }
 0x588   : > { %7056 = vmatmul.mubr.bf16.vlgmr.msra.gmra.mrb[0].mxu1 %v25958_v60 }
 0x589   : > { %7067 = vmatpush1.bf16.msra.mxu1 %v22720_v57  ;;  %7098 = vmatprep.mubr.bf16.mxu1 %v25962_v27  ;;  %v22804_v57 = vld [vmem:[%s25052_s23 + $0x8a8] ss:$24 sps:$4 sm:$0xff]  }
 0x58a   : > { %6901 = vmatpush1.bf16.msra.mxu0 %v22582_v39  ;;  %7068 = vmatprep.subr.bf16.mxu1 %v22728_v61  ;;  %v22621_v39 = vld [vmem:[%s25052_s23 + $0x600] ss:$24 sps:$4 sm:$0xff]   ;;  %v22689_v61 = vld [vmem:[%s25052_s23 + $0x814] ss:$24 sps:$4 sm:$0xff]  }
 0x58b   : > { %6902 = vmatprep.subr.bf16.mxu0 %v22587_v30  ;;  %v22752_v30 = vld [vmem:[%s25052_s23 + $0x6fc] ss:$24 sps:$4 sm:$0xff]  }
 0x58d   : > { %7069 = vmatpush1.bf16.msra.mxu1 %v22726_v4  ;;  %v22810_v4 = vld [vmem:[%s25052_s23 + $0x8d8] ss:$24 sps:$4 sm:$0xff]  }
 0x58e   : > { %6903 = vmatpush1.bf16.msra.mxu0 %v22585_v15  ;;  %7070 = vmatprep.subr.bf16.mxu1 %v22734_v5  ;;  %v22627_v15 = vld [vmem:[%s25052_s23 + $0x630] ss:$24 sps:$4 sm:$0xff]   ;;  %v22695_v5 = vld [vmem:[%s25052_s23 + $0x844] ss:$24 sps:$4 sm:$0xff]  }
 0x58f   : > { %6904 = vmatprep.subr.bf16.mxu0 %v22590_v17  ;;  %v22635_v17 = vld [vmem:[%s25052_s23 + $0x664] ss:$24 sps:$4 sm:$0xff]  }
 0x591   : > { %7071 = vmatpush1.bf16.msra.mxu1 %v22732_v6  ;;  %v7255_v6 = vld [vmem:[#allocation3 + $0xc0] sm:$0xff] }
 0x592   : > { %6905 = vmatpush1.bf16.msra.mxu0 %v22588_v28  ;;  %7072 = vmatprep.subr.bf16.mxu1 %v22740_v41  ;;  %v22756_v28 = vld [vmem:[%s25052_s23 + $0x728] ss:$24 sps:$4 sm:$0xff]   ;;  %v5058_v41 = vld [vmem:[#allocation2 + $0x50] sm:$0xff] }
 0x593   : > { %6906 = vmatprep.subr.bf16.mxu0 %v22593_v49  ;;  %v22764_v49 = vld [vmem:[%s25052_s23 + $0x75c] ss:$24 sps:$4 sm:$0xff]  }
 0x595   : > { %7073 = vmatpush1.bf16.msra.mxu1 %v22738_v8 }
 0x596   : > { %6907 = vmatpush1.bf16.msra.mxu0 %v22591_v18  ;;  %7074 = vmatprep.subr.bf16.mxu1 %v22746_v11  ;;  %v22639_v18 = vld [vmem:[%s25052_s23 + $0x690] ss:$24 sps:$4 sm:$0xff]   ;;  %v22701_v11 = vld [vmem:[%s25052_s23 + $0x874] ss:$24 sps:$4 sm:$0xff]  }
 0x597   : > { %6908 = vmatprep.subr.bf16.mxu0 %v22596_v20  ;;  %v22770_v20 = vld [vmem:[%s25052_s23 + $0x78c] ss:$24 sps:$4 sm:$0xff]  }
 0x599   : > { %7075 = vmatpush1.bf16.msra.mxu1 %v22744_v12  ;;  %v22699_v12 = vld [vmem:[%s25052_s23 + $0x870] ss:$24 sps:$4 sm:$0xff]  }
 0x59a   : > { %6909 = vmatpush1.bf16.msra.mxu0 %v22594_v62  ;;  %7076 = vmatprep.subr.bf16.mxu1 %v22752_v30  ;;  %v22645_v62 = vld [vmem:[%s25052_s23 + $0x6c0] ss:$24 sps:$4 sm:$0xff]  }
 0x59b   : > { %6910 = vmatprep.subr.bf16.mxu0 %v22599_v22  ;;  %v22776_v22 = vld [vmem:[%s25052_s23 + $0x7bc] ss:$24 sps:$4 sm:$0xff]   ;;  %v22705_v30 = vld [vmem:[%s25052_s23 + $0x8a0] ss:$24 sps:$4 sm:$0xff]  }
 0x59d   : > { %7077 = vmatpush1.bf16.msra.mxu1 %v22750_v14  ;;  %v22713_v14 = vld [vmem:[%s25052_s23 + $0x8d4] ss:$24 sps:$4 sm:$0xff]  }
 0x59e   : > { %6911 = vmatpush1.bf16.msra.mxu0 %v22597_v33  ;;  %7078 = vmatprep.subr.bf16.mxu1 %v22758_v16  ;;  %v22651_v33 = vld [vmem:[%s25052_s23 + $0x6f0] ss:$24 sps:$4 sm:$0xff]   ;;  %v22719_v16 = vld [vmem:[%s25052_s23 + $0xc] ss:$24 sps:$4 sm:$0xff]  }
 0x59f   : > { %6912 = vmatprep.subr.bf16.mxu0 %v22602_v25  ;;  %v22782_v25 = vld [vmem:[%s25052_s23 + $0x7ec] ss:$24 sps:$4 sm:$0xff]  }
 0x5a1   : > { %7079 = vmatpush1.bf16.msra.mxu1 %v22756_v28  ;;  %v22725_v28 = vld [vmem:[%s25052_s23 + $0x3c] ss:$24 sps:$4 sm:$0xff]  }
 0x5a2   : > { %6913 = vmatpush1.bf16.msra.mxu0 %v22600_v32  ;;  %7080 = vmatprep.subr.bf16.mxu1 %v22764_v49  ;;  %v22657_v32 = vld [vmem:[%s25052_s23 + $0x720] ss:$24 sps:$4 sm:$0xff]   ;;  %v22731_v49 = vld [vmem:[%s25052_s23 + $0x6c] ss:$24 sps:$4 sm:$0xff]  }
 0x5a3   : > { %6914 = vmatprep.subr.bf16.mxu0 %v22605_v46  ;;  %v22788_v46 = vld [vmem:[%s25052_s23 + $0x81c] ss:$24 sps:$4 sm:$0xff]  }
 0x5a5   : > { %7081 = vmatpush1.bf16.msra.mxu1 %v22762_v48  ;;  %v22729_v48 = vld [vmem:[%s25052_s23 + $0x68] ss:$24 sps:$4 sm:$0xff]  }
 0x5a6   : > { %6915 = vmatpush1.bf16.msra.mxu0 %v22603_v42  ;;  %7082 = vmatprep.subr.bf16.mxu1 %v22770_v20  ;;  %v22663_v42 = vld [vmem:[%s25052_s23 + $0x750] ss:$24 sps:$4 sm:$0xff]   ;;  %v22743_v20 = vld [vmem:[%s25052_s23 + $0xcc] ss:$24 sps:$4 sm:$0xff]  }
 0x5a7   : > { %6916 = vmatprep.subr.bf16.mxu0 %v22608_v43  ;;  %v22794_v43 = vld [vmem:[%s25052_s23 + $0x84c] ss:$24 sps:$4 sm:$0xff]  }
 0x5a9   : > { %7083 = vmatpush1.bf16.msra.mxu1 %v22768_v21 }
 0x5aa   : > { %6917 = vmatpush1.bf16.msra.mxu0 %v22606_v45  ;;  %7084 = vmatprep.subr.bf16.mxu1 %v22776_v22  ;;  %v22792_v45 = vld [vmem:[%s25052_s23 + $0x848] ss:$24 sps:$4 sm:$0xff]   ;;  %v22747_v22 = vld [vmem:[%s25052_s23 + $0xf8] ss:$24 sps:$4 sm:$0xff]  }
 0x5ab   : > { %6918 = vmatprep.subr.bf16.mxu0 %v22611_v47  ;;  %v22669_v47 = vld [vmem:[%s25052_s23 + $0x780] ss:$24 sps:$4 sm:$0xff]  }
 0x5ad   : > { %7085 = vmatpush1.bf16.msra.mxu1 %v22774_v23  ;;  %v22755_v23 = vld [vmem:[%s25052_s23 + $0x12c] ss:$24 sps:$4 sm:$0xff]  }
 0x5ae   : > { %6919 = vmatpush1.bf16.msra.mxu0 %v22609_v59  ;;  %7086 = vmatprep.subr.bf16.mxu1 %v22782_v25  ;;  %v22681_v59 = vld [vmem:[%s25052_s23 + $0x7e0] ss:$24 sps:$4 sm:$0xff]  }
 0x5af   : > { %6920 = vmatprep.subr.bf16.mxu0 %v22614_v63  ;;  %v22812_v63 = vld [vmem:[%s25052_s23 + $0x8dc] ss:$24 sps:$4 sm:$0xff]   ;;  %v22759_v25 = vld [vmem:[%s25052_s23 + $0x158] ss:$24 sps:$4 sm:$0xff]  }
 0x5b1   : > { %7087 = vmatpush1.bf16.msra.mxu1 %v22780_v26  ;;  %v22767_v26 = vld [vmem:[%s25052_s23 + $0x18c] ss:$24 sps:$4 sm:$0xff]  }
 0x5b2   : > { %6921 = vmatpush1.bf16.msra.mxu0 %v22612_v29  ;;  %7088 = vmatprep.subr.bf16.mxu1 %v22788_v46  ;;  %v22687_v29 = vld [vmem:[%s25052_s23 + $0x810] ss:$24 sps:$4 sm:$0xff]  }
 0x5b3   : > { %6922 = vmatprep.subr.bf16.mxu0 %v22617_v31  ;;  %v7254_v31 = vld [vmem:[#allocation3 + $0x30] sm:$0xff] }
 0x5b4   : > { %v22465_v21 = vpack.i.bf16 %v7255_v6, %v7254_v31  ;;  %v22771_v46 = vld [vmem:[%s25052_s23 + $0x1b8] ss:$24 sps:$4 sm:$0xff]  }
 0x5b5   : > { %7089 = vmatpush1.bf16.msra.mxu1 %v22786_v37  ;;  %v22779_v37 = vld [vmem:[%s25052_s23 + $0x1ec] ss:$24 sps:$4 sm:$0xff]  }
 0x5b6   : > { %6923 = vmatpush1.bf16.msra.mxu0 %v22615_v35  ;;  %7090 = vmatprep.subr.bf16.mxu1 %v22794_v43  ;;  %v5052_v35 = vld [vmem:[#allocation2 + $0x20] sm:$0xff]  ;;  %v22783_v43 = vld [vmem:[%s25052_s23 + $0x218] ss:$24 sps:$4 sm:$0xff]  }
 0x5b7   : > { %6924 = vmatprep.subr.bf16.mxu0 %v22620_v7  ;;  %v21159_v7 = vpack.c.bf16 %v7255_v6, %v7254_v31  ;;  %22466 = vrot.lane.b32.xlu0 %v22465_v21, %s24779_s21  ;;  %v22822_v31 = vld [vmem:[%s25052_s23 + $0xa0] ss:$24 sps:$4 sm:$0xff]   ;;  %v22827_v6 = vld [vmem:[%s25052_s23 + $0xd4] ss:$24 sps:$4 sm:$0xff]  }
 0x5b8   : > { %v22858_v21 = vld [vmem:[%s25052_s23 + $0x2e0] ss:$24 sps:$4 sm:$0xff]  }
 0x5b9   : > { %7091 = vmatpush1.bf16.msra.mxu1 %v22792_v45  ;;  %v22791_v45 = vld [vmem:[%s25052_s23 + $0x24c] ss:$24 sps:$4 sm:$0xff]  }
 0x5ba   : > { %6925 = vmatpush1.bf16.msra.mxu0 %v22618_v9  ;;  %7092 = vmatprep.subr.bf16.mxu1 %v22800_v51  ;;  %v22693_v9 = vld [vmem:[%s25052_s23 + $0x840] ss:$24 sps:$4 sm:$0xff]  }
 0x5bb   : > { %6937 = vmatprep.subr.bf16.mxu0 %v22623_v38  ;;  %v26035_v38 = vpack.c.bf16 %v5058_v41, %v5052_v35  ;;  %v22795_v51 = vld [vmem:[%s25052_s23 + $0x278] ss:$24 sps:$4 sm:$0xff]   ;;  %v22830_v41 = vld [vmem:[%s25052_s23 + $0x104] ss:$24 sps:$4 sm:$0xff]  }
 0x5bc   : > { %v22825_v35 = vld [vmem:[%s25052_s23 + $0xd0] ss:$24 sps:$4 sm:$0xff]  }
 0x5bd   : > { %6927 = vmatmul.mubr.bf16.vlgmr.msra.gmra.mrb[0].mxu0 %v25958_v60  ;;  %7093 = vmatpush1.bf16.msra.mxu1 %v22798_v52  ;;  %v22803_v52 = vld [vmem:[%s25052_s23 + $0x2ac] ss:$24 sps:$4 sm:$0xff]  }
 0x5be   : > { %6938 = vmatpush1.bf16.msra.mxu0 %v22621_v39  ;;  %6969 = vmatprep.mubr.bf16.mxu0 %v25962_v27  ;;  %v7252_v39 = vld [vmem:[#allocation3] sm:$0xff] }
 0x5bf   : > { %6939 = vmatprep.subr.bf16.mxu0 %v22629_v13  ;;  %7094 = vmatprep.subr.bf16.mxu1 %v22806_v56  ;;  %v22707_v13 = vld [vmem:[%s25052_s23 + $0x8a4] ss:$24 sps:$4 sm:$0xff]   ;;  %v22807_v56 = vld [vmem:[%s25052_s23 + $0x2d8] ss:$24 sps:$4 sm:$0xff]  }
 0x5c0   : > { %7464 = vrot.lane.b32.xlu0 %v7252_v39, %s24779_s21 }
 0x5c1   : > { %7095 = vmatpush1.bf16.msra.mxu1 %v22804_v57  ;;  %v22815_v57 = vld [vmem:[%s25052_s23 + $0x14] ss:$24 sps:$4 sm:$0xff]  }
 0x5c2   : > { %6940 = vmatpush1.bf16.msra.mxu0 %v22627_v15  ;;  %7096 = vmatprep.subr.bf16.mxu1 %v22812_v63  ;;  %v22711_v15 = vld [vmem:[%s25052_s23 + $0x8d0] ss:$24 sps:$4 sm:$0xff]   ;;  %v22816_v63 = vld [vmem:[%s25052_s23 + $0x40] ss:$24 sps:$4 sm:$0xff]  }
 0x5c3   : > { %6941 = vmatprep.subr.bf16.mxu0 %v22635_v17  ;;  %v7253_v17 = vld [vmem:[#allocation3 + $0x90] sm:$0xff] }
 0x5c4   : > { %7466 = vrot.lane.b32.xlu1 %v7253_v17, %s24779_s21 }
 0x5c5   : > { %7097 = vmatpush1.bf16.msra.mxu1 %v22810_v4  ;;  %v22821_v4 = vld [vmem:[%s25052_s23 + $0x74] ss:$24 sps:$4 sm:$0xff]  }
 0x5c6   : > { %6942 = vmatpush1.bf16.msra.mxu0 %v22633_v40  ;;  %21161 = vmatprep.subr.msk.bf16.mxu1 %vm26029_vm1, %v21159_v7  ;;  %v22717_v40 = vld [vmem:[%s25052_s23 + $0x8] ss:$24 sps:$4 sm:$0xff]  }
 0x5c7   : > { %6943 = vmatprep.subr.bf16.mxu0 %v22641_v44  ;;  %v22723_v44 = vld [vmem:[%s25052_s23 + $0x38] ss:$24 sps:$4 sm:$0xff]  }
 0x5c8   : > { %7099 = vmatmul.mubr.bf16.vlgmr.msra.gmra.mrb[0].mxu1 %v26035_v38 }
 0x5c9   : > { %20995 = vmatprep.mubr.msk.f32.mxu1 %vm7258_vm0, %v7252_v39  ;;  %v22839_v39 = vld [vmem:[%s25052_s23 + $0x194] ss:$24 sps:$4 sm:$0xff]  }
 0x5ca   : > { %6944 = vmatpush1.bf16.msra.mxu0 %v22639_v18  ;;  %v22737_v18 = vld [vmem:[%s25052_s23 + $0x9c] ss:$24 sps:$4 sm:$0xff]  }
 0x5cb   : > { %6945 = vmatprep.subr.bf16.mxu0 %v22647_v19  ;;  %v22735_v19 = vld [vmem:[%s25052_s23 + $0x98] ss:$24 sps:$4 sm:$0xff]  }
 0x5ce   : > { %6946 = vmatpush1.bf16.msra.mxu0 %v22645_v62  ;;  %21164 = vmatpush3.bf16.xpose.msk.msra.mxu1 %vm26029_vm1, %v21159_v7  ;;  %v22741_v62 = vld [vmem:[%s25052_s23 + $0xc8] ss:$24 sps:$4 sm:$0xff]   ;;  %v22833_v7 = vld [vmem:[%s25052_s23 + $0x134] ss:$24 sps:$4 sm:$0xff]  }
 0x5cf   : > { %6947 = vmatprep.subr.bf16.mxu0 %v22653_v58  ;;  %v22749_v58 = vld [vmem:[%s25052_s23 + $0xfc] ss:$24 sps:$4 sm:$0xff]  }
 0x5d2   : > { %6948 = vmatpush1.bf16.msra.mxu0 %v22651_v33  ;;  %v22753_v33 = vld [vmem:[%s25052_s23 + $0x128] ss:$24 sps:$4 sm:$0xff]  }
 0x5d3   : > { %6949 = vmatprep.subr.bf16.mxu0 %v22659_v24  ;;  %v22761_v24 = vld [vmem:[%s25052_s23 + $0x15c] ss:$24 sps:$4 sm:$0xff]  }
 0x5d5   : > { %20996 = vmatmul.mubr.msk.f32.vlgmr.msra.gmra.mrb[4].mxu1 %vm7258_vm0, %v7253_v17  ;;  %v22848_v17 = vld [vmem:[%s25052_s23 + $0x224] ss:$24 sps:$4 sm:$0xff]  }
 0x5d6   : > { %6950 = vmatpush1.bf16.msra.mxu0 %v22657_v32  ;;  %v22765_v32 = vld [vmem:[%s25052_s23 + $0x188] ss:$24 sps:$4 sm:$0xff]  }
 0x5d7   : > { %6951 = vmatprep.subr.bf16.mxu0 %v22665_v34  ;;  %v22773_v34 = vld [vmem:[%s25052_s23 + $0x1bc] ss:$24 sps:$4 sm:$0xff]  }
 0x5da   : > { %6952 = vmatpush1.bf16.msra.mxu0 %v22663_v42  ;;  %v22777_v42 = vld [vmem:[%s25052_s23 + $0x1e8] ss:$24 sps:$4 sm:$0xff]  }
 0x5db   : > { %6953 = vmatprep.subr.bf16.mxu0 %v22671_v10  ;;  %v22785_v10 = vld [vmem:[%s25052_s23 + $0x21c] ss:$24 sps:$4 sm:$0xff]  }
 0x5de   : > { %6954 = vmatpush1.bf16.msra.mxu0 %v22669_v47  ;;  %v22789_v47 = vld [vmem:[%s25052_s23 + $0x248] ss:$24 sps:$4 sm:$0xff]  }
 0x5df   : > { %6955 = vmatprep.subr.bf16.mxu0 %v22677_v50  ;;  %v22797_v50 = vld [vmem:[%s25052_s23 + $0x27c] ss:$24 sps:$4 sm:$0xff]  }
 0x5e2   : > { %6956 = vmatpush1.bf16.msra.mxu0 %v22675_v53  ;;  %v22801_v53 = vld [vmem:[%s25052_s23 + $0x2a8] ss:$24 sps:$4 sm:$0xff]  }
 0x5e3   : > { %6957 = vmatprep.subr.bf16.mxu0 %v22683_v55  ;;  %v22809_v55 = vld [vmem:[%s25052_s23 + $0x2dc] ss:$24 sps:$4 sm:$0xff]  }
 0x5e6   : > { %6958 = vmatpush1.bf16.msra.mxu0 %v22681_v59  ;;  %v22813_v59 = vld [vmem:[%s25052_s23 + $0x10] ss:$24 sps:$4 sm:$0xff]  }
 0x5e7   : > { %6959 = vmatprep.subr.bf16.mxu0 %v22689_v61  ;;  %v22818_v61 = vld [vmem:[%s25052_s23 + $0x44] ss:$24 sps:$4 sm:$0xff]  }
 0x5ea   : > { %6960 = vmatpush1.bf16.msra.mxu0 %v22687_v29  ;;  %v22819_v29 = vld [vmem:[%s25052_s23 + $0x70] ss:$24 sps:$4 sm:$0xff]  }
 0x5eb   : > { %6961 = vmatprep.subr.bf16.mxu0 %v22695_v5  ;;  %v22824_v5 = vld [vmem:[%s25052_s23 + $0xa4] ss:$24 sps:$4 sm:$0xff]  }
 0x5ee   : > { %6962 = vmatpush1.bf16.msra.mxu0 %v22693_v9  ;;  %v22831_v9 = vld [vmem:[%s25052_s23 + $0x130] ss:$24 sps:$4 sm:$0xff]  }
 0x5ef   : > { %6963 = vmatprep.subr.bf16.mxu0 %v22701_v11  ;;  %v22836_v11 = vld [vmem:[%s25052_s23 + $0x164] ss:$24 sps:$4 sm:$0xff]  }
 0x5f2   : > { %6964 = vmatpush1.bf16.msra.mxu0 %v22699_v12  ;;  %v22834_v12 = vld [vmem:[%s25052_s23 + $0x160] ss:$24 sps:$4 sm:$0xff]  }
 0x5f3   : > { %6965 = vmatprep.subr.bf16.mxu0 %v22707_v13  ;;  %v22837_v13 = vld [vmem:[%s25052_s23 + $0x190] ss:$24 sps:$4 sm:$0xff]  }
 0x5f6   : > { %6966 = vmatpush1.bf16.msra.mxu0 %v22705_v30  ;;  %v22842_v30 = vld [vmem:[%s25052_s23 + $0x1c4] ss:$24 sps:$4 sm:$0xff]  }
 0x5f7   : > { %6967 = vmatprep.subr.bf16.mxu0 %v22713_v14  ;;  %v22840_v14 = vld [vmem:[%s25052_s23 + $0x1c0] ss:$24 sps:$4 sm:$0xff]  }
 0x5fa   : > { %6968 = vmatpush1.bf16.msra.mxu0 %v22711_v15  ;;  %v22845_v15 = vld [vmem:[%s25052_s23 + $0x1f4] ss:$24 sps:$4 sm:$0xff]  }
 0x5fb   : > { %6980 = vmatprep.subr.bf16.mxu0 %v22719_v16  ;;  %v22843_v16 = vld [vmem:[%s25052_s23 + $0x1f0] ss:$24 sps:$4 sm:$0xff]  }
 0x5fd   : > { %6970 = vmatmul.mubr.bf16.vlgmr.msra.gmra.mrb[0].mxu0 %v26035_v38 }
 0x5fe   : > { %6981 = vmatpush1.bf16.msra.mxu0 %v22717_v40  ;;  %7012 = vmatprep.mubr.bf16.mxu0 %v25869_v54  ;;  %v22846_v40 = vld [vmem:[%s25052_s23 + $0x220] ss:$24 sps:$4 sm:$0xff]  }
 0x5ff   : > { %6982 = vmatprep.subr.bf16.mxu0 %v22725_v28  ;;  %v22851_v28 = vld [vmem:[%s25052_s23 + $0x254] ss:$24 sps:$4 sm:$0xff]  }
 0x602   : > { %6983 = vmatpush1.bf16.msra.mxu0 %v22723_v44  ;;  %v22849_v44 = vld [vmem:[%s25052_s23 + $0x250] ss:$24 sps:$4 sm:$0xff]  }
 0x603   : > { %6984 = vmatprep.subr.bf16.mxu0 %v22731_v49  ;;  %v22854_v49 = vld [vmem:[%s25052_s23 + $0x284] ss:$24 sps:$4 sm:$0xff]  }
 0x606   : > { %6985 = vmatpush1.bf16.msra.mxu0 %v22729_v48  ;;  %v22852_v48 = vld [vmem:[%s25052_s23 + $0x280] ss:$24 sps:$4 sm:$0xff]  }
 0x607   : > { %6986 = vmatprep.subr.bf16.mxu0 %v22737_v18  ;;  %v22857_v18 = vld [vmem:[%s25052_s23 + $0x2b4] ss:$24 sps:$4 sm:$0xff]  }
 0x60a   : > { %6987 = vmatpush1.bf16.msra.mxu0 %v22735_v19  ;;  %v22855_v19 = vld [vmem:[%s25052_s23 + $0x2b0] ss:$24 sps:$4 sm:$0xff]  }
 0x60b   : > { %6988 = vmatprep.subr.bf16.mxu0 %v22743_v20  ;;  %v22860_v20 = vld [vmem:[%s25052_s23 + $0x2e4] ss:$24 sps:$4 sm:$0xff]  }
 0x60e   : > { %6989 = vmatpush1.bf16.msra.mxu0 %v22741_v62  ;;  %v22863_v62 = vld [vmem:[%s25052_s23 + $0x314] ss:$24 sps:$4 sm:$0xff]  }
 0x60f   : > { %6990 = vmatprep.subr.bf16.mxu0 %v22749_v58  ;;  %v22861_v58 = vld [vmem:[%s25052_s23 + $0x310] ss:$24 sps:$4 sm:$0xff]  }
 0x612   : > { %6991 = vmatpush1.bf16.msra.mxu0 %v22747_v22  ;;  %v22866_v22 = vld [vmem:[%s25052_s23 + $0x344] ss:$24 sps:$4 sm:$0xff]  }
 0x613   : > { %6992 = vmatprep.subr.bf16.mxu0 %v22755_v23  ;;  %v22864_v23 = vld [vmem:[%s25052_s23 + $0x340] ss:$24 sps:$4 sm:$0xff]  }
 0x616   : > { %6993 = vmatpush1.bf16.msra.mxu0 %v22753_v33  ;;  %v22869_v33 = vld [vmem:[%s25052_s23 + $0x374] ss:$24 sps:$4 sm:$0xff]  }
 0x617   : > { %6994 = vmatprep.subr.bf16.mxu0 %v22761_v24  ;;  %v22867_v24 = vld [vmem:[%s25052_s23 + $0x370] ss:$24 sps:$4 sm:$0xff]  }
 0x61a   : > { %6995 = vmatpush1.bf16.msra.mxu0 %v22759_v25  ;;  %v22872_v25 = vld [vmem:[%s25052_s23 + $0x3a4] ss:$24 sps:$4 sm:$0xff]  }
 0x61b   : > { %6996 = vmatprep.subr.bf16.mxu0 %v22767_v26  ;;  %v22870_v26 = vld [vmem:[%s25052_s23 + $0x3a0] ss:$24 sps:$4 sm:$0xff]  }
 0x61e   : > { %6997 = vmatpush1.bf16.msra.mxu0 %v22765_v32  ;;  %v22873_v32 = vld [vmem:[%s25052_s23 + $0x3d0] ss:$24 sps:$4 sm:$0xff]  }
 0x61f   : > { %6998 = vmatprep.subr.bf16.mxu0 %v22773_v34  ;;  %v22876_v34 = vld [vmem:[%s25052_s23 + $0x400] ss:$24 sps:$4 sm:$0xff]  }
 0x622   : > { %6999 = vmatpush1.bf16.msra.mxu0 %v22771_v46  ;;  %v22881_v46 = vld [vmem:[%s25052_s23 + $0x434] ss:$24 sps:$4 sm:$0xff]  }
 0x623   : > { %7000 = vmatprep.subr.bf16.mxu0 %v22779_v37  ;;  %v22879_v37 = vld [vmem:[%s25052_s23 + $0x430] ss:$24 sps:$4 sm:$0xff]  }
 0x626   : > { %7001 = vmatpush1.bf16.msra.mxu0 %v22777_v42  ;;  %v22884_v42 = vld [vmem:[%s25052_s23 + $0x464] ss:$24 sps:$4 sm:$0xff]  }
 0x627   : > { %7002 = vmatprep.subr.bf16.mxu0 %v22785_v10  ;;  %v22882_v10 = vld [vmem:[%s25052_s23 + $0x460] ss:$24 sps:$4 sm:$0xff]  }
 0x62a   : > { %7003 = vmatpush1.bf16.msra.mxu0 %v22783_v43  ;;  %v22887_v43 = vld [vmem:[%s25052_s23 + $0x494] ss:$24 sps:$4 sm:$0xff]  }
 0x62b   : > { %7004 = vmatprep.subr.bf16.mxu0 %v22791_v45  ;;  %v22885_v45 = vld [vmem:[%s25052_s23 + $0x490] ss:$24 sps:$4 sm:$0xff]  }
 0x62e   : > { %7005 = vmatpush1.bf16.msra.mxu0 %v22789_v47  ;;  %v22890_v47 = vld [vmem:[%s25052_s23 + $0x4c4] ss:$24 sps:$4 sm:$0xff]  }
 0x62f   : > { %7006 = vmatprep.subr.bf16.mxu0 %v22797_v50  ;;  %v22888_v50 = vld [vmem:[%s25052_s23 + $0x4c0] ss:$24 sps:$4 sm:$0xff]  }
 0x632   : > { %7007 = vmatpush1.bf16.msra.mxu0 %v22795_v51  ;;  %v22893_v51 = vld [vmem:[%s25052_s23 + $0x4f4] ss:$24 sps:$4 sm:$0xff]  }
 0x633   : > { %7008 = vmatprep.subr.bf16.mxu0 %v22803_v52  ;;  %v22891_v52 = vld [vmem:[%s25052_s23 + $0x4f0] ss:$24 sps:$4 sm:$0xff]  }
 0x636   : > { %7009 = vmatpush1.bf16.msra.mxu0 %v22801_v53  ;;  %v22896_v53 = vld [vmem:[%s25052_s23 + $0x524] ss:$24 sps:$4 sm:$0xff]  }
 0x637   : > { %7010 = vmatprep.subr.bf16.mxu0 %v22809_v55  ;;  %v22894_v55 = vld [vmem:[%s25052_s23 + $0x520] ss:$24 sps:$4 sm:$0xff]  }
 0x63a   : > { %7011 = vmatpush1.bf16.msra.mxu0 %v22807_v56  ;;  %v22899_v56 = vld [vmem:[%s25052_s23 + $0x554] ss:$24 sps:$4 sm:$0xff]  }
 0x63b   : > { %7109 = vmatprep.subr.bf16.mxu0 %v22815_v57  ;;  %v22897_v57 = vld [vmem:[%s25052_s23 + $0x550] ss:$24 sps:$4 sm:$0xff]  }
 0x63d   : > { %7013 = vmatmul.mubr.bf16.vlgmr.msra.gmra.mrb[4].mxu0 %v25904_v3 }
 0x63e   : > { %7110 = vmatpush1.bf16.msra.mxu0 %v22813_v59  ;;  %7141 = vmatprep.mubr.bf16.mxu0 %v25869_v54  ;;  %v22828_v54 = vld [vmem:[%s25052_s23 + $0x100] ss:$24 sps:$4 sm:$0xff]   ;;  %v22902_v59 = vld [vmem:[%s25052_s23 + $0x584] ss:$24 sps:$4 sm:$0xff]  }
 0x63f   : > { %7111 = vmatprep.subr.bf16.mxu0 %v22818_v61  ;;  %v22900_v61 = vld [vmem:[%s25052_s23 + $0x580] ss:$24 sps:$4 sm:$0xff]  }
 0x642   : > { %7112 = vmatpush1.bf16.msra.mxu0 %v22816_v63  ;;  %v22905_v63 = vld [vmem:[%s25052_s23 + $0x5b4] ss:$24 sps:$4 sm:$0xff]  }
 0x643   : > { %7113 = vmatprep.subr.bf16.mxu0 %v22821_v4  ;;  %v22903_v4 = vld [vmem:[%s25052_s23 + $0x5b0] ss:$24 sps:$4 sm:$0xff]  }
 0x646   : > { %7114 = vmatpush1.bf16.msra.mxu0 %v22819_v29  ;;  %v22908_v29 = vld [vmem:[%s25052_s23 + $0x5e4] ss:$24 sps:$4 sm:$0xff]  }
 0x647   : > { %7115 = vmatprep.subr.bf16.mxu0 %v22824_v5  ;;  %v22906_v5 = vld [vmem:[%s25052_s23 + $0x5e0] ss:$24 sps:$4 sm:$0xff]  }
 0x64a   : > { %7116 = vmatpush1.bf16.msra.mxu0 %v22822_v31  ;;  %v22911_v31 = vld [vmem:[%s25052_s23 + $0x614] ss:$24 sps:$4 sm:$0xff]  }
 0x64b   : > { %7117 = vmatprep.subr.bf16.mxu0 %v22827_v6  ;;  %v22909_v6 = vld [vmem:[%s25052_s23 + $0x610] ss:$24 sps:$4 sm:$0xff]  }
 0x64e   : > { %7118 = vmatpush1.bf16.msra.mxu0 %v22825_v35  ;;  %v22914_v35 = vld [vmem:[%s25052_s23 + $0x644] ss:$24 sps:$4 sm:$0xff]  }
 0x64f   : > { %7119 = vmatprep.subr.bf16.mxu0 %v22830_v41  ;;  %v5357_v41 = vlaneseq }
 0x652   : > { %7120 = vmatpush1.bf16.msra.mxu0 %v22828_v54  ;;  %v22912_v54 = vld [vmem:[%s25052_s23 + $0x640] ss:$24 sps:$4 sm:$0xff]  }
 0x653   : > { %7121 = vmatprep.subr.bf16.mxu0 %v22833_v7  ;;  %v22917_v7 = vld [vmem:[%s25052_s23 + $0x674] ss:$24 sps:$4 sm:$0xff]  }
 0x656   : > { %7122 = vmatpush1.bf16.msra.mxu0 %v22831_v9 }
 0x657   : > { %7123 = vmatprep.subr.bf16.mxu0 %v22836_v11 }
 0x65a   : > { %7124 = vmatpush1.bf16.msra.mxu0 %v22834_v12  ;;  %v26165_v12 = vshrl.u32 %v5357_v41, 7  ;;  %v22953_v41 = vld [vmem:[%s25052_s23 + $0x8b4] ss:$24 sps:$4 sm:$0xff]  }
 0x65b   : > { %7125 = vmatprep.subr.bf16.mxu0 %v22839_v39 }
 0x65e   : > { %7126 = vmatpush1.bf16.msra.mxu0 %v22837_v13 }
 0x65f   : > { %7127 = vmatprep.subr.bf16.mxu0 %v22842_v30  ;;  %v22920_v30 = vld [vmem:[%s25052_s23 + $0x6a4] ss:$24 sps:$4 sm:$0xff]  }
 0x662   : > { %7128 = vmatpush1.bf16.msra.mxu0 %v22840_v14  ;;  %v22918_v14 = vld [vmem:[%s25052_s23 + $0x6a0] ss:$24 sps:$4 sm:$0xff]  }
 0x663   : > { %7129 = vmatprep.subr.bf16.mxu0 %v22845_v15  ;;  %v26178_v15 = vsub.s32 4, %v26165_v12 }
 0x666   : > { %7130 = vmatpush1.bf16.msra.mxu0 %v22843_v16  ;;  %v22923_v16 = vld [vmem:[%s25052_s23 + $0x6d4] ss:$24 sps:$4 sm:$0xff]  }
 0x667   : > { %7131 = vmatprep.subr.bf16.mxu0 %v22848_v17 }
 0x66a   : > { %7132 = vmatpush1.bf16.msra.mxu0 %v22846_v40  ;;  %v22921_v40 = vld [vmem:[%s25052_s23 + $0x6d0] ss:$24 sps:$4 sm:$0xff]  }
 0x66b   : > { %7133 = vmatprep.subr.bf16.mxu0 %v22851_v28  ;;  %v5364_v28 = vrot.slane %v25077_v0, %v26178_v15 }
 0x66e   : > { %7134 = vmatpush1.bf16.msra.mxu0 %v22849_v44  ;;  %v22926_v44 = vld [vmem:[%s25052_s23 + $0x704] ss:$24 sps:$4 sm:$0xff]  }
 0x66f   : > { %7135 = vmatprep.subr.bf16.mxu0 %v22854_v49 }
 0x672   : > { %7136 = vmatpush1.bf16.msra.mxu0 %v22852_v48  ;;  %v26190_v48 = vld [vmem:[%s27807_s1 + $0x8] sm:$0xff] }
 0x673   : > { %7137 = vmatprep.subr.bf16.mxu0 %v22857_v18 }
 0x676   : > { %7138 = vmatpush1.bf16.msra.mxu0 %v22855_v19 }
 0x677   : > { %7139 = vmatprep.subr.bf16.mxu0 %v22860_v20 }
 0x67a   : > { %7140 = vmatpush1.bf16.msra.mxu0 %v22858_v21  ;;  %v26196_v21 = vld [vmem:[%s27807_s1] sm:$0xff] }
 0x67b   : > { %7152 = vmatprep.subr.bf16.mxu0 %v22863_v62 }
 0x67d   : > { %7142 = vmatmul.mubr.bf16.vlgmr.msra.gmra.mrb[8].mxu0 %v25904_v3  ;;  %v22875_v3 = vld [vmem:[%s25052_s23 + $0x3d4] ss:$24 sps:$4 sm:$0xff]  }
 0x67e   : > { %7153 = vmatpush1.bf16.msra.mxu0 %v22861_v58  ;;  %7184 = vmatprep.mubr.bf16.mxu0 %v25884_v36  ;;  %v22878_v36 = vld [vmem:[%s25052_s23 + $0x404] ss:$24 sps:$4 sm:$0xff]   ;;  %v22924_v58 = vld [vmem:[%s25052_s23 + $0x700] ss:$24 sps:$4 sm:$0xff]  }
 0x67f   : > { %7154 = vmatprep.subr.bf16.mxu0 %v22866_v22 }
 0x682   : > { %7155 = vmatpush1.bf16.msra.mxu0 %v22864_v23  ;;  %v22929_v23 = vld [vmem:[%s25052_s23 + $0x734] ss:$24 sps:$4 sm:$0xff]  }
 0x683   : > { %7156 = vmatprep.subr.bf16.mxu0 %v22869_v33 }
 0x686   : > { %7157 = vmatpush1.bf16.msra.mxu0 %v22867_v24 }
 0x687   : > { %7158 = vmatprep.subr.bf16.mxu0 %v22872_v25 }
 0x68a   : > { %7159 = vmatpush1.bf16.msra.mxu0 %v22870_v26 }
 0x68b   : > { %7160 = vmatprep.subr.bf16.mxu0 %v22875_v3 }
 0x68e   : > { %7161 = vmatpush1.bf16.msra.mxu0 %v22873_v32 }
 0x68f   : > { %7162 = vmatprep.subr.bf16.mxu0 %v22878_v36 }
 0x692   : > { %7163 = vmatpush1.bf16.msra.mxu0 %v22876_v34 }
 0x693   : > { %7164 = vmatprep.subr.bf16.mxu0 %v22881_v46  ;;  %v22927_v46 = vld [vmem:[%s25052_s23 + $0x730] ss:$24 sps:$4 sm:$0xff]  }
 0x696   : > { %7165 = vmatpush1.bf16.msra.mxu0 %v22879_v37 }
 0x697   : > { %7166 = vmatprep.subr.bf16.mxu0 %v22884_v42 }
 0x69a   : > { %7167 = vmatpush1.bf16.msra.mxu0 %v22882_v10 }
 0x69b   : > { %7168 = vmatprep.subr.bf16.mxu0 %v22887_v43  ;;  %v26161_v9 = vpop.f32.mrb[0].mxu1  ;;  %v22932_v43 = vld [vmem:[%s25052_s23 + $0x764] ss:$24 sps:$4 sm:$0xff]  }
 0x69c   : > { %v26163_v11 = vpop.f32.mrb[1].mxu1 }
 0x69d   : > { %v26167_v39 = vpop.f32.mrb[2].mxu1 }
 0x69e   : > { %7169 = vmatpush1.bf16.msra.mxu0 %v22885_v45  ;;  %v26170_v13 = vpop.f32.mrb[3].mxu1 }
 0x69f   : > { %7170 = vmatprep.subr.bf16.mxu0 %v22890_v47 }
 0x6a2   : > { %7171 = vmatpush1.bf16.msra.mxu0 %v22888_v50 }
 0x6a3   : > { %7172 = vmatprep.subr.bf16.mxu0 %v22893_v51  ;;  %v22930_v51 = vld [vmem:[%s25052_s23 + $0x760] ss:$24 sps:$4 sm:$0xff]  }
 0x6a6   : > { %7173 = vmatpush1.bf16.msra.mxu0 %v22891_v52 }
 0x6a7   : > { %7174 = vmatprep.subr.bf16.mxu0 %v22896_v53 }
 0x6a8   : > { %v20997_v49 = vpop.f32.mrb[4].mxu1 }
 0x6a9   : > { %v7347_v19 = vmul.f32 0.125, %v20997_v49  ;;  %v7337_v20 = vpop.f32.mrb[5].mxu1  ;;  %v5372_v49 = vrot.slane %v25079_v1, %v26178_v15 }
 0x6aa   : > { %7175 = vmatpush1.bf16.msra.mxu0 %v22894_v55  ;;  %v7346_v22 = vmul.f32 0.125, %v7337_v20  ;;  %v22935_v55 = vld [vmem:[%s25052_s23 + $0x794] ss:$24 sps:$4 sm:$0xff]  }
 0x6ab   : > { %7176 = vmatprep.subr.bf16.mxu0 %v22899_v56  ;;  %v26202_v33 = vadd.f32 %v7347_v19, %v26190_v48  ;;  %v22933_v56 = vld [vmem:[%s25052_s23 + $0x790] ss:$24 sps:$4 sm:$0xff]  }
 0x6ac   : > { %v26205_v25 = vadd.f32 %v7346_v22, %v26196_v21 }
 0x6ad   : > { %v7354_v32 = vsel %vm7350_vm2, %v26202_v33, -inf }
 0x6ae   : > { %7177 = vmatpush1.bf16.msra.mxu0 %v22897_v57  ;;  %7355 = vmax.xlane.f32.xlu0 %v7354_v32  ;;  %v7351_v37 = vsel %vm7350_vm2, %v26205_v25, -inf  ;;  %v22938_v57 = vld [vmem:[%s25052_s23 + $0x7c4] ss:$24 sps:$4 sm:$0xff]  }
 0x6af   : > { %7178 = vmatprep.subr.bf16.mxu0 %v22902_v59  ;;  %7352 = vmax.xlane.f32.xlu1 %v7351_v37  ;;  %v22936_v59 = vld [vmem:[%s25052_s23 + $0x7c0] ss:$24 sps:$4 sm:$0xff]  }
 0x6b2   : > { %7179 = vmatpush1.bf16.msra.mxu0 %v22900_v61  ;;  %v22941_v61 = vld [vmem:[%s25052_s23 + $0x7f4] ss:$24 sps:$4 sm:$0xff]  }
 0x6b3   : > { %7180 = vmatprep.subr.bf16.mxu0 %v22905_v63  ;;  %v22939_v63 = vld [vmem:[%s25052_s23 + $0x7f0] ss:$24 sps:$4 sm:$0xff]  }
 0x6b6   : > { %7181 = vmatpush1.bf16.msra.mxu0 %v22903_v4  ;;  %v22944_v4 = vld [vmem:[%s25052_s23 + $0x824] ss:$24 sps:$4 sm:$0xff]  }
 0x6b7   : > { %7182 = vmatprep.subr.bf16.mxu0 %v22908_v29  ;;  %v22942_v29 = vld [vmem:[%s25052_s23 + $0x820] ss:$24 sps:$4 sm:$0xff]  }
 0x6ba   : > { %7183 = vmatpush1.bf16.msra.mxu0 %v22906_v5  ;;  %v22947_v5 = vld [vmem:[%s25052_s23 + $0x854] ss:$24 sps:$4 sm:$0xff]  }
 0x6bb   : > { %7195 = vmatprep.subr.bf16.mxu0 %v22911_v31  ;;  %v22945_v31 = vld [vmem:[%s25052_s23 + $0x850] ss:$24 sps:$4 sm:$0xff]  }
 0x6bd   : > { %7185 = vmatmul.mubr.bf16.vlgmr.msra.gmra.mrb[8].mxu0 %v25958_v60  ;;  %v22915_v60 = vld [vmem:[%s25052_s23 + $0x670] ss:$24 sps:$4 sm:$0xff]  }
 0x6be   : > { %7196 = vmatpush1.bf16.msra.mxu0 %v22909_v6  ;;  %7227 = vmatprep.mubr.bf16.mxu0 %v25962_v27  ;;  %v26174_v27 = vsub.s32 0, %v26165_v12  ;;  %v22950_v6 = vld [vmem:[%s25052_s23 + $0x884] ss:$24 sps:$4 sm:$0xff]  }
 0x6bf   : > { %7197 = vmatprep.subr.bf16.mxu0 %v22914_v35  ;;  %v22948_v35 = vld [vmem:[%s25052_s23 + $0x880] ss:$24 sps:$4 sm:$0xff]  }
 0x6c0   : > { %v5360_v17 = vrot.slane %v25077_v0, %v26174_v27  ;;  %v5394_v62 = vrot.slane %v5364_v28, %v26174_v27  ;;  %v7467_v28 = vpop.permute.xlu1 %7466  ;;  %v5402_v19 = vrot.slane %v5372_v49, %v26174_v27 }
 0x6c2   : > { %7198 = vmatpush1.bf16.msra.mxu0 %v22912_v54  ;;  %v5390_v18 = vrot.slane %v5360_v17, %v26174_v27  ;;  %v22467_v54 = vpop.permute.xlu0 %22466 }
 0x6c3   : > { %7199 = vmatprep.subr.bf16.mxu0 %v22917_v7  ;;  %v22951_v7 = vld [vmem:[%s25052_s23 + $0x8b0] ss:$24 sps:$4 sm:$0xff]  }
 0x6c6   : > { %7200 = vmatpush1.bf16.msra.mxu0 %v22915_v60  ;;  %v22956_v60 = vld [vmem:[%s25052_s23 + $0x8e4] ss:$24 sps:$4 sm:$0xff]  }
 0x6c7   : > { %7201 = vmatprep.subr.bf16.mxu0 %v22920_v30  ;;  %v22469_v30 = vunpack.i.h.bf16 %v22467_v54 }
 0x6ca   : > { %7202 = vmatpush1.bf16.msra.mxu0 %v22918_v14  ;;  %v22468_v14 = vunpack.i.l.bf16 %v22467_v54 }
 0x6cb   : > { %7203 = vmatprep.subr.bf16.mxu0 %v22923_v16  ;;  %v22954_v16 = vld [vmem:[%s25052_s23 + $0x8e0] ss:$24 sps:$4 sm:$0xff]  }
 0x6cc   : > { %v21169_v17 = vpack.c.bf16 %v22469_v30, %v22468_v14 }
 0x6ce   : > { %7204 = vmatpush1.bf16.msra.mxu0 %v22921_v40  ;;  %v7465_v40 = vpop.permute.xlu0 %7464 }
 0x6cf   : > { %7205 = vmatprep.subr.bf16.mxu0 %v22926_v44  ;;  %v5368_v44 = vrot.slane %v25079_v1, %v26174_v27 }
 0x6d0   : > { %v6971_v24 = vpop.f32.mrb[0].mxu0 }
 0x6d1   : > { %v26207_v26 = vadd.f32 %v6971_v24, %v5390_v18  ;;  %v6973_v3 = vpop.f32.mrb[1].mxu0 }
 0x6d2   : > { %v26211_v36 = vadd.f32 %v6973_v3, %v5394_v62  ;;  %v6975_v34 = vpop.f32.mrb[2].mxu0  ;;  %7206 = vmatpush1.bf16.msra.mxu0 %v22924_v58 }
 0x6d3   : > { %v26216_v42 = vadd.f32 %v6975_v34, %v5390_v18  ;;  %v6977_v10 = vpop.f32.mrb[3].mxu0  ;;  %7207 = vmatprep.subr.bf16.mxu0 %v22929_v23  ;;  %v5398_v18 = vrot.slane %v5368_v44, %v26174_v27 }
 0x6d4   : > { %v26219_v45 = vadd.f32 %v6977_v10, %v5394_v62 }
 0x6d5   : > { %v21165_v47 = vpack.c.bf16 %v26216_v42, %v26207_v26  ;;  %v22470_v50 = vpack.i.bf16 %v26216_v42, %v26207_v26 }
 0x6d6   : > { %7208 = vmatpush1.bf16.msra.mxu0 %v22927_v46  ;;  %v26228_v52 = vpack.c.bf16 %v26219_v45, %v26211_v36  ;;  %v22480_v53 = vpack.i.bf16 %v26219_v45, %v26211_v36 }
 0x6d7   : > { %7209 = vmatprep.subr.bf16.mxu0 %v22932_v43  ;;  %21166 = vmatprep.subr.bf16.mxu1 %v21165_v47 }
 0x6d8   : > { %21168 = vmatpush3.bf16.msra.mxu1 %v21165_v47 }
 0x6da   : > { %7210 = vmatpush1.bf16.msra.mxu0 %v22930_v51 }
 0x6db   : > { %7211 = vmatprep.subr.bf16.mxu0 %v22935_v55 }
 0x6de   : > { %7212 = vmatpush1.bf16.msra.mxu0 %v22933_v56 }
 0x6df   : > { %7213 = vmatprep.subr.bf16.mxu0 %v22938_v57 }
 0x6e2   : > { %7214 = vmatpush1.bf16.msra.mxu0 %v22936_v59 }
 0x6e3   : > { %7215 = vmatprep.subr.bf16.mxu0 %v22941_v61 }
 0x6e6   : > { %7216 = vmatpush1.bf16.msra.mxu0 %v22939_v63 }
 0x6e7   : > { %7217 = vmatprep.subr.bf16.mxu0 %v22944_v4 }
 0x6ea   : > { %7218 = vmatpush1.bf16.msra.mxu0 %v22942_v29 }
 0x6eb   : > { %7219 = vmatprep.subr.bf16.mxu0 %v22947_v5 }
 0x6ee   : > { %7220 = vmatpush1.bf16.msra.mxu0 %v22945_v31 }
 0x6ef   : > { %7221 = vmatprep.subr.bf16.mxu0 %v22950_v6 }
 0x6f2   : > { %7222 = vmatpush1.bf16.msra.mxu0 %v22948_v35 }
 0x6f3   : > { %7223 = vmatprep.subr.bf16.mxu0 %v22953_v41 }
 0x6f6   : > { %7224 = vmatpush1.bf16.msra.mxu0 %v22951_v7 }
 0x6f7   : > { %7225 = vmatprep.subr.bf16.mxu0 %v22956_v60 }
 0x6fa   : > { %7226 = vmatpush1.bf16.msra.mxu0 %v22954_v16 }
 0x6fb   : > { %21171 = vmatprep.subr.msk.bf16.mxu0 %vm26029_vm1, %v21169_v17 }
 0x6fd   : > { %7228 = vmatmul.mubr.bf16.vlgmr.msra.gmra.mrb[8].mxu0 %v26035_v38 }
 0x6fe   : > { %21009 = vmatprep.mubr.msk.f32.mxu0 %vm7258_vm0, %v7465_v40 }
 0x703   : > { %21174 = vmatpush3.bf16.xpose.msk.msra.mxu0 %vm26029_vm1, %v21169_v17 }
 0x70a   : > { %21010 = vmatmul.mubr.msk.f32.vlgmr.msra.gmra.mrb[12].mxu0 %vm7258_vm0, %v7467_v28 }
 0x710   : > { %v7014_v20 = vpop.f32.mrb[4].mxu0 }
 0x711   : > { %v7015_v38 = vadd.f32 %v7014_v20, %v5398_v18  ;;  %v7016_v62 = vpop.f32.mrb[5].mxu0 }
 0x712   : > { %v7017_v58 = vadd.f32 %v7016_v62, %v5402_v19  ;;  %v7018_v22 = vpop.f32.mrb[6].mxu0 }
 0x713   : > { %v7019_v23 = vadd.f32 %v7018_v22, %v5398_v18  ;;  %v26262_v24 = vadd.f32 %v26161_v9, %v7015_v38  ;;  %v7020_v3 = vpop.f32.mrb[7].mxu0 }
 0x714   : > { %v7021_v32 = vadd.f32 %v7020_v3, %v5402_v19  ;;  %v26265_v34 = vadd.f32 %v26163_v11, %v7017_v58 }
 0x715   : > { %v26268_v46 = vadd.f32 %v26167_v39, %v7019_v23  ;;  %v5376_v39 = vrot.slane %v25081_v2, %v26174_v27 }
 0x716   : > { %v26271_v37 = vadd.f32 %v26170_v13, %v7021_v32  ;;  %v5380_v13 = vrot.slane %v25081_v2, %v26178_v15 }
 0x717   : > { %v26275_v10 = vpack.c.bf16 %v26268_v46, %v26262_v24  ;;  %v22490_v43 = vpack.i.bf16 %v26268_v46, %v26262_v24  ;;  %v5406_v51 = vrot.slane %v5376_v39, %v26174_v27 }
 0x718   : > { %v26281_v9 = vpack.c.bf16 %v26271_v37, %v26265_v34  ;;  %v22500_v11 = vpack.i.bf16 %v26271_v37, %v26265_v34  ;;  %v5410_v56 = vrot.slane %v5380_v13, %v26174_v27 }
 0x73b   : > { %v7356_v47 = vpop.xlane.xlu0 %7355 }
 0x73c   : > { %v7353_v55 = vpop.xlane.xlu1 %7352  ;;  %v7358_v57 = vsub.f32 %v26202_v33, %v7356_v47 }
 0x73d   : > { %v7357_v61 = vsub.f32 %v26205_v25, %v7353_v55 }
 0x73e   : > { %v7361_v15 = vmul.f32 1.442695, %v7358_v57 }
 0x73f   : > { %v7359_v41 = vmul.f32 1.442695, %v7357_v61  ;;  %v7684_v61 = vld [vmem:[#allocation3 + $0x98] sm:$0xff] }
 0x740   : > { %23389 = vpow2.f32 %v7361_v15  ;;  %v7686_v15 = vld [vmem:[#allocation3 + $0xc8] sm:$0xff] }
 0x741   : > { %23391 = vpow2.f32 %v7359_v41 }
 0x74a   : > { %v23390_v16 = vpop.eup %23389 }
 0x74b   : > { %v23392_v40 = vpop.eup %23391  ;;  %v7366_v49 = vsel %vm7350_vm2, %v23390_v16, 0.0 }
 0x74c   : > { %v7363_v18 = vsel %vm7350_vm2, %v23392_v40, 0.0 }
 0x7d0   : > { %v7229_v59 = vpop.f32.mrb[8].mxu0 }
 0x7d1   : > { %v26293_v63 = vadd.f32 %v7229_v59, %v5406_v51  ;;  %v7231_v4 = vpop.f32.mrb[9].mxu0  ;;  %v7683_v59 = vld [vmem:[#allocation3 + $0x8] sm:$0xff] }
 0x7d2   : > { %v21364_v29 = vadd.f32 %v7231_v4, %v5410_v56  ;;  %v7233_v5 = vpop.f32.mrb[10].mxu0 }
 0x7d3   : > { %v26295_v31 = vadd.f32 %v7233_v5, %v5406_v51  ;;  %v7235_v6 = vpop.f32.mrb[11].mxu0 }
 0x7d4   : > { %7243 = vst [vmem:[#allocation3 + $0x88] sm:$0xff] %v21364_v29  ;;  %v21366_v35 = vadd.f32 %v7235_v6, %v5410_v56  ;;  %v7685_v6 = vld [vmem:[#allocation3 + $0x38] sm:$0xff] }
 0x7d5   : > { %v26299_v27 = vpack.c.bf16 %v26295_v31, %v26293_v63  ;;  %v22510_v33 = vpack.i.bf16 %v26295_v31, %v26293_v63 }
 0x7d6   : > { %7249 = vst [vmem:[#allocation3 + $0x118] sm:$0xff] %v21366_v35  ;;  %v26303_v25 = vpack.c.bf16 %v21366_v35, %v21364_v29 }
 0x7dd   : > { %v21011_v54 = vpop.f32.mrb[12].mxu0 }
 0x7de   : > { %v7558_v7 = vmul.f32 0.125, %v21011_v54  ;;  %v7548_v60 = vpop.f32.mrb[13].mxu0 }
 0x7df   : > { %v7557_v30 = vmul.f32 0.125, %v7548_v60 }
 0x7e0   : > { %v7560_v14 = vadd.f32 %v7558_v7, %v26190_v48  ;;  %v21179_v7 = vpack.c.bf16 %v7686_v15, %v7685_v6 }
 0x7e1   : > { %v7559_v17 = vadd.f32 %v7557_v30, %v26196_v21 }
 0x7e2   : > { %v7564_v28 = vsel %vm7350_vm2, %v7560_v14, -inf }
 0x7e3   : > { %7565 = vmax.xlane.f32.xlu1 %v7564_v28  ;;  %v7561_v44 = vsel %vm7350_vm2, %v7559_v17, -inf }
 0x7e4   : > { %7562 = vmax.xlane.f32.xlu0 %v7561_v44 }
 0x7e7   : > { %7367 = vadd.xlane.f32.xlu1 %v7366_v49 }
 0x7e8   : > { %7364 = vadd.xlane.f32.xlu0 %v7363_v18 }
 0x870   : > { %v7566_v19 = vpop.xlane.xlu1 %7565 }
 0x871   : > { %v7568_v20 = vsub.f32 %v7560_v14, %v7566_v19  ;;  %v7563_v38 = vpop.xlane.xlu0 %7562 }
 0x872   : > { %v7567_v62 = vsub.f32 %v7559_v17, %v7563_v38 }
 0x873   : > { %v7571_v58 = vmul.f32 1.442695, %v7568_v20 }
 0x874   : > { %v7569_v22 = vmul.f32 1.442695, %v7567_v62  ;;  %v7368_v23 = vpop.xlane.xlu1 %7367 }
 0x875   : > { %23393 = vpow2.f32 %v7571_v58  ;;  %v7365_v3 = vpop.xlane.xlu0 %7364 }
 0x876   : > { %23395 = vpow2.f32 %v7569_v22 }
 0x877   : > { %23397 = vrcp.f32 %v7368_v23 }
 0x878   : > { %23399 = vrcp.f32 %v7365_v3 }
 0x87f   : > { %v23394_v32 = vpop.eup %23393 }
 0x880   : > { %v23396_v39 = vpop.eup %23395  ;;  %v7576_v13 = vsel %vm7350_vm2, %v23394_v32, 0.0 }
 0x881   : > { %v23398_v47 = vpop.eup %23397  ;;  %7577 = vadd.xlane.f32.xlu1 %v7576_v13  ;;  %v7573_v51 = vsel %vm7350_vm2, %v23396_v39, 0.0 }
 0x882   : > { %v23400_v55 = vpop.eup %23399  ;;  %7574 = vadd.xlane.f32.xlu0 %v7573_v51  ;;  %v7372_v57 = vmul.f32 %v23398_v47, %v23390_v16  ;;  %v22475_v51 = vpack.i.bf16 %v7686_v15, %v7685_v6 }
 0x883   : > { %v7370_v56 = vmul.f32 %v23400_v55, %v23392_v40 }
 0x885   : > { %21002 = vmatprep.mubr.msk.f32.mxu1 %vm7350_vm2, %v7370_v56 }
 0x886   : > { %21003 = vmatmul.mubr.msk.f32.vlgmr.msra.gmra.mrb[6].mxu1 %vm7350_vm2, %v7372_v57 }
 0x898   : > { %22471 = vrot.lane.b32.xlu0 %v22470_v50, %s24779_s21 }
 0x89c   : > { %7893 = vrot.lane.b32.xlu0 %v7683_v59, %s24779_s21 }
 0x8a0   : > { %7895 = vrot.lane.b32.xlu0 %v7684_v61, %s24779_s21 }
 0x90e   : > { %v7578_v4 = vpop.xlane.xlu1 %7577 }
 0x90f   : > { %23401 = vrcp.f32 %v7578_v4  ;;  %v7575_v29 = vpop.xlane.xlu0 %7574 }
 0x910   : > { %23403 = vrcp.f32 %v7575_v29 }
 0x913   : > { %v22472_v5 = vpop.permute.xlu0 %22471 }
 0x914   : > { %v22474_v35 = vunpack.i.h.bf16 %v22472_v5  ;;  %v22473_v41 = vunpack.i.l.bf16 %v22472_v5 }
 0x916   : > { %v21175_v54 = vpack.c.bf16 %v22474_v35, %v22473_v41 }
 0x918   : > { %21176 = vmatprep.subr.bf16.mxu1 %v21175_v54 }
 0x919   : > { %v23402_v26 = vpop.eup %23401  ;;  %21178 = vmatpush3.bf16.msra.mxu1 %v21175_v54  ;;  %v7894_v54 = vpop.permute.xlu0 %7893 }
 0x91a   : > { %v23404_v42 = vpop.eup %23403  ;;  %21181 = vmatprep.subr.msk.bf16.mxu1 %vm26029_vm1, %v21179_v7  ;;  %v7582_v60 = vmul.f32 %v23402_v26, %v23394_v32 }
 0x91b   : > { %v7580_v50 = vmul.f32 %v23404_v42, %v23396_v39 }
 0x91d   : > { %21016 = vmatprep.mubr.msk.f32.mxu1 %vm7350_vm2, %v7580_v50  ;;  %v7896_v6 = vpop.permute.xlu0 %7895 }
 0x91e   : > { %21017 = vmatmul.mubr.msk.f32.vlgmr.msra.gmra.mrb[8].mxu1 %vm7350_vm2, %v7582_v60 }
 0x91f   : > { %21023 = vmatprep.mubr.msk.f32.mxu1 %vm7258_vm0, %v7683_v59 }
 0x922   : > { %21184 = vmatpush3.bf16.xpose.msk.msra.mxu1 %vm26029_vm1, %v21179_v7 }
 0x923   : > { %21186 = vmatprep.subr.bf16.mxu1 %v26228_v52 }
 0x929   : > { %21024 = vmatmul.mubr.msk.f32.vlgmr.msra.gmra.mrb[10].mxu1 %vm7258_vm0, %v7684_v61 }
 0x92a   : > { %21188 = vmatpush3.bf16.msra.mxu1 %v26228_v52 }
 0x959   : > { %v21004_v30 = vpop.f32.mrb[6].mxu1 }
 0x95a   : > { %7455 = vst.msk [vmem:[#allocation4 + $0x30] sm:$0xff] %vm7258_vm0, %v21004_v30  ;;  %v7445_v14 = vpop.f32.mrb[7].mxu1 }
 0x95b   : > { %7454 = vst.msk [vmem:[#allocation4] sm:$0xff] %vm7258_vm0, %v7445_v14 }
 0x9f1   : > { %v26333_v16 = vpop.f32.mrb[8].mxu1 }
 0x9f2   : > { %v26335_v17 = vpop.f32.mrb[9].mxu1 }
 0x9fc   : > { %v21025_v40 = vpop.f32.mrb[10].mxu1 }
 0x9fd   : > { %v7767_v28 = vpop.f32.mrb[11].mxu1  ;;  %v7777_v44 = vmul.f32 0.125, %v21025_v40 }
 0x9fe   : > { %v7776_v49 = vmul.f32 0.125, %v7767_v28 }
 0x9ff   : > { %v7779_v52 = vadd.f32 %v7777_v44, %v26190_v48 }
 0xa00   : > { %v7778_v18 = vadd.f32 %v7776_v49, %v26196_v21 }
 0xa01   : > { %v7783_v20 = vsel %vm7350_vm2, %v7779_v52, -inf }
 0xa02   : > { %v7780_v19 = vsel %vm7350_vm2, %v7778_v18, -inf }
 0xa03   : > { %7781 = vmax.xlane.f32.xlu1 %v7780_v19 }
 0xa07   : > { %7784 = vmax.xlane.f32.xlu1 %v7783_v20 }
 0xa90   : > { %v7782_v38 = vpop.xlane.xlu1 %7781 }
 0xa91   : > { %v7786_v62 = vsub.f32 %v7778_v18, %v7782_v38 }
 0xa93   : > { %v7788_v23 = vmul.f32 1.442695, %v7786_v62 }
 0xa94   : > { %v7785_v58 = vpop.xlane.xlu1 %7784 }
 0xa95   : > { %v7787_v22 = vsub.f32 %v7779_v52, %v7785_v58 }
 0xa97   : > { %v7790_v3 = vmul.f32 1.442695, %v7787_v22 }
 0xa99   : > { %23405 = vpow2.f32 %v7790_v3  ;;  %v8112_v3 = vld [vmem:[#allocation3 + $0xa0] sm:$0xff] }
 0xa9a   : > { %23407 = vpow2.f32 %v7788_v23  ;;  %v8111_v23 = vld [vmem:[#allocation3 + $0x10] sm:$0xff] }
 0xaa3   : > { %v23406_v32 = vpop.eup %23405 }
 0xaa4   : > { %v7795_v39 = vsel %vm7350_vm2, %v23406_v32, 0.0  ;;  %v23408_v13 = vpop.eup %23407 }
 0xaa5   : > { %7796 = vadd.xlane.f32.xlu1 %v7795_v39  ;;  %v7792_v47 = vsel %vm7350_vm2, %v23408_v13, 0.0 }
 0xaa9   : > { %7793 = vadd.xlane.f32.xlu1 %v7792_v47  ;;  %v8113_v47 = vld [vmem:[#allocation3 + $0x40] sm:$0xff] }
 0xaba   : > { %22476 = vrot.lane.b32.xlu1 %v22475_v51, %s24779_s21  ;;  %v8114_v51 = vld [vmem:[#allocation3 + $0xd0] sm:$0xff] }
 0xb32   : > { %v7797_v55 = vpop.xlane.xlu1 %7796 }
 0xb33   : > { %23409 = vrcp.f32 %v7797_v55 }
 0xb36   : > { %v7794_v56 = vpop.xlane.xlu1 %7793 }
 0xb37   : > { %23411 = vrcp.f32 %v7794_v56 }
 0xb3a   : > { %v22477_v57 = vpop.permute.xlu1 %22476 }
 0xb3b   : > { %v22479_v59 = vunpack.i.h.bf16 %v22477_v57  ;;  %v22478_v61 = vunpack.i.l.bf16 %v22477_v57 }
 0xb3d   : > { %v21189_v4 = vpack.c.bf16 %v22479_v59, %v22478_v61  ;;  %v23410_v29 = vpop.eup %23409  ;;  %v21199_v59 = vpack.c.bf16 %v8114_v51, %v8113_v47 }
 0xb3e   : > { %v7801_v41 = vmul.f32 %v23410_v29, %v23406_v32 }
 0xb3f   : > { %21191 = vmatprep.subr.msk.bf16.mxu1 %vm26029_vm1, %v21189_v4 }
 0xb41   : > { %v23412_v5 = vpop.eup %23411 }
 0xb42   : > { %v7799_v35 = vmul.f32 %v23412_v5, %v23408_v13 }
 0xb44   : > { %21030 = vmatprep.mubr.msk.f32.mxu1 %vm7350_vm2, %v7799_v35 }
 0xb45   : > { %21031 = vmatmul.mubr.msk.f32.vlgmr.msra.gmra.mrb[12].mxu1 %vm7350_vm2, %v7801_v41 }
 0xb46   : > { %21194 = vmatpush3.bf16.xpose.msk.msra.mxu1 %vm26029_vm1, %v21189_v4  ;;  %21037 = vmatprep.mubr.msk.f32.mxu1 %vm7258_vm0, %v7894_v54 }
 0xb4d   : > { %21038 = vmatmul.mubr.msk.f32.vlgmr.msra.gmra.mrb[14].mxu1 %vm7258_vm0, %v7896_v6 }
 0xc18   : > { %v21032_v15 = vpop.f32.mrb[12].mxu1 }
 0xc19   : > { %7884 = vst.msk [vmem:[#allocation4 + $0x38] sm:$0xff] %vm7258_vm0, %v21032_v15  ;;  %v7874_v7 = vpop.f32.mrb[13].mxu1 }
 0xc1a   : > { %7883 = vst.msk [vmem:[#allocation4 + $0x8] sm:$0xff] %vm7258_vm0, %v7874_v7 }
 0xc20   : > { %v21039_v26 = vpop.f32.mrb[14].mxu1 }
 0xc21   : > { %v7987_v42 = vmul.f32 0.125, %v21039_v26  ;;  %v7977_v50 = vpop.f32.mrb[15].mxu1 }
 0xc22   : > { %v7986_v60 = vmul.f32 0.125, %v7977_v50 }
 0xc23   : > { %v7989_v30 = vadd.f32 %v7987_v42, %v26190_v48 }
 0xc24   : > { %v7988_v14 = vadd.f32 %v7986_v60, %v26196_v21 }
 0xc25   : > { %v7993_v40 = vsel %vm7350_vm2, %v7989_v30, -inf }
 0xc26   : > { %7994 = vmax.xlane.f32.xlu1 %v7993_v40  ;;  %v7990_v28 = vsel %vm7350_vm2, %v7988_v14, -inf }
 0xc27   : > { %7991 = vmax.xlane.f32.xlu0 %v7990_v28 }
 0xcb3   : > { %v7995_v44 = vpop.xlane.xlu1 %7994 }
 0xcb4   : > { %v7997_v49 = vsub.f32 %v7989_v30, %v7995_v44  ;;  %v7992_v18 = vpop.xlane.xlu0 %7991 }
 0xcb5   : > { %v7996_v19 = vsub.f32 %v7988_v14, %v7992_v18  ;;  %v22485_v18 = vpack.i.bf16 %v8114_v51, %v8113_v47 }
 0xcb6   : > { %v8000_v52 = vmul.f32 1.442695, %v7997_v49 }
 0xcb7   : > { %v7998_v20 = vmul.f32 1.442695, %v7996_v19 }
 0xcb8   : > { %23413 = vpow2.f32 %v8000_v52 }
 0xcb9   : > { %23415 = vpow2.f32 %v7998_v20 }
 0xcc2   : > { %v23414_v38 = vpop.eup %23413 }
 0xcc3   : > { %v8005_v62 = vsel %vm7350_vm2, %v23414_v38, 0.0  ;;  %v23416_v58 = vpop.eup %23415 }
 0xcc4   : > { %8006 = vadd.xlane.f32.xlu0 %v8005_v62  ;;  %v8002_v22 = vsel %vm7350_vm2, %v23416_v58, 0.0 }
 0xcc8   : > { %8003 = vadd.xlane.f32.xlu0 %v8002_v22 }
 0xcde   : > { %22481 = vrot.lane.b32.xlu0 %v22480_v53, %s24779_s21 }
 0xce2   : > { %8321 = vrot.lane.b32.xlu0 %v8111_v23, %s24779_s21 }
 0xce6   : > { %8323 = vrot.lane.b32.xlu0 %v8112_v3, %s24779_s21 }
 0xd51   : > { %v8007_v32 = vpop.xlane.xlu0 %8006 }
 0xd52   : > { %23417 = vrcp.f32 %v8007_v32 }
 0xd55   : > { %v8004_v39 = vpop.xlane.xlu0 %8003 }
 0xd56   : > { %23419 = vrcp.f32 %v8004_v39 }
 0xd59   : > { %v22482_v13 = vpop.permute.xlu0 %22481 }
 0xd5a   : > { %v22484_v55 = vunpack.i.h.bf16 %v22482_v13  ;;  %v22483_v56 = vunpack.i.l.bf16 %v22482_v13 }
 0xd5c   : > { %v21195_v57 = vpack.c.bf16 %v22484_v55, %v22483_v56  ;;  %v23418_v36 = vpop.eup %23417 }
 0xd5d   : > { %v8011_v61 = vmul.f32 %v23418_v36, %v23414_v38  ;;  %v8322_v39 = vpop.permute.xlu0 %8321 }
 0xd5e   : > { %21196 = vmatprep.subr.bf16.mxu1 %v21195_v57 }
 0xd5f   : > { %21198 = vmatpush3.bf16.msra.mxu1 %v21195_v57 }
 0xd60   : > { %v23420_v45 = vpop.eup %23419  ;;  %21201 = vmatprep.subr.msk.bf16.mxu1 %vm26029_vm1, %v21199_v59 }
 0xd61   : > { %v8009_v53 = vmul.f32 %v23420_v45, %v23416_v58  ;;  %v8324_v13 = vpop.permute.xlu0 %8323 }
 0xd63   : > { %21044 = vmatprep.mubr.msk.f32.mxu1 %vm7350_vm2, %v8009_v53 }
 0xd64   : > { %21045 = vmatmul.mubr.msk.f32.vlgmr.msra.gmra.mrb[16].mxu1 %vm7350_vm2, %v8011_v61 }
 0xd65   : > { %21051 = vmatprep.mubr.msk.f32.mxu1 %vm7258_vm0, %v8111_v23 }
 0xd68   : > { %21204 = vmatpush3.bf16.xpose.msk.msra.mxu1 %vm26029_vm1, %v21199_v59 }
 0xd69   : > { %21206 = vmatprep.subr.bf16.mxu1 %v26275_v10 }
 0xd6f   : > { %21052 = vmatmul.mubr.msk.f32.vlgmr.msra.gmra.mrb[18].mxu1 %vm7258_vm0, %v8112_v3 }
 0xd70   : > { %21208 = vmatpush3.bf16.msra.mxu1 %v26275_v10 }
 0xe37   : > { %v26376_v4 = vpop.f32.mrb[16].mxu1 }
 0xe38   : > { %v26378_v29 = vpop.f32.mrb[17].mxu1 }
 0xe42   : > { %v21053_v5 = vpop.f32.mrb[18].mxu1 }
 0xe43   : > { %v8195_v35 = vpop.f32.mrb[19].mxu1  ;;  %v8205_v41 = vmul.f32 0.125, %v21053_v5 }
 0xe44   : > { %v8204_v54 = vmul.f32 0.125, %v8195_v35 }
 0xe45   : > { %v8207_v7 = vadd.f32 %v8205_v41, %v26190_v48 }
 0xe46   : > { %v8206_v6 = vadd.f32 %v8204_v54, %v26196_v21 }
 0xe47   : > { %v8211_v26 = vsel %vm7350_vm2, %v8207_v7, -inf }
 0xe48   : > { %v8208_v15 = vsel %vm7350_vm2, %v8206_v6, -inf }
 0xe49   : > { %8209 = vmax.xlane.f32.xlu1 %v8208_v15 }
 0xe4d   : > { %8212 = vmax.xlane.f32.xlu1 %v8211_v26 }
 0xed6   : > { %v8210_v42 = vpop.xlane.xlu1 %8209 }
 0xed7   : > { %v8214_v10 = vsub.f32 %v8206_v6, %v8210_v42 }
 0xed9   : > { %v8216_v30 = vmul.f32 1.442695, %v8214_v10 }
 0xeda   : > { %v8213_v50 = vpop.xlane.xlu1 %8212 }
 0xedb   : > { %v8215_v60 = vsub.f32 %v8207_v7, %v8213_v50  ;;  %v8539_v50 = vld [vmem:[#allocation3 + $0x18] sm:$0xff] }
 0xedd   : > { %v8218_v14 = vmul.f32 1.442695, %v8215_v60  ;;  %v8540_v60 = vld [vmem:[#allocation3 + $0xa8] sm:$0xff] }
 0xedf   : > { %23421 = vpow2.f32 %v8218_v14 }
 0xee0   : > { %23423 = vpow2.f32 %v8216_v30 }
 0xee9   : > { %v23422_v40 = vpop.eup %23421 }
 0xeea   : > { %v8223_v28 = vsel %vm7350_vm2, %v23422_v40, 0.0  ;;  %v23424_v44 = vpop.eup %23423 }
 0xeeb   : > { %8224 = vadd.xlane.f32.xlu1 %v8223_v28  ;;  %v8220_v49 = vsel %vm7350_vm2, %v23424_v44, 0.0  ;;  %v8541_v28 = vld [vmem:[#allocation3 + $0x48] sm:$0xff] }
 0xeef   : > { %8221 = vadd.xlane.f32.xlu1 %v8220_v49 }
 0xf00   : > { %22486 = vrot.lane.b32.xlu1 %v22485_v18, %s24779_s21 }
 0xf78   : > { %v8225_v19 = vpop.xlane.xlu1 %8224 }
 0xf79   : > { %23425 = vrcp.f32 %v8225_v19 }
 0xf7c   : > { %v8222_v52 = vpop.xlane.xlu1 %8221 }
 0xf7d   : > { %23427 = vrcp.f32 %v8222_v52 }
 0xf80   : > { %v22487_v20 = vpop.permute.xlu1 %22486 }
 0xf81   : > { %v22489_v38 = vunpack.i.h.bf16 %v22487_v20  ;;  %v22488_v62 = vunpack.i.l.bf16 %v22487_v20 }
 0xf83   : > { %v21209_v58 = vpack.c.bf16 %v22489_v38, %v22488_v62  ;;  %v23426_v22 = vpop.eup %23425 }
 0xf84   : > { %v8229_v32 = vmul.f32 %v23426_v22, %v23422_v40 }
 0xf85   : > { %21211 = vmatprep.subr.msk.bf16.mxu1 %vm26029_vm1, %v21209_v58 }
 0xf87   : > { %v23428_v23 = vpop.eup %23427 }
 0xf88   : > { %v8227_v3 = vmul.f32 %v23428_v23, %v23424_v44  ;;  %v8542_v44 = vld [vmem:[#allocation3 + $0xd8] sm:$0xff] }
 0xf89   : > { %v21219_v52 = vpack.c.bf16 %v8542_v44, %v8541_v28 }
 0xf8a   : > { %21058 = vmatprep.mubr.msk.f32.mxu1 %vm7350_vm2, %v8227_v3 }
 0xf8b   : > { %21059 = vmatmul.mubr.msk.f32.vlgmr.msra.gmra.mrb[20].mxu1 %vm7350_vm2, %v8229_v32 }
 0xf8c   : > { %21214 = vmatpush3.bf16.xpose.msk.msra.mxu1 %vm26029_vm1, %v21209_v58  ;;  %21065 = vmatprep.mubr.msk.f32.mxu1 %vm7258_vm0, %v8322_v39 }
 0xf93   : > { %21066 = vmatmul.mubr.msk.f32.vlgmr.msra.gmra.mrb[22].mxu1 %vm7258_vm0, %v8324_v13 }
0x105e   : > { %v21060_v47 = vpop.f32.mrb[20].mxu1 }
0x105f   : > { %8312 = vst.msk [vmem:[#allocation4 + $0x40] sm:$0xff] %vm7258_vm0, %v21060_v47  ;;  %v8302_v51 = vpop.f32.mrb[21].mxu1 }
0x1060   : > { %8311 = vst.msk [vmem:[#allocation4 + $0x10] sm:$0xff] %vm7258_vm0, %v8302_v51 }
0x1066   : > { %v21067_v55 = vpop.f32.mrb[22].mxu1 }
0x1067   : > { %v8415_v56 = vmul.f32 0.125, %v21067_v55  ;;  %v8405_v57 = vpop.f32.mrb[23].mxu1 }
0x1068   : > { %v8414_v59 = vmul.f32 0.125, %v8405_v57 }
0x1069   : > { %v8417_v36 = vadd.f32 %v8415_v56, %v26190_v48 }
0x106a   : > { %v8416_v45 = vadd.f32 %v8414_v59, %v26196_v21 }
0x106b   : > { %v8421_v53 = vsel %vm7350_vm2, %v8417_v36, -inf }
0x106c   : > { %8422 = vmax.xlane.f32.xlu1 %v8421_v53  ;;  %v8418_v61 = vsel %vm7350_vm2, %v8416_v45, -inf }
0x106d   : > { %8419 = vmax.xlane.f32.xlu0 %v8418_v61 }
0x10f9   : > { %v8423_v5 = vpop.xlane.xlu1 %8422 }
0x10fa   : > { %v8425_v35 = vsub.f32 %v8417_v36, %v8423_v5  ;;  %v8420_v41 = vpop.xlane.xlu0 %8419  ;;  %v22495_v5 = vpack.i.bf16 %v8542_v44, %v8541_v28 }
0x10fb   : > { %v8424_v54 = vsub.f32 %v8416_v45, %v8420_v41 }
0x10fc   : > { %v8428_v6 = vmul.f32 1.442695, %v8425_v35 }
0x10fd   : > { %v8426_v15 = vmul.f32 1.442695, %v8424_v54 }
0x10fe   : > { %23429 = vpow2.f32 %v8428_v6 }
0x10ff   : > { %23431 = vpow2.f32 %v8426_v15 }
0x1108   : > { %v23430_v7 = vpop.eup %23429 }
0x1109   : > { %v8433_v26 = vsel %vm7350_vm2, %v23430_v7, 0.0  ;;  %v23432_v42 = vpop.eup %23431 }
0x110a   : > { %8434 = vadd.xlane.f32.xlu0 %v8433_v26  ;;  %v8430_v10 = vsel %vm7350_vm2, %v23432_v42, 0.0 }
0x110e   : > { %8431 = vadd.xlane.f32.xlu0 %v8430_v10 }
0x1124   : > { %22491 = vrot.lane.b32.xlu0 %v22490_v43, %s24779_s21 }
0x1128   : > { %8749 = vrot.lane.b32.xlu0 %v8539_v50, %s24779_s21 }
0x112c   : > { %8751 = vrot.lane.b32.xlu0 %v8540_v60, %s24779_s21 }
0x1197   : > { %v8435_v30 = vpop.xlane.xlu0 %8434 }
0x1198   : > { %23433 = vrcp.f32 %v8435_v30 }
0x119b   : > { %v8432_v14 = vpop.xlane.xlu0 %8431 }
0x119c   : > { %23435 = vrcp.f32 %v8432_v14 }
0x119f   : > { %v22492_v40 = vpop.permute.xlu0 %22491 }
0x11a0   : > { %v22494_v49 = vunpack.i.h.bf16 %v22492_v40  ;;  %v22493_v18 = vunpack.i.l.bf16 %v22492_v40 }
0x11a2   : > { %v21215_v19 = vpack.c.bf16 %v22494_v49, %v22493_v18  ;;  %v23434_v24 = vpop.eup %23433 }
0x11a3   : > { %v8439_v20 = vmul.f32 %v23434_v24, %v23430_v7 }
0x11a4   : > { %21216 = vmatprep.subr.bf16.mxu1 %v21215_v19 }
0x11a5   : > { %21218 = vmatpush3.bf16.msra.mxu1 %v21215_v19 }
0x11a6   : > { %v23436_v46 = vpop.eup %23435  ;;  %21221 = vmatprep.subr.msk.bf16.mxu1 %vm26029_vm1, %v21219_v52 }
0x11a7   : > { %v8437_v43 = vmul.f32 %v23436_v46, %v23432_v42 }
0x11a9   : > { %21072 = vmatprep.mubr.msk.f32.mxu1 %vm7350_vm2, %v8437_v43 }
0x11aa   : > { %21073 = vmatmul.mubr.msk.f32.vlgmr.msra.gmra.mrb[24].mxu1 %vm7350_vm2, %v8439_v20 }
0x11ab   : > { %21079 = vmatprep.mubr.msk.f32.mxu1 %vm7258_vm0, %v8539_v50 }
0x11ae   : > { %21224 = vmatpush3.bf16.xpose.msk.msra.mxu1 %vm26029_vm1, %v21219_v52 }
0x11af   : > { %21226 = vmatprep.subr.bf16.mxu1 %v26281_v9 }
0x11b5   : > { %21080 = vmatmul.mubr.msk.f32.vlgmr.msra.gmra.mrb[26].mxu1 %vm7258_vm0, %v8540_v60  ;;  %v8750_v60 = vpop.permute.xlu0 %8749 }
0x11b6   : > { %21228 = vmatpush3.bf16.msra.mxu1 %v26281_v9 }
0x11b9   : > { %v8752_v30 = vpop.permute.xlu0 %8751 }
0x127d   : > { %v26419_v38 = vpop.f32.mrb[24].mxu1 }
0x127e   : > { %v26421_v62 = vpop.f32.mrb[25].mxu1 }
0x1288   : > { %v21081_v58 = vpop.f32.mrb[26].mxu1 }
0x1289   : > { %v8623_v22 = vpop.f32.mrb[27].mxu1  ;;  %v8633_v23 = vmul.f32 0.125, %v21081_v58 }
0x128a   : > { %v8632_v3 = vmul.f32 0.125, %v8623_v22 }
0x128b   : > { %v8635_v13 = vadd.f32 %v8633_v23, %v26190_v48 }
0x128c   : > { %v8634_v32 = vadd.f32 %v8632_v3, %v26196_v21 }
0x128d   : > { %v8639_v47 = vsel %vm7350_vm2, %v8635_v13, -inf }
0x128e   : > { %v8636_v39 = vsel %vm7350_vm2, %v8634_v32, -inf }
0x128f   : > { %8637 = vmax.xlane.f32.xlu1 %v8636_v39 }
0x1293   : > { %8640 = vmax.xlane.f32.xlu1 %v8639_v47  ;;  %v8968_v47 = vld [vmem:[#allocation3 + $0xb0] sm:$0xff] }
0x131c   : > { %v8638_v51 = vpop.xlane.xlu1 %8637 }
0x131d   : > { %v8642_v9 = vsub.f32 %v8634_v32, %v8638_v51 }
0x131f   : > { %v8644_v57 = vmul.f32 1.442695, %v8642_v9 }
0x1320   : > { %v8641_v55 = vpop.xlane.xlu1 %8640 }
0x1321   : > { %v8643_v56 = vsub.f32 %v8635_v13, %v8641_v55  ;;  %v8967_v13 = vld [vmem:[#allocation3 + $0x20] sm:$0xff] }
0x1323   : > { %v8646_v59 = vmul.f32 1.442695, %v8643_v56  ;;  %v8969_v56 = vld [vmem:[#allocation3 + $0x50] sm:$0xff] }
0x1325   : > { %23437 = vpow2.f32 %v8646_v59 }
0x1326   : > { %23439 = vpow2.f32 %v8644_v57  ;;  %v8970_v57 = vld [vmem:[#allocation3 + $0xe0] sm:$0xff] }
0x132f   : > { %v23438_v36 = vpop.eup %23437 }
0x1330   : > { %v8651_v45 = vsel %vm7350_vm2, %v23438_v36, 0.0  ;;  %v23440_v53 = vpop.eup %23439 }
0x1331   : > { %8652 = vadd.xlane.f32.xlu1 %v8651_v45  ;;  %v8648_v61 = vsel %vm7350_vm2, %v23440_v53, 0.0 }
0x1335   : > { %8649 = vadd.xlane.f32.xlu1 %v8648_v61 }
0x1346   : > { %22496 = vrot.lane.b32.xlu1 %v22495_v5, %s24779_s21 }
0x13be   : > { %v8653_v35 = vpop.xlane.xlu1 %8652 }
0x13bf   : > { %23441 = vrcp.f32 %v8653_v35 }
0x13c2   : > { %v8650_v41 = vpop.xlane.xlu1 %8649 }
0x13c3   : > { %23443 = vrcp.f32 %v8650_v41 }
0x13c6   : > { %v22497_v54 = vpop.permute.xlu1 %22496 }
0x13c7   : > { %v22499_v6 = vunpack.i.h.bf16 %v22497_v54  ;;  %v22498_v15 = vunpack.i.l.bf16 %v22497_v54 }
0x13c9   : > { %v21229_v7 = vpack.c.bf16 %v22499_v6, %v22498_v15  ;;  %v23442_v26 = vpop.eup %23441 }
0x13ca   : > { %v8657_v50 = vmul.f32 %v23442_v26, %v23438_v36 }
0x13cb   : > { %21231 = vmatprep.subr.msk.bf16.mxu1 %vm26029_vm1, %v21229_v7 }
0x13cd   : > { %v23444_v42 = vpop.eup %23443 }
0x13ce   : > { %v8655_v10 = vmul.f32 %v23444_v42, %v23440_v53  ;;  %v21239_v53 = vpack.c.bf16 %v8970_v57, %v8969_v56 }
0x13d0   : > { %21086 = vmatprep.mubr.msk.f32.mxu1 %vm7350_vm2, %v8655_v10 }
0x13d1   : > { %21087 = vmatmul.mubr.msk.f32.vlgmr.msra.gmra.mrb[28].mxu1 %vm7350_vm2, %v8657_v50 }
0x13d2   : > { %21234 = vmatpush3.bf16.xpose.msk.msra.mxu1 %vm26029_vm1, %v21229_v7  ;;  %21093 = vmatprep.mubr.msk.f32.mxu1 %vm7258_vm0, %v8750_v60  ;;  %v26469_v7 = vld [vmem:[%s27807_s1] sm:$0xff] }
0x13d9   : > { %21094 = vmatmul.mubr.msk.f32.vlgmr.msra.gmra.mrb[30].mxu1 %vm7258_vm0, %v8752_v30 }
0x14a4   : > { %v21088_v14 = vpop.f32.mrb[28].mxu1 }
0x14a5   : > { %8740 = vst.msk [vmem:[#allocation4 + $0x48] sm:$0xff] %vm7258_vm0, %v21088_v14  ;;  %v8730_v40 = vpop.f32.mrb[29].mxu1 }
0x14a6   : > { %8739 = vst.msk [vmem:[#allocation4 + $0x18] sm:$0xff] %vm7258_vm0, %v8730_v40 }
0x14ac   : > { %v21095_v28 = vpop.f32.mrb[30].mxu1 }
0x14ad   : > { %v8843_v44 = vmul.f32 0.125, %v21095_v28  ;;  %v8833_v49 = vpop.f32.mrb[31].mxu1 }
0x14ae   : > { %v8842_v18 = vmul.f32 0.125, %v8833_v49 }
0x14af   : > { %v8845_v19 = vadd.f32 %v8843_v44, %v26190_v48 }
0x14b0   : > { %v8844_v52 = vadd.f32 %v8842_v18, %v26196_v21 }
0x14b1   : > { %v8849_v24 = vsel %vm7350_vm2, %v8845_v19, -inf }
0x14b2   : > { %8850 = vmax.xlane.f32.xlu1 %v8849_v24  ;;  %v8846_v46 = vsel %vm7350_vm2, %v8844_v52, -inf  ;;  %v22505_v24 = vpack.i.bf16 %v8970_v57, %v8969_v56 }
0x14b3   : > { %8847 = vmax.xlane.f32.xlu0 %v8846_v46 }
0x153f   : > { %v8851_v43 = vpop.xlane.xlu1 %8850 }
0x1540   : > { %v8853_v20 = vsub.f32 %v8845_v19, %v8851_v43  ;;  %v8848_v58 = vpop.xlane.xlu0 %8847 }
0x1541   : > { %v8852_v22 = vsub.f32 %v8844_v52, %v8848_v58 }
0x1542   : > { %v8856_v23 = vmul.f32 1.442695, %v8853_v20 }
0x1543   : > { %v8854_v3 = vmul.f32 1.442695, %v8852_v22 }
0x1544   : > { %23445 = vpow2.f32 %v8856_v23 }
0x1545   : > { %23447 = vpow2.f32 %v8854_v3 }
0x154e   : > { %v23446_v32 = vpop.eup %23445 }
0x154f   : > { %v8861_v39 = vsel %vm7350_vm2, %v23446_v32, 0.0  ;;  %v23448_v48 = vpop.eup %23447 }
0x1550   : > { %8862 = vadd.xlane.f32.xlu0 %v8861_v39  ;;  %v8858_v21 = vsel %vm7350_vm2, %v23448_v48, 0.0 }
0x1554   : > { %8859 = vadd.xlane.f32.xlu0 %v8858_v21 }
0x156a   : > { %22501 = vrot.lane.b32.xlu0 %v22500_v11, %s24779_s21 }
0x156e   : > { %9177 = vrot.lane.b32.xlu0 %v8967_v13, %s24779_s21 }
0x1572   : > { %9179 = vrot.lane.b32.xlu0 %v8968_v47, %s24779_s21 }
0x15dd   : > { %v8863_v51 = vpop.xlane.xlu0 %8862 }
0x15de   : > { %23449 = vrcp.f32 %v8863_v51 }
0x15e1   : > { %v8860_v9 = vpop.xlane.xlu0 %8859 }
0x15e2   : > { %23451 = vrcp.f32 %v8860_v9 }
0x15e5   : > { %v22502_v55 = vpop.permute.xlu0 %22501 }
0x15e6   : > { %v22504_v59 = vunpack.i.h.bf16 %v22502_v55  ;;  %v22503_v36 = vunpack.i.l.bf16 %v22502_v55 }
0x15e8   : > { %v21235_v45 = vpack.c.bf16 %v22504_v59, %v22503_v36  ;;  %v23450_v34 = vpop.eup %23449 }
0x15e9   : > { %v8867_v61 = vmul.f32 %v23450_v34, %v23446_v32  ;;  %v9178_v21 = vpop.permute.xlu0 %9177 }
0x15ea   : > { %21236 = vmatprep.subr.bf16.mxu1 %v21235_v45 }
0x15eb   : > { %21238 = vmatpush3.bf16.msra.mxu1 %v21235_v45 }
0x15ec   : > { %v23452_v37 = vpop.eup %23451  ;;  %21241 = vmatprep.subr.msk.bf16.mxu1 %vm26029_vm1, %v21239_v53 }
0x15ed   : > { %v8865_v11 = vmul.f32 %v23452_v37, %v23448_v48 }
0x15ef   : > { %21100 = vmatprep.mubr.msk.f32.mxu1 %vm7350_vm2, %v8865_v11 }
0x15f0   : > { %21101 = vmatmul.mubr.msk.f32.vlgmr.msra.gmra.mrb[32].mxu1 %vm7350_vm2, %v8867_v61 }
0x15f1   : > { %21107 = vmatprep.mubr.msk.f32.mxu1 %vm7258_vm0, %v8967_v13  ;;  %v9180_v13 = vpop.permute.xlu0 %9179 }
0x15f4   : > { %21244 = vmatpush3.bf16.xpose.msk.msra.mxu1 %vm26029_vm1, %v21239_v53 }
0x15f5   : > { %21246 = vmatprep.subr.bf16.mxu1 %v26299_v27 }
0x15fb   : > { %21108 = vmatmul.mubr.msk.f32.vlgmr.msra.gmra.mrb[34].mxu1 %vm7258_vm0, %v8968_v47 }
0x15fc   : > { %21248 = vmatpush3.bf16.msra.mxu1 %v26299_v27  ;;  %v26476_v27 = vld [vmem:[%s27807_s1 + $0x8] sm:$0xff] }
0x16c3   : > { %v26462_v5 = vpop.f32.mrb[32].mxu1 }
0x16c4   : > { %v26464_v35 = vpop.f32.mrb[33].mxu1 }
0x16ce   : > { %v21109_v41 = vpop.f32.mrb[34].mxu1 }
0x16cf   : > { %v9051_v54 = vpop.f32.mrb[35].mxu1  ;;  %v9061_v6 = vmul.f32 0.125, %v21109_v41 }
0x16d0   : > { %v9060_v15 = vmul.f32 0.125, %v9051_v54 }
0x16d1   : > { %v9063_v10 = vadd.f32 %v26476_v27, %v9061_v6 }
0x16d2   : > { %v9062_v26 = vadd.f32 %v26469_v7, %v9060_v15 }
0x16d3   : > { %v9067_v50 = vsel %vm7350_vm2, %v9063_v10, -inf }
0x16d4   : > { %v9064_v42 = vsel %vm7350_vm2, %v9062_v26, -inf }
0x16d5   : > { %9065 = vmax.xlane.f32.xlu1 %v9064_v42 }
0x16d9   : > { %9068 = vmax.xlane.f32.xlu1 %v9067_v50  ;;  %v9396_v50 = vld [vmem:[#allocation3 + $0xb8] sm:$0xff] }
0x1762   : > { %v9066_v60 = vpop.xlane.xlu1 %9065 }
0x1763   : > { %v9070_v30 = vsub.f32 %v9062_v26, %v9066_v60 }
0x1765   : > { %v9072_v28 = vmul.f32 1.442695, %v9070_v30 }
0x1766   : > { %v9069_v14 = vpop.xlane.xlu1 %9068 }
0x1767   : > { %v9071_v40 = vsub.f32 %v9063_v10, %v9069_v14  ;;  %v9395_v10 = vld [vmem:[#allocation3 + $0x28] sm:$0xff] }
0x1769   : > { %v9074_v44 = vmul.f32 1.442695, %v9071_v40  ;;  %v9397_v40 = vld [vmem:[#allocation3 + $0x58] sm:$0xff] }
0x176b   : > { %23453 = vpow2.f32 %v9074_v44 }
0x176c   : > { %23455 = vpow2.f32 %v9072_v28  ;;  %v9398_v28 = vld [vmem:[#allocation3 + $0xe8] sm:$0xff] }
0x1775   : > { %v23454_v49 = vpop.eup %23453 }
0x1776   : > { %v9079_v18 = vsel %vm7350_vm2, %v23454_v49, 0.0  ;;  %v23456_v19 = vpop.eup %23455 }
0x1777   : > { %9080 = vadd.xlane.f32.xlu1 %v9079_v18  ;;  %v9076_v52 = vsel %vm7350_vm2, %v23456_v19, 0.0 }
0x177b   : > { %9077 = vadd.xlane.f32.xlu1 %v9076_v52 }
0x178c   : > { %22506 = vrot.lane.b32.xlu1 %v22505_v24, %s24779_s21 }
0x1804   : > { %v9081_v46 = vpop.xlane.xlu1 %9080 }
0x1805   : > { %23457 = vrcp.f32 %v9081_v46 }
0x1808   : > { %v9078_v43 = vpop.xlane.xlu1 %9077 }
0x1809   : > { %23459 = vrcp.f32 %v9078_v43 }
0x180c   : > { %v22507_v20 = vpop.permute.xlu1 %22506 }
0x180d   : > { %v22509_v58 = vunpack.i.h.bf16 %v22507_v20  ;;  %v22508_v22 = vunpack.i.l.bf16 %v22507_v20 }
0x180f   : > { %v21249_v23 = vpack.c.bf16 %v22509_v58, %v22508_v22  ;;  %v23458_v3 = vpop.eup %23457 }
0x1810   : > { %v9085_v48 = vmul.f32 %v23458_v3, %v23454_v49 }
0x1811   : > { %21251 = vmatprep.subr.msk.bf16.mxu1 %vm26029_vm1, %v21249_v23 }
0x1813   : > { %v23460_v32 = vpop.eup %23459 }
0x1814   : > { %v9083_v39 = vmul.f32 %v23460_v32, %v23456_v19  ;;  %v21259_v19 = vpack.c.bf16 %v9398_v28, %v9397_v40 }
0x1816   : > { %21114 = vmatprep.mubr.msk.f32.mxu1 %vm7350_vm2, %v9083_v39 }
0x1817   : > { %21115 = vmatmul.mubr.msk.f32.vlgmr.msra.gmra.mrb[36].mxu1 %vm7350_vm2, %v9085_v48 }
0x1818   : > { %21254 = vmatpush3.bf16.xpose.msk.msra.mxu1 %vm26029_vm1, %v21249_v23  ;;  %21121 = vmatprep.mubr.msk.f32.mxu1 %vm7258_vm0, %v9178_v21 }
0x181f   : > { %21122 = vmatmul.mubr.msk.f32.vlgmr.msra.gmra.mrb[38].mxu1 %vm7258_vm0, %v9180_v13 }
0x18ea   : > { %v21116_v47 = vpop.f32.mrb[36].mxu1 }
0x18eb   : > { %9168 = vst.msk [vmem:[#allocation4 + $0x50] sm:$0xff] %vm7258_vm0, %v21116_v47  ;;  %v9158_v51 = vpop.f32.mrb[37].mxu1 }
0x18ec   : > { %9167 = vst.msk [vmem:[#allocation4 + $0x20] sm:$0xff] %vm7258_vm0, %v9158_v51 }
0x18f2   : > { %v21123_v9 = vpop.f32.mrb[38].mxu1 }
0x18f3   : > { %v9271_v55 = vmul.f32 0.125, %v21123_v9  ;;  %v9261_v56 = vpop.f32.mrb[39].mxu1 }
0x18f4   : > { %v9270_v57 = vmul.f32 0.125, %v9261_v56 }
0x18f5   : > { %v9273_v59 = vadd.f32 %v26476_v27, %v9271_v55 }
0x18f6   : > { %v9272_v36 = vadd.f32 %v26469_v7, %v9270_v57 }
0x18f7   : > { %v9277_v45 = vsel %vm7350_vm2, %v9273_v59, -inf }
0x18f8   : > { %9278 = vmax.xlane.f32.xlu1 %v9277_v45  ;;  %v9274_v53 = vsel %vm7350_vm2, %v9272_v36, -inf }
0x18f9   : > { %9275 = vmax.xlane.f32.xlu0 %v9274_v53 }
0x1985   : > { %v9279_v34 = vpop.xlane.xlu1 %9278 }
0x1986   : > { %v9281_v37 = vsub.f32 %v9273_v59, %v9279_v34  ;;  %v9276_v11 = vpop.xlane.xlu0 %9275  ;;  %v22515_v59 = vpack.i.bf16 %v9398_v28, %v9397_v40 }
0x1987   : > { %v9280_v61 = vsub.f32 %v9272_v36, %v9276_v11 }
0x1988   : > { %v9284_v41 = vmul.f32 1.442695, %v9281_v37 }
0x1989   : > { %v9282_v54 = vmul.f32 1.442695, %v9280_v61 }
0x198a   : > { %23461 = vpow2.f32 %v9284_v41 }
0x198b   : > { %23463 = vpow2.f32 %v9282_v54 }
0x1994   : > { %v23462_v6 = vpop.eup %23461 }
0x1995   : > { %v9289_v15 = vsel %vm7350_vm2, %v23462_v6, 0.0  ;;  %v23464_v26 = vpop.eup %23463 }
0x1996   : > { %9290 = vadd.xlane.f32.xlu0 %v9289_v15  ;;  %v9286_v42 = vsel %vm7350_vm2, %v23464_v26, 0.0 }
0x199a   : > { %9287 = vadd.xlane.f32.xlu0 %v9286_v42 }
0x19b0   : > { %22511 = vrot.lane.b32.xlu0 %v22510_v33, %s24779_s21 }
0x19b4   : > { %9605 = vrot.lane.b32.xlu0 %v9395_v10, %s24779_s21 }
0x19b8   : > { %9607 = vrot.lane.b32.xlu0 %v9396_v50, %s24779_s21 }
0x1a23   : > { %v9291_v60 = vpop.xlane.xlu0 %9290 }
0x1a24   : > { %23465 = vrcp.f32 %v9291_v60 }
0x1a27   : > { %v9288_v30 = vpop.xlane.xlu0 %9287 }
0x1a28   : > { %23467 = vrcp.f32 %v9288_v30 }
0x1a2b   : > { %v22512_v14 = vpop.permute.xlu0 %22511 }
0x1a2c   : > { %v22514_v44 = vunpack.i.h.bf16 %v22512_v14  ;;  %v22513_v49 = vunpack.i.l.bf16 %v22512_v14 }
0x1a2e   : > { %v21255_v18 = vpack.c.bf16 %v22514_v44, %v22513_v49  ;;  %v23466_v63 = vpop.eup %23465  ;;  %v22962_v49 = vld [vmem:[%s25052_s23 + $0x93c] ss:$24 sps:$4 sm:$0xff]  }
0x1a2f   : > { %v9295_v52 = vmul.f32 %v23466_v63, %v23462_v6  ;;  %v9606_v15 = vpop.permute.xlu0 %9605  ;;  %v22974_v63 = vld [vmem:[%s25052_s23 + $0x9fc] ss:$24 sps:$4 sm:$0xff]  }
0x1a30   : > { %21256 = vmatprep.subr.bf16.mxu1 %v21255_v18 }
0x1a31   : > { %21258 = vmatpush3.bf16.msra.mxu1 %v21255_v18  ;;  %v22971_v18 = vld [vmem:[%s25052_s23 + $0x9cc] ss:$24 sps:$4 sm:$0xff]  }
0x1a32   : > { %v23468_v31 = vpop.eup %23467  ;;  %21261 = vmatprep.subr.msk.bf16.mxu1 %vm26029_vm1, %v21259_v19 }
0x1a33   : > { %v9293_v33 = vmul.f32 %v23468_v31, %v23464_v26  ;;  %v9608_v26 = vpop.permute.xlu0 %9607  ;;  %v22972_v31 = vld [vmem:[%s25052_s23 + $0x9f8] ss:$24 sps:$4 sm:$0xff]  }
0x1a35   : > { %21128 = vmatprep.mubr.msk.f32.mxu1 %vm7350_vm2, %v9293_v33  ;;  %v22977_v33 = vld [vmem:[%s25052_s23 + $0xa2c] ss:$24 sps:$4 sm:$0xff]  }
0x1a36   : > { %21129 = vmatmul.mubr.msk.f32.vlgmr.msra.gmra.mrb[40].mxu1 %vm7350_vm2, %v9295_v52  ;;  %v22975_v52 = vld [vmem:[%s25052_s23 + $0xa28] ss:$24 sps:$4 sm:$0xff]  }
0x1a37   : > { %21135 = vmatprep.mubr.msk.f32.mxu1 %vm7258_vm0, %v9395_v10 }
0x1a3a   : > { %21264 = vmatpush3.bf16.xpose.msk.msra.mxu1 %vm26029_vm1, %v21259_v19  ;;  %v22969_v19 = vld [vmem:[%s25052_s23 + $0x9c8] ss:$24 sps:$4 sm:$0xff]  }
0x1a3b   : > { %21266 = vmatprep.subr.bf16.mxu1 %v26303_v25 }
0x1a41   : > { %21136 = vmatmul.mubr.msk.f32.vlgmr.msra.gmra.mrb[42].mxu1 %vm7258_vm0, %v9396_v50 }
0x1a42   : > { %21268 = vmatpush3.bf16.msra.mxu1 %v26303_v25 }
0x1b09   : > { %v26515_v24 = vpop.f32.mrb[40].mxu1 }
0x1b0a   : > { %v26517_v46 = vpop.f32.mrb[41].mxu1 }
0x1b14   : > { %v21137_v43 = vpop.f32.mrb[42].mxu1 }
0x1b15   : > { %v9479_v20 = vpop.f32.mrb[43].mxu1  ;;  %v9489_v58 = vmul.f32 0.125, %v21137_v43  ;;  %v22980_v43 = vld [vmem:[%s25052_s23 + $0xa5c] ss:$24 sps:$4 sm:$0xff]  }
0x1b16   : > { %v9488_v22 = vmul.f32 0.125, %v9479_v20  ;;  %v22978_v20 = vld [vmem:[%s25052_s23 + $0xa58] ss:$24 sps:$4 sm:$0xff]  }
0x1b17   : > { %v9491_v32 = vadd.f32 %v26476_v27, %v9489_v58  ;;  %v22983_v58 = vld [vmem:[%s25052_s23 + $0xa8c] ss:$24 sps:$4 sm:$0xff]  }
0x1b18   : > { %v9490_v23 = vadd.f32 %v26469_v7, %v9488_v22  ;;  %v22981_v22 = vld [vmem:[%s25052_s23 + $0xa88] ss:$24 sps:$4 sm:$0xff]  }
0x1b19   : > { %v9495_v39 = vsel %vm7350_vm2, %v9491_v32, -inf }
0x1b1a   : > { %v9492_v3 = vsel %vm7350_vm2, %v9490_v23, -inf }
0x1b1b   : > { %9493 = vmax.xlane.f32.xlu1 %v9492_v3  ;;  %v22984_v3 = vld [vmem:[%s25052_s23 + $0xab8] ss:$24 sps:$4 sm:$0xff]  }
0x1b1f   : > { %9496 = vmax.xlane.f32.xlu1 %v9495_v39  ;;  %v22987_v39 = vld [vmem:[%s25052_s23 + $0xae8] ss:$24 sps:$4 sm:$0xff]  }
0x1ba8   : > { %v9494_v48 = vpop.xlane.xlu1 %9493 }
0x1ba9   : > { %v9498_v25 = vsub.f32 %v9490_v23, %v9494_v48  ;;  %v22986_v23 = vld [vmem:[%s25052_s23 + $0xabc] ss:$24 sps:$4 sm:$0xff]  }
0x1bab   : > { %v9500_v47 = vmul.f32 1.442695, %v9498_v25 }
0x1bac   : > { %v9497_v21 = vpop.xlane.xlu1 %9496 }
0x1bad   : > { %v9499_v13 = vsub.f32 %v9491_v32, %v9497_v21  ;;  %v22989_v32 = vld [vmem:[%s25052_s23 + $0xaec] ss:$24 sps:$4 sm:$0xff]  }
0x1baf   : > { %v9502_v51 = vmul.f32 1.442695, %v9499_v13 }
0x1bb1   : > { %23469 = vpow2.f32 %v9502_v51 }
0x1bb2   : > { %23471 = vpow2.f32 %v9500_v47 }
0x1bbb   : > { %v23470_v9 = vpop.eup %23469 }
0x1bbc   : > { %v9507_v55 = vsel %vm7350_vm2, %v23470_v9, 0.0  ;;  %v23472_v56 = vpop.eup %23471 }
0x1bbd   : > { %9508 = vadd.xlane.f32.xlu1 %v9507_v55  ;;  %v9504_v57 = vsel %vm7350_vm2, %v23472_v56, 0.0 }
0x1bc1   : > { %9505 = vadd.xlane.f32.xlu1 %v9504_v57 }
0x1bd2   : > { %22516 = vrot.lane.b32.xlu1 %v22515_v59, %s24779_s21 }
0x1c4a   : > { %v9509_v36 = vpop.xlane.xlu1 %9508 }
0x1c4b   : > { %23473 = vrcp.f32 %v9509_v36 }
0x1c4e   : > { %v9506_v45 = vpop.xlane.xlu1 %9505 }
0x1c4f   : > { %23475 = vrcp.f32 %v9506_v45 }
0x1c52   : > { %v22517_v53 = vpop.permute.xlu1 %22516 }
0x1c53   : > { %v22519_v34 = vunpack.i.h.bf16 %v22517_v53  ;;  %v22518_v37 = vunpack.i.l.bf16 %v22517_v53 }
0x1c55   : > { %v21269_v11 = vpack.c.bf16 %v22519_v34, %v22518_v37  ;;  %v23474_v61 = vpop.eup %23473 }
0x1c56   : > { %v9513_v6 = vmul.f32 %v23474_v61, %v23470_v9 }
0x1c57   : > { %21271 = vmatprep.subr.msk.bf16.mxu1 %vm26029_vm1, %v21269_v11 }
0x1c59   : > { %v23476_v41 = vpop.eup %23475 }
0x1c5a   : > { %v9511_v54 = vmul.f32 %v23476_v41, %v23472_v56  ;;  %v22992_v41 = vld [vmem:[%s25052_s23 + $0xb1c] ss:$24 sps:$4 sm:$0xff]  }
0x1c5c   : > { %21142 = vmatprep.mubr.msk.f32.mxu1 %vm7350_vm2, %v9511_v54  ;;  %v22990_v54 = vld [vmem:[%s25052_s23 + $0xb18] ss:$24 sps:$4 sm:$0xff]  }
0x1c5d   : > { %21143 = vmatmul.mubr.msk.f32.vlgmr.msra.gmra.mrb[44].mxu1 %vm7350_vm2, %v9513_v6  ;;  %v22995_v6 = vld [vmem:[%s25052_s23 + $0xb4c] ss:$24 sps:$4 sm:$0xff]  }
0x1c5e   : > { %21274 = vmatpush3.bf16.xpose.msk.msra.mxu1 %vm26029_vm1, %v21269_v11  ;;  %21149 = vmatprep.mubr.msk.f32.mxu1 %vm7258_vm0, %v9606_v15  ;;  %v22993_v15 = vld [vmem:[%s25052_s23 + $0xb48] ss:$24 sps:$4 sm:$0xff]  }
0x1c65   : > { %21150 = vmatmul.mubr.msk.f32.vlgmr.msra.gmra.mrb[46].mxu1 %vm7258_vm0, %v9608_v26  ;;  %v9602_v26 = vld [vmem:[#allocation3 + $0x118] sm:$0xff] }
0x1d30   : > { %v21144_v42 = vpop.f32.mrb[44].mxu1 }
0x1d31   : > { %9596 = vst.msk [vmem:[#allocation4 + $0x58] sm:$0xff] %vm7258_vm0, %v21144_v42  ;;  %v9586_v10 = vpop.f32.mrb[45].mxu1  ;;  %v22998_v42 = vld [vmem:[%s25052_s23 + $0xb7c] ss:$24 sps:$4 sm:$0xff]  }
0x1d32   : > { %9595 = vst.msk [vmem:[#allocation4 + $0x28] sm:$0xff] %vm7258_vm0, %v9586_v10  ;;  %v22996_v10 = vld [vmem:[%s25052_s23 + $0xb78] ss:$24 sps:$4 sm:$0xff]  }
0x1d38   : > { %v21151_v50 = vpop.f32.mrb[46].mxu1 }
0x1d39   : > { %v9699_v60 = vmul.f32 0.125, %v21151_v50  ;;  %v9689_v30 = vpop.f32.mrb[47].mxu1  ;;  %v9601_v50 = vld [vmem:[#allocation3 + $0x88] sm:$0xff] }
0x1d3a   : > { %v9698_v14 = vmul.f32 0.125, %v9689_v30  ;;  %v23001_v30 = vld [vmem:[%s25052_s23 + $0xbac] ss:$24 sps:$4 sm:$0xff]  }
0x1d3b   : > { %v9701_v8 = vadd.f32 %v26476_v27, %v9699_v60  ;;  %v22959_v27 = vld [vmem:[%s25052_s23 + $0x90c] ss:$24 sps:$4 sm:$0xff]   ;;  %v22520_v60 = vpack.i.bf16 %v9602_v26, %v9601_v50  ;;  %v23047_v26 = vld [vmem:[%s25052_s23 + $0xd28] ss:$24 sps:$4 sm:$0xff]  }
0x1d3c   : > { %v9700_v40 = vadd.f32 %v26469_v7, %v9698_v14  ;;  %v22957_v7 = vld [vmem:[%s25052_s23 + $0x908] ss:$24 sps:$4 sm:$0xff]   ;;  %11753 = vmatprep.subr.bf16.mxu0 %v22959_v27 }
0x1d3d   : > { %v9705_v28 = vsel %vm7350_vm2, %v9701_v8, -inf  ;;  %11754 = vmatpush1.bf16.msra.mxu0 %v22957_v7  ;;  %v22999_v14 = vld [vmem:[%s25052_s23 + $0xba8] ss:$24 sps:$4 sm:$0xff]  }
0x1d3e   : > { %9706 = vmax.xlane.f32.xlu1 %v9705_v28  ;;  %v9702_v44 = vsel %vm7350_vm2, %v9700_v40, -inf  ;;  %11755 = vmatprep.subr.bf16.mxu0 %v22962_v49  ;;  %v23013_v28 = vld [vmem:[%s25052_s23 + $0xc0c] ss:$24 sps:$4 sm:$0xff]   ;;  %v23050_v50 = vld [vmem:[%s25052_s23 + $0xa80] ss:$24 sps:$4 sm:$0xff]  }
0x1d3f   : > { %9703 = vmax.xlane.f32.xlu0 %v9702_v44 }
0x1d4f   : > { %8103 = vrot.lane.b32.xlu1 %v26378_v29, %s24779_s21  ;;  %v22960_v29 = vld [vmem:[%s25052_s23 + $0x938] ss:$24 sps:$4 sm:$0xff]  }
0x1d50   : > { %11756 = vmatpush1.bf16.msra.mxu0 %v22960_v29 }
0x1d53   : > { %8105 = vrot.lane.b32.xlu1 %v26376_v4, %s24779_s21  ;;  %v22965_v4 = vld [vmem:[%s25052_s23 + $0x96c] ss:$24 sps:$4 sm:$0xff]  }
0x1d54   : > { %11757 = vmatprep.subr.bf16.mxu0 %v22965_v4  ;;  %v23004_v4 = vld [vmem:[%s25052_s23 + $0x904] ss:$24 sps:$4 sm:$0xff]  }
0x1d57   : > { %7676 = vrot.lane.b32.xlu1 %v26333_v16, %s24779_s21  ;;  %v22963_v16 = vld [vmem:[%s25052_s23 + $0x968] ss:$24 sps:$4 sm:$0xff]  }
0x1d58   : > { %11758 = vmatpush1.bf16.msra.mxu0 %v22963_v16 }
0x1d5b   : > { %8961 = vrot.lane.b32.xlu1 %v26462_v5, %s24779_s21  ;;  %v22968_v5 = vld [vmem:[%s25052_s23 + $0x99c] ss:$24 sps:$4 sm:$0xff]  }
0x1d5c   : > { %11759 = vmatprep.subr.bf16.mxu0 %v22968_v5 }
0x1d5f   : > { %8533 = vrot.lane.b32.xlu1 %v26419_v38, %s24779_s21  ;;  %v22966_v38 = vld [vmem:[%s25052_s23 + $0x998] ss:$24 sps:$4 sm:$0xff]  }
0x1d60   : > { %11760 = vmatpush1.bf16.msra.mxu0 %v22966_v38 }
0x1d61   : > { %11761 = vmatprep.subr.bf16.mxu0 %v22971_v18  ;;  %v23002_v18 = vld [vmem:[%s25052_s23 + $0x900] ss:$24 sps:$4 sm:$0xff]  }
0x1d64   : > { %11762 = vmatpush1.bf16.msra.mxu0 %v22969_v19 }
0x1d65   : > { %11763 = vmatprep.subr.bf16.mxu0 %v22974_v63  ;;  %v23010_v63 = vld [vmem:[%s25052_s23 + $0x934] ss:$24 sps:$4 sm:$0xff]  }
0x1d68   : > { %11764 = vmatpush1.bf16.msra.mxu0 %v22972_v31 }
0x1d69   : > { %11765 = vmatprep.subr.bf16.mxu0 %v22977_v33 }
0x1d6c   : > { %11766 = vmatpush1.bf16.msra.mxu0 %v22975_v52  ;;  %v23008_v52 = vld [vmem:[%s25052_s23 + $0x930] ss:$24 sps:$4 sm:$0xff]  }
0x1d6d   : > { %11767 = vmatprep.subr.bf16.mxu0 %v22980_v43  ;;  %v23011_v43 = vld [vmem:[%s25052_s23 + $0xc08] ss:$24 sps:$4 sm:$0xff]  }
0x1d70   : > { %11768 = vmatpush1.bf16.msra.mxu0 %v22978_v20 }
0x1d71   : > { %11769 = vmatprep.subr.bf16.mxu0 %v22983_v58 }
0x1d74   : > { %11770 = vmatpush1.bf16.msra.mxu0 %v22981_v22  ;;  %v23016_v22 = vld [vmem:[%s25052_s23 + $0x964] ss:$24 sps:$4 sm:$0xff]  }
0x1d75   : > { %11771 = vmatprep.subr.bf16.mxu0 %v22986_v23  ;;  %v23019_v23 = vld [vmem:[%s25052_s23 + $0xc3c] ss:$24 sps:$4 sm:$0xff]  }
0x1d78   : > { %11772 = vmatpush1.bf16.msra.mxu0 %v22984_v3 }
0x1d79   : > { %11773 = vmatprep.subr.bf16.mxu0 %v22989_v32  ;;  %v23014_v32 = vld [vmem:[%s25052_s23 + $0x960] ss:$24 sps:$4 sm:$0xff]  }
0x1d7c   : > { %11774 = vmatpush1.bf16.msra.mxu0 %v22987_v39  ;;  %v23017_v39 = vld [vmem:[%s25052_s23 + $0xc38] ss:$24 sps:$4 sm:$0xff]  }
0x1d7d   : > { %11775 = vmatprep.subr.bf16.mxu0 %v22992_v41  ;;  %v23041_v41 = vld [vmem:[%s25052_s23 + $0xcf8] ss:$24 sps:$4 sm:$0xff]  }
0x1d80   : > { %11776 = vmatpush1.bf16.msra.mxu0 %v22990_v54  ;;  %v23046_v54 = vld [vmem:[%s25052_s23 + $0xa54] ss:$24 sps:$4 sm:$0xff]  }
0x1d81   : > { %11777 = vmatprep.subr.bf16.mxu0 %v22995_v6  ;;  %v23049_v6 = vld [vmem:[%s25052_s23 + $0xd2c] ss:$24 sps:$4 sm:$0xff]  }
0x1d84   : > { %11778 = vmatpush1.bf16.msra.mxu0 %v22993_v15  ;;  %v23044_v15 = vld [vmem:[%s25052_s23 + $0xa50] ss:$24 sps:$4 sm:$0xff]  }
0x1d85   : > { %11779 = vmatprep.subr.bf16.mxu0 %v22998_v42  ;;  %v23052_v42 = vld [vmem:[%s25052_s23 + $0xa84] ss:$24 sps:$4 sm:$0xff]  }
0x1d88   : > { %11780 = vmatpush1.bf16.msra.mxu0 %v22996_v10  ;;  %v23055_v10 = vld [vmem:[%s25052_s23 + $0xd5c] ss:$24 sps:$4 sm:$0xff]  }
0x1d89   : > { %11781 = vmatprep.subr.bf16.mxu0 %v23001_v30  ;;  %v23058_v30 = vld [vmem:[%s25052_s23 + $0xab4] ss:$24 sps:$4 sm:$0xff]  }
0x1d8c   : > { %11782 = vmatpush1.bf16.msra.mxu0 %v22999_v14  ;;  %v23061_v14 = vld [vmem:[%s25052_s23 + $0xd8c] ss:$24 sps:$4 sm:$0xff]  }
0x1dcb   : > { %v9707_v48 = vpop.xlane.xlu1 %9706 }
0x1dcc   : > { %v9709_v25 = vsub.f32 %v9701_v8, %v9707_v48  ;;  %v9704_v21 = vpop.xlane.xlu0 %9703  ;;  %v23007_v8 = vld [vmem:[%s25052_s23 + $0xbdc] ss:$24 sps:$4 sm:$0xff]  }
0x1dcd   : > { %v9708_v13 = vsub.f32 %v9700_v40, %v9704_v21  ;;  %v23005_v40 = vld [vmem:[%s25052_s23 + $0xbd8] ss:$24 sps:$4 sm:$0xff]   ;;  %11783 = vmatprep.subr.bf16.mxu0 %v23007_v8  ;;  %v23022_v21 = vld [vmem:[%s25052_s23 + $0x994] ss:$24 sps:$4 sm:$0xff]  }
0x1dce   : > { %v9712_v47 = vmul.f32 1.442695, %v9709_v25  ;;  %11784 = vmatpush1.bf16.msra.mxu0 %v23005_v40  ;;  %v23056_v8 = vld [vmem:[%s25052_s23 + $0xab0] ss:$24 sps:$4 sm:$0xff]  }
0x1dcf   : > { %v9710_v51 = vmul.f32 1.442695, %v9708_v13  ;;  %v8104_v9 = vpop.permute.xlu1 %8103  ;;  %11796 = vmatprep.subr.bf16.mxu0 %v23013_v28  ;;  %v23025_v13 = vld [vmem:[%s25052_s23 + $0xc6c] ss:$24 sps:$4 sm:$0xff]   ;;  %v23059_v40 = vld [vmem:[%s25052_s23 + $0xd88] ss:$24 sps:$4 sm:$0xff]  }
0x1dd0   : > { %23477 = vpow2.f32 %v9712_v47  ;;  %8109 = vst.msk [vmem:[#allocation4 + $0x8] sm:$0xff] %vm7680_vm3, %v8104_v9  ;;  %v23020_v47 = vld [vmem:[%s25052_s23 + $0x990] ss:$24 sps:$4 sm:$0xff]   ;;  %v23028_v9 = vld [vmem:[%s25052_s23 + $0x9c4] ss:$24 sps:$4 sm:$0xff]  }
0x1dd1   : > { %23479 = vpow2.f32 %v9710_v51  ;;  %v23023_v51 = vld [vmem:[%s25052_s23 + $0xc68] ss:$24 sps:$4 sm:$0xff]   ;;  %v23064_v28 = vld [vmem:[%s25052_s23 + $0xae4] ss:$24 sps:$4 sm:$0xff]  }
0x1dd3   : > { %v8106_v55 = vpop.permute.xlu1 %8105 }
0x1dd4   : > { %8110 = vst.msk [vmem:[#allocation4 + $0x38] sm:$0xff] %vm7680_vm3, %v8106_v55  ;;  %v23031_v55 = vld [vmem:[%s25052_s23 + $0xc9c] ss:$24 sps:$4 sm:$0xff]  }
0x1dd7   : > { %v7677_v56 = vpop.permute.xlu1 %7676  ;;  %v9824_v45 = vld [vmem:[#allocation4 + $0x8] sm:$0xff] }
0x1dd8   : > { %7682 = vst.msk [vmem:[#allocation4 + $0x30] sm:$0xff] %vm7680_vm3, %v7677_v56  ;;  %v23026_v56 = vld [vmem:[%s25052_s23 + $0x9c0] ss:$24 sps:$4 sm:$0xff]  }
0x1dda   : > { %v23478_v57 = vpop.eup %23477 }
0x1ddb   : > { %v8962_v59 = vpop.permute.xlu1 %8961  ;;  %v9717_v36 = vsel %vm7350_vm2, %v23478_v57, 0.0  ;;  %v9830_v53 = vld [vmem:[#allocation4 + $0x38] sm:$0xff]  ;;  %v23480_v34 = vpop.eup %23479 }
0x1ddc   : > { %8966 = vst.msk [vmem:[#allocation4 + $0x48] sm:$0xff] %vm7680_vm3, %v8962_v59  ;;  %9718 = vadd.xlane.f32.xlu0 %v9717_v36  ;;  %v26577_v37 = vpack.c.bf16 %v9830_v53, %v9824_v45  ;;  %v9714_v61 = vsel %vm7350_vm2, %v23480_v34, 0.0  ;;  %v23034_v59 = vld [vmem:[%s25052_s23 + $0x9f4] ss:$24 sps:$4 sm:$0xff]   ;;  %v23032_v45 = vld [vmem:[%s25052_s23 + $0x9f0] ss:$24 sps:$4 sm:$0xff]  }
0x1ddd   : > { %v23037_v36 = vld [vmem:[%s25052_s23 + $0xccc] ss:$24 sps:$4 sm:$0xff]   ;;  %v23035_v53 = vld [vmem:[%s25052_s23 + $0xcc8] ss:$24 sps:$4 sm:$0xff]  }
0x1dde   : > { %11785 = vmatprep.mubr.bf16.mxu0 %v26577_v37 }
0x1ddf   : > { %v8534_v11 = vpop.permute.xlu1 %8533  ;;  %v9829_v31 = vld [vmem:[#allocation4 + $0x30] sm:$0xff] }
0x1de0   : > { %8538 = vst.msk [vmem:[#allocation4 + $0x40] sm:$0xff] %vm7680_vm3, %v8534_v11  ;;  %9715 = vadd.xlane.f32.xlu0 %v9714_v61  ;;  %v23043_v11 = vld [vmem:[%s25052_s23 + $0xcfc] ss:$24 sps:$4 sm:$0xff]   ;;  %v23038_v61 = vld [vmem:[%s25052_s23 + $0xa20] ss:$24 sps:$4 sm:$0xff]  }
0x1de3   : > { %v9832_v3 = vld [vmem:[#allocation4 + $0x48] sm:$0xff] }
0x1df6   : > { %22521 = vrot.lane.b32.xlu0 %v22520_v60, %s24779_s21  ;;  %v23053_v60 = vld [vmem:[%s25052_s23 + $0xd58] ss:$24 sps:$4 sm:$0xff]  }
0x1dfa   : > { %7674 = vrot.lane.b32.xlu0 %v26335_v17, %s24779_s21 }
0x1dfe   : > { %8959 = vrot.lane.b32.xlu0 %v26464_v35, %s24779_s21 }
0x1e02   : > { %8531 = vrot.lane.b32.xlu0 %v26421_v62, %s24779_s21 }
0x1e69   : > { %v9719_v44 = vpop.xlane.xlu0 %9718 }
0x1e6a   : > { %23481 = vrcp.f32 %v9719_v44  ;;  %v23067_v44 = vld [vmem:[%s25052_s23 + $0xdbc] ss:$24 sps:$4 sm:$0xff]  }
0x1e6d   : > { %v9716_v7 = vpop.xlane.xlu0 %9715 }
0x1e6e   : > { %23483 = vrcp.f32 %v9716_v7  ;;  %v23062_v7 = vld [vmem:[%s25052_s23 + $0xae0] ss:$24 sps:$4 sm:$0xff]  }
0x1e71   : > { %v22522_v27 = vpop.permute.xlu0 %22521 }
0x1e72   : > { %v22524_v49 = vunpack.i.h.bf16 %v22522_v27  ;;  %v22523_v17 = vunpack.i.l.bf16 %v22522_v27  ;;  %v23065_v27 = vld [vmem:[%s25052_s23 + $0xdb8] ss:$24 sps:$4 sm:$0xff]  }
0x1e74   : > { %v21275_v29 = vpack.c.bf16 %v22524_v49, %v22523_v17  ;;  %v23482_v35 = vpop.eup %23481  ;;  %v23070_v49 = vld [vmem:[%s25052_s23 + $0xb14] ss:$24 sps:$4 sm:$0xff]  }
0x1e75   : > { %v7675_v16 = vpop.permute.xlu0 %7674  ;;  %v9723_v19 = vmul.f32 %v23482_v35, %v23478_v57  ;;  %v23029_v57 = vld [vmem:[%s25052_s23 + $0xc98] ss:$24 sps:$4 sm:$0xff]   ;;  %v23073_v17 = vld [vmem:[%s25052_s23 + $0xdec] ss:$24 sps:$4 sm:$0xff]   ;;  %v23079_v35 = vld [vmem:[%s25052_s23 + $0xe1c] ss:$24 sps:$4 sm:$0xff]  }
0x1e76   : > { %7681 = vst.msk [vmem:[#allocation4] sm:$0xff] %vm7680_vm3, %v7675_v16  ;;  %21276 = vmatprep.subr.bf16.mxu1 %v21275_v29  ;;  %v23076_v16 = vld [vmem:[%s25052_s23 + $0xb44] ss:$24 sps:$4 sm:$0xff]  }
0x1e77   : > { %21278 = vmatpush3.bf16.msra.mxu1 %v21275_v29  ;;  %v23068_v29 = vld [vmem:[%s25052_s23 + $0xb10] ss:$24 sps:$4 sm:$0xff]  }
0x1e78   : > { %v23484_v62 = vpop.eup %23483  ;;  %11624 = vmatprep.subr.bf16.mxu1 %v23004_v4  ;;  %v23071_v4 = vld [vmem:[%s25052_s23 + $0xde8] ss:$24 sps:$4 sm:$0xff]  }
0x1e79   : > { %v8960_v5 = vpop.permute.xlu0 %8959  ;;  %v9721_v38 = vmul.f32 %v23484_v62, %v23480_v34  ;;  %v23040_v34 = vld [vmem:[%s25052_s23 + $0xa24] ss:$24 sps:$4 sm:$0xff]   ;;  %v23074_v62 = vld [vmem:[%s25052_s23 + $0xb40] ss:$24 sps:$4 sm:$0xff]  }
0x1e7a   : > { %8965 = vst.msk [vmem:[#allocation4 + $0x18] sm:$0xff] %vm7680_vm3, %v8960_v5  ;;  %v23077_v5 = vld [vmem:[%s25052_s23 + $0xe18] ss:$24 sps:$4 sm:$0xff]  }
0x1e7b   : > { %21156 = vmatprep.mubr.msk.f32.mxu1 %vm7350_vm2, %v9721_v38  ;;  %v23082_v38 = vld [vmem:[%s25052_s23 + $0xb74] ss:$24 sps:$4 sm:$0xff]  }
0x1e7c   : > { %21157 = vmatmul.mubr.msk.f32.vlgmr.msra.gmra.mrb[48].mxu1 %vm7350_vm2, %v9723_v19  ;;  %v23080_v19 = vld [vmem:[%s25052_s23 + $0xb70] ss:$24 sps:$4 sm:$0xff]  }
0x1e7d   : > { %11625 = vmatpush1.bf16.msra.mxu1 %v23002_v18  ;;  %v8532_v33 = vpop.permute.xlu0 %8531  ;;  %11656 = vmatprep.mubr.bf16.mxu1 %v26577_v37  ;;  %v9823_v20 = vld [vmem:[#allocation4] sm:$0xff] }
0x1e7e   : > { %8537 = vst.msk [vmem:[#allocation4 + $0x10] sm:$0xff] %vm7680_vm3, %v8532_v33  ;;  %11626 = vmatprep.subr.bf16.mxu1 %v23010_v63  ;;  %v26611_v58 = vpack.c.bf16 %v9829_v31, %v9823_v20  ;;  %v23085_v18 = vld [vmem:[%s25052_s23 + $0xe4c] ss:$24 sps:$4 sm:$0xff]   ;;  %v23083_v63 = vld [vmem:[%s25052_s23 + $0xe48] ss:$24 sps:$4 sm:$0xff]  }
0x1e7f   : > { %v23088_v31 = vld [vmem:[%s25052_s23 + $0xba4] ss:$24 sps:$4 sm:$0xff]   ;;  %v23094_v20 = vld [vmem:[%s25052_s23 + $0xbd4] ss:$24 sps:$4 sm:$0xff]  }
0x1e80   : > { %11786 = vmatmul.mubr.bf16.vlgmr.msra.gmra.mrb[16].mxu0 %v26611_v58  ;;  %v23091_v33 = vld [vmem:[%s25052_s23 + $0xe7c] ss:$24 sps:$4 sm:$0xff]  }
0x1e81   : > { %11627 = vmatpush1.bf16.msra.mxu1 %v23008_v52  ;;  %11797 = vmatpush1.bf16.msra.mxu0 %v23011_v43  ;;  %v9826_v48 = vld [vmem:[#allocation4 + $0x18] sm:$0xff] }
0x1e82   : > { %11628 = vmatprep.subr.bf16.mxu1 %v23016_v22  ;;  %11798 = vmatprep.subr.bf16.mxu0 %v23019_v23  ;;  %v26618_v25 = vpack.c.bf16 %v9832_v3, %v9826_v48  ;;  %v23086_v52 = vld [vmem:[%s25052_s23 + $0xba0] ss:$24 sps:$4 sm:$0xff]   ;;  %v23097_v22 = vld [vmem:[%s25052_s23 + $0xeac] ss:$24 sps:$4 sm:$0xff]   ;;  %v23092_v23 = vld [vmem:[%s25052_s23 + $0xbd0] ss:$24 sps:$4 sm:$0xff]  }
0x1e83   : > { %v23089_v43 = vld [vmem:[%s25052_s23 + $0xe78] ss:$24 sps:$4 sm:$0xff]   ;;  %v23095_v3 = vld [vmem:[%s25052_s23 + $0xea8] ss:$24 sps:$4 sm:$0xff]  }
0x1e84   : > { %11828 = vmatprep.mubr.bf16.mxu0 %v26618_v25  ;;  %v23098_v48 = vld [vmem:[%s25052_s23 + $0xc00] ss:$24 sps:$4 sm:$0xff]  }
0x1e85   : > { %11629 = vmatpush1.bf16.msra.mxu1 %v23014_v32  ;;  %11799 = vmatpush1.bf16.msra.mxu0 %v23017_v39  ;;  %v23100_v32 = vld [vmem:[%s25052_s23 + $0xc04] ss:$24 sps:$4 sm:$0xff]  }
0x1e86   : > { %11630 = vmatprep.subr.bf16.mxu1 %v23022_v21  ;;  %11800 = vmatprep.subr.bf16.mxu0 %v23025_v13  ;;  %v23103_v39 = vld [vmem:[%s25052_s23 + $0xedc] ss:$24 sps:$4 sm:$0xff]   ;;  %v23101_v21 = vld [vmem:[%s25052_s23 + $0xed8] ss:$24 sps:$4 sm:$0xff]  }
0x1e87   : > { %v23106_v13 = vld [vmem:[%s25052_s23 + $0xc34] ss:$24 sps:$4 sm:$0xff]  }
0x1e89   : > { %11631 = vmatpush1.bf16.msra.mxu1 %v23020_v47  ;;  %11801 = vmatpush1.bf16.msra.mxu0 %v23023_v51  ;;  %v9825_v47 = vld [vmem:[#allocation4 + $0x10] sm:$0xff] }
0x1e8a   : > { %11632 = vmatprep.subr.bf16.mxu1 %v23028_v9  ;;  %11802 = vmatprep.subr.bf16.mxu0 %v23031_v55  ;;  %v23104_v51 = vld [vmem:[%s25052_s23 + $0xc30] ss:$24 sps:$4 sm:$0xff]   ;;  %v9831_v9 = vld [vmem:[#allocation4 + $0x40] sm:$0xff] }
0x1e8b   : > { %v23109_v55 = vld [vmem:[%s25052_s23 + $0xc64] ss:$24 sps:$4 sm:$0xff]  }
0x1e8d   : > { %11633 = vmatpush1.bf16.msra.mxu1 %v23026_v56  ;;  %11803 = vmatpush1.bf16.msra.mxu0 %v23029_v57  ;;  %v26682_v56 = vpack.c.bf16 %v9831_v9, %v9825_v47  ;;  %v23107_v57 = vld [vmem:[%s25052_s23 + $0xc60] ss:$24 sps:$4 sm:$0xff]   ;;  %v23214_v47 = vld [vmem:[%s25052_s23 + $0x10ec] ss:$24 sps:$4 sm:$0xff]  }
0x1e8e   : > { %11634 = vmatprep.subr.bf16.mxu1 %v23034_v59  ;;  %11804 = vmatprep.subr.bf16.mxu0 %v23037_v36  ;;  %v23112_v59 = vld [vmem:[%s25052_s23 + $0xc94] ss:$24 sps:$4 sm:$0xff]   ;;  %v23110_v36 = vld [vmem:[%s25052_s23 + $0xc90] ss:$24 sps:$4 sm:$0xff]  }
0x1e8f   : > { %v23212_v9 = vld [vmem:[%s25052_s23 + $0x10e8] ss:$24 sps:$4 sm:$0xff]  }
0x1e91   : > { %11635 = vmatpush1.bf16.msra.mxu1 %v23032_v45  ;;  %11805 = vmatpush1.bf16.msra.mxu0 %v23035_v53  ;;  %v23115_v45 = vld [vmem:[%s25052_s23 + $0xcc4] ss:$24 sps:$4 sm:$0xff]   ;;  %v23113_v53 = vld [vmem:[%s25052_s23 + $0xcc0] ss:$24 sps:$4 sm:$0xff]  }
0x1e92   : > { %11636 = vmatprep.subr.bf16.mxu1 %v23040_v34  ;;  %11806 = vmatprep.subr.bf16.mxu0 %v23043_v11  ;;  %v23118_v34 = vld [vmem:[%s25052_s23 + $0xcf4] ss:$24 sps:$4 sm:$0xff]   ;;  %v23116_v11 = vld [vmem:[%s25052_s23 + $0xcf0] ss:$24 sps:$4 sm:$0xff]  }
0x1e95   : > { %11637 = vmatpush1.bf16.msra.mxu1 %v23038_v61  ;;  %11807 = vmatpush1.bf16.msra.mxu0 %v23041_v41  ;;  %v23121_v61 = vld [vmem:[%s25052_s23 + $0xd24] ss:$24 sps:$4 sm:$0xff]   ;;  %v23119_v41 = vld [vmem:[%s25052_s23 + $0xd20] ss:$24 sps:$4 sm:$0xff]  }
0x1e96   : > { %11638 = vmatprep.subr.bf16.mxu1 %v23046_v54  ;;  %11808 = vmatprep.subr.bf16.mxu0 %v23049_v6  ;;  %v23124_v54 = vld [vmem:[%s25052_s23 + $0xd54] ss:$24 sps:$4 sm:$0xff]   ;;  %v23122_v6 = vld [vmem:[%s25052_s23 + $0xd50] ss:$24 sps:$4 sm:$0xff]  }
0x1e99   : > { %11639 = vmatpush1.bf16.msra.mxu1 %v23044_v15  ;;  %11809 = vmatpush1.bf16.msra.mxu0 %v23047_v26  ;;  %v23152_v15 = vld [vmem:[%s25052_s23 + $0xf08] ss:$24 sps:$4 sm:$0xff]   ;;  %v23127_v26 = vld [vmem:[%s25052_s23 + $0xd84] ss:$24 sps:$4 sm:$0xff]  }
0x1e9a   : > { %11640 = vmatprep.subr.bf16.mxu1 %v23052_v42  ;;  %11810 = vmatprep.subr.bf16.mxu0 %v23055_v10  ;;  %v23154_v42 = vld [vmem:[%s25052_s23 + $0xf0c] ss:$24 sps:$4 sm:$0xff]   ;;  %v23160_v10 = vld [vmem:[%s25052_s23 + $0xf3c] ss:$24 sps:$4 sm:$0xff]  }
0x1e9d   : > { %11641 = vmatpush1.bf16.msra.mxu1 %v23050_v50  ;;  %11811 = vmatpush1.bf16.msra.mxu0 %v23053_v60  ;;  %v23125_v50 = vld [vmem:[%s25052_s23 + $0xd80] ss:$24 sps:$4 sm:$0xff]  }
0x1e9e   : > { %11642 = vmatprep.subr.bf16.mxu1 %v23058_v30  ;;  %11812 = vmatprep.subr.bf16.mxu0 %v23061_v14  ;;  %v23158_v60 = vld [vmem:[%s25052_s23 + $0xf38] ss:$24 sps:$4 sm:$0xff]   ;;  %v23130_v30 = vld [vmem:[%s25052_s23 + $0xdb4] ss:$24 sps:$4 sm:$0xff]  }
0x1e9f   : > { %v23166_v14 = vld [vmem:[%s25052_s23 + $0xf6c] ss:$24 sps:$4 sm:$0xff]  }
0x1ea1   : > { %11643 = vmatpush1.bf16.msra.mxu1 %v23056_v8  ;;  %11813 = vmatpush1.bf16.msra.mxu0 %v23059_v40  ;;  %v23128_v8 = vld [vmem:[%s25052_s23 + $0xdb0] ss:$24 sps:$4 sm:$0xff]  }
0x1ea2   : > { %11644 = vmatprep.subr.bf16.mxu1 %v23064_v28  ;;  %11814 = vmatprep.subr.bf16.mxu0 %v23067_v44  ;;  %v23164_v40 = vld [vmem:[%s25052_s23 + $0xf68] ss:$24 sps:$4 sm:$0xff]   ;;  %v23133_v28 = vld [vmem:[%s25052_s23 + $0xde4] ss:$24 sps:$4 sm:$0xff]  }
0x1ea3   : > { %v23172_v44 = vld [vmem:[%s25052_s23 + $0xf9c] ss:$24 sps:$4 sm:$0xff]  }
0x1ea5   : > { %11645 = vmatpush1.bf16.msra.mxu1 %v23062_v7  ;;  %11815 = vmatpush1.bf16.msra.mxu0 %v23065_v27  ;;  %v23131_v7 = vld [vmem:[%s25052_s23 + $0xde0] ss:$24 sps:$4 sm:$0xff]  }
0x1ea6   : > { %11646 = vmatprep.subr.bf16.mxu1 %v23070_v49  ;;  %11816 = vmatprep.subr.bf16.mxu0 %v23073_v17  ;;  %v23170_v27 = vld [vmem:[%s25052_s23 + $0xf98] ss:$24 sps:$4 sm:$0xff]   ;;  %v23136_v49 = vld [vmem:[%s25052_s23 + $0xe14] ss:$24 sps:$4 sm:$0xff]  }
0x1ea7   : > { %v23178_v17 = vld [vmem:[%s25052_s23 + $0xfcc] ss:$24 sps:$4 sm:$0xff]  }
0x1ea9   : > { %11647 = vmatpush1.bf16.msra.mxu1 %v23068_v29  ;;  %11817 = vmatpush1.bf16.msra.mxu0 %v23071_v4  ;;  %v23134_v29 = vld [vmem:[%s25052_s23 + $0xe10] ss:$24 sps:$4 sm:$0xff]  }
0x1eaa   : > { %11648 = vmatprep.subr.bf16.mxu1 %v23076_v16  ;;  %11818 = vmatprep.subr.bf16.mxu0 %v23079_v35  ;;  %v23176_v4 = vld [vmem:[%s25052_s23 + $0xfc8] ss:$24 sps:$4 sm:$0xff]   ;;  %v23139_v16 = vld [vmem:[%s25052_s23 + $0xe44] ss:$24 sps:$4 sm:$0xff]  }
0x1eab   : > { %v23184_v35 = vld [vmem:[%s25052_s23 + $0xffc] ss:$24 sps:$4 sm:$0xff]  }
0x1ead   : > { %11649 = vmatpush1.bf16.msra.mxu1 %v23074_v62  ;;  %11819 = vmatpush1.bf16.msra.mxu0 %v23077_v5  ;;  %v23137_v62 = vld [vmem:[%s25052_s23 + $0xe40] ss:$24 sps:$4 sm:$0xff]  }
0x1eae   : > { %11650 = vmatprep.subr.bf16.mxu1 %v23082_v38  ;;  %11820 = vmatprep.subr.bf16.mxu0 %v23085_v18  ;;  %v23182_v5 = vld [vmem:[%s25052_s23 + $0xff8] ss:$24 sps:$4 sm:$0xff]   ;;  %v23142_v38 = vld [vmem:[%s25052_s23 + $0xe74] ss:$24 sps:$4 sm:$0xff]  }
0x1eaf   : > { %v23190_v18 = vld [vmem:[%s25052_s23 + $0x102c] ss:$24 sps:$4 sm:$0xff]  }
0x1eb1   : > { %11651 = vmatpush1.bf16.msra.mxu1 %v23080_v19  ;;  %11821 = vmatpush1.bf16.msra.mxu0 %v23083_v63  ;;  %v23140_v19 = vld [vmem:[%s25052_s23 + $0xe70] ss:$24 sps:$4 sm:$0xff]  }
0x1eb2   : > { %11652 = vmatprep.subr.bf16.mxu1 %v23088_v31  ;;  %11822 = vmatprep.subr.bf16.mxu0 %v23091_v33  ;;  %v23188_v63 = vld [vmem:[%s25052_s23 + $0x1028] ss:$24 sps:$4 sm:$0xff]   ;;  %v23145_v31 = vld [vmem:[%s25052_s23 + $0xea4] ss:$24 sps:$4 sm:$0xff]  }
0x1eb3   : > { %v23196_v33 = vld [vmem:[%s25052_s23 + $0x105c] ss:$24 sps:$4 sm:$0xff]  }
0x1eb5   : > { %11653 = vmatpush1.bf16.msra.mxu1 %v23086_v52  ;;  %11823 = vmatpush1.bf16.msra.mxu0 %v23089_v43  ;;  %v23143_v52 = vld [vmem:[%s25052_s23 + $0xea0] ss:$24 sps:$4 sm:$0xff]  }
0x1eb6   : > { %11654 = vmatprep.subr.bf16.mxu1 %v23094_v20  ;;  %11824 = vmatprep.subr.bf16.mxu0 %v23097_v22  ;;  %v23194_v43 = vld [vmem:[%s25052_s23 + $0x1058] ss:$24 sps:$4 sm:$0xff]   ;;  %v23148_v20 = vld [vmem:[%s25052_s23 + $0xed4] ss:$24 sps:$4 sm:$0xff]  }
0x1eb7   : > { %v23202_v22 = vld [vmem:[%s25052_s23 + $0x108c] ss:$24 sps:$4 sm:$0xff]  }
0x1eb9   : > { %11655 = vmatpush1.bf16.msra.mxu1 %v23092_v23  ;;  %11825 = vmatpush1.bf16.msra.mxu0 %v23095_v3  ;;  %v23146_v23 = vld [vmem:[%s25052_s23 + $0xed0] ss:$24 sps:$4 sm:$0xff]  }
0x1eba   : > { %11667 = vmatprep.subr.bf16.mxu1 %v23100_v32  ;;  %11826 = vmatprep.subr.bf16.mxu0 %v23103_v39  ;;  %v23200_v3 = vld [vmem:[%s25052_s23 + $0x1088] ss:$24 sps:$4 sm:$0xff]   ;;  %v23151_v32 = vld [vmem:[%s25052_s23 + $0xf04] ss:$24 sps:$4 sm:$0xff]  }
0x1ebb   : > { %v23208_v39 = vld [vmem:[%s25052_s23 + $0x10bc] ss:$24 sps:$4 sm:$0xff]  }
0x1ebc   : > { %11657 = vmatmul.mubr.bf16.vlgmr.msra.gmra.mrb[52].mxu1 %v26611_v58 }
0x1ebd   : > { %11668 = vmatpush1.bf16.msra.mxu1 %v23098_v48  ;;  %11699 = vmatprep.mubr.bf16.mxu1 %v26618_v25  ;;  %v23149_v48 = vld [vmem:[%s25052_s23 + $0xf00] ss:$24 sps:$4 sm:$0xff]  }
0x1ebe   : > { %11827 = vmatpush1.bf16.msra.mxu0 %v23101_v21  ;;  %11669 = vmatprep.subr.bf16.mxu1 %v23106_v13  ;;  %v23206_v21 = vld [vmem:[%s25052_s23 + $0x10b8] ss:$24 sps:$4 sm:$0xff]   ;;  %v23157_v13 = vld [vmem:[%s25052_s23 + $0xf34] ss:$24 sps:$4 sm:$0xff]  }
0x1ebf   : > { %11839 = vmatprep.subr.bf16.mxu0 %v23154_v42  ;;  %v23199_v42 = vld [vmem:[%s25052_s23 + $0x1084] ss:$24 sps:$4 sm:$0xff]  }
0x1ec1   : > { %11829 = vmatmul.mubr.bf16.vlgmr.msra.gmra.mrb[16].mxu0 %v26682_v56  ;;  %11670 = vmatpush1.bf16.msra.mxu1 %v23104_v51  ;;  %v23155_v51 = vld [vmem:[%s25052_s23 + $0xf30] ss:$24 sps:$4 sm:$0xff]  }
0x1ec2   : > { %11671 = vmatprep.subr.bf16.mxu1 %v23109_v55  ;;  %11840 = vmatpush1.bf16.msra.mxu0 %v23152_v15  ;;  %v23163_v55 = vld [vmem:[%s25052_s23 + $0xf64] ss:$24 sps:$4 sm:$0xff]   ;;  %v23193_v15 = vld [vmem:[%s25052_s23 + $0x1054] ss:$24 sps:$4 sm:$0xff]  }
0x1ec3   : > { %11841 = vmatprep.subr.bf16.mxu0 %v23160_v10  ;;  %v23197_v10 = vld [vmem:[%s25052_s23 + $0x1080] ss:$24 sps:$4 sm:$0xff]  }
0x1ec5   : > { %11672 = vmatpush1.bf16.msra.mxu1 %v23107_v57  ;;  %v23220_v57 = vld [vmem:[%s25052_s23 + $0x111c] ss:$24 sps:$4 sm:$0xff]  }
0x1ec6   : > { %11673 = vmatprep.subr.bf16.mxu1 %v23112_v59  ;;  %11842 = vmatpush1.bf16.msra.mxu0 %v23158_v60  ;;  %v23161_v59 = vld [vmem:[%s25052_s23 + $0xf60] ss:$24 sps:$4 sm:$0xff]   ;;  %v23203_v60 = vld [vmem:[%s25052_s23 + $0x10b0] ss:$24 sps:$4 sm:$0xff]  }
0x1ec7   : > { %11843 = vmatprep.subr.bf16.mxu0 %v23166_v14  ;;  %v23209_v14 = vld [vmem:[%s25052_s23 + $0x10e0] ss:$24 sps:$4 sm:$0xff]  }
0x1ec9   : > { %11674 = vmatpush1.bf16.msra.mxu1 %v23110_v36  ;;  %v23218_v36 = vld [vmem:[%s25052_s23 + $0x1118] ss:$24 sps:$4 sm:$0xff]  }
0x1eca   : > { %11675 = vmatprep.subr.bf16.mxu1 %v23115_v45  ;;  %11844 = vmatpush1.bf16.msra.mxu0 %v23164_v40  ;;  %v23169_v45 = vld [vmem:[%s25052_s23 + $0xf94] ss:$24 sps:$4 sm:$0xff]   ;;  %v23215_v40 = vld [vmem:[%s25052_s23 + $0x1110] ss:$24 sps:$4 sm:$0xff]  }
0x1ecb   : > { %11845 = vmatprep.subr.bf16.mxu0 %v23172_v44  ;;  %v23221_v44 = vld [vmem:[%s25052_s23 + $0x1140] ss:$24 sps:$4 sm:$0xff]  }
0x1ecd   : > { %11676 = vmatpush1.bf16.msra.mxu1 %v23113_v53  ;;  %v23167_v53 = vld [vmem:[%s25052_s23 + $0xf90] ss:$24 sps:$4 sm:$0xff]  }
0x1ece   : > { %11677 = vmatprep.subr.bf16.mxu1 %v23118_v34  ;;  %11846 = vmatpush1.bf16.msra.mxu0 %v23170_v27  ;;  %v23175_v34 = vld [vmem:[%s25052_s23 + $0xfc4] ss:$24 sps:$4 sm:$0xff]   ;;  %v23224_v27 = vld [vmem:[%s25052_s23 + $0x1148] ss:$24 sps:$4 sm:$0xff]  }
0x1ecf   : > { %11847 = vmatprep.subr.bf16.mxu0 %v23178_v17  ;;  %v23229_v17 = vld [vmem:[%s25052_s23 + $0x1174] ss:$24 sps:$4 sm:$0xff]  }
0x1ed1   : > { %11678 = vmatpush1.bf16.msra.mxu1 %v23116_v11  ;;  %v23173_v11 = vld [vmem:[%s25052_s23 + $0xfc0] ss:$24 sps:$4 sm:$0xff]  }
0x1ed2   : > { %11679 = vmatprep.subr.bf16.mxu1 %v23121_v61  ;;  %11848 = vmatpush1.bf16.msra.mxu0 %v23176_v4  ;;  %v23181_v61 = vld [vmem:[%s25052_s23 + $0xff4] ss:$24 sps:$4 sm:$0xff]   ;;  %v23230_v4 = vld [vmem:[%s25052_s23 + $0x1178] ss:$24 sps:$4 sm:$0xff]  }
0x1ed3   : > { %11849 = vmatprep.subr.bf16.mxu0 %v23184_v35  ;;  %v23235_v35 = vld [vmem:[%s25052_s23 + $0x11a4] ss:$24 sps:$4 sm:$0xff]  }
0x1ed5   : > { %11680 = vmatpush1.bf16.msra.mxu1 %v23119_v41  ;;  %v23179_v41 = vld [vmem:[%s25052_s23 + $0xff0] ss:$24 sps:$4 sm:$0xff]  }
0x1ed6   : > { %11681 = vmatprep.subr.bf16.mxu1 %v23124_v54  ;;  %11850 = vmatpush1.bf16.msra.mxu0 %v23182_v5  ;;  %v23187_v54 = vld [vmem:[%s25052_s23 + $0x1024] ss:$24 sps:$4 sm:$0xff]  }
0x1ed7   : > { %11851 = vmatprep.subr.bf16.mxu0 %v23190_v18  ;;  %v23238_v5 = vld [vmem:[%s25052_s23 + $0x11ac] ss:$24 sps:$4 sm:$0xff]   ;;  %v23239_v18 = vld [vmem:[%s25052_s23 + $0x11d0] ss:$24 sps:$4 sm:$0xff]  }
0x1ed9   : > { %11682 = vmatpush1.bf16.msra.mxu1 %v23122_v6  ;;  %v23185_v6 = vld [vmem:[%s25052_s23 + $0x1020] ss:$24 sps:$4 sm:$0xff]  }
0x1eda   : > { %11683 = vmatprep.subr.bf16.mxu1 %v23127_v26  ;;  %11852 = vmatpush1.bf16.msra.mxu0 %v23188_v63  ;;  %v23191_v26 = vld [vmem:[%s25052_s23 + $0x1050] ss:$24 sps:$4 sm:$0xff]   ;;  %v23244_v63 = vld [vmem:[%s25052_s23 + $0x11dc] ss:$24 sps:$4 sm:$0xff]  }
0x1edb   : > { %11853 = vmatprep.subr.bf16.mxu0 %v23196_v33  ;;  %v23247_v33 = vld [vmem:[%s25052_s23 + $0x914] ss:$24 sps:$4 sm:$0xff]  }
0x1edd   : > { %11684 = vmatpush1.bf16.msra.mxu1 %v23125_v50  ;;  %v23205_v50 = vld [vmem:[%s25052_s23 + $0x10b4] ss:$24 sps:$4 sm:$0xff]  }
0x1ede   : > { %11685 = vmatprep.subr.bf16.mxu1 %v23130_v30  ;;  %11854 = vmatpush1.bf16.msra.mxu0 %v23194_v43  ;;  %v23211_v30 = vld [vmem:[%s25052_s23 + $0x10e4] ss:$24 sps:$4 sm:$0xff]  }
0x1edf   : > { %11855 = vmatprep.subr.bf16.mxu0 %v23202_v22 }
0x1ee1   : > { %11686 = vmatpush1.bf16.msra.mxu1 %v23128_v8  ;;  %v23217_v8 = vld [vmem:[%s25052_s23 + $0x1114] ss:$24 sps:$4 sm:$0xff]  }
0x1ee2   : > { %11687 = vmatprep.subr.bf16.mxu1 %v23133_v28  ;;  %11856 = vmatpush1.bf16.msra.mxu0 %v23200_v3  ;;  %v23223_v28 = vld [vmem:[%s25052_s23 + $0x1144] ss:$24 sps:$4 sm:$0xff]  }
0x1ee3   : > { %11857 = vmatprep.subr.bf16.mxu0 %v23208_v39  ;;  %v23245_v39 = vld [vmem:[%s25052_s23 + $0x910] ss:$24 sps:$4 sm:$0xff]  }
0x1ee5   : > { %11688 = vmatpush1.bf16.msra.mxu1 %v23131_v7  ;;  %v23226_v7 = vld [vmem:[%s25052_s23 + $0x114c] ss:$24 sps:$4 sm:$0xff]  }
0x1ee6   : > { %11689 = vmatprep.subr.bf16.mxu1 %v23136_v49  ;;  %11858 = vmatpush1.bf16.msra.mxu0 %v23206_v21  ;;  %v23227_v49 = vld [vmem:[%s25052_s23 + $0x1170] ss:$24 sps:$4 sm:$0xff]  }
0x1ee7   : > { %11859 = vmatprep.subr.bf16.mxu0 %v23214_v47  ;;  %v23248_v47 = vld [vmem:[%s25052_s23 + $0x940] ss:$24 sps:$4 sm:$0xff]  }
0x1ee9   : > { %11690 = vmatpush1.bf16.msra.mxu1 %v23134_v29  ;;  %v23232_v29 = vld [vmem:[%s25052_s23 + $0x117c] ss:$24 sps:$4 sm:$0xff]  }
0x1eea   : > { %11691 = vmatprep.subr.bf16.mxu1 %v23139_v16  ;;  %11860 = vmatpush1.bf16.msra.mxu0 %v23212_v9  ;;  %v23233_v16 = vld [vmem:[%s25052_s23 + $0x11a0] ss:$24 sps:$4 sm:$0xff]   ;;  %v23251_v9 = vld [vmem:[%s25052_s23 + $0x970] ss:$24 sps:$4 sm:$0xff]  }
0x1eeb   : > { %11861 = vmatprep.subr.bf16.mxu0 %v23220_v57  ;;  %v23254_v57 = vld [vmem:[%s25052_s23 + $0x9a0] ss:$24 sps:$4 sm:$0xff]  }
0x1eed   : > { %11692 = vmatpush1.bf16.msra.mxu1 %v23137_v62  ;;  %v23236_v62 = vld [vmem:[%s25052_s23 + $0x11a8] ss:$24 sps:$4 sm:$0xff]  }
0x1eee   : > { %11693 = vmatprep.subr.bf16.mxu1 %v23142_v38  ;;  %11862 = vmatpush1.bf16.msra.mxu0 %v23218_v36  ;;  %v23241_v38 = vld [vmem:[%s25052_s23 + $0x11d4] ss:$24 sps:$4 sm:$0xff]   ;;  %v23257_v36 = vld [vmem:[%s25052_s23 + $0x9d0] ss:$24 sps:$4 sm:$0xff]  }
0x1eef   : > { %11863 = vmatprep.subr.bf16.mxu0 %v23226_v7  ;;  %v23290_v7 = vld [vmem:[%s25052_s23 + $0xbe0] ss:$24 sps:$4 sm:$0xff]  }
0x1ef1   : > { %11694 = vmatpush1.bf16.msra.mxu1 %v23140_v19  ;;  %v23242_v19 = vld [vmem:[%s25052_s23 + $0x11d8] ss:$24 sps:$4 sm:$0xff]  }
0x1ef2   : > { %11695 = vmatprep.subr.bf16.mxu1 %v23145_v31  ;;  %11864 = vmatpush1.bf16.msra.mxu0 %v23224_v27  ;;  %v23295_v27 = vld [vmem:[%s25052_s23 + $0xc14] ss:$24 sps:$4 sm:$0xff]  }
0x1ef3   : > { %11865 = vmatprep.subr.bf16.mxu0 %v23232_v29  ;;  %v23296_v29 = vld [vmem:[%s25052_s23 + $0xc40] ss:$24 sps:$4 sm:$0xff]  }
0x1ef5   : > { %11696 = vmatpush1.bf16.msra.mxu1 %v23143_v52 }
0x1ef6   : > { %11697 = vmatprep.subr.bf16.mxu1 %v23148_v20  ;;  %11866 = vmatpush1.bf16.msra.mxu0 %v23230_v4  ;;  %v23301_v4 = vld [vmem:[%s25052_s23 + $0xc74] ss:$24 sps:$4 sm:$0xff]  }
0x1ef7   : > { %11867 = vmatprep.subr.bf16.mxu0 %v23238_v5  ;;  %v23305_v5 = vld [vmem:[%s25052_s23 + $0xcd0] ss:$24 sps:$4 sm:$0xff]  }
0x1ef9   : > { %11698 = vmatpush1.bf16.msra.mxu1 %v23146_v23 }
0x1efa   : > { %11710 = vmatprep.subr.bf16.mxu1 %v23151_v32  ;;  %11868 = vmatpush1.bf16.msra.mxu0 %v23236_v62  ;;  %v23302_v62 = vld [vmem:[%s25052_s23 + $0xca0] ss:$24 sps:$4 sm:$0xff]  }
0x1efb   : > { %11869 = vmatprep.subr.bf16.mxu0 %v23244_v63  ;;  %v23316_v63 = vld [vmem:[%s25052_s23 + $0xd64] ss:$24 sps:$4 sm:$0xff]  }
0x1efc   : > { %11700 = vmatmul.mubr.bf16.vlgmr.msra.gmra.mrb[52].mxu1 %v26682_v56 }
0x1efd   : > { %11711 = vmatpush1.bf16.msra.mxu1 %v23149_v48 }
0x1efe   : > { %11712 = vmatprep.subr.bf16.mxu1 %v23157_v13  ;;  %11870 = vmatpush1.bf16.msra.mxu0 %v23242_v19  ;;  %v23250_v13 = vld [vmem:[%s25052_s23 + $0x944] ss:$24 sps:$4 sm:$0xff]   ;;  %v23311_v19 = vld [vmem:[%s25052_s23 + $0xd30] ss:$24 sps:$4 sm:$0xff]  }
0x1f01   : > { %11713 = vmatpush1.bf16.msra.mxu1 %v23155_v51  ;;  %v23253_v51 = vld [vmem:[%s25052_s23 + $0x974] ss:$24 sps:$4 sm:$0xff]  }
0x1f02   : > { %11714 = vmatprep.subr.bf16.mxu1 %v23163_v55  ;;  %v23256_v55 = vld [vmem:[%s25052_s23 + $0x9a4] ss:$24 sps:$4 sm:$0xff]  }
0x1f05   : > { %11715 = vmatpush1.bf16.msra.mxu1 %v23161_v59  ;;  %v23259_v59 = vld [vmem:[%s25052_s23 + $0x9d4] ss:$24 sps:$4 sm:$0xff]  }
0x1f06   : > { %11716 = vmatprep.subr.bf16.mxu1 %v23169_v45  ;;  %v23260_v45 = vld [vmem:[%s25052_s23 + $0xa00] ss:$24 sps:$4 sm:$0xff]  }
0x1f09   : > { %11717 = vmatpush1.bf16.msra.mxu1 %v23167_v53  ;;  %v23265_v53 = vld [vmem:[%s25052_s23 + $0xa34] ss:$24 sps:$4 sm:$0xff]  }
0x1f0a   : > { %11718 = vmatprep.subr.bf16.mxu1 %v23175_v34  ;;  %v23263_v34 = vld [vmem:[%s25052_s23 + $0xa30] ss:$24 sps:$4 sm:$0xff]  }
0x1f0d   : > { %11719 = vmatpush1.bf16.msra.mxu1 %v23173_v11  ;;  %v23268_v11 = vld [vmem:[%s25052_s23 + $0xa64] ss:$24 sps:$4 sm:$0xff]  }
0x1f0e   : > { %11720 = vmatprep.subr.bf16.mxu1 %v23181_v61  ;;  %v23266_v61 = vld [vmem:[%s25052_s23 + $0xa60] ss:$24 sps:$4 sm:$0xff]  }
0x1f11   : > { %11721 = vmatpush1.bf16.msra.mxu1 %v23179_v41  ;;  %v23271_v41 = vld [vmem:[%s25052_s23 + $0xa94] ss:$24 sps:$4 sm:$0xff]  }
0x1f12   : > { %11722 = vmatprep.subr.bf16.mxu1 %v23187_v54  ;;  %v23269_v54 = vld [vmem:[%s25052_s23 + $0xa90] ss:$24 sps:$4 sm:$0xff]  }
0x1f15   : > { %11723 = vmatpush1.bf16.msra.mxu1 %v23185_v6  ;;  %v23274_v6 = vld [vmem:[%s25052_s23 + $0xac4] ss:$24 sps:$4 sm:$0xff]  }
0x1f16   : > { %11724 = vmatprep.subr.bf16.mxu1 %v23193_v15  ;;  %v23272_v15 = vld [vmem:[%s25052_s23 + $0xac0] ss:$24 sps:$4 sm:$0xff]  }
0x1f19   : > { %11725 = vmatpush1.bf16.msra.mxu1 %v23191_v26  ;;  %v23277_v26 = vld [vmem:[%s25052_s23 + $0xaf4] ss:$24 sps:$4 sm:$0xff]  }
0x1f1a   : > { %11726 = vmatprep.subr.bf16.mxu1 %v23199_v42  ;;  %v23275_v42 = vld [vmem:[%s25052_s23 + $0xaf0] ss:$24 sps:$4 sm:$0xff]  }
0x1f1d   : > { %11727 = vmatpush1.bf16.msra.mxu1 %v23197_v10  ;;  %v23280_v10 = vld [vmem:[%s25052_s23 + $0xb24] ss:$24 sps:$4 sm:$0xff]  }
0x1f1e   : > { %11728 = vmatprep.subr.bf16.mxu1 %v23205_v50  ;;  %v23278_v50 = vld [vmem:[%s25052_s23 + $0xb20] ss:$24 sps:$4 sm:$0xff]  }
0x1f21   : > { %11729 = vmatpush1.bf16.msra.mxu1 %v23203_v60  ;;  %v23283_v60 = vld [vmem:[%s25052_s23 + $0xb54] ss:$24 sps:$4 sm:$0xff]  }
0x1f22   : > { %11730 = vmatprep.subr.bf16.mxu1 %v23211_v30  ;;  %v23281_v30 = vld [vmem:[%s25052_s23 + $0xb50] ss:$24 sps:$4 sm:$0xff]  }
0x1f25   : > { %11731 = vmatpush1.bf16.msra.mxu1 %v23209_v14  ;;  %v23286_v14 = vld [vmem:[%s25052_s23 + $0xb84] ss:$24 sps:$4 sm:$0xff]  }
0x1f26   : > { %11732 = vmatprep.subr.bf16.mxu1 %v23217_v8  ;;  %v23284_v8 = vld [vmem:[%s25052_s23 + $0xb80] ss:$24 sps:$4 sm:$0xff]  }
0x1f29   : > { %11733 = vmatpush1.bf16.msra.mxu1 %v23215_v40  ;;  %v23289_v40 = vld [vmem:[%s25052_s23 + $0xbb4] ss:$24 sps:$4 sm:$0xff]  }
0x1f2a   : > { %11734 = vmatprep.subr.bf16.mxu1 %v23223_v28  ;;  %v23287_v28 = vld [vmem:[%s25052_s23 + $0xbb0] ss:$24 sps:$4 sm:$0xff]  }
0x1f2d   : > { %11735 = vmatpush1.bf16.msra.mxu1 %v23221_v44  ;;  %v23292_v44 = vld [vmem:[%s25052_s23 + $0xbe4] ss:$24 sps:$4 sm:$0xff]  }
0x1f2e   : > { %11736 = vmatprep.subr.bf16.mxu1 %v23229_v17  ;;  %v23298_v17 = vld [vmem:[%s25052_s23 + $0xc44] ss:$24 sps:$4 sm:$0xff]  }
0x1f31   : > { %11737 = vmatpush1.bf16.msra.mxu1 %v23227_v49  ;;  %v23293_v49 = vld [vmem:[%s25052_s23 + $0xc10] ss:$24 sps:$4 sm:$0xff]  }
0x1f32   : > { %11738 = vmatprep.subr.bf16.mxu1 %v23235_v35  ;;  %v23304_v35 = vld [vmem:[%s25052_s23 + $0xca4] ss:$24 sps:$4 sm:$0xff]  }
0x1f35   : > { %11739 = vmatpush1.bf16.msra.mxu1 %v23233_v16  ;;  %v23299_v16 = vld [vmem:[%s25052_s23 + $0xc70] ss:$24 sps:$4 sm:$0xff]  }
0x1f36   : > { %11740 = vmatprep.subr.bf16.mxu1 %v23241_v38  ;;  %v23308_v38 = vld [vmem:[%s25052_s23 + $0xd00] ss:$24 sps:$4 sm:$0xff]  }
0x1f39   : > { %11741 = vmatpush1.bf16.msra.mxu1 %v23239_v18  ;;  %v23313_v18 = vld [vmem:[%s25052_s23 + $0xd34] ss:$24 sps:$4 sm:$0xff]  }
0x1f3a   : > { %11882 = vmatprep.subr.bf16.mxu1 %v23247_v33  ;;  %v23319_v33 = vld [vmem:[%s25052_s23 + $0xd94] ss:$24 sps:$4 sm:$0xff]  }
0x1f4f   : > { %v21158_v31 = vpop.f32.mrb[48].mxu1 }
0x1f50   : > { %9817 = vrot.lane.b32.xlu1 %v21158_v31, %s24779_s21  ;;  %v9804_v52 = vpop.f32.mrb[49].mxu1  ;;  %v23314_v31 = vld [vmem:[%s25052_s23 + $0xd60] ss:$24 sps:$4 sm:$0xff]  }
0x1f51   : > { %9815 = vrot.lane.b32.xlu0 %v9804_v52, %s24779_s21  ;;  %v23317_v52 = vld [vmem:[%s25052_s23 + $0xd90] ss:$24 sps:$4 sm:$0xff]  }
0x1f54   : > { %9389 = vrot.lane.b32.xlu1 %v26515_v24, %s24779_s21 }
0x1f55   : > { %9387 = vrot.lane.b32.xlu0 %v26517_v46, %s24779_s21 }
0x1fc2   : > { %v9818_v43 = vpop.permute.xlu1 %9817 }
0x1fc3   : > { %9822 = vst.msk [vmem:[#allocation4 + $0x58] sm:$0xff] %vm7680_vm3, %v9818_v43  ;;  %v9816_v20 = vpop.permute.xlu0 %9815  ;;  %v23322_v43 = vld [vmem:[%s25052_s23 + $0xdc4] ss:$24 sps:$4 sm:$0xff]  }
0x1fc4   : > { %9821 = vst.msk [vmem:[#allocation4 + $0x28] sm:$0xff] %vm7680_vm3, %v9816_v20  ;;  %v23320_v20 = vld [vmem:[%s25052_s23 + $0xdc0] ss:$24 sps:$4 sm:$0xff]  }
0x1fc6   : > { %v9390_v22 = vpop.permute.xlu1 %9389 }
0x1fc7   : > { %9394 = vst.msk [vmem:[#allocation4 + $0x50] sm:$0xff] %vm7680_vm3, %v9390_v22  ;;  %v9388_v23 = vpop.permute.xlu0 %9387  ;;  %v23325_v22 = vld [vmem:[%s25052_s23 + $0xdf4] ss:$24 sps:$4 sm:$0xff]  }
0x1fc8   : > { %9393 = vst.msk [vmem:[#allocation4 + $0x20] sm:$0xff] %vm7680_vm3, %v9388_v23  ;;  %v23323_v23 = vld [vmem:[%s25052_s23 + $0xdf0] ss:$24 sps:$4 sm:$0xff]  }
0x1fca   : > { %v9834_v3 = vld [vmem:[#allocation4 + $0x58] sm:$0xff] }
0x1fcb   : > { %v9828_v24 = vld [vmem:[#allocation4 + $0x28] sm:$0xff] }
0x1fcc   : > { %v26788_v32 = vpack.c.bf16 %v9834_v3, %v9828_v24  ;;  %v23328_v3 = vld [vmem:[%s25052_s23 + $0xe24] ss:$24 sps:$4 sm:$0xff]   ;;  %v23326_v24 = vld [vmem:[%s25052_s23 + $0xe20] ss:$24 sps:$4 sm:$0xff]  }
0x1fce   : > { %11742 = vmatprep.mubr.bf16.mxu1 %v26788_v32  ;;  %11871 = vmatprep.mubr.bf16.mxu0 %v26788_v32  ;;  %v9833_v46 = vld [vmem:[#allocation4 + $0x50] sm:$0xff] }
0x1fcf   : > { %v9827_v48 = vld [vmem:[#allocation4 + $0x20] sm:$0xff] }
0x1fd0   : > { %v26793_v21 = vpack.c.bf16 %v9833_v46, %v9827_v48  ;;  %v23331_v46 = vld [vmem:[%s25052_s23 + $0xe54] ss:$24 sps:$4 sm:$0xff]   ;;  %v23334_v48 = vld [vmem:[%s25052_s23 + $0xe84] ss:$24 sps:$4 sm:$0xff]  }
0x1fd2   : > { %11743 = vmatmul.mubr.bf16.vlgmr.msra.gmra.mrb[52].mxu1 %v26793_v21  ;;  %11872 = vmatmul.mubr.bf16.vlgmr.msra.gmra.mrb[16].mxu0 %v26793_v21 }
0x1fd3   : > { %11883 = vmatpush1.bf16.msra.mxu1 %v23245_v39  ;;  %11914 = vmatprep.mubr.bf16.mxu1 %v26577_v37  ;;  %v23262_v37 = vld [vmem:[%s25052_s23 + $0xa04] ss:$24 sps:$4 sm:$0xff]   ;;  %v23329_v39 = vld [vmem:[%s25052_s23 + $0xe50] ss:$24 sps:$4 sm:$0xff]  }
0x1fd4   : > { %11884 = vmatprep.subr.bf16.mxu1 %v23250_v13  ;;  %v23332_v13 = vld [vmem:[%s25052_s23 + $0xe80] ss:$24 sps:$4 sm:$0xff]  }
0x1fd7   : > { %11885 = vmatpush1.bf16.msra.mxu1 %v23248_v47  ;;  %v23337_v47 = vld [vmem:[%s25052_s23 + $0xeb4] ss:$24 sps:$4 sm:$0xff]  }
0x1fd8   : > { %11886 = vmatprep.subr.bf16.mxu1 %v23253_v51  ;;  %v23335_v51 = vld [vmem:[%s25052_s23 + $0xeb0] ss:$24 sps:$4 sm:$0xff]  }
0x1fdb   : > { %11887 = vmatpush1.bf16.msra.mxu1 %v23251_v9  ;;  %v23340_v9 = vld [vmem:[%s25052_s23 + $0xee4] ss:$24 sps:$4 sm:$0xff]  }
0x1fdc   : > { %11888 = vmatprep.subr.bf16.mxu1 %v23256_v55  ;;  %v23338_v55 = vld [vmem:[%s25052_s23 + $0xee0] ss:$24 sps:$4 sm:$0xff]  }
0x1fdf   : > { %11889 = vmatpush1.bf16.msra.mxu1 %v23254_v57  ;;  %v23343_v57 = vld [vmem:[%s25052_s23 + $0xf14] ss:$24 sps:$4 sm:$0xff]  }
0x1fe0   : > { %11890 = vmatprep.subr.bf16.mxu1 %v23259_v59  ;;  %v23341_v59 = vld [vmem:[%s25052_s23 + $0xf10] ss:$24 sps:$4 sm:$0xff]  }
0x1fe3   : > { %11891 = vmatpush1.bf16.msra.mxu1 %v23257_v36  ;;  %v23346_v36 = vld [vmem:[%s25052_s23 + $0xf44] ss:$24 sps:$4 sm:$0xff]  }
0x1fe4   : > { %11892 = vmatprep.subr.bf16.mxu1 %v23262_v37  ;;  %v23344_v37 = vld [vmem:[%s25052_s23 + $0xf40] ss:$24 sps:$4 sm:$0xff]  }
0x1fe7   : > { %11893 = vmatpush1.bf16.msra.mxu1 %v23260_v45  ;;  %v23349_v45 = vld [vmem:[%s25052_s23 + $0xf74] ss:$24 sps:$4 sm:$0xff]  }
0x1fe8   : > { %11894 = vmatprep.subr.bf16.mxu1 %v23265_v53  ;;  %v23347_v53 = vld [vmem:[%s25052_s23 + $0xf70] ss:$24 sps:$4 sm:$0xff]  }
0x1feb   : > { %11895 = vmatpush1.bf16.msra.mxu1 %v23263_v34  ;;  %v23352_v34 = vld [vmem:[%s25052_s23 + $0xfa4] ss:$24 sps:$4 sm:$0xff]  }
0x1fec   : > { %11896 = vmatprep.subr.bf16.mxu1 %v23268_v11  ;;  %v23350_v11 = vld [vmem:[%s25052_s23 + $0xfa0] ss:$24 sps:$4 sm:$0xff]  }
0x1fef   : > { %11897 = vmatpush1.bf16.msra.mxu1 %v23266_v61  ;;  %v23353_v61 = vld [vmem:[%s25052_s23 + $0xfd0] ss:$24 sps:$4 sm:$0xff]  }
0x1ff0   : > { %11898 = vmatprep.subr.bf16.mxu1 %v23271_v41  ;;  %v23356_v41 = vld [vmem:[%s25052_s23 + $0x1000] ss:$24 sps:$4 sm:$0xff]  }
0x1ff3   : > { %11899 = vmatpush1.bf16.msra.mxu1 %v23269_v54  ;;  %v23361_v54 = vld [vmem:[%s25052_s23 + $0x1034] ss:$24 sps:$4 sm:$0xff]  }
0x1ff4   : > { %11900 = vmatprep.subr.bf16.mxu1 %v23274_v6  ;;  %v23359_v6 = vld [vmem:[%s25052_s23 + $0x1030] ss:$24 sps:$4 sm:$0xff]  }
0x1ff7   : > { %11901 = vmatpush1.bf16.msra.mxu1 %v23272_v15  ;;  %v23364_v15 = vld [vmem:[%s25052_s23 + $0x1064] ss:$24 sps:$4 sm:$0xff]  }
0x1ff8   : > { %11902 = vmatprep.subr.bf16.mxu1 %v23277_v26  ;;  %v23362_v26 = vld [vmem:[%s25052_s23 + $0x1060] ss:$24 sps:$4 sm:$0xff]  }
0x1ffb   : > { %11903 = vmatpush1.bf16.msra.mxu1 %v23275_v42  ;;  %v23367_v42 = vld [vmem:[%s25052_s23 + $0x1094] ss:$24 sps:$4 sm:$0xff]  }
0x1ffc   : > { %11904 = vmatprep.subr.bf16.mxu1 %v23280_v10  ;;  %v23365_v10 = vld [vmem:[%s25052_s23 + $0x1090] ss:$24 sps:$4 sm:$0xff]  }
0x1fff   : > { %11905 = vmatpush1.bf16.msra.mxu1 %v23278_v50  ;;  %v23370_v50 = vld [vmem:[%s25052_s23 + $0x10c4] ss:$24 sps:$4 sm:$0xff]  }
0x2000   : > { %11906 = vmatprep.subr.bf16.mxu1 %v23283_v60  ;;  %v23368_v60 = vld [vmem:[%s25052_s23 + $0x10c0] ss:$24 sps:$4 sm:$0xff]  }
0x2003   : > { %11907 = vmatpush1.bf16.msra.mxu1 %v23281_v30  ;;  %v23373_v30 = vld [vmem:[%s25052_s23 + $0x10f4] ss:$24 sps:$4 sm:$0xff]  }
0x2004   : > { %11908 = vmatprep.subr.bf16.mxu1 %v23286_v14  ;;  %v23371_v14 = vld [vmem:[%s25052_s23 + $0x10f0] ss:$24 sps:$4 sm:$0xff]  }
0x2007   : > { %11909 = vmatpush1.bf16.msra.mxu1 %v23284_v8  ;;  %v23376_v8 = vld [vmem:[%s25052_s23 + $0x1124] ss:$24 sps:$4 sm:$0xff]  }
0x2008   : > { %11910 = vmatprep.subr.bf16.mxu1 %v23289_v40  ;;  %v23374_v40 = vld [vmem:[%s25052_s23 + $0x1120] ss:$24 sps:$4 sm:$0xff]  }
0x200b   : > { %11911 = vmatpush1.bf16.msra.mxu1 %v23287_v28  ;;  %v23379_v28 = vld [vmem:[%s25052_s23 + $0x1154] ss:$24 sps:$4 sm:$0xff]  }
0x200c   : > { %11912 = vmatprep.subr.bf16.mxu1 %v23292_v44  ;;  %v23377_v44 = vld [vmem:[%s25052_s23 + $0x1150] ss:$24 sps:$4 sm:$0xff]  }
0x200f   : > { %11913 = vmatpush1.bf16.msra.mxu1 %v23290_v7  ;;  %v23382_v7 = vld [vmem:[%s25052_s23 + $0x1184] ss:$24 sps:$4 sm:$0xff]  }
0x2010   : > { %11925 = vmatprep.subr.bf16.mxu1 %v23295_v27  ;;  %v23380_v27 = vld [vmem:[%s25052_s23 + $0x1180] ss:$24 sps:$4 sm:$0xff]  }
0x2012   : > { %11915 = vmatmul.mubr.bf16.vlgmr.msra.gmra.mrb[56].mxu1 %v26611_v58  ;;  %v23307_v58 = vld [vmem:[%s25052_s23 + $0xcd4] ss:$24 sps:$4 sm:$0xff]  }
0x2013   : > { %11926 = vmatpush1.bf16.msra.mxu1 %v23293_v49  ;;  %11957 = vmatprep.mubr.bf16.mxu1 %v26618_v25  ;;  %v23310_v25 = vld [vmem:[%s25052_s23 + $0xd04] ss:$24 sps:$4 sm:$0xff]   ;;  %v23385_v49 = vld [vmem:[%s25052_s23 + $0x11b4] ss:$24 sps:$4 sm:$0xff]  }
0x2014   : > { %11927 = vmatprep.subr.bf16.mxu1 %v23298_v17  ;;  %v23383_v17 = vld [vmem:[%s25052_s23 + $0x11b0] ss:$24 sps:$4 sm:$0xff]  }
0x2017   : > { %11928 = vmatpush1.bf16.msra.mxu1 %v23296_v29  ;;  %v23388_v29 = vld [vmem:[%s25052_s23 + $0x11e4] ss:$24 sps:$4 sm:$0xff]  }
0x2018   : > { %11929 = vmatprep.subr.bf16.mxu1 %v23301_v4  ;;  %v23386_v4 = vld [vmem:[%s25052_s23 + $0x11e0] ss:$24 sps:$4 sm:$0xff]  }
0x201b   : > { %11930 = vmatpush1.bf16.msra.mxu1 %v23299_v16 }
0x201c   : > { %11931 = vmatprep.subr.bf16.mxu1 %v23304_v35 }
0x201f   : > { %11932 = vmatpush1.bf16.msra.mxu1 %v23302_v62 }
0x2020   : > { %11933 = vmatprep.subr.bf16.mxu1 %v23307_v58 }
0x2023   : > { %11934 = vmatpush1.bf16.msra.mxu1 %v23305_v5 }
0x2024   : > { %11935 = vmatprep.subr.bf16.mxu1 %v23310_v25 }
0x2027   : > { %11936 = vmatpush1.bf16.msra.mxu1 %v23308_v38 }
0x2028   : > { %11937 = vmatprep.subr.bf16.mxu1 %v23313_v18 }
0x202b   : > { %11938 = vmatpush1.bf16.msra.mxu1 %v23311_v19  ;;  %v10132_v19 = vsub.s32 1, %v26165_v12 }
0x202c   : > { %11939 = vmatprep.subr.bf16.mxu1 %v23316_v63  ;;  %v10136_v63 = vsub.s32 5, %v26165_v12 }
0x202f   : > { %11940 = vmatpush1.bf16.msra.mxu1 %v23314_v31  ;;  %v10133_v31 = vrot.slane %v25077_v0, %v10132_v19 }
0x2030   : > { %11941 = vmatprep.subr.bf16.mxu1 %v23319_v33  ;;  %v10137_v33 = vrot.slane %v25077_v0, %v10136_v63 }
0x2033   : > { %11942 = vmatpush1.bf16.msra.mxu1 %v23317_v52  ;;  %v10163_v52 = vrot.slane %v10133_v31, %v10132_v19 }
0x2034   : > { %11943 = vmatprep.subr.bf16.mxu1 %v23322_v43  ;;  %v10167_v43 = vrot.slane %v10137_v33, %v10132_v19 }
0x2037   : > { %11944 = vmatpush1.bf16.msra.mxu1 %v23320_v20 }
0x2038   : > { %11945 = vmatprep.subr.bf16.mxu1 %v23325_v22 }
0x203b   : > { %11946 = vmatpush1.bf16.msra.mxu1 %v23323_v23  ;;  %v12011_v23 = vld [vmem:[#allocation2] sm:$0xff] }
0x203c   : > { %11947 = vmatprep.subr.bf16.mxu1 %v23328_v3  ;;  %v12012_v3 = vld [vmem:[#allocation2 + $0x8] sm:$0xff] }
0x203f   : > { %11948 = vmatpush1.bf16.msra.mxu1 %v23326_v24  ;;  %v10145_v24 = vrot.slane %v25079_v1, %v10136_v63 }
0x2040   : > { %11949 = vmatprep.subr.bf16.mxu1 %v23331_v46 }
0x2043   : > { %11950 = vmatpush1.bf16.msra.mxu1 %v23329_v39 }
0x2044   : > { %11951 = vmatprep.subr.bf16.mxu1 %v23334_v48 }
0x2047   : > { %11952 = vmatpush1.bf16.msra.mxu1 %v23332_v13  ;;  %v12017_v13 = vld [vmem:[#allocation2 + $0x30] sm:$0xff] }
0x2048   : > { %11953 = vmatprep.subr.bf16.mxu1 %v23337_v47  ;;  %v12018_v47 = vld [vmem:[#allocation2 + $0x38] sm:$0xff] }
0x204b   : > { %11954 = vmatpush1.bf16.msra.mxu1 %v23335_v51 }
0x204c   : > { %11955 = vmatprep.subr.bf16.mxu1 %v23340_v9 }
0x204f   : > { %11956 = vmatpush1.bf16.msra.mxu1 %v23338_v55  ;;  %v10175_v55 = vrot.slane %v10145_v24, %v10132_v19 }
0x2050   : > { %11968 = vmatprep.subr.bf16.mxu1 %v23343_v57 }
0x2052   : > { %11958 = vmatmul.mubr.bf16.vlgmr.msra.gmra.mrb[56].mxu1 %v26682_v56  ;;  %v23355_v56 = vld [vmem:[%s25052_s23 + $0xfd4] ss:$24 sps:$4 sm:$0xff]  }
0x2053   : > { %11969 = vmatpush1.bf16.msra.mxu1 %v23341_v59  ;;  %12000 = vmatprep.mubr.bf16.mxu1 %v26788_v32  ;;  %v23358_v32 = vld [vmem:[%s25052_s23 + $0x1004] ss:$24 sps:$4 sm:$0xff]  }
0x2054   : > { %11970 = vmatprep.subr.bf16.mxu1 %v23346_v36 }
0x2057   : > { %11971 = vmatpush1.bf16.msra.mxu1 %v23344_v37  ;;  %v10149_v37 = vrot.slane %v25081_v2, %v10132_v19 }
0x2058   : > { %11972 = vmatprep.subr.bf16.mxu1 %v23349_v45  ;;  %v12013_v45 = vld [vmem:[#allocation2 + $0x10] sm:$0xff] }
0x205b   : > { %11973 = vmatpush1.bf16.msra.mxu1 %v23347_v53  ;;  %v10153_v53 = vrot.slane %v25081_v2, %v10136_v63 }
0x205c   : > { %11974 = vmatprep.subr.bf16.mxu1 %v23352_v34 }
0x205f   : > { %11975 = vmatpush1.bf16.msra.mxu1 %v23350_v11 }
0x2060   : > { %11976 = vmatprep.subr.bf16.mxu1 %v23355_v56  ;;  %v12019_v56 = vld [vmem:[#allocation2 + $0x40] sm:$0xff] }
0x2063   : > { %11977 = vmatpush1.bf16.msra.mxu1 %v23353_v61 }
0x2064   : > { %11978 = vmatprep.subr.bf16.mxu1 %v23358_v32 }
0x2067   : > { %11979 = vmatpush1.bf16.msra.mxu1 %v23356_v41 }
0x2068   : > { %11980 = vmatprep.subr.bf16.mxu1 %v23361_v54  ;;  %v10179_v54 = vrot.slane %v10149_v37, %v10132_v19 }
0x206b   : > { %11981 = vmatpush1.bf16.msra.mxu1 %v23359_v6  ;;  %v12014_v6 = vld [vmem:[#allocation2 + $0x18] sm:$0xff] }
0x206c   : > { %11982 = vmatprep.subr.bf16.mxu1 %v23364_v15  ;;  %v10183_v15 = vrot.slane %v10153_v53, %v10132_v19 }
0x206f   : > { %11983 = vmatpush1.bf16.msra.mxu1 %v23362_v26 }
0x2070   : > { %11984 = vmatprep.subr.bf16.mxu1 %v23367_v42 }
0x2073   : > { %11985 = vmatpush1.bf16.msra.mxu1 %v23365_v10 }
0x2074   : > { %11986 = vmatprep.subr.bf16.mxu1 %v23370_v50  ;;  %v12020_v50 = vld [vmem:[#allocation2 + $0x48] sm:$0xff] }
0x2077   : > { %11987 = vmatpush1.bf16.msra.mxu1 %v23368_v60 }
0x2078   : > { %11988 = vmatprep.subr.bf16.mxu1 %v23373_v30  ;;  %v12015_v30 = vld [vmem:[#allocation2 + $0x20] sm:$0xff] }
0x207b   : > { %11989 = vmatpush1.bf16.msra.mxu1 %v23371_v14 }
0x207c   : > { %11990 = vmatprep.subr.bf16.mxu1 %v23376_v8 }
0x207f   : > { %11991 = vmatpush1.bf16.msra.mxu1 %v23374_v40 }
0x2080   : > { %11992 = vmatprep.subr.bf16.mxu1 %v23379_v28 }
0x2083   : > { %11993 = vmatpush1.bf16.msra.mxu1 %v23377_v44  ;;  %v12016_v44 = vld [vmem:[#allocation2 + $0x28] sm:$0xff] }
0x2084   : > { %11994 = vmatprep.subr.bf16.mxu1 %v23382_v7 }
0x2087   : > { %11995 = vmatpush1.bf16.msra.mxu1 %v23380_v27 }
0x2088   : > { %11996 = vmatprep.subr.bf16.mxu1 %v23385_v49  ;;  %v12021_v49 = vld [vmem:[#allocation2 + $0x50] sm:$0xff] }
0x208b   : > { %11997 = vmatpush1.bf16.msra.mxu1 %v23383_v17 }
0x208c   : > { %11998 = vmatprep.subr.bf16.mxu1 %v23388_v29 }
0x208f   : > { %11999 = vmatpush1.bf16.msra.mxu1 %v23386_v4 }
0x2092   : > { %12001 = vmatmul.mubr.bf16.vlgmr.msra.gmra.mrb[56].mxu1 %v26793_v21  ;;  %v10141_v21 = vrot.slane %v25079_v1, %v10132_v19 }
0x2094   : > { %v10171_v46 = vrot.slane %v10141_v21, %v10132_v19 }
0x20a5   : > { %v11744_v16 = vpop.f32.mrb[52].mxu1  ;;  %v11873_v35 = vpop.f32.mrb[16].mxu0 }
0x20a6   : > { %v11746_v62 = vpop.f32.mrb[53].mxu1  ;;  %v11875_v58 = vpop.f32.mrb[17].mxu0  ;;  %v21367_v20 = vadd.f32 %v11744_v16, %v10163_v52  ;;  %v21371_v57 = vadd.f32 %v11873_v35, %v10171_v46 }
0x20a7   : > { %v11748_v5 = vpop.f32.mrb[54].mxu1  ;;  %v11877_v25 = vpop.f32.mrb[18].mxu0  ;;  %v21368_v22 = vadd.f32 %v11746_v62, %v10167_v43  ;;  %v21372_v32 = vadd.f32 %v11875_v58, %v10175_v55  ;;  %v12022_v62 = vld [vmem:[#allocation2 + $0x58] sm:$0xff] }
0x20a8   : > { %v11750_v38 = vpop.f32.mrb[55].mxu1  ;;  %v11879_v18 = vpop.f32.mrb[19].mxu0  ;;  %v21369_v39 = vadd.f32 %v11748_v5, %v10163_v52  ;;  %v12023_v51 = vadd.f32 %v21367_v20, %v12011_v23  ;;  %v21373_v11 = vadd.f32 %v11877_v25, %v10171_v46  ;;  %v12025_v61 = vadd.f32 %v21371_v57, %v12013_v45 }
0x20a9   : > { %v21370_v48 = vadd.f32 %v11750_v38, %v10167_v43  ;;  %v12024_v9 = vadd.f32 %v21368_v22, %v12012_v3  ;;  %v21374_v10 = vadd.f32 %v11879_v18, %v10175_v55  ;;  %v12026_v14 = vadd.f32 %v21372_v32, %v12014_v6 }
0x20aa   : > { %v12029_v59 = vadd.f32 %v21369_v39, %v12017_v13  ;;  %v12031_v42 = vadd.f32 %v21373_v11, %v12019_v56 }
0x20ab   : > { %v12030_v36 = vadd.f32 %v21370_v48, %v12018_v47  ;;  %v12035_v34 = vadd.f32 %v12024_v9, %v12023_v51  ;;  %v12032_v29 = vadd.f32 %v21374_v10, %v12020_v50 }
0x20ad   : > { %v12042_v41 = vadd.f32 %v12030_v36, %v12029_v59  ;;  %v12036_v26 = vadd.f32 %v12035_v34, %v12025_v61 }
0x20af   : > { %v12043_v8 = vadd.f32 %v12042_v41, %v12031_v42  ;;  %v12037_v17 = vadd.f32 %v12036_v26, %v12026_v14 }
0x20b1   : > { %v12044_v25 = vadd.f32 %v12043_v8, %v12032_v29 }
0x2165   : > { %v12002_v60 = vpop.f32.mrb[56].mxu1 }
0x2166   : > { %v21375_v40 = vadd.f32 %v12002_v60, %v10179_v54  ;;  %v12004_v28 = vpop.f32.mrb[57].mxu1 }
0x2167   : > { %v21376_v7 = vadd.f32 %v12004_v28, %v10183_v15  ;;  %v12006_v27 = vpop.f32.mrb[58].mxu1 }
0x2168   : > { %v12027_v4 = vadd.f32 %v21375_v40, %v12015_v30  ;;  %v21377_v16 = vadd.f32 %v12006_v27, %v10179_v54  ;;  %v12008_v35 = vpop.f32.mrb[59].mxu1  ;;  %v12114_v27 = vsub.s32 6, %v26165_v12 }
0x2169   : > { %v12028_v58 = vadd.f32 %v21376_v7, %v12016_v44  ;;  %v21378_v5 = vadd.f32 %v12008_v35, %v10183_v15  ;;  %v12110_v7 = vsub.s32 2, %v26165_v12 }
0x216a   : > { %v12033_v38 = vadd.f32 %v21377_v16, %v12021_v49  ;;  %v12038_v18 = vadd.f32 %v12037_v17, %v12027_v4  ;;  %v12176_v17 = vsub.s32 3, %v26165_v12  ;;  %v12115_v35 = vrot.slane %v25077_v0, %v12114_v27 }
0x216b   : > { %v12034_v19 = vadd.f32 %v21378_v5, %v12022_v62  ;;  %v12111_v16 = vrot.slane %v25077_v0, %v12110_v7  ;;  %v12119_v62 = vrot.slane %v25079_v1, %v12110_v7  ;;  %v12127_v5 = vrot.slane %v25081_v2, %v12110_v7 }
0x216c   : > { %v12039_v63 = vadd.f32 %v12038_v18, %v12028_v58  ;;  %v12045_v31 = vadd.f32 %v12044_v25, %v12033_v38  ;;  %v12131_v25 = vrot.slane %v25081_v2, %v12114_v27 }
0x216e   : > { %12040 = vadd.xlane.f32.xlu0 %v12039_v63  ;;  %v12046_v33 = vadd.f32 %v12045_v31, %v12034_v19  ;;  %v12141_v63 = vrot.slane %v12111_v16, %v12110_v7  ;;  %v12145_v31 = vrot.slane %v12115_v35, %v12110_v7 }
0x2170   : > { %12047 = vadd.xlane.f32.xlu1 %v12046_v33  ;;  %v12193_v33 = vrot.slane %v25081_v2, %v12176_v17 }
0x21fb   : > { %v12041_v52 = vpop.xlane.xlu0 %12040 }
0x21fc   : > { %v12050_v43 = vmul.f32 0.0013020834, %v12041_v52 }
0x21fd   : > { %v12048_v21 = vpop.xlane.xlu1 %12047 }
0x21fe   : > { %v12051_v20 = vmul.f32 0.0013020834, %v12048_v21  ;;  %v26905_v22 = vsub.f32 %v12023_v51, %v12050_v43  ;;  %v26907_v23 = vsub.f32 %v12024_v9, %v12050_v43  ;;  %v26909_v3 = vsub.f32 %v12025_v61, %v12050_v43 }
0x21ff   : > { %v26911_v24 = vsub.f32 %v12026_v14, %v12050_v43  ;;  %v26921_v47 = vsub.f32 %v12027_v4, %v12050_v43 }
0x2200   : > { %v12064_v46 = vmul.f32 %v26905_v22, %v26905_v22  ;;  %v12065_v39 = vmul.f32 %v26907_v23, %v26907_v23  ;;  %v26917_v48 = vsub.f32 %v12029_v59, %v12051_v20  ;;  %v26919_v13 = vsub.f32 %v12030_v36, %v12051_v20 }
0x2201   : > { %v12066_v51 = vmul.f32 %v26909_v3, %v26909_v3  ;;  %v26925_v55 = vsub.f32 %v12031_v42, %v12051_v20  ;;  %v26927_v57 = vsub.f32 %v12032_v29, %v12051_v20  ;;  %v26933_v59 = vsub.f32 %v12028_v58, %v12050_v43 }
0x2202   : > { %v12076_v9 = vadd.f32 %v12065_v39, %v12064_v46  ;;  %v12070_v37 = vmul.f32 %v26917_v48, %v26917_v48  ;;  %v12071_v45 = vmul.f32 %v26919_v13, %v26919_v13  ;;  %v12067_v36 = vmul.f32 %v26911_v24, %v26911_v24 }
0x2203   : > { %v26937_v34 = vsub.f32 %v12033_v38, %v12051_v20  ;;  %v12072_v11 = vmul.f32 %v26925_v55, %v26925_v55  ;;  %v12068_v61 = vmul.f32 %v26921_v47, %v26921_v47  ;;  %v12073_v41 = vmul.f32 %v26927_v57, %v26927_v57 }
0x2204   : > { %v12077_v53 = vadd.f32 %v12076_v9, %v12066_v51  ;;  %v12083_v56 = vadd.f32 %v12071_v45, %v12070_v37  ;;  %v12069_v6 = vmul.f32 %v26933_v59, %v26933_v59  ;;  %v26947_v26 = vsub.f32 %v12034_v19, %v12051_v20 }
0x2205   : > { %v12074_v42 = vmul.f32 %v26937_v34, %v26937_v34  ;;  %v12180_v29 = vsub.s32 7, %v26165_v12  ;;  %v12123_v58 = vrot.slane %v25079_v1, %v12114_v27  ;;  %v12177_v38 = vrot.slane %v25077_v0, %v12176_v17 }
0x2206   : > { %v12078_v32 = vadd.f32 %v12077_v53, %v12067_v36  ;;  %v12084_v54 = vadd.f32 %v12083_v56, %v12072_v11  ;;  %v12075_v30 = vmul.f32 %v26947_v26, %v26947_v26  ;;  %v12185_v12 = vrot.slane %v25079_v1, %v12176_v17 }
0x2207   : > { %v12181_v18 = vrot.slane %v25077_v0, %v12180_v29  ;;  %v12189_v19 = vrot.slane %v25079_v1, %v12180_v29  ;;  %v12197_v52 = vrot.slane %v25081_v2, %v12180_v29  ;;  %v12149_v43 = vrot.slane %v12119_v62, %v12110_v7 }
0x2208   : > { %v12079_v15 = vadd.f32 %v12078_v32, %v12068_v61  ;;  %v12085_v10 = vadd.f32 %v12084_v54, %v12073_v41  ;;  %v12153_v21 = vrot.slane %v12123_v58, %v12110_v7  ;;  %v12157_v20 = vrot.slane %v12127_v5, %v12110_v7 }
0x2209   : > { %v12161_v46 = vrot.slane %v12131_v25, %v12110_v7  ;;  %v12207_v51 = vrot.slane %v12177_v38, %v12176_v17  ;;  %v12211_v9 = vrot.slane %v12181_v18, %v12176_v17  ;;  %v12215_v37 = vrot.slane %v12185_v12, %v12176_v17 }
0x220a   : > { %v12080_v50 = vadd.f32 %v12079_v15, %v12069_v6  ;;  %v12086_v60 = vadd.f32 %v12085_v10, %v12074_v42  ;;  %v12219_v45 = vrot.slane %v12189_v19, %v12176_v17  ;;  %v12223_v61 = vrot.slane %v12193_v33, %v12176_v17 }
0x220b   : > { %v12227_v32 = vrot.slane %v12197_v52, %v12176_v17 }
0x220c   : > { %12081 = vadd.xlane.f32.xlu0 %v12080_v50  ;;  %v12087_v14 = vadd.f32 %v12086_v60, %v12075_v30 }
0x2210   : > { %12088 = vadd.xlane.f32.xlu0 %v12087_v14 }
0x2299   : > { %v12082_v8 = vpop.xlane.xlu0 %12081 }
0x229a   : > { %v12090_v40 = vmul.f32 0.0013020834, %v12082_v8 }
0x229c   : > { %v12092_v28 = vadd.f32 1e-12, %v12090_v40 }
0x229d   : > { %v12089_v44 = vpop.xlane.xlu0 %12088 }
0x229e   : > { %23485 = vrsqrt.f32 %v12092_v28  ;;  %v12091_v49 = vmul.f32 0.0013020834, %v12089_v44 }
0x22a0   : > { %v12093_v4 = vadd.f32 1e-12, %v12091_v49 }
0x22a2   : > { %23487 = vrsqrt.f32 %v12093_v4 }
0x22a8   : > { %v23486_v39 = vpop.eup %23485 }
0x22a9   : > { %v12096_v36 = vmul.f32 %v23486_v39, %v26905_v22  ;;  %v12097_v53 = vmul.f32 %v23486_v39, %v26907_v23  ;;  %v12098_v11 = vmul.f32 %v23486_v39, %v26909_v3  ;;  %v12099_v56 = vmul.f32 %v23486_v39, %v26911_v24 }
0x22aa   : > { %v12100_v41 = vmul.f32 %v23486_v39, %v26921_v47  ;;  %v12101_v54 = vmul.f32 %v23486_v39, %v26933_v59 }
0x22ab   : > { %v12162_v6 = vmul.f32 %v12141_v63, %v12096_v36  ;;  %v12163_v15 = vmul.f32 %v12145_v31, %v12097_v53  ;;  %v12164_v42 = vmul.f32 %v12149_v43, %v12098_v11  ;;  %v12165_v10 = vmul.f32 %v12153_v21, %v12099_v56 }
0x22ac   : > { %v23488_v50 = vpop.eup %23487  ;;  %v12166_v60 = vmul.f32 %v12157_v20, %v12100_v41  ;;  %v12167_v30 = vmul.f32 %v12161_v46, %v12101_v54 }
0x22ad   : > { %v12228_v22 = vadd.f32 %v12207_v51, %v12162_v6  ;;  %v12229_v14 = vadd.f32 %v12211_v9, %v12163_v15  ;;  %v12230_v23 = vadd.f32 %v12215_v37, %v12164_v42  ;;  %v12231_v8 = vadd.f32 %v12219_v45, %v12165_v10 }
0x22ae   : > { %v12232_v3 = vadd.f32 %v12223_v61, %v12166_v60  ;;  %v12233_v40 = vadd.f32 %v12227_v32, %v12167_v30  ;;  %v12102_v24 = vmul.f32 %v23488_v50, %v26917_v48  ;;  %v12103_v28 = vmul.f32 %v23488_v50, %v26919_v13 }
0x22af   : > { %12240 = vst [vmem:[#allocation2] sm:$0xff] %v12228_v22  ;;  %12241 = vst [vmem:[#allocation2 + $0x8] sm:$0xff] %v12229_v14  ;;  %v12104_v47 = vmul.f32 %v23488_v50, %v26925_v55  ;;  %v12105_v59 = vmul.f32 %v23488_v50, %v26927_v57  ;;  %v12106_v44 = vmul.f32 %v23488_v50, %v26937_v34 }
0x22b0   : > { %12242 = vst [vmem:[#allocation2 + $0x10] sm:$0xff] %v12230_v23  ;;  %12243 = vst [vmem:[#allocation2 + $0x18] sm:$0xff] %v12231_v8  ;;  %v12107_v7 = vmul.f32 %v23488_v50, %v26947_v26  ;;  %v12168_v27 = vmul.f32 %v12141_v63, %v12102_v24  ;;  %v12169_v49 = vmul.f32 %v12145_v31, %v12103_v28 }
0x22b1   : > { %12244 = vst [vmem:[#allocation2 + $0x20] sm:$0xff] %v12232_v3  ;;  %12245 = vst [vmem:[#allocation2 + $0x28] sm:$0xff] %v12233_v40  ;;  %v12170_v17 = vmul.f32 %v12149_v43, %v12104_v47  ;;  %v12171_v48 = vmul.f32 %v12153_v21, %v12105_v59  ;;  %v12172_v29 = vmul.f32 %v12157_v20, %v12106_v44 }
0x22b2   : > { %v12173_v13 = vmul.f32 %v12161_v46, %v12107_v7  ;;  %v12234_v4 = vadd.f32 %v12207_v51, %v12168_v27  ;;  %v12235_v16 = vadd.f32 %v12211_v9, %v12169_v49 }
0x22b3   : > { %v12236_v35 = vadd.f32 %v12215_v37, %v12170_v17  ;;  %v12237_v62 = vadd.f32 %v12219_v45, %v12171_v48  ;;  %v12238_v58 = vadd.f32 %v12223_v61, %v12172_v29 }
0x22b4   : > { %v12239_v55 = vadd.f32 %v12227_v32, %v12173_v13  ;;  %12246 = vst [vmem:[#allocation2 + $0x30] sm:$0xff] %v12234_v4  ;;  %12247 = vst [vmem:[#allocation2 + $0x38] sm:$0xff] %v12235_v16 }
0x22b5   : > { %12248 = vst [vmem:[#allocation2 + $0x40] sm:$0xff] %v12236_v35  ;;  %12249 = vst [vmem:[#allocation2 + $0x48] sm:$0xff] %v12237_v62 }
0x22b6   : > { %12250 = vst [vmem:[#allocation2 + $0x50] sm:$0xff] %v12238_v58  ;;  %12251 = vst [vmem:[#allocation2 + $0x58] sm:$0xff] %v12239_v55 }
0x22b7 PF: > { %p19890_p10 = scmp.lt.s32.totalorder %s27847_s14, 2 }
0x22b8   : > { %p19891_p4 = scmp.ne.s32.totalorder (!%p19890_p10), %s27847_s14, 2 }
0x22b9   : > { %12255 = sbr.rel (%p19890_p10) target bundleno = 10286 (0x282e), region = 92 }
0x22c0   : > { %12259 = sbr.rel (%p19891_p4) target bundleno = 8903 (0x22c7), region = 96  ;;  %v24780_v57 = vmov (!%p19891_p4), 0.0  }
0x22c1   : > { %12260 = vst [vmem:[#allocation5] sm:$0xff] (!%p19891_p4), %v24780_v57  ;;  %12261 = vst [vmem:[#allocation5 + $0x8] sm:$0xff] (!%p19891_p4), %v24780_v57 }
0x22c2   : > { %12262 = vst [vmem:[#allocation5 + $0x10] sm:$0xff] (!%p19891_p4), %v24780_v57  ;;  %12263 = vst [vmem:[#allocation5 + $0x18] sm:$0xff] (!%p19891_p4), %v24780_v57 }
0x22c3   : > { %12264 = vst [vmem:[#allocation5 + $0x20] sm:$0xff] (!%p19891_p4), %v24780_v57  ;;  %12265 = vst [vmem:[#allocation5 + $0x28] sm:$0xff] (!%p19891_p4), %v24780_v57 }
0x22c4   : > { %12266 = vst [vmem:[#allocation5 + $0x30] sm:$0xff] (!%p19891_p4), %v24780_v57  ;;  %12267 = vst [vmem:[#allocation5 + $0x38] sm:$0xff] (!%p19891_p4), %v24780_v57 }
0x22c5   : > { %12268 = vst [vmem:[#allocation5 + $0x40] sm:$0xff] (!%p19891_p4), %v24780_v57  ;;  %12269 = vst [vmem:[#allocation5 + $0x48] sm:$0xff] (!%p19891_p4), %v24780_v57 }
0x22c6   : > { %12270 = vst [vmem:[#allocation5 + $0x50] sm:$0xff] (!%p19891_p4), %v24780_v57  ;;  %12271 = vst [vmem:[#allocation5 + $0x58] sm:$0xff] (!%p19891_p4), %v24780_v57 }
0x22c7 PF: > { %v23491_v34 = vld [vmem:[%s25052_s23 + $0x4] ss:$24 sps:$4 sm:$0xff]   ;;  %v23495_v5 = vld [vmem:[%s25052_s23] ss:$24 sps:$4 sm:$0xff]   ;;  %v23497_v38 = vld [vmem:[%s25052_s23 + $0x34] ss:$24 sps:$4 sm:$0xff]  }
0x22c8   : > { %v23493_v26 = vld [vmem:[%s25052_s23 + $0xc] ss:$24 sps:$4 sm:$0xff]   ;;  %14075 = vmatprep.subr.bf16.mxu0 %v23491_v34  ;;  %v23496_v25 = vld [vmem:[%s25052_s23 + $0x8] ss:$24 sps:$4 sm:$0xff]   ;;  %v23499_v18 = vld [vmem:[%s25052_s23 + $0x3c] ss:$24 sps:$4 sm:$0xff]  }
0x22c9   : > { %14204 = vmatprep.subr.bf16.mxu1 %v23493_v26  ;;  %14076 = vmatpush1.bf16.msra.mxu0 %v23495_v5  ;;  %v23501_v12 = vld [vmem:[%s25052_s23 + $0x30] ss:$24 sps:$4 sm:$0xff]   ;;  %v23503_v63 = vld [vmem:[%s25052_s23 + $0x64] ss:$24 sps:$4 sm:$0xff]   ;;  %v23507_v33 = vld [vmem:[%s25052_s23 + $0x60] ss:$24 sps:$4 sm:$0xff]  }
0x22ca   : > { %14205 = vmatpush1.bf16.msra.mxu1 %v23496_v25  ;;  %14077 = vmatprep.subr.bf16.mxu0 %v23497_v38  ;;  %v23502_v19 = vld [vmem:[%s25052_s23 + $0x38] ss:$24 sps:$4 sm:$0xff]   ;;  %v23505_v31 = vld [vmem:[%s25052_s23 + $0x6c] ss:$24 sps:$4 sm:$0xff]   ;;  %v23508_v52 = vld [vmem:[%s25052_s23 + $0x68] ss:$24 sps:$4 sm:$0xff]  }
0x22cb   : > { %14206 = vmatprep.subr.bf16.mxu1 %v23499_v18  ;;  %v23509_v43 = vld [vmem:[%s25052_s23 + $0x94] ss:$24 sps:$4 sm:$0xff]   ;;  %v23513_v20 = vld [vmem:[%s25052_s23 + $0x90] ss:$24 sps:$4 sm:$0xff]   ;;  %v23515_v39 = vld [vmem:[%s25052_s23 + $0xc4] ss:$24 sps:$4 sm:$0xff]  }
0x22cc   : > { %v23511_v21 = vld [vmem:[%s25052_s23 + $0x9c] ss:$24 sps:$4 sm:$0xff]   ;;  %v23514_v46 = vld [vmem:[%s25052_s23 + $0x98] ss:$24 sps:$4 sm:$0xff]   ;;  %v23517_v51 = vld [vmem:[%s25052_s23 + $0xcc] ss:$24 sps:$4 sm:$0xff]  }
0x22cd   : > { %14078 = vmatpush1.bf16.msra.mxu0 %v23501_v12  ;;  %v23519_v9 = vld [vmem:[%s25052_s23 + $0xc0] ss:$24 sps:$4 sm:$0xff]   ;;  %v23521_v45 = vld [vmem:[%s25052_s23 + $0xf4] ss:$24 sps:$4 sm:$0xff]   ;;  %v23525_v53 = vld [vmem:[%s25052_s23 + $0xf0] ss:$24 sps:$4 sm:$0xff]  }
0x22ce   : > { %14207 = vmatpush1.bf16.msra.mxu1 %v23502_v19  ;;  %14079 = vmatprep.subr.bf16.mxu0 %v23503_v63  ;;  %v23520_v37 = vld [vmem:[%s25052_s23 + $0xc8] ss:$24 sps:$4 sm:$0xff]   ;;  %v23523_v36 = vld [vmem:[%s25052_s23 + $0xfc] ss:$24 sps:$4 sm:$0xff]   ;;  %v23526_v11 = vld [vmem:[%s25052_s23 + $0xf8] ss:$24 sps:$4 sm:$0xff]  }
0x22cf   : > { %14208 = vmatprep.subr.bf16.mxu1 %v23505_v31  ;;  %v23527_v56 = vld [vmem:[%s25052_s23 + $0x124] ss:$24 sps:$4 sm:$0xff]   ;;  %v23531_v32 = vld [vmem:[%s25052_s23 + $0x120] ss:$24 sps:$4 sm:$0xff]   ;;  %v23533_v54 = vld [vmem:[%s25052_s23 + $0x154] ss:$24 sps:$4 sm:$0xff]  }
0x22d0   : > { %v23529_v61 = vld [vmem:[%s25052_s23 + $0x12c] ss:$24 sps:$4 sm:$0xff]   ;;  %v23532_v41 = vld [vmem:[%s25052_s23 + $0x128] ss:$24 sps:$4 sm:$0xff]   ;;  %v23535_v6 = vld [vmem:[%s25052_s23 + $0x15c] ss:$24 sps:$4 sm:$0xff]  }
0x22d1   : > { %14080 = vmatpush1.bf16.msra.mxu0 %v23507_v33  ;;  %v23537_v15 = vld [vmem:[%s25052_s23 + $0x150] ss:$24 sps:$4 sm:$0xff]   ;;  %v23539_v10 = vld [vmem:[%s25052_s23 + $0x184] ss:$24 sps:$4 sm:$0xff]   ;;  %v23543_v60 = vld [vmem:[%s25052_s23 + $0x180] ss:$24 sps:$4 sm:$0xff]  }
0x22d2   : > { %14209 = vmatpush1.bf16.msra.mxu1 %v23508_v52  ;;  %14081 = vmatprep.subr.bf16.mxu0 %v23509_v43  ;;  %v23538_v42 = vld [vmem:[%s25052_s23 + $0x158] ss:$24 sps:$4 sm:$0xff]   ;;  %v23541_v50 = vld [vmem:[%s25052_s23 + $0x18c] ss:$24 sps:$4 sm:$0xff]   ;;  %v23544_v30 = vld [vmem:[%s25052_s23 + $0x188] ss:$24 sps:$4 sm:$0xff]  }
0x22d3   : > { %14210 = vmatprep.subr.bf16.mxu1 %v23511_v21  ;;  %v23545_v22 = vld [vmem:[%s25052_s23 + $0x1b4] ss:$24 sps:$4 sm:$0xff]   ;;  %v23549_v23 = vld [vmem:[%s25052_s23 + $0x1b0] ss:$24 sps:$4 sm:$0xff]   ;;  %v23551_v3 = vld [vmem:[%s25052_s23 + $0x1e4] ss:$24 sps:$4 sm:$0xff]  }
0x22d4   : > { %v23547_v14 = vld [vmem:[%s25052_s23 + $0x1bc] ss:$24 sps:$4 sm:$0xff]   ;;  %v23550_v8 = vld [vmem:[%s25052_s23 + $0x1b8] ss:$24 sps:$4 sm:$0xff]   ;;  %v23553_v40 = vld [vmem:[%s25052_s23 + $0x1ec] ss:$24 sps:$4 sm:$0xff]  }
0x22d5   : > { %14082 = vmatpush1.bf16.msra.mxu0 %v23513_v20  ;;  %v23555_v24 = vld [vmem:[%s25052_s23 + $0x1e0] ss:$24 sps:$4 sm:$0xff]   ;;  %v23557_v47 = vld [vmem:[%s25052_s23 + $0x214] ss:$24 sps:$4 sm:$0xff]   ;;  %v23561_v27 = vld [vmem:[%s25052_s23 + $0x210] ss:$24 sps:$4 sm:$0xff]  }
0x22d6   : > { %14211 = vmatpush1.bf16.msra.mxu1 %v23514_v46  ;;  %14083 = vmatprep.subr.bf16.mxu0 %v23515_v39  ;;  %v23556_v28 = vld [vmem:[%s25052_s23 + $0x1e8] ss:$24 sps:$4 sm:$0xff]   ;;  %v23559_v59 = vld [vmem:[%s25052_s23 + $0x21c] ss:$24 sps:$4 sm:$0xff]   ;;  %v23562_v49 = vld [vmem:[%s25052_s23 + $0x218] ss:$24 sps:$4 sm:$0xff]  }
0x22d7   : > { %14212 = vmatprep.subr.bf16.mxu1 %v23517_v51  ;;  %v12273_v44 = vld [vmem:[#allocation2 + $0x8] sm:$0xff]  ;;  %v12279_v7 = vld [vmem:[#allocation2 + $0x38] sm:$0xff]  ;;  %v12272_v19 = vld [vmem:[#allocation2] sm:$0xff]  ;;  %p20756_p2 = scmp.ne.s32.totalorder %s27847_s14, 5 }
0x22d8   : > { %v27031_v17 = vpack.c.bf16 %v12279_v7, %v12273_v44  ;;  %v23563_v48 = vld [vmem:[%s25052_s23 + $0x244] ss:$24 sps:$4 sm:$0xff]   ;;  %v23567_v13 = vld [vmem:[%s25052_s23 + $0x240] ss:$24 sps:$4 sm:$0xff]   ;;  %v23569_v16 = vld [vmem:[%s25052_s23 + $0x274] ss:$24 sps:$4 sm:$0xff]  }
0x22d9   : > { %14084 = vmatpush1.bf16.msra.mxu0 %v23519_v9  ;;  %v23565_v29 = vld [vmem:[%s25052_s23 + $0x24c] ss:$24 sps:$4 sm:$0xff]   ;;  %v23568_v4 = vld [vmem:[%s25052_s23 + $0x248] ss:$24 sps:$4 sm:$0xff]   ;;  %v23571_v35 = vld [vmem:[%s25052_s23 + $0x27c] ss:$24 sps:$4 sm:$0xff]  }
0x22da   : > { %14213 = vmatpush1.bf16.msra.mxu1 %v23520_v37  ;;  %14085 = vmatprep.subr.bf16.mxu0 %v23521_v45  ;;  %v23573_v62 = vld [vmem:[%s25052_s23 + $0x270] ss:$24 sps:$4 sm:$0xff]   ;;  %v23575_v55 = vld [vmem:[%s25052_s23 + $0x2a4] ss:$24 sps:$4 sm:$0xff]   ;;  %v23579_v34 = vld [vmem:[%s25052_s23 + $0x2a0] ss:$24 sps:$4 sm:$0xff]  }
0x22db   : > { %14214 = vmatprep.subr.bf16.mxu1 %v23523_v36  ;;  %14107 = vmatprep.mubr.bf16.mxu0 %v27031_v17  ;;  %v23574_v58 = vld [vmem:[%s25052_s23 + $0x278] ss:$24 sps:$4 sm:$0xff]   ;;  %v23577_v57 = vld [vmem:[%s25052_s23 + $0x2ac] ss:$24 sps:$4 sm:$0xff]   ;;  %v23580_v26 = vld [vmem:[%s25052_s23 + $0x2a8] ss:$24 sps:$4 sm:$0xff]  }
0x22dc   : > { %14236 = vmatprep.mubr.bf16.mxu1 %v27031_v17  ;;  %v23581_v5 = vld [vmem:[%s25052_s23 + $0x2d4] ss:$24 sps:$4 sm:$0xff]   ;;  %v23585_v38 = vld [vmem:[%s25052_s23 + $0x2d0] ss:$24 sps:$4 sm:$0xff]   ;;  %v23589_v12 = vld [vmem:[%s25052_s23 + $0x304] ss:$24 sps:$4 sm:$0xff]  }
0x22dd   : > { %14086 = vmatpush1.bf16.msra.mxu0 %v23525_v53  ;;  %v23583_v25 = vld [vmem:[%s25052_s23 + $0x2dc] ss:$24 sps:$4 sm:$0xff]   ;;  %v23586_v18 = vld [vmem:[%s25052_s23 + $0x2d8] ss:$24 sps:$4 sm:$0xff]   ;;  %v23592_v31 = vld [vmem:[%s25052_s23 + $0x30c] ss:$24 sps:$4 sm:$0xff]  }
0x22de   : > { %14215 = vmatpush1.bf16.msra.mxu1 %v23526_v11  ;;  %14087 = vmatprep.subr.bf16.mxu0 %v23527_v56  ;;  %v12278_v63 = vld [vmem:[#allocation2 + $0x30] sm:$0xff]  ;;  %v23587_v33 = vld [vmem:[%s25052_s23 + $0x300] ss:$24 sps:$4 sm:$0xff]   ;;  %v23601_v51 = vld [vmem:[%s25052_s23 + $0x364] ss:$24 sps:$4 sm:$0xff]  }
0x22df   : > { %14216 = vmatprep.subr.bf16.mxu1 %v23529_v61  ;;  %v23590_v52 = vld [vmem:[%s25052_s23 + $0x308] ss:$24 sps:$4 sm:$0xff]   ;;  %v27055_v43 = vpack.c.bf16 %v12278_v63, %v12272_v19  ;;  %v23595_v21 = vld [vmem:[%s25052_s23 + $0x334] ss:$24 sps:$4 sm:$0xff]   ;;  %v23596_v39 = vld [vmem:[%s25052_s23 + $0x338] ss:$24 sps:$4 sm:$0xff]  }
0x22e0   : > { %v23598_v20 = vld [vmem:[%s25052_s23 + $0x33c] ss:$24 sps:$4 sm:$0xff]   ;;  %v23593_v46 = vld [vmem:[%s25052_s23 + $0x330] ss:$24 sps:$4 sm:$0xff]   ;;  %v23604_v9 = vld [vmem:[%s25052_s23 + $0x36c] ss:$24 sps:$4 sm:$0xff]  }
0x22e1   : > { %14088 = vmatpush1.bf16.msra.mxu0 %v23531_v32  ;;  %v23599_v37 = vld [vmem:[%s25052_s23 + $0x360] ss:$24 sps:$4 sm:$0xff]   ;;  %v23607_v36 = vld [vmem:[%s25052_s23 + $0x394] ss:$24 sps:$4 sm:$0xff]   ;;  %v23605_v11 = vld [vmem:[%s25052_s23 + $0x390] ss:$24 sps:$4 sm:$0xff]  }
0x22e2   : > { %14217 = vmatpush1.bf16.msra.mxu1 %v23532_v41  ;;  %14089 = vmatprep.subr.bf16.mxu0 %v23533_v54  ;;  %v23602_v45 = vld [vmem:[%s25052_s23 + $0x368] ss:$24 sps:$4 sm:$0xff]   ;;  %v23610_v53 = vld [vmem:[%s25052_s23 + $0x39c] ss:$24 sps:$4 sm:$0xff]   ;;  %v23608_v56 = vld [vmem:[%s25052_s23 + $0x398] ss:$24 sps:$4 sm:$0xff]  }
0x22e3   : > { %14218 = vmatprep.subr.bf16.mxu1 %v23535_v6  ;;  %v23613_v61 = vld [vmem:[%s25052_s23 + $0x3c4] ss:$24 sps:$4 sm:$0xff]   ;;  %v23611_v41 = vld [vmem:[%s25052_s23 + $0x3c0] ss:$24 sps:$4 sm:$0xff]   ;;  %v23619_v6 = vld [vmem:[%s25052_s23 + $0x3f4] ss:$24 sps:$4 sm:$0xff]  }
0x22e4   : > { %v23616_v32 = vld [vmem:[%s25052_s23 + $0x3cc] ss:$24 sps:$4 sm:$0xff]   ;;  %v23614_v54 = vld [vmem:[%s25052_s23 + $0x3c8] ss:$24 sps:$4 sm:$0xff]   ;;  %v23668_v19 = vld [vmem:[%s25052_s23 + $0x578] ss:$24 sps:$4 sm:$0xff]  }
0x22e5   : > { %14090 = vmatpush1.bf16.msra.mxu0 %v23537_v15  ;;  %v23622_v15 = vld [vmem:[%s25052_s23 + $0x3fc] ss:$24 sps:$4 sm:$0xff]   ;;  %v23635_v44 = vld [vmem:[%s25052_s23 + $0x480] ss:$24 sps:$4 sm:$0xff]  }
0x22e6   : > { %14219 = vmatpush1.bf16.msra.mxu1 %v23538_v42  ;;  %14091 = vmatprep.subr.bf16.mxu0 %v23539_v10  ;;  %v23617_v42 = vld [vmem:[%s25052_s23 + $0x3f0] ss:$24 sps:$4 sm:$0xff]   ;;  %v23673_v63 = vld [vmem:[%s25052_s23 + $0x5a4] ss:$24 sps:$4 sm:$0xff]  }
0x22e7   : > { %14220 = vmatprep.subr.bf16.mxu1 %v23541_v50  ;;  %v23620_v10 = vld [vmem:[%s25052_s23 + $0x3f8] ss:$24 sps:$4 sm:$0xff]   ;;  %v23625_v50 = vld [vmem:[%s25052_s23 + $0x424] ss:$24 sps:$4 sm:$0xff]   ;;  %v23638_v7 = vld [vmem:[%s25052_s23 + $0x488] ss:$24 sps:$4 sm:$0xff]  }
0x22e9   : > { %14092 = vmatpush1.bf16.msra.mxu0 %v23543_v60  ;;  %v23628_v60 = vld [vmem:[%s25052_s23 + $0x42c] ss:$24 sps:$4 sm:$0xff]  }
0x22ea   : > { %14221 = vmatpush1.bf16.msra.mxu1 %v23544_v30  ;;  %14093 = vmatprep.subr.bf16.mxu0 %v23545_v22  ;;  %v12275_v30 = vld [vmem:[#allocation2 + $0x18] sm:$0xff]  ;;  %v12281_v22 = vld [vmem:[#allocation2 + $0x48] sm:$0xff] }
0x22eb   : > { %14222 = vmatprep.subr.bf16.mxu1 %v23547_v14  ;;  %v23623_v14 = vld [vmem:[%s25052_s23 + $0x420] ss:$24 sps:$4 sm:$0xff]  }
0x22ed   : > { %14094 = vmatpush1.bf16.msra.mxu0 %v23549_v23  ;;  %v23626_v23 = vld [vmem:[%s25052_s23 + $0x428] ss:$24 sps:$4 sm:$0xff]  }
0x22ee   : > { %14223 = vmatpush1.bf16.msra.mxu1 %v23550_v8  ;;  %14095 = vmatprep.subr.bf16.mxu0 %v23551_v3  ;;  %v27083_v8 = vpack.c.bf16 %v12281_v22, %v12275_v30  ;;  %v23631_v3 = vld [vmem:[%s25052_s23 + $0x454] ss:$24 sps:$4 sm:$0xff]  }
0x22ef   : > { %14224 = vmatprep.subr.bf16.mxu1 %v23553_v40  ;;  %v23634_v40 = vld [vmem:[%s25052_s23 + $0x45c] ss:$24 sps:$4 sm:$0xff]  }
0x22f0   : > { %v23703_v30 = vld [vmem:[%s25052_s23 + $0x694] ss:$24 sps:$4 sm:$0xff]  }
0x22f1   : > { %14096 = vmatpush1.bf16.msra.mxu0 %v23555_v24  ;;  %v23629_v24 = vld [vmem:[%s25052_s23 + $0x450] ss:$24 sps:$4 sm:$0xff]   ;;  %v23706_v22 = vld [vmem:[%s25052_s23 + $0x69c] ss:$24 sps:$4 sm:$0xff]  }
0x22f2   : > { %14225 = vmatpush1.bf16.msra.mxu1 %v23556_v28  ;;  %14097 = vmatprep.subr.bf16.mxu0 %v23557_v47  ;;  %v23632_v28 = vld [vmem:[%s25052_s23 + $0x458] ss:$24 sps:$4 sm:$0xff]   ;;  %v23637_v47 = vld [vmem:[%s25052_s23 + $0x484] ss:$24 sps:$4 sm:$0xff]  }
0x22f3   : > { %14226 = vmatprep.subr.bf16.mxu1 %v23559_v59  ;;  %v23640_v59 = vld [vmem:[%s25052_s23 + $0x48c] ss:$24 sps:$4 sm:$0xff]  }
0x22f5   : > { %14098 = vmatpush1.bf16.msra.mxu0 %v23561_v27  ;;  %v23643_v27 = vld [vmem:[%s25052_s23 + $0x4b4] ss:$24 sps:$4 sm:$0xff]  }
0x22f6   : > { %14227 = vmatpush1.bf16.msra.mxu1 %v23562_v49  ;;  %14099 = vmatprep.subr.bf16.mxu0 %v23563_v48  ;;  %v23646_v49 = vld [vmem:[%s25052_s23 + $0x4bc] ss:$24 sps:$4 sm:$0xff]   ;;  %v23641_v48 = vld [vmem:[%s25052_s23 + $0x4b0] ss:$24 sps:$4 sm:$0xff]  }
0x22f7   : > { %14228 = vmatprep.subr.bf16.mxu1 %v23565_v29  ;;  %v23644_v29 = vld [vmem:[%s25052_s23 + $0x4b8] ss:$24 sps:$4 sm:$0xff]  }
0x22f9   : > { %14100 = vmatpush1.bf16.msra.mxu0 %v23567_v13  ;;  %v23649_v13 = vld [vmem:[%s25052_s23 + $0x4e4] ss:$24 sps:$4 sm:$0xff]  }
0x22fa   : > { %14229 = vmatpush1.bf16.msra.mxu1 %v23568_v4  ;;  %14101 = vmatprep.subr.bf16.mxu0 %v23569_v16  ;;  %v23652_v4 = vld [vmem:[%s25052_s23 + $0x4ec] ss:$24 sps:$4 sm:$0xff]   ;;  %v23647_v16 = vld [vmem:[%s25052_s23 + $0x4e0] ss:$24 sps:$4 sm:$0xff]  }
0x22fb   : > { %14230 = vmatprep.subr.bf16.mxu1 %v23571_v35  ;;  %v23650_v35 = vld [vmem:[%s25052_s23 + $0x4e8] ss:$24 sps:$4 sm:$0xff]  }
0x22fd   : > { %14102 = vmatpush1.bf16.msra.mxu0 %v23573_v62  ;;  %v23655_v62 = vld [vmem:[%s25052_s23 + $0x514] ss:$24 sps:$4 sm:$0xff]  }
0x22fe   : > { %14231 = vmatpush1.bf16.msra.mxu1 %v23574_v58  ;;  %14103 = vmatprep.subr.bf16.mxu0 %v23575_v55  ;;  %v23658_v58 = vld [vmem:[%s25052_s23 + $0x51c] ss:$24 sps:$4 sm:$0xff]   ;;  %v23653_v55 = vld [vmem:[%s25052_s23 + $0x510] ss:$24 sps:$4 sm:$0xff]  }
0x22ff   : > { %14232 = vmatprep.subr.bf16.mxu1 %v23577_v57  ;;  %v23656_v57 = vld [vmem:[%s25052_s23 + $0x518] ss:$24 sps:$4 sm:$0xff]  }
0x2301   : > { %14104 = vmatpush1.bf16.msra.mxu0 %v23579_v34  ;;  %v23661_v34 = vld [vmem:[%s25052_s23 + $0x544] ss:$24 sps:$4 sm:$0xff]  }
0x2302   : > { %14233 = vmatpush1.bf16.msra.mxu1 %v23580_v26  ;;  %14105 = vmatprep.subr.bf16.mxu0 %v23581_v5  ;;  %v23664_v26 = vld [vmem:[%s25052_s23 + $0x54c] ss:$24 sps:$4 sm:$0xff]   ;;  %v23659_v5 = vld [vmem:[%s25052_s23 + $0x540] ss:$24 sps:$4 sm:$0xff]  }
0x2303   : > { %14234 = vmatprep.subr.bf16.mxu1 %v23583_v25  ;;  %v23662_v25 = vld [vmem:[%s25052_s23 + $0x548] ss:$24 sps:$4 sm:$0xff]  }
0x2305   : > { %14106 = vmatpush1.bf16.msra.mxu0 %v23585_v38  ;;  %v23667_v38 = vld [vmem:[%s25052_s23 + $0x574] ss:$24 sps:$4 sm:$0xff]  }
0x2306   : > { %14235 = vmatpush1.bf16.msra.mxu1 %v23586_v18  ;;  %14118 = vmatprep.subr.bf16.mxu0 %v23589_v12  ;;  %v23670_v18 = vld [vmem:[%s25052_s23 + $0x57c] ss:$24 sps:$4 sm:$0xff]   ;;  %v23665_v12 = vld [vmem:[%s25052_s23 + $0x570] ss:$24 sps:$4 sm:$0xff]  }
0x2307   : > { %14247 = vmatprep.subr.bf16.mxu1 %v23592_v31  ;;  %v23676_v31 = vld [vmem:[%s25052_s23 + $0x5ac] ss:$24 sps:$4 sm:$0xff]  }
0x2308   : > { %14108 = vmatmul.mubr.bf16.vlgmr.msra.gmra.mrb[0].mxu0 %v27055_v43 }
0x2309   : > { %14237 = vmatmul.mubr.bf16.vlgmr.msra.gmra.mrb[0].mxu1 %v27055_v43  ;;  %14119 = vmatpush1.bf16.msra.mxu0 %v23587_v33  ;;  %v23671_v33 = vld [vmem:[%s25052_s23 + $0x5a0] ss:$24 sps:$4 sm:$0xff]  }
0x230a   : > { %14248 = vmatpush1.bf16.msra.mxu1 %v23590_v52  ;;  %14120 = vmatprep.subr.bf16.mxu0 %v23595_v21  ;;  %v23674_v52 = vld [vmem:[%s25052_s23 + $0x5a8] ss:$24 sps:$4 sm:$0xff]   ;;  %v23679_v21 = vld [vmem:[%s25052_s23 + $0x5d4] ss:$24 sps:$4 sm:$0xff]  }
0x230b   : > { %14249 = vmatprep.subr.bf16.mxu1 %v23598_v20  ;;  %14150 = vmatprep.mubr.bf16.mxu0 %v27083_v8  ;;  %v23682_v20 = vld [vmem:[%s25052_s23 + $0x5dc] ss:$24 sps:$4 sm:$0xff]  }
0x230c   : > { %14279 = vmatprep.mubr.bf16.mxu1 %v27083_v8 }
0x230d   : > { %14121 = vmatpush1.bf16.msra.mxu0 %v23593_v46  ;;  %v23677_v46 = vld [vmem:[%s25052_s23 + $0x5d0] ss:$24 sps:$4 sm:$0xff]  }
0x230e   : > { %14250 = vmatpush1.bf16.msra.mxu1 %v23596_v39  ;;  %14122 = vmatprep.subr.bf16.mxu0 %v23601_v51  ;;  %v23680_v39 = vld [vmem:[%s25052_s23 + $0x5d8] ss:$24 sps:$4 sm:$0xff]   ;;  %v23685_v51 = vld [vmem:[%s25052_s23 + $0x604] ss:$24 sps:$4 sm:$0xff]  }
0x230f   : > { %14251 = vmatprep.subr.bf16.mxu1 %v23604_v9  ;;  %v12274_v9 = vld [vmem:[#allocation2 + $0x10] sm:$0xff] }
0x2311   : > { %14123 = vmatpush1.bf16.msra.mxu0 %v23599_v37  ;;  %v12280_v37 = vld [vmem:[#allocation2 + $0x40] sm:$0xff] }
0x2312   : > { %14252 = vmatpush1.bf16.msra.mxu1 %v23602_v45  ;;  %14124 = vmatprep.subr.bf16.mxu0 %v23607_v36  ;;  %v23688_v45 = vld [vmem:[%s25052_s23 + $0x60c] ss:$24 sps:$4 sm:$0xff]   ;;  %v23683_v36 = vld [vmem:[%s25052_s23 + $0x600] ss:$24 sps:$4 sm:$0xff]  }
0x2313   : > { %14253 = vmatprep.subr.bf16.mxu1 %v23610_v53  ;;  %v23686_v53 = vld [vmem:[%s25052_s23 + $0x608] ss:$24 sps:$4 sm:$0xff]  }
0x2315   : > { %14125 = vmatpush1.bf16.msra.mxu0 %v23605_v11  ;;  %v27127_v11 = vpack.c.bf16 %v12280_v37, %v12274_v9  ;;  %v23766_v9 = vld [vmem:[%s25052_s23 + $0x87c] ss:$24 sps:$4 sm:$0xff]   ;;  %v23761_v37 = vld [vmem:[%s25052_s23 + $0x870] ss:$24 sps:$4 sm:$0xff]  }
0x2316   : > { %14254 = vmatpush1.bf16.msra.mxu1 %v23608_v56  ;;  %14126 = vmatprep.subr.bf16.mxu0 %v23613_v61  ;;  %v23691_v56 = vld [vmem:[%s25052_s23 + $0x634] ss:$24 sps:$4 sm:$0xff]  }
0x2317   : > { %14255 = vmatprep.subr.bf16.mxu1 %v23616_v32  ;;  %v23694_v61 = vld [vmem:[%s25052_s23 + $0x63c] ss:$24 sps:$4 sm:$0xff]   ;;  %v12277_v32 = vld [vmem:[#allocation2 + $0x28] sm:$0xff] }
0x2319   : > { %14127 = vmatpush1.bf16.msra.mxu0 %v23611_v41  ;;  %v23689_v41 = vld [vmem:[%s25052_s23 + $0x630] ss:$24 sps:$4 sm:$0xff]  }
0x231a   : > { %14256 = vmatpush1.bf16.msra.mxu1 %v23614_v54  ;;  %14128 = vmatprep.subr.bf16.mxu0 %v23619_v6  ;;  %v23692_v54 = vld [vmem:[%s25052_s23 + $0x638] ss:$24 sps:$4 sm:$0xff]  }
0x231b   : > { %14257 = vmatprep.subr.bf16.mxu1 %v23622_v15  ;;  %v12283_v6 = vld [vmem:[#allocation2 + $0x58] sm:$0xff] }
0x231c   : > { %v23697_v15 = vld [vmem:[%s25052_s23 + $0x664] ss:$24 sps:$4 sm:$0xff]  }
0x231d   : > { %14129 = vmatpush1.bf16.msra.mxu0 %v23617_v42  ;;  %v27136_v42 = vpack.c.bf16 %v12283_v6, %v12277_v32  ;;  %v23775_v32 = vld [vmem:[%s25052_s23 + $0x8d4] ss:$24 sps:$4 sm:$0xff]   ;;  %v23776_v6 = vld [vmem:[%s25052_s23 + $0x8d8] ss:$24 sps:$4 sm:$0xff]  }
0x231e   : > { %14258 = vmatpush1.bf16.msra.mxu1 %v23620_v10  ;;  %14130 = vmatprep.subr.bf16.mxu0 %v23625_v50  ;;  %v23700_v10 = vld [vmem:[%s25052_s23 + $0x66c] ss:$24 sps:$4 sm:$0xff]   ;;  %v23695_v50 = vld [vmem:[%s25052_s23 + $0x660] ss:$24 sps:$4 sm:$0xff]  }
0x231f   : > { %14259 = vmatprep.subr.bf16.mxu1 %v23628_v60  ;;  %v23698_v60 = vld [vmem:[%s25052_s23 + $0x668] ss:$24 sps:$4 sm:$0xff]  }
0x2321   : > { %14131 = vmatpush1.bf16.msra.mxu0 %v23623_v14  ;;  %v23701_v14 = vld [vmem:[%s25052_s23 + $0x690] ss:$24 sps:$4 sm:$0xff]  }
0x2322   : > { %14260 = vmatpush1.bf16.msra.mxu1 %v23626_v23  ;;  %14132 = vmatprep.subr.bf16.mxu0 %v23631_v3  ;;  %v23704_v23 = vld [vmem:[%s25052_s23 + $0x698] ss:$24 sps:$4 sm:$0xff]   ;;  %v23709_v3 = vld [vmem:[%s25052_s23 + $0x6c4] ss:$24 sps:$4 sm:$0xff]  }
0x2323   : > { %14261 = vmatprep.subr.bf16.mxu1 %v23634_v40  ;;  %v23712_v40 = vld [vmem:[%s25052_s23 + $0x6cc] ss:$24 sps:$4 sm:$0xff]  }
0x2325   : > { %14133 = vmatpush1.bf16.msra.mxu0 %v23629_v24  ;;  %v23707_v24 = vld [vmem:[%s25052_s23 + $0x6c0] ss:$24 sps:$4 sm:$0xff]  }
0x2326   : > { %14262 = vmatpush1.bf16.msra.mxu1 %v23632_v28  ;;  %14134 = vmatprep.subr.bf16.mxu0 %v23637_v47  ;;  %v23710_v28 = vld [vmem:[%s25052_s23 + $0x6c8] ss:$24 sps:$4 sm:$0xff]   ;;  %v23715_v47 = vld [vmem:[%s25052_s23 + $0x6f4] ss:$24 sps:$4 sm:$0xff]  }
0x2327   : > { %14263 = vmatprep.subr.bf16.mxu1 %v23640_v59  ;;  %v23718_v59 = vld [vmem:[%s25052_s23 + $0x6fc] ss:$24 sps:$4 sm:$0xff]  }
0x2329   : > { %14135 = vmatpush1.bf16.msra.mxu0 %v23635_v44  ;;  %v23713_v44 = vld [vmem:[%s25052_s23 + $0x6f0] ss:$24 sps:$4 sm:$0xff]  }
0x232a   : > { %14264 = vmatpush1.bf16.msra.mxu1 %v23638_v7  ;;  %14136 = vmatprep.subr.bf16.mxu0 %v23643_v27  ;;  %v23716_v7 = vld [vmem:[%s25052_s23 + $0x6f8] ss:$24 sps:$4 sm:$0xff]   ;;  %v23721_v27 = vld [vmem:[%s25052_s23 + $0x724] ss:$24 sps:$4 sm:$0xff]  }
0x232b   : > { %14265 = vmatprep.subr.bf16.mxu1 %v23646_v49  ;;  %v23724_v49 = vld [vmem:[%s25052_s23 + $0x72c] ss:$24 sps:$4 sm:$0xff]  }
0x232d   : > { %14137 = vmatpush1.bf16.msra.mxu0 %v23641_v48  ;;  %v23719_v48 = vld [vmem:[%s25052_s23 + $0x720] ss:$24 sps:$4 sm:$0xff]  }
0x232e   : > { %14266 = vmatpush1.bf16.msra.mxu1 %v23644_v29  ;;  %14138 = vmatprep.subr.bf16.mxu0 %v23649_v13  ;;  %v23722_v29 = vld [vmem:[%s25052_s23 + $0x728] ss:$24 sps:$4 sm:$0xff]   ;;  %v23727_v13 = vld [vmem:[%s25052_s23 + $0x754] ss:$24 sps:$4 sm:$0xff]  }
0x232f   : > { %14267 = vmatprep.subr.bf16.mxu1 %v23652_v4  ;;  %v23730_v4 = vld [vmem:[%s25052_s23 + $0x75c] ss:$24 sps:$4 sm:$0xff]  }
0x2331   : > { %14139 = vmatpush1.bf16.msra.mxu0 %v23647_v16  ;;  %v23725_v16 = vld [vmem:[%s25052_s23 + $0x750] ss:$24 sps:$4 sm:$0xff]  }
0x2332   : > { %14268 = vmatpush1.bf16.msra.mxu1 %v23650_v35  ;;  %14140 = vmatprep.subr.bf16.mxu0 %v23655_v62  ;;  %v23728_v35 = vld [vmem:[%s25052_s23 + $0x758] ss:$24 sps:$4 sm:$0xff]   ;;  %v23733_v62 = vld [vmem:[%s25052_s23 + $0x784] ss:$24 sps:$4 sm:$0xff]  }
0x2333   : > { %14269 = vmatprep.subr.bf16.mxu1 %v23658_v58  ;;  %v23736_v58 = vld [vmem:[%s25052_s23 + $0x78c] ss:$24 sps:$4 sm:$0xff]  }
0x2335   : > { %14141 = vmatpush1.bf16.msra.mxu0 %v23653_v55  ;;  %v23731_v55 = vld [vmem:[%s25052_s23 + $0x780] ss:$24 sps:$4 sm:$0xff]  }
0x2336   : > { %14270 = vmatpush1.bf16.msra.mxu1 %v23656_v57  ;;  %14142 = vmatprep.subr.bf16.mxu0 %v23661_v34  ;;  %v23734_v57 = vld [vmem:[%s25052_s23 + $0x788] ss:$24 sps:$4 sm:$0xff]   ;;  %v23739_v34 = vld [vmem:[%s25052_s23 + $0x7b4] ss:$24 sps:$4 sm:$0xff]  }
0x2337   : > { %14271 = vmatprep.subr.bf16.mxu1 %v23664_v26  ;;  %v23742_v26 = vld [vmem:[%s25052_s23 + $0x7bc] ss:$24 sps:$4 sm:$0xff]  }
0x2339   : > { %14143 = vmatpush1.bf16.msra.mxu0 %v23659_v5  ;;  %v23737_v5 = vld [vmem:[%s25052_s23 + $0x7b0] ss:$24 sps:$4 sm:$0xff]  }
0x233a   : > { %14272 = vmatpush1.bf16.msra.mxu1 %v23662_v25  ;;  %14144 = vmatprep.subr.bf16.mxu0 %v23667_v38  ;;  %v23740_v25 = vld [vmem:[%s25052_s23 + $0x7b8] ss:$24 sps:$4 sm:$0xff]   ;;  %v23745_v38 = vld [vmem:[%s25052_s23 + $0x7e4] ss:$24 sps:$4 sm:$0xff]  }
0x233b   : > { %14273 = vmatprep.subr.bf16.mxu1 %v23670_v18  ;;  %v23748_v18 = vld [vmem:[%s25052_s23 + $0x7ec] ss:$24 sps:$4 sm:$0xff]  }
0x233d   : > { %14145 = vmatpush1.bf16.msra.mxu0 %v23665_v12  ;;  %v23743_v12 = vld [vmem:[%s25052_s23 + $0x7e0] ss:$24 sps:$4 sm:$0xff]  }
0x233e   : > { %14274 = vmatpush1.bf16.msra.mxu1 %v23668_v19  ;;  %14146 = vmatprep.subr.bf16.mxu0 %v23673_v63  ;;  %v23746_v19 = vld [vmem:[%s25052_s23 + $0x7e8] ss:$24 sps:$4 sm:$0xff]   ;;  %v23751_v63 = vld [vmem:[%s25052_s23 + $0x814] ss:$24 sps:$4 sm:$0xff]  }
0x233f   : > { %14275 = vmatprep.subr.bf16.mxu1 %v23676_v31  ;;  %v23754_v31 = vld [vmem:[%s25052_s23 + $0x81c] ss:$24 sps:$4 sm:$0xff]  }
0x2341   : > { %14147 = vmatpush1.bf16.msra.mxu0 %v23671_v33  ;;  %v23749_v33 = vld [vmem:[%s25052_s23 + $0x810] ss:$24 sps:$4 sm:$0xff]  }
0x2342   : > { %14276 = vmatpush1.bf16.msra.mxu1 %v23674_v52  ;;  %14148 = vmatprep.subr.bf16.mxu0 %v23679_v21  ;;  %v23752_v52 = vld [vmem:[%s25052_s23 + $0x818] ss:$24 sps:$4 sm:$0xff]   ;;  %v23757_v21 = vld [vmem:[%s25052_s23 + $0x844] ss:$24 sps:$4 sm:$0xff]  }
0x2343   : > { %14277 = vmatprep.subr.bf16.mxu1 %v23682_v20  ;;  %v23760_v20 = vld [vmem:[%s25052_s23 + $0x84c] ss:$24 sps:$4 sm:$0xff]  }
0x2345   : > { %14149 = vmatpush1.bf16.msra.mxu0 %v23677_v46  ;;  %v23755_v46 = vld [vmem:[%s25052_s23 + $0x840] ss:$24 sps:$4 sm:$0xff]  }
0x2346   : > { %14278 = vmatpush1.bf16.msra.mxu1 %v23680_v39  ;;  %14161 = vmatprep.subr.bf16.mxu0 %v23685_v51  ;;  %v23758_v39 = vld [vmem:[%s25052_s23 + $0x848] ss:$24 sps:$4 sm:$0xff]   ;;  %v23763_v51 = vld [vmem:[%s25052_s23 + $0x874] ss:$24 sps:$4 sm:$0xff]  }
0x2347   : > { %14290 = vmatprep.subr.bf16.mxu1 %v23688_v45  ;;  %v23764_v45 = vld [vmem:[%s25052_s23 + $0x878] ss:$24 sps:$4 sm:$0xff]  }
0x2348   : > { %14151 = vmatmul.mubr.bf16.vlgmr.msra.gmra.mrb[0].mxu0 %v27127_v11 }
0x2349   : > { %14280 = vmatmul.mubr.bf16.vlgmr.msra.gmra.mrb[0].mxu1 %v27127_v11  ;;  %14162 = vmatpush1.bf16.msra.mxu0 %v23683_v36  ;;  %v23769_v36 = vld [vmem:[%s25052_s23 + $0x8a4] ss:$24 sps:$4 sm:$0xff]  }
0x234a   : > { %14291 = vmatpush1.bf16.msra.mxu1 %v23686_v53  ;;  %14163 = vmatprep.subr.bf16.mxu0 %v23691_v56  ;;  %v23772_v53 = vld [vmem:[%s25052_s23 + $0x8ac] ss:$24 sps:$4 sm:$0xff]   ;;  %v23767_v56 = vld [vmem:[%s25052_s23 + $0x8a0] ss:$24 sps:$4 sm:$0xff]  }
0x234b   : > { %14292 = vmatprep.subr.bf16.mxu1 %v23694_v61  ;;  %14193 = vmatprep.mubr.bf16.mxu0 %v27136_v42  ;;  %v23770_v61 = vld [vmem:[%s25052_s23 + $0x8a8] ss:$24 sps:$4 sm:$0xff]  }
0x234c   : > { %14322 = vmatprep.mubr.bf16.mxu1 %v27136_v42 }
0x234d   : > { %14164 = vmatpush1.bf16.msra.mxu0 %v23689_v41  ;;  %v23778_v41 = vld [vmem:[%s25052_s23 + $0x8dc] ss:$24 sps:$4 sm:$0xff]  }
0x234e   : > { %14293 = vmatpush1.bf16.msra.mxu1 %v23692_v54  ;;  %14165 = vmatprep.subr.bf16.mxu0 %v23697_v15  ;;  %v23773_v54 = vld [vmem:[%s25052_s23 + $0x8d0] ss:$24 sps:$4 sm:$0xff]   ;;  %v12276_v15 = vld [vmem:[#allocation2 + $0x20] sm:$0xff] }
0x234f   : > { %14294 = vmatprep.subr.bf16.mxu1 %v23700_v10  ;;  %v12282_v10 = vld [vmem:[#allocation2 + $0x50] sm:$0xff] }
0x2351   : > { %14166 = vmatpush1.bf16.msra.mxu0 %v23695_v50  ;;  %v23781_v50 = vld [vmem:[%s25052_s23 + $0x14] ss:$24 sps:$4 sm:$0xff]  }
0x2352   : > { %14295 = vmatpush1.bf16.msra.mxu1 %v23698_v60  ;;  %14167 = vmatprep.subr.bf16.mxu0 %v23703_v30  ;;  %v27196_v60 = vpack.c.bf16 %v12282_v10, %v12276_v15  ;;  %v23779_v30 = vld [vmem:[%s25052_s23 + $0x10] ss:$24 sps:$4 sm:$0xff]   ;;  %v23953_v15 = vld [vmem:[%s25052_s23 + $0xa20] ss:$24 sps:$4 sm:$0xff]  }
0x2353   : > { %14296 = vmatprep.subr.bf16.mxu1 %v23706_v22  ;;  %v23784_v22 = vld [vmem:[%s25052_s23 + $0x44] ss:$24 sps:$4 sm:$0xff]   ;;  %v23842_v10 = vld [vmem:[%s25052_s23 + $0x400] ss:$24 sps:$4 sm:$0xff]  }
0x2355   : > { %14168 = vmatpush1.bf16.msra.mxu0 %v23701_v14  ;;  %v23782_v14 = vld [vmem:[%s25052_s23 + $0x40] ss:$24 sps:$4 sm:$0xff]  }
0x2356   : > { %14297 = vmatpush1.bf16.msra.mxu1 %v23704_v23  ;;  %14169 = vmatprep.subr.bf16.mxu0 %v23709_v3  ;;  %v23787_v23 = vld [vmem:[%s25052_s23 + $0x74] ss:$24 sps:$4 sm:$0xff]   ;;  %v23785_v3 = vld [vmem:[%s25052_s23 + $0x70] ss:$24 sps:$4 sm:$0xff]  }
0x2357   : > { %14298 = vmatprep.subr.bf16.mxu1 %v23712_v40  ;;  %v23790_v40 = vld [vmem:[%s25052_s23 + $0xa4] ss:$24 sps:$4 sm:$0xff]  }
0x2359   : > { %14170 = vmatpush1.bf16.msra.mxu0 %v23707_v24  ;;  %v23788_v24 = vld [vmem:[%s25052_s23 + $0xa0] ss:$24 sps:$4 sm:$0xff]  }
0x235a   : > { %14299 = vmatpush1.bf16.msra.mxu1 %v23710_v28  ;;  %14171 = vmatprep.subr.bf16.mxu0 %v23715_v47  ;;  %v23793_v28 = vld [vmem:[%s25052_s23 + $0xd4] ss:$24 sps:$4 sm:$0xff]   ;;  %v23791_v47 = vld [vmem:[%s25052_s23 + $0xd0] ss:$24 sps:$4 sm:$0xff]  }
0x235b   : > { %14300 = vmatprep.subr.bf16.mxu1 %v23718_v59  ;;  %v23796_v59 = vld [vmem:[%s25052_s23 + $0x104] ss:$24 sps:$4 sm:$0xff]  }
0x235d   : > { %14172 = vmatpush1.bf16.msra.mxu0 %v23713_v44  ;;  %v23799_v44 = vld [vmem:[%s25052_s23 + $0x134] ss:$24 sps:$4 sm:$0xff]  }
0x235e   : > { %14301 = vmatpush1.bf16.msra.mxu1 %v23716_v7  ;;  %14173 = vmatprep.subr.bf16.mxu0 %v23721_v27  ;;  %v23797_v7 = vld [vmem:[%s25052_s23 + $0x130] ss:$24 sps:$4 sm:$0xff]   ;;  %v23802_v27 = vld [vmem:[%s25052_s23 + $0x164] ss:$24 sps:$4 sm:$0xff]  }
0x235f   : > { %14302 = vmatprep.subr.bf16.mxu1 %v23724_v49  ;;  %v23800_v49 = vld [vmem:[%s25052_s23 + $0x160] ss:$24 sps:$4 sm:$0xff]  }
0x2361   : > { %14174 = vmatpush1.bf16.msra.mxu0 %v23719_v48  ;;  %v23805_v48 = vld [vmem:[%s25052_s23 + $0x194] ss:$24 sps:$4 sm:$0xff]  }
0x2362   : > { %14303 = vmatpush1.bf16.msra.mxu1 %v23722_v29  ;;  %14175 = vmatprep.subr.bf16.mxu0 %v23727_v13  ;;  %v23803_v29 = vld [vmem:[%s25052_s23 + $0x190] ss:$24 sps:$4 sm:$0xff]   ;;  %v23808_v13 = vld [vmem:[%s25052_s23 + $0x1c4] ss:$24 sps:$4 sm:$0xff]  }
0x2363   : > { %14304 = vmatprep.subr.bf16.mxu1 %v23730_v4  ;;  %v23806_v4 = vld [vmem:[%s25052_s23 + $0x1c0] ss:$24 sps:$4 sm:$0xff]  }
0x2365   : > { %14176 = vmatpush1.bf16.msra.mxu0 %v23725_v16  ;;  %v23811_v16 = vld [vmem:[%s25052_s23 + $0x1f4] ss:$24 sps:$4 sm:$0xff]  }
0x2366   : > { %14305 = vmatpush1.bf16.msra.mxu1 %v23728_v35  ;;  %14177 = vmatprep.subr.bf16.mxu0 %v23733_v62  ;;  %v23809_v35 = vld [vmem:[%s25052_s23 + $0x1f0] ss:$24 sps:$4 sm:$0xff]   ;;  %v23814_v62 = vld [vmem:[%s25052_s23 + $0x224] ss:$24 sps:$4 sm:$0xff]  }
0x2367   : > { %14306 = vmatprep.subr.bf16.mxu1 %v23736_v58  ;;  %v23812_v58 = vld [vmem:[%s25052_s23 + $0x220] ss:$24 sps:$4 sm:$0xff]  }
0x2369   : > { %14178 = vmatpush1.bf16.msra.mxu0 %v23731_v55  ;;  %v23817_v55 = vld [vmem:[%s25052_s23 + $0x254] ss:$24 sps:$4 sm:$0xff]  }
0x236a   : > { %14307 = vmatpush1.bf16.msra.mxu1 %v23734_v57  ;;  %14179 = vmatprep.subr.bf16.mxu0 %v23739_v34  ;;  %v23815_v57 = vld [vmem:[%s25052_s23 + $0x250] ss:$24 sps:$4 sm:$0xff]   ;;  %v23820_v34 = vld [vmem:[%s25052_s23 + $0x284] ss:$24 sps:$4 sm:$0xff]  }
0x236b   : > { %14308 = vmatprep.subr.bf16.mxu1 %v23742_v26  ;;  %v23818_v26 = vld [vmem:[%s25052_s23 + $0x280] ss:$24 sps:$4 sm:$0xff]  }
0x236d   : > { %14180 = vmatpush1.bf16.msra.mxu0 %v23737_v5  ;;  %v23823_v5 = vld [vmem:[%s25052_s23 + $0x2b4] ss:$24 sps:$4 sm:$0xff]  }
0x236e   : > { %14309 = vmatpush1.bf16.msra.mxu1 %v23740_v25  ;;  %14181 = vmatprep.subr.bf16.mxu0 %v23745_v38  ;;  %v23919_v25 = vld [vmem:[%s25052_s23 + $0x904] ss:$24 sps:$4 sm:$0xff]   ;;  %v23821_v38 = vld [vmem:[%s25052_s23 + $0x2b0] ss:$24 sps:$4 sm:$0xff]  }
0x236f   : > { %14310 = vmatprep.subr.bf16.mxu1 %v23748_v18  ;;  %v23826_v18 = vld [vmem:[%s25052_s23 + $0x2e4] ss:$24 sps:$4 sm:$0xff]  }
0x2371   : > { %14182 = vmatpush1.bf16.msra.mxu0 %v23743_v12  ;;  %v23917_v12 = vld [vmem:[%s25052_s23 + $0x900] ss:$24 sps:$4 sm:$0xff]  }
0x2372   : > { %14311 = vmatpush1.bf16.msra.mxu1 %v23746_v19  ;;  %14183 = vmatprep.subr.bf16.mxu0 %v23751_v63  ;;  %v23925_v19 = vld [vmem:[%s25052_s23 + $0x934] ss:$24 sps:$4 sm:$0xff]   ;;  %v23824_v63 = vld [vmem:[%s25052_s23 + $0x2e0] ss:$24 sps:$4 sm:$0xff]  }
0x2373   : > { %14312 = vmatprep.subr.bf16.mxu1 %v23754_v31  ;;  %v23829_v31 = vld [vmem:[%s25052_s23 + $0x314] ss:$24 sps:$4 sm:$0xff]  }
0x2375   : > { %14184 = vmatpush1.bf16.msra.mxu0 %v23749_v33  ;;  %v23923_v33 = vld [vmem:[%s25052_s23 + $0x930] ss:$24 sps:$4 sm:$0xff]  }
0x2376   : > { %14313 = vmatpush1.bf16.msra.mxu1 %v23752_v52  ;;  %14185 = vmatprep.subr.bf16.mxu0 %v23757_v21  ;;  %v23827_v52 = vld [vmem:[%s25052_s23 + $0x310] ss:$24 sps:$4 sm:$0xff]   ;;  %v23931_v21 = vld [vmem:[%s25052_s23 + $0x964] ss:$24 sps:$4 sm:$0xff]  }
0x2377   : > { %14314 = vmatprep.subr.bf16.mxu1 %v23760_v20  ;;  %v23929_v20 = vld [vmem:[%s25052_s23 + $0x960] ss:$24 sps:$4 sm:$0xff]  }
0x2379   : > { %14186 = vmatpush1.bf16.msra.mxu0 %v23755_v46  ;;  %v23832_v46 = vld [vmem:[%s25052_s23 + $0x344] ss:$24 sps:$4 sm:$0xff]  }
0x237a   : > { %14315 = vmatpush1.bf16.msra.mxu1 %v23758_v39  ;;  %14187 = vmatprep.subr.bf16.mxu0 %v23763_v51  ;;  %v23937_v39 = vld [vmem:[%s25052_s23 + $0x994] ss:$24 sps:$4 sm:$0xff]   ;;  %v23830_v51 = vld [vmem:[%s25052_s23 + $0x340] ss:$24 sps:$4 sm:$0xff]  }
0x237b   : > { %14316 = vmatprep.subr.bf16.mxu1 %v23766_v9  ;;  %v23835_v9 = vld [vmem:[%s25052_s23 + $0x374] ss:$24 sps:$4 sm:$0xff]  }
0x237d   : > { %14188 = vmatpush1.bf16.msra.mxu0 %v23761_v37  ;;  %v23935_v37 = vld [vmem:[%s25052_s23 + $0x990] ss:$24 sps:$4 sm:$0xff]  }
0x237e   : > { %14317 = vmatpush1.bf16.msra.mxu1 %v23764_v45  ;;  %14189 = vmatprep.subr.bf16.mxu0 %v23769_v36  ;;  %v23943_v45 = vld [vmem:[%s25052_s23 + $0x9c4] ss:$24 sps:$4 sm:$0xff]   ;;  %v23833_v36 = vld [vmem:[%s25052_s23 + $0x370] ss:$24 sps:$4 sm:$0xff]  }
0x237f   : > { %14318 = vmatprep.subr.bf16.mxu1 %v23772_v53  ;;  %v23941_v53 = vld [vmem:[%s25052_s23 + $0x9c0] ss:$24 sps:$4 sm:$0xff]  }
0x2381   : > { %14190 = vmatpush1.bf16.msra.mxu0 %v23767_v56  ;;  %v23836_v56 = vld [vmem:[%s25052_s23 + $0x3a0] ss:$24 sps:$4 sm:$0xff]  }
0x2382   : > { %14319 = vmatpush1.bf16.msra.mxu1 %v23770_v61  ;;  %14191 = vmatprep.subr.bf16.mxu0 %v23775_v32  ;;  %v23841_v61 = vld [vmem:[%s25052_s23 + $0x3d4] ss:$24 sps:$4 sm:$0xff]   ;;  %v23947_v32 = vld [vmem:[%s25052_s23 + $0x9f0] ss:$24 sps:$4 sm:$0xff]  }
0x2383   : > { %14320 = vmatprep.subr.bf16.mxu1 %v23778_v41  ;;  %v23955_v41 = vld [vmem:[%s25052_s23 + $0xa24] ss:$24 sps:$4 sm:$0xff]  }
0x2385   : > { %14192 = vmatpush1.bf16.msra.mxu0 %v23773_v54  ;;  %v23839_v54 = vld [vmem:[%s25052_s23 + $0x3d0] ss:$24 sps:$4 sm:$0xff]  }
0x2386   : > { %14321 = vmatpush1.bf16.msra.mxu1 %v23776_v6  ;;  %14333 = vmatprep.subr.bf16.mxu0 %v23781_v50  ;;  %v23844_v6 = vld [vmem:[%s25052_s23 + $0x404] ss:$24 sps:$4 sm:$0xff]   ;;  %v23847_v50 = vld [vmem:[%s25052_s23 + $0x434] ss:$24 sps:$4 sm:$0xff]  }
0x2387   : > { %16317 = vmatprep.subr.bf16.mxu1 %v23919_v25  ;;  %v23866_v25 = vld [vmem:[%s25052_s23 + $0x580] ss:$24 sps:$4 sm:$0xff]  }
0x2388   : > { %14194 = vmatmul.mubr.bf16.vlgmr.msra.gmra.mrb[0].mxu0 %v27196_v60 }
0x2389   : > { %14323 = vmatmul.mubr.bf16.vlgmr.msra.gmra.mrb[0].mxu1 %v27196_v60  ;;  %14334 = vmatpush1.bf16.msra.mxu0 %v23779_v30  ;;  %v23961_v30 = vld [vmem:[%s25052_s23 + $0xa54] ss:$24 sps:$4 sm:$0xff]  }
0x238a   : > { %14365 = vmatprep.mubr.bf16.mxu0 %v27031_v17  ;;  %14335 = vmatprep.subr.bf16.mxu0 %v23784_v22  ;;  %v23794_v17 = vld [vmem:[%s25052_s23 + $0x100] ss:$24 sps:$4 sm:$0xff]   ;;  %v23959_v22 = vld [vmem:[%s25052_s23 + $0xa50] ss:$24 sps:$4 sm:$0xff]  }
0x238b   : > { %16318 = vmatpush1.bf16.msra.mxu1 %v23917_v12  ;;  %v23871_v12 = vld [vmem:[%s25052_s23 + $0x5b4] ss:$24 sps:$4 sm:$0xff]  }
0x238c   : > { %16319 = vmatprep.subr.bf16.mxu1 %v23925_v19  ;;  %v24007_v19 = vld [vmem:[%s25052_s23 + $0xbd0] ss:$24 sps:$4 sm:$0xff]  }
0x238d   : > { %14336 = vmatpush1.bf16.msra.mxu0 %v23782_v14  ;;  %v23845_v14 = vld [vmem:[%s25052_s23 + $0x430] ss:$24 sps:$4 sm:$0xff]  }
0x238e   : > { %14337 = vmatprep.subr.bf16.mxu0 %v23787_v23  ;;  %v23850_v23 = vld [vmem:[%s25052_s23 + $0x464] ss:$24 sps:$4 sm:$0xff]  }
0x238f   : > { %16320 = vmatpush1.bf16.msra.mxu1 %v23923_v33  ;;  %v23874_v33 = vld [vmem:[%s25052_s23 + $0x5e4] ss:$24 sps:$4 sm:$0xff]  }
0x2390   : > { %16321 = vmatprep.subr.bf16.mxu1 %v23931_v21  ;;  %v23872_v21 = vld [vmem:[%s25052_s23 + $0x5e0] ss:$24 sps:$4 sm:$0xff]  }
0x2391   : > { %14338 = vmatpush1.bf16.msra.mxu0 %v23785_v3  ;;  %v23848_v3 = vld [vmem:[%s25052_s23 + $0x460] ss:$24 sps:$4 sm:$0xff]  }
0x2392   : > { %14339 = vmatprep.subr.bf16.mxu0 %v23790_v40  ;;  %v23967_v40 = vld [vmem:[%s25052_s23 + $0xa84] ss:$24 sps:$4 sm:$0xff]  }
0x2393   : > { %16322 = vmatpush1.bf16.msra.mxu1 %v23929_v20  ;;  %v23877_v20 = vld [vmem:[%s25052_s23 + $0x614] ss:$24 sps:$4 sm:$0xff]  }
0x2394   : > { %16323 = vmatprep.subr.bf16.mxu1 %v23937_v39  ;;  %v23880_v39 = vld [vmem:[%s25052_s23 + $0x644] ss:$24 sps:$4 sm:$0xff]  }
0x2395   : > { %14340 = vmatpush1.bf16.msra.mxu0 %v23788_v24  ;;  %v23965_v24 = vld [vmem:[%s25052_s23 + $0xa80] ss:$24 sps:$4 sm:$0xff]  }
0x2396   : > { %14341 = vmatprep.subr.bf16.mxu0 %v23793_v28  ;;  %v23853_v28 = vld [vmem:[%s25052_s23 + $0x494] ss:$24 sps:$4 sm:$0xff]  }
0x2397   : > { %16324 = vmatpush1.bf16.msra.mxu1 %v23935_v37  ;;  %v23881_v37 = vld [vmem:[%s25052_s23 + $0x670] ss:$24 sps:$4 sm:$0xff]  }
0x2398   : > { %16325 = vmatprep.subr.bf16.mxu1 %v23943_v45  ;;  %v23886_v45 = vld [vmem:[%s25052_s23 + $0x6a4] ss:$24 sps:$4 sm:$0xff]  }
0x2399   : > { %14342 = vmatpush1.bf16.msra.mxu0 %v23791_v47  ;;  %v23851_v47 = vld [vmem:[%s25052_s23 + $0x490] ss:$24 sps:$4 sm:$0xff]  }
0x239a   : > { %14343 = vmatprep.subr.bf16.mxu0 %v23796_v59  ;;  %v23973_v59 = vld [vmem:[%s25052_s23 + $0xab4] ss:$24 sps:$4 sm:$0xff]  }
0x239b   : > { %16326 = vmatpush1.bf16.msra.mxu1 %v23941_v53  ;;  %v23890_v53 = vld [vmem:[%s25052_s23 + $0x700] ss:$24 sps:$4 sm:$0xff]  }
0x239d   : > { %14344 = vmatpush1.bf16.msra.mxu0 %v23794_v17  ;;  %v23971_v17 = vld [vmem:[%s25052_s23 + $0xab0] ss:$24 sps:$4 sm:$0xff]  }
0x239e   : > { %14345 = vmatprep.subr.bf16.mxu0 %v23799_v44  ;;  %v23856_v44 = vld [vmem:[%s25052_s23 + $0x4c4] ss:$24 sps:$4 sm:$0xff]  }
0x23a1   : > { %14346 = vmatpush1.bf16.msra.mxu0 %v23797_v7  ;;  %v23854_v7 = vld [vmem:[%s25052_s23 + $0x4c0] ss:$24 sps:$4 sm:$0xff]  }
0x23a2   : > { %14347 = vmatprep.subr.bf16.mxu0 %v23802_v27  ;;  %v23979_v27 = vld [vmem:[%s25052_s23 + $0xae4] ss:$24 sps:$4 sm:$0xff]  }
0x23a5   : > { %14348 = vmatpush1.bf16.msra.mxu0 %v23800_v49  ;;  %v23977_v49 = vld [vmem:[%s25052_s23 + $0xae0] ss:$24 sps:$4 sm:$0xff]  }
0x23a6   : > { %14349 = vmatprep.subr.bf16.mxu0 %v23805_v48  ;;  %v23859_v48 = vld [vmem:[%s25052_s23 + $0x4f4] ss:$24 sps:$4 sm:$0xff]  }
0x23a9   : > { %14350 = vmatpush1.bf16.msra.mxu0 %v23803_v29  ;;  %v23857_v29 = vld [vmem:[%s25052_s23 + $0x4f0] ss:$24 sps:$4 sm:$0xff]  }
0x23aa   : > { %14351 = vmatprep.subr.bf16.mxu0 %v23808_v13  ;;  %v23985_v13 = vld [vmem:[%s25052_s23 + $0xb14] ss:$24 sps:$4 sm:$0xff]  }
0x23ad   : > { %14352 = vmatpush1.bf16.msra.mxu0 %v23806_v4  ;;  %v23983_v4 = vld [vmem:[%s25052_s23 + $0xb10] ss:$24 sps:$4 sm:$0xff]  }
0x23ae   : > { %14353 = vmatprep.subr.bf16.mxu0 %v23811_v16  ;;  %v23862_v16 = vld [vmem:[%s25052_s23 + $0x524] ss:$24 sps:$4 sm:$0xff]  }
0x23b1   : > { %14354 = vmatpush1.bf16.msra.mxu0 %v23809_v35  ;;  %v23860_v35 = vld [vmem:[%s25052_s23 + $0x520] ss:$24 sps:$4 sm:$0xff]  }
0x23b2   : > { %14355 = vmatprep.subr.bf16.mxu0 %v23814_v62  ;;  %v23991_v62 = vld [vmem:[%s25052_s23 + $0xb44] ss:$24 sps:$4 sm:$0xff]  }
0x23b5   : > { %14356 = vmatpush1.bf16.msra.mxu0 %v23812_v58  ;;  %v23989_v58 = vld [vmem:[%s25052_s23 + $0xb40] ss:$24 sps:$4 sm:$0xff]  }
0x23b6   : > { %14357 = vmatprep.subr.bf16.mxu0 %v23817_v55  ;;  %v23865_v55 = vld [vmem:[%s25052_s23 + $0x554] ss:$24 sps:$4 sm:$0xff]  }
0x23b9   : > { %14358 = vmatpush1.bf16.msra.mxu0 %v23815_v57  ;;  %v23863_v57 = vld [vmem:[%s25052_s23 + $0x550] ss:$24 sps:$4 sm:$0xff]  }
0x23ba   : > { %14359 = vmatprep.subr.bf16.mxu0 %v23820_v34  ;;  %v23997_v34 = vld [vmem:[%s25052_s23 + $0xb74] ss:$24 sps:$4 sm:$0xff]  }
0x23bd   : > { %14360 = vmatpush1.bf16.msra.mxu0 %v23818_v26  ;;  %v23995_v26 = vld [vmem:[%s25052_s23 + $0xb70] ss:$24 sps:$4 sm:$0xff]  }
0x23be   : > { %14361 = vmatprep.subr.bf16.mxu0 %v23823_v5  ;;  %v23868_v5 = vld [vmem:[%s25052_s23 + $0x584] ss:$24 sps:$4 sm:$0xff]  }
0x23c1   : > { %14362 = vmatpush1.bf16.msra.mxu0 %v23821_v38  ;;  %v24003_v38 = vld [vmem:[%s25052_s23 + $0xba4] ss:$24 sps:$4 sm:$0xff]  }
0x23c2   : > { %14363 = vmatprep.subr.bf16.mxu0 %v23826_v18  ;;  %v24001_v18 = vld [vmem:[%s25052_s23 + $0xba0] ss:$24 sps:$4 sm:$0xff]  }
0x23c5   : > { %14364 = vmatpush1.bf16.msra.mxu0 %v23824_v63  ;;  %v24009_v63 = vld [vmem:[%s25052_s23 + $0xbd4] ss:$24 sps:$4 sm:$0xff]  }
0x23c6   : > { %14376 = vmatprep.subr.bf16.mxu0 %v23829_v31  ;;  %v23869_v31 = vld [vmem:[%s25052_s23 + $0x5b0] ss:$24 sps:$4 sm:$0xff]  }
0x23c8   : > { %14366 = vmatmul.mubr.bf16.vlgmr.msra.gmra.mrb[4].mxu0 %v27055_v43  ;;  %v23838_v43 = vld [vmem:[%s25052_s23 + $0x3a4] ss:$24 sps:$4 sm:$0xff]  }
0x23c9   : > { %14377 = vmatpush1.bf16.msra.mxu0 %v23827_v52  ;;  %14408 = vmatprep.mubr.bf16.mxu0 %v27083_v8  ;;  %v23949_v8 = vld [vmem:[%s25052_s23 + $0x9f4] ss:$24 sps:$4 sm:$0xff]   ;;  %v24015_v52 = vld [vmem:[%s25052_s23 + $0xc04] ss:$24 sps:$4 sm:$0xff]  }
0x23ca   : > { %14378 = vmatprep.subr.bf16.mxu0 %v23832_v46  ;;  %16327 = vmatprep.subr.bf16.mxu1 %v23949_v8  ;;  %v23875_v46 = vld [vmem:[%s25052_s23 + $0x610] ss:$24 sps:$4 sm:$0xff]   ;;  %v23895_v8 = vld [vmem:[%s25052_s23 + $0x734] ss:$24 sps:$4 sm:$0xff]  }
0x23cb   : > { %16328 = vmatpush1.bf16.msra.mxu1 %v23947_v32  ;;  %v23896_v32 = vld [vmem:[%s25052_s23 + $0x760] ss:$24 sps:$4 sm:$0xff]  }
0x23cc   : > { %16329 = vmatprep.subr.bf16.mxu1 %v23955_v41  ;;  %v23901_v41 = vld [vmem:[%s25052_s23 + $0x794] ss:$24 sps:$4 sm:$0xff]  }
0x23cd   : > { %14379 = vmatpush1.bf16.msra.mxu0 %v23830_v51  ;;  %v23878_v51 = vld [vmem:[%s25052_s23 + $0x640] ss:$24 sps:$4 sm:$0xff]  }
0x23ce   : > { %14380 = vmatprep.subr.bf16.mxu0 %v23835_v9  ;;  %v23883_v9 = vld [vmem:[%s25052_s23 + $0x674] ss:$24 sps:$4 sm:$0xff]  }
0x23cf   : > { %16330 = vmatpush1.bf16.msra.mxu1 %v23953_v15  ;;  %v23902_v15 = vld [vmem:[%s25052_s23 + $0x7c0] ss:$24 sps:$4 sm:$0xff]  }
0x23d0   : > { %16331 = vmatprep.subr.bf16.mxu1 %v23961_v30  ;;  %v23910_v30 = vld [vmem:[%s25052_s23 + $0x824] ss:$24 sps:$4 sm:$0xff]  }
0x23d1   : > { %14381 = vmatpush1.bf16.msra.mxu0 %v23833_v36  ;;  %v23884_v36 = vld [vmem:[%s25052_s23 + $0x6a0] ss:$24 sps:$4 sm:$0xff]  }
0x23d2   : > { %14382 = vmatprep.subr.bf16.mxu0 %v23838_v43  ;;  %v23887_v43 = vld [vmem:[%s25052_s23 + $0x6d0] ss:$24 sps:$4 sm:$0xff]  }
0x23d3   : > { %16332 = vmatpush1.bf16.msra.mxu1 %v23959_v22  ;;  %v23908_v22 = vld [vmem:[%s25052_s23 + $0x820] ss:$24 sps:$4 sm:$0xff]  }
0x23d4   : > { %16333 = vmatprep.subr.bf16.mxu1 %v23967_v40  ;;  %v23914_v40 = vld [vmem:[%s25052_s23 + $0x880] ss:$24 sps:$4 sm:$0xff]  }
0x23d5   : > { %14383 = vmatpush1.bf16.msra.mxu0 %v23836_v56  ;;  %v23893_v56 = vld [vmem:[%s25052_s23 + $0x730] ss:$24 sps:$4 sm:$0xff]  }
0x23d6   : > { %14384 = vmatprep.subr.bf16.mxu0 %v23841_v61  ;;  %v23898_v61 = vld [vmem:[%s25052_s23 + $0x764] ss:$24 sps:$4 sm:$0xff]  }
0x23d7   : > { %16334 = vmatpush1.bf16.msra.mxu1 %v23965_v24  ;;  %v23922_v24 = vld [vmem:[%s25052_s23 + $0x8b4] ss:$24 sps:$4 sm:$0xff]  }
0x23d8   : > { %16335 = vmatprep.subr.bf16.mxu1 %v23973_v59  ;;  %v23926_v59 = vld [vmem:[%s25052_s23 + $0x8e0] ss:$24 sps:$4 sm:$0xff]  }
0x23d9   : > { %14385 = vmatpush1.bf16.msra.mxu0 %v23839_v54  ;;  %v23899_v54 = vld [vmem:[%s25052_s23 + $0x790] ss:$24 sps:$4 sm:$0xff]  }
0x23da   : > { %14386 = vmatprep.subr.bf16.mxu0 %v23844_v6  ;;  %v23904_v6 = vld [vmem:[%s25052_s23 + $0x7c4] ss:$24 sps:$4 sm:$0xff]  }
0x23db   : > { %16336 = vmatpush1.bf16.msra.mxu1 %v23971_v17  ;;  %v23934_v17 = vld [vmem:[%s25052_s23 + $0x90c] ss:$24 sps:$4 sm:$0xff]  }
0x23dc   : > { %16337 = vmatprep.subr.bf16.mxu1 %v23979_v27  ;;  %v12581_v27 = vlaneseq }
0x23dd   : > { %14387 = vmatpush1.bf16.msra.mxu0 %v23842_v10  ;;  %v23907_v10 = vld [vmem:[%s25052_s23 + $0x7f4] ss:$24 sps:$4 sm:$0xff]  }
0x23de   : > { %14388 = vmatprep.subr.bf16.mxu0 %v23847_v50  ;;  %v23905_v50 = vld [vmem:[%s25052_s23 + $0x7f0] ss:$24 sps:$4 sm:$0xff]  }
0x23df   : > { %16338 = vmatpush1.bf16.msra.mxu1 %v23977_v49  ;;  %v23938_v49 = vld [vmem:[%s25052_s23 + $0x938] ss:$24 sps:$4 sm:$0xff]  }
0x23e0   : > { %16339 = vmatprep.subr.bf16.mxu1 %v23985_v13  ;;  %v23944_v13 = vld [vmem:[%s25052_s23 + $0x968] ss:$24 sps:$4 sm:$0xff]  }
0x23e1   : > { %14389 = vmatpush1.bf16.msra.mxu0 %v23845_v14  ;;  %v23913_v14 = vld [vmem:[%s25052_s23 + $0x854] ss:$24 sps:$4 sm:$0xff]  }
0x23e2   : > { %14390 = vmatprep.subr.bf16.mxu0 %v23850_v23  ;;  %v23911_v23 = vld [vmem:[%s25052_s23 + $0x850] ss:$24 sps:$4 sm:$0xff]  }
0x23e3   : > { %16340 = vmatpush1.bf16.msra.mxu1 %v23983_v4  ;;  %v23952_v4 = vld [vmem:[%s25052_s23 + $0x99c] ss:$24 sps:$4 sm:$0xff]  }
0x23e4   : > { %16341 = vmatprep.subr.bf16.mxu1 %v23991_v62  ;;  %v23958_v62 = vld [vmem:[%s25052_s23 + $0x9cc] ss:$24 sps:$4 sm:$0xff]  }
0x23e5   : > { %14391 = vmatpush1.bf16.msra.mxu0 %v23848_v3  ;;  %v23916_v3 = vld [vmem:[%s25052_s23 + $0x884] ss:$24 sps:$4 sm:$0xff]  }
0x23e6   : > { %14392 = vmatprep.subr.bf16.mxu0 %v23853_v28  ;;  %v23920_v28 = vld [vmem:[%s25052_s23 + $0x8b0] ss:$24 sps:$4 sm:$0xff]  }
0x23e7   : > { %16342 = vmatpush1.bf16.msra.mxu1 %v23989_v58 }
0x23e8   : > { %16343 = vmatprep.subr.bf16.mxu1 %v23997_v34 }
0x23e9   : > { %14393 = vmatpush1.bf16.msra.mxu0 %v23851_v47  ;;  %v23928_v47 = vld [vmem:[%s25052_s23 + $0x8e4] ss:$24 sps:$4 sm:$0xff]  }
0x23ea   : > { %14394 = vmatprep.subr.bf16.mxu0 %v23856_v44  ;;  %v23932_v44 = vld [vmem:[%s25052_s23 + $0x908] ss:$24 sps:$4 sm:$0xff]  }
0x23eb   : > { %16344 = vmatpush1.bf16.msra.mxu1 %v23995_v26 }
0x23ec   : > { %16345 = vmatprep.subr.bf16.mxu1 %v24003_v38 }
0x23ed   : > { %14395 = vmatpush1.bf16.msra.mxu0 %v23854_v7  ;;  %v23940_v7 = vld [vmem:[%s25052_s23 + $0x93c] ss:$24 sps:$4 sm:$0xff]  }
0x23ee   : > { %14396 = vmatprep.subr.bf16.mxu0 %v23859_v48  ;;  %v23946_v48 = vld [vmem:[%s25052_s23 + $0x96c] ss:$24 sps:$4 sm:$0xff]  }
0x23ef   : > { %16346 = vmatpush1.bf16.msra.mxu1 %v24001_v18 }
0x23f0   : > { %16347 = vmatprep.subr.bf16.mxu1 %v24009_v63  ;;  %v23970_v63 = vld [vmem:[%s25052_s23 + $0xa2c] ss:$24 sps:$4 sm:$0xff]  }
0x23f1   : > { %14397 = vmatpush1.bf16.msra.mxu0 %v23857_v29  ;;  %v27339_v29 = vshrl.u32 %v12581_v27, 7 }
0x23f2   : > { %14398 = vmatprep.subr.bf16.mxu0 %v23862_v16 }
0x23f3   : > { %16348 = vmatpush1.bf16.msra.mxu1 %v24007_v19  ;;  %v27344_v16 = vsub.s32 0, %v27339_v29  ;;  %v23962_v19 = vld [vmem:[%s25052_s23 + $0x9f8] ss:$24 sps:$4 sm:$0xff]  }
0x23f4   : > { %16360 = vmatprep.subr.bf16.mxu1 %v24015_v52 }
0x23f5   : > { %14399 = vmatpush1.bf16.msra.mxu0 %v23860_v35  ;;  %v23950_v35 = vld [vmem:[%s25052_s23 + $0x998] ss:$24 sps:$4 sm:$0xff]   ;;  %v12584_v58 = vrot.slane %v25077_v0, %v27344_v16 }
0x23f6   : > { %14400 = vmatprep.subr.bf16.mxu0 %v23865_v55  ;;  %v12592_v55 = vrot.slane %v25079_v1, %v27344_v16 }
0x23f8   : > { %v12622_v38 = vrot.slane %v12592_v55, %v27344_v16 }
0x23f9   : > { %14401 = vmatpush1.bf16.msra.mxu0 %v23863_v57  ;;  %v23956_v57 = vld [vmem:[%s25052_s23 + $0x9c8] ss:$24 sps:$4 sm:$0xff]  }
0x23fa   : > { %14402 = vmatprep.subr.bf16.mxu0 %v23868_v5  ;;  %v23964_v5 = vld [vmem:[%s25052_s23 + $0x9fc] ss:$24 sps:$4 sm:$0xff]  }
0x23fd   : > { %14403 = vmatpush1.bf16.msra.mxu0 %v23866_v25  ;;  %v12614_v25 = vrot.slane %v12584_v58, %v27344_v16 }
0x23fe   : > { %14404 = vmatprep.subr.bf16.mxu0 %v23871_v12 }
0x2401   : > { %14405 = vmatpush1.bf16.msra.mxu0 %v23869_v31 }
0x2402   : > { %14406 = vmatprep.subr.bf16.mxu0 %v23874_v33 }
0x2405   : > { %14407 = vmatpush1.bf16.msra.mxu0 %v23872_v21 }
0x2406   : > { %14419 = vmatprep.subr.bf16.mxu0 %v23877_v20 }
0x2408   : > { %14409 = vmatmul.mubr.bf16.vlgmr.msra.gmra.mrb[4].mxu0 %v27127_v11  ;;  %v23889_v11 = vld [vmem:[%s25052_s23 + $0x6d4] ss:$24 sps:$4 sm:$0xff]  }
0x2409   : > { %14420 = vmatpush1.bf16.msra.mxu0 %v23875_v46  ;;  %14451 = vmatprep.mubr.bf16.mxu0 %v27136_v42  ;;  %v23892_v42 = vld [vmem:[%s25052_s23 + $0x704] ss:$24 sps:$4 sm:$0xff]  }
0x240a   : > { %14421 = vmatprep.subr.bf16.mxu0 %v23880_v39 }
0x240d   : > { %14422 = vmatpush1.bf16.msra.mxu0 %v23878_v51 }
0x240e   : > { %14423 = vmatprep.subr.bf16.mxu0 %v23883_v9 }
0x2411   : > { %14424 = vmatpush1.bf16.msra.mxu0 %v23881_v37 }
0x2412   : > { %14425 = vmatprep.subr.bf16.mxu0 %v23886_v45  ;;  %v23968_v45 = vld [vmem:[%s25052_s23 + $0xa28] ss:$24 sps:$4 sm:$0xff]  }
0x2415   : > { %14426 = vmatpush1.bf16.msra.mxu0 %v23884_v36 }
0x2416   : > { %14427 = vmatprep.subr.bf16.mxu0 %v23889_v11 }
0x2419   : > { %14428 = vmatpush1.bf16.msra.mxu0 %v23887_v43 }
0x241a   : > { %14429 = vmatprep.subr.bf16.mxu0 %v23892_v42 }
0x241d   : > { %14430 = vmatpush1.bf16.msra.mxu0 %v23890_v53 }
0x241e   : > { %14431 = vmatprep.subr.bf16.mxu0 %v23895_v8 }
0x2421   : > { %14432 = vmatpush1.bf16.msra.mxu0 %v23893_v56  ;;  %v23976_v56 = vld [vmem:[%s25052_s23 + $0xa5c] ss:$24 sps:$4 sm:$0xff]  }
0x2422   : > { %14433 = vmatprep.subr.bf16.mxu0 %v23898_v61 }
0x2425   : > { %14434 = vmatpush1.bf16.msra.mxu0 %v23896_v32 }
0x2426   : > { %14435 = vmatprep.subr.bf16.mxu0 %v23901_v41 }
0x2429   : > { %14436 = vmatpush1.bf16.msra.mxu0 %v23899_v54 }
0x242a   : > { %14437 = vmatprep.subr.bf16.mxu0 %v23904_v6 }
0x242d   : > { %14438 = vmatpush1.bf16.msra.mxu0 %v23902_v15 }
0x242e   : > { %14439 = vmatprep.subr.bf16.mxu0 %v23907_v10 }
0x2431   : > { %14440 = vmatpush1.bf16.msra.mxu0 %v23905_v50 }
0x2432   : > { %14441 = vmatprep.subr.bf16.mxu0 %v23910_v30 }
0x2435   : > { %14442 = vmatpush1.bf16.msra.mxu0 %v23908_v22 }
0x2436   : > { %14443 = vmatprep.subr.bf16.mxu0 %v23913_v14 }
0x2439   : > { %14444 = vmatpush1.bf16.msra.mxu0 %v23911_v23 }
0x243a   : > { %14445 = vmatprep.subr.bf16.mxu0 %v23916_v3  ;;  %v23974_v3 = vld [vmem:[%s25052_s23 + $0xa58] ss:$24 sps:$4 sm:$0xff]  }
0x243d   : > { %14446 = vmatpush1.bf16.msra.mxu0 %v23914_v40 }
0x243e   : > { %14447 = vmatprep.subr.bf16.mxu0 %v23922_v24 }
0x2441   : > { %14448 = vmatpush1.bf16.msra.mxu0 %v23920_v28 }
0x2442   : > { %14449 = vmatprep.subr.bf16.mxu0 %v23928_v47 }
0x2445   : > { %14450 = vmatpush1.bf16.msra.mxu0 %v23926_v59  ;;  %v23982_v59 = vld [vmem:[%s25052_s23 + $0xa8c] ss:$24 sps:$4 sm:$0xff]  }
0x2446   : > { %16446 = vmatprep.subr.bf16.mxu0 %v23934_v17 }
0x2448   : > { %14452 = vmatmul.mubr.bf16.vlgmr.msra.gmra.mrb[4].mxu0 %v27196_v60  ;;  %v27348_v60 = vsub.s32 4, %v27339_v29 }
0x2449   : > { %16447 = vmatpush1.bf16.msra.mxu0 %v23932_v44 }
0x244a   : > { %16448 = vmatprep.subr.bf16.mxu0 %v23940_v7  ;;  %v12588_v34 = vrot.slane %v25077_v0, %v27348_v60  ;;  %v12596_v26 = vrot.slane %v25079_v1, %v27348_v60 }
0x244c   : > { %v12618_v18 = vrot.slane %v12588_v34, %v27344_v16  ;;  %v12626_v12 = vrot.slane %v12596_v26, %v27344_v16 }
0x244d   : > { %16449 = vmatpush1.bf16.msra.mxu0 %v23938_v49 }
0x244e   : > { %16450 = vmatprep.subr.bf16.mxu0 %v23946_v48 }
0x2451   : > { %16451 = vmatpush1.bf16.msra.mxu0 %v23944_v13 }
0x2452   : > { %16452 = vmatprep.subr.bf16.mxu0 %v23952_v4 }
0x2455   : > { %16453 = vmatpush1.bf16.msra.mxu0 %v23950_v35 }
0x2456   : > { %16454 = vmatprep.subr.bf16.mxu0 %v23958_v62 }
0x2459   : > { %16455 = vmatpush1.bf16.msra.mxu0 %v23956_v57  ;;  %v23980_v57 = vld [vmem:[%s25052_s23 + $0xa88] ss:$24 sps:$4 sm:$0xff]  }
0x245a   : > { %16456 = vmatprep.subr.bf16.mxu0 %v23964_v5 }
0x245b   : > { %v14195_v31 = vpop.f32.mrb[0].mxu0 }
0x245c   : > { %v14324_v33 = vpop.f32.mrb[0].mxu1  ;;  %v27367_v52 = vadd.f32 %v14195_v31, %v12614_v25  ;;  %v14197_v20 = vpop.f32.mrb[1].mxu0 }
0x245d   : > { %v27369_v21 = vadd.f32 %v14324_v33, %v12622_v38  ;;  %v14326_v46 = vpop.f32.mrb[1].mxu1  ;;  %v27371_v39 = vadd.f32 %v14197_v20, %v12618_v18  ;;  %v14199_v9 = vpop.f32.mrb[2].mxu0  ;;  %16457 = vmatpush1.bf16.msra.mxu0 %v23962_v19  ;;  %v23986_v20 = vld [vmem:[%s25052_s23 + $0xab8] ss:$24 sps:$4 sm:$0xff]  }
0x245e   : > { %v27373_v51 = vadd.f32 %v14326_v46, %v12626_v12  ;;  %v14328_v37 = vpop.f32.mrb[2].mxu1  ;;  %v14462_v36 = vmul.f32 %v27367_v52, %v27367_v52  ;;  %v27380_v43 = vadd.f32 %v14199_v9, %v12614_v25  ;;  %v14201_v53 = vpop.f32.mrb[3].mxu0  ;;  %16458 = vmatprep.subr.bf16.mxu0 %v23970_v63  ;;  %v23994_v9 = vld [vmem:[%s25052_s23 + $0xaec] ss:$24 sps:$4 sm:$0xff]  }
0x245f   : > { %v14464_v11 = vmul.f32 %v27369_v21, %v27369_v21  ;;  %v27382_v42 = vadd.f32 %v14328_v37, %v12622_v38  ;;  %v14330_v8 = vpop.f32.mrb[3].mxu1  ;;  %v14463_v61 = vmul.f32 %v27371_v39, %v27371_v39  ;;  %v27389_v41 = vadd.f32 %v14201_v53, %v12618_v18  ;;  %v23988_v38 = vld [vmem:[%s25052_s23 + $0xabc] ss:$24 sps:$4 sm:$0xff]  }
0x2460   : > { %v14465_v32 = vmul.f32 %v27373_v51, %v27373_v51  ;;  %v27391_v54 = vadd.f32 %v14330_v8, %v12626_v12  ;;  %v14474_v6 = vmul.f32 %v27367_v52, %v14462_v36  ;;  %v14468_v10 = vmul.f32 %v27380_v43, %v27380_v43  ;;  %v24000_v36 = vld [vmem:[%s25052_s23 + $0xb1c] ss:$24 sps:$4 sm:$0xff]   ;;  %v24006_v8 = vld [vmem:[%s25052_s23 + $0xb4c] ss:$24 sps:$4 sm:$0xff]  }
0x2461   : > { %v14476_v15 = vmul.f32 %v27369_v21, %v14464_v11  ;;  %v14470_v50 = vmul.f32 %v27382_v42, %v27382_v42  ;;  %v14475_v30 = vmul.f32 %v27371_v39, %v14463_v61  ;;  %v14469_v14 = vmul.f32 %v27389_v41, %v27389_v41  ;;  %16459 = vmatpush1.bf16.msra.mxu0 %v23968_v45  ;;  %v23992_v45 = vld [vmem:[%s25052_s23 + $0xae8] ss:$24 sps:$4 sm:$0xff]   ;;  %v23998_v11 = vld [vmem:[%s25052_s23 + $0xb18] ss:$24 sps:$4 sm:$0xff]  }
0x2462   : > { %v14477_v22 = vmul.f32 %v27373_v51, %v14465_v32  ;;  %v14471_v23 = vmul.f32 %v27391_v54, %v27391_v54  ;;  %v14486_v40 = vmul.f32 0.044715, %v14474_v6  ;;  %v14480_v28 = vmul.f32 %v27380_v43, %v14468_v10  ;;  %16460 = vmatprep.subr.bf16.mxu0 %v23976_v56  ;;  %v24004_v10 = vld [vmem:[%s25052_s23 + $0xb48] ss:$24 sps:$4 sm:$0xff]  }
0x2463   : > { %v14488_v24 = vmul.f32 0.044715, %v14476_v15  ;;  %v14482_v47 = vmul.f32 %v27382_v42, %v14470_v50  ;;  %v14487_v17 = vmul.f32 0.044715, %v14475_v30  ;;  %v14481_v7 = vmul.f32 %v27389_v41, %v14469_v14 }
0x2464   : > { %v14489_v44 = vmul.f32 0.044715, %v14477_v22  ;;  %v14483_v27 = vmul.f32 %v27391_v54, %v14471_v23  ;;  %v14498_v49 = vadd.f32 %v27367_v52, %v14486_v40  ;;  %v14492_v13 = vmul.f32 0.044715, %v14480_v28  ;;  %v24012_v22 = vld [vmem:[%s25052_s23 + $0xb7c] ss:$24 sps:$4 sm:$0xff]  }
0x2465   : > { %v14500_v48 = vadd.f32 %v27369_v21, %v14488_v24  ;;  %v14494_v4 = vmul.f32 0.044715, %v14482_v47  ;;  %v14499_v35 = vadd.f32 %v27371_v39, %v14487_v17  ;;  %v14493_v58 = vmul.f32 0.044715, %v14481_v7  ;;  %16461 = vmatpush1.bf16.msra.mxu0 %v23974_v3 }
0x2466   : > { %v14501_v62 = vadd.f32 %v27373_v51, %v14489_v44  ;;  %v14495_v55 = vmul.f32 0.044715, %v14483_v27  ;;  %v14510_v34 = vmul.f32 0.7978846, %v14498_v49  ;;  %v14504_v5 = vadd.f32 %v27380_v43, %v14492_v13  ;;  %16462 = vmatprep.subr.bf16.mxu0 %v23982_v59  ;;  %v24010_v44 = vld [vmem:[%s25052_s23 + $0xb78] ss:$24 sps:$4 sm:$0xff]  }
0x2467   : > { %v14512_v26 = vmul.f32 0.7978846, %v14500_v48  ;;  %v14506_v25 = vadd.f32 %v27382_v42, %v14494_v4  ;;  %v14511_v18 = vmul.f32 0.7978846, %v14499_v35  ;;  %v14505_v19 = vadd.f32 %v27389_v41, %v14493_v58  ;;  %v24018_v4 = vld [vmem:[%s25052_s23 + $0xbac] ss:$24 sps:$4 sm:$0xff]  }
0x2468   : > { %v14513_v12 = vmul.f32 0.7978846, %v14501_v62  ;;  %v14507_v63 = vadd.f32 %v27391_v54, %v14495_v55  ;;  %24355 = vtanh.f32 %v14510_v34  ;;  %v14516_v31 = vmul.f32 0.7978846, %v14504_v5 }
0x2469   : > { %24357 = vtanh.f32 %v14512_v26  ;;  %v14518_v33 = vmul.f32 0.7978846, %v14506_v25  ;;  %16463 = vmatpush1.bf16.msra.mxu0 %v23980_v57  ;;  %v14517_v46 = vmul.f32 0.7978846, %v14505_v19  ;;  %v24030_v19 = vld [vmem:[%s25052_s23 + $0xc0c] ss:$24 sps:$4 sm:$0xff]  }
0x246a   : > { %24359 = vtanh.f32 %v14511_v18  ;;  %16464 = vmatprep.subr.bf16.mxu0 %v23988_v38  ;;  %v14519_v37 = vmul.f32 0.7978846, %v14507_v63  ;;  %v24016_v38 = vld [vmem:[%s25052_s23 + $0xba8] ss:$24 sps:$4 sm:$0xff]   ;;  %v24027_v63 = vld [vmem:[%s25052_s23 + $0xc64] ss:$24 sps:$4 sm:$0xff]  }
0x246b   : > { %24361 = vtanh.f32 %v14513_v12  ;;  %v24013_v18 = vld [vmem:[%s25052_s23 + $0xc00] ss:$24 sps:$4 sm:$0xff]   ;;  %v24024_v12 = vld [vmem:[%s25052_s23 + $0xbdc] ss:$24 sps:$4 sm:$0xff]  }
0x246c   : > { %24363 = vtanh.f32 %v14516_v31  ;;  %v24028_v31 = vld [vmem:[%s25052_s23 + $0xc08] ss:$24 sps:$4 sm:$0xff]  }
0x246d   : > { %24365 = vtanh.f32 %v14518_v33  ;;  %16465 = vmatpush1.bf16.msra.mxu0 %v23986_v20  ;;  %v24025_v33 = vld [vmem:[%s25052_s23 + $0xc60] ss:$24 sps:$4 sm:$0xff]   ;;  %v24036_v20 = vld [vmem:[%s25052_s23 + $0xc3c] ss:$24 sps:$4 sm:$0xff]  }
0x246e   : > { %24367 = vtanh.f32 %v14517_v46  ;;  %16466 = vmatprep.subr.bf16.mxu0 %v23994_v9  ;;  %v24033_v46 = vld [vmem:[%s25052_s23 + $0xc94] ss:$24 sps:$4 sm:$0xff]   ;;  %v24034_v9 = vld [vmem:[%s25052_s23 + $0xc38] ss:$24 sps:$4 sm:$0xff]  }
0x246f   : > { %24369 = vtanh.f32 %v14519_v37  ;;  %v24031_v37 = vld [vmem:[%s25052_s23 + $0xc90] ss:$24 sps:$4 sm:$0xff]  }
0x2471   : > { %16467 = vmatpush1.bf16.msra.mxu0 %v23992_v45  ;;  %v24042_v45 = vld [vmem:[%s25052_s23 + $0xc6c] ss:$24 sps:$4 sm:$0xff]  }
0x2472   : > { %v24356_v53 = vpop.eup %24355  ;;  %16468 = vmatprep.subr.bf16.mxu0 %v24000_v36  ;;  %v24039_v36 = vld [vmem:[%s25052_s23 + $0xcc4] ss:$24 sps:$4 sm:$0xff]  }
0x2473   : > { %v24358_v56 = vpop.eup %24357  ;;  %v14534_v61 = vadd.f32 1.0, %v24356_v53  ;;  %v24037_v53 = vld [vmem:[%s25052_s23 + $0xcc0] ss:$24 sps:$4 sm:$0xff]  }
0x2474   : > { %v24360_v32 = vpop.eup %24359  ;;  %v14536_v6 = vadd.f32 1.0, %v24358_v56  ;;  %v24045_v56 = vld [vmem:[%s25052_s23 + $0xcf4] ss:$24 sps:$4 sm:$0xff]  }
0x2475   : > { %v24362_v15 = vpop.eup %24361  ;;  %16469 = vmatpush1.bf16.msra.mxu0 %v23998_v11  ;;  %v14535_v50 = vadd.f32 1.0, %v24360_v32  ;;  %v14546_v3 = vmul.f32 0.5, %v14534_v61  ;;  %v24040_v11 = vld [vmem:[%s25052_s23 + $0xc68] ss:$24 sps:$4 sm:$0xff]   ;;  %v24046_v61 = vld [vmem:[%s25052_s23 + $0xc98] ss:$24 sps:$4 sm:$0xff]  }
0x2476   : > { %v24364_v30 = vpop.eup %24363  ;;  %16470 = vmatprep.subr.bf16.mxu0 %v24006_v8  ;;  %v14537_v14 = vadd.f32 1.0, %v24362_v15  ;;  %v14548_v28 = vmul.f32 0.5, %v14536_v6  ;;  %v24048_v8 = vld [vmem:[%s25052_s23 + $0xc9c] ss:$24 sps:$4 sm:$0xff]   ;;  %v24043_v32 = vld [vmem:[%s25052_s23 + $0xcf0] ss:$24 sps:$4 sm:$0xff]  }
0x2477   : > { %v24366_v23 = vpop.eup %24365  ;;  %v14540_v40 = vadd.f32 1.0, %v24364_v30  ;;  %v14547_v27 = vmul.f32 0.5, %v14535_v50  ;;  %v14558_v35 = vmul.f32 %v27367_v52, %v14546_v3  ;;  %v24054_v6 = vld [vmem:[%s25052_s23 + $0xccc] ss:$24 sps:$4 sm:$0xff]   ;;  %v24049_v50 = vld [vmem:[%s25052_s23 + $0xd20] ss:$24 sps:$4 sm:$0xff]  }
0x2478   : > { %v24368_v24 = vpop.eup %24367  ;;  %v14542_v47 = vadd.f32 1.0, %v24366_v23  ;;  %v14549_v13 = vmul.f32 0.5, %v14537_v14  ;;  %v14560_v55 = vmul.f32 %v27369_v21, %v14548_v28  ;;  %v24051_v15 = vld [vmem:[%s25052_s23 + $0xd24] ss:$24 sps:$4 sm:$0xff]   ;;  %v24058_v14 = vld [vmem:[%s25052_s23 + $0xcf8] ss:$24 sps:$4 sm:$0xff]  }
0x2479   : > { %v24370_v59 = vpop.eup %24369  ;;  %v14552_v17 = vmul.f32 0.5, %v14540_v40  ;;  %16471 = vmatpush1.bf16.msra.mxu0 %v24004_v10  ;;  %v14541_v7 = vadd.f32 1.0, %v24368_v24  ;;  %v14559_v26 = vmul.f32 %v27371_v39, %v14547_v27  ;;  %v24052_v10 = vld [vmem:[%s25052_s23 + $0xcc8] ss:$24 sps:$4 sm:$0xff]   ;;  %v24060_v30 = vld [vmem:[%s25052_s23 + $0xcfc] ss:$24 sps:$4 sm:$0xff]  }
0x247a   : > { %v14554_v49 = vmul.f32 0.5, %v14542_v47  ;;  %16472 = vmatprep.subr.bf16.mxu0 %v24012_v22  ;;  %v14543_v48 = vadd.f32 1.0, %v24370_v59  ;;  %v14561_v52 = vmul.f32 %v27373_v51, %v14549_v13  ;;  %v24022_v51 = vld [vmem:[%s25052_s23 + $0xbd8] ss:$24 sps:$4 sm:$0xff]   ;;  %v24057_v22 = vld [vmem:[%s25052_s23 + $0xd54] ss:$24 sps:$4 sm:$0xff]  }
0x247b   : > { %v14564_v62 = vmul.f32 %v27380_v43, %v14552_v17  ;;  %v14553_v58 = vmul.f32 0.5, %v14541_v7  ;;  %v24055_v23 = vld [vmem:[%s25052_s23 + $0xd50] ss:$24 sps:$4 sm:$0xff]   ;;  %v24066_v3 = vld [vmem:[%s25052_s23 + $0xd2c] ss:$24 sps:$4 sm:$0xff]  }
0x247c   : > { %v14566_v57 = vmul.f32 %v27382_v42, %v14554_v49  ;;  %v14555_v34 = vmul.f32 0.5, %v14543_v48  ;;  %v24063_v40 = vld [vmem:[%s25052_s23 + $0xd84] ss:$24 sps:$4 sm:$0xff]   ;;  %v24064_v24 = vld [vmem:[%s25052_s23 + $0xd28] ss:$24 sps:$4 sm:$0xff]  }
0x247d   : > { %16473 = vmatpush1.bf16.msra.mxu0 %v24010_v44  ;;  %v14565_v5 = vmul.f32 %v27389_v41, %v14553_v58  ;;  %v27437_v25 = vpack.c.bf16 %v14564_v62, %v14558_v35  ;;  %v24021_v41 = vld [vmem:[%s25052_s23 + $0xc34] ss:$24 sps:$4 sm:$0xff]   ;;  %v24061_v28 = vld [vmem:[%s25052_s23 + $0xd80] ss:$24 sps:$4 sm:$0xff]   ;;  %v24067_v44 = vld [vmem:[%s25052_s23 + $0xdb0] ss:$24 sps:$4 sm:$0xff]  }
0x247e   : > { %v14567_v43 = vmul.f32 %v27391_v54, %v14555_v34  ;;  %16474 = vmatprep.subr.bf16.mxu0 %v24018_v4  ;;  %v27442_v21 = vpack.c.bf16 %v14566_v57, %v14560_v55  ;;  %v24019_v54 = vld [vmem:[%s25052_s23 + $0xc30] ss:$24 sps:$4 sm:$0xff]   ;;  %v24072_v47 = vld [vmem:[%s25052_s23 + $0xd5c] ss:$24 sps:$4 sm:$0xff]   ;;  %v24078_v7 = vld [vmem:[%s25052_s23 + $0xd8c] ss:$24 sps:$4 sm:$0xff]  }
0x247f   : > { %v27444_v42 = vpack.c.bf16 %v14565_v5, %v14559_v26  ;;  %v24069_v59 = vld [vmem:[%s25052_s23 + $0xdb4] ss:$24 sps:$4 sm:$0xff]   ;;  %v24070_v17 = vld [vmem:[%s25052_s23 + $0xd58] ss:$24 sps:$4 sm:$0xff]   ;;  %v24075_v27 = vld [vmem:[%s25052_s23 + $0xde4] ss:$24 sps:$4 sm:$0xff]  }
0x2480   : > { %v27447_v39 = vpack.c.bf16 %v14567_v43, %v14561_v52  ;;  %v24076_v49 = vld [vmem:[%s25052_s23 + $0xd88] ss:$24 sps:$4 sm:$0xff]   ;;  %v24084_v13 = vld [vmem:[%s25052_s23 + $0xdbc] ss:$24 sps:$4 sm:$0xff]   ;;  %v24082_v35 = vld [vmem:[%s25052_s23 + $0xdb8] ss:$24 sps:$4 sm:$0xff]  }
0x2481   : > { %16349 = vmatprep.mubr.bf16.mxu1 %v27444_v42  ;;  %16478 = vmatprep.mubr.bf16.mxu0 %v27444_v42  ;;  %v24073_v48 = vld [vmem:[%s25052_s23 + $0xde0] ss:$24 sps:$4 sm:$0xff]   ;;  %v24081_v4 = vld [vmem:[%s25052_s23 + $0xe14] ss:$24 sps:$4 sm:$0xff]   ;;  %v24079_v62 = vld [vmem:[%s25052_s23 + $0xe10] ss:$24 sps:$4 sm:$0xff]  }
0x2482   : > { %16350 = vmatmul.mubr.bf16.vlgmr.msra.gmra.mrb[4].mxu1 %v27437_v25  ;;  %16475 = vmatpush1.bf16.msra.mxu0 %v24016_v38  ;;  %v24090_v58 = vld [vmem:[%s25052_s23 + $0xdec] ss:$24 sps:$4 sm:$0xff]   ;;  %v24088_v57 = vld [vmem:[%s25052_s23 + $0xde8] ss:$24 sps:$4 sm:$0xff]   ;;  %v24096_v26 = vld [vmem:[%s25052_s23 + $0xe1c] ss:$24 sps:$4 sm:$0xff]  }
0x2483   : > { %16361 = vmatpush1.bf16.msra.mxu1 %v24013_v18  ;;  %16392 = vmatprep.mubr.bf16.mxu1 %v27447_v39  ;;  %v24087_v55 = vld [vmem:[%s25052_s23 + $0xe44] ss:$24 sps:$4 sm:$0xff]   ;;  %v24085_v34 = vld [vmem:[%s25052_s23 + $0xe40] ss:$24 sps:$4 sm:$0xff]   ;;  %v24093_v5 = vld [vmem:[%s25052_s23 + $0xe74] ss:$24 sps:$4 sm:$0xff]  }
0x2484   : > { %16362 = vmatprep.subr.bf16.mxu1 %v24021_v41  ;;  %16476 = vmatprep.subr.bf16.mxu0 %v24024_v12  ;;  %v24094_v52 = vld [vmem:[%s25052_s23 + $0xe18] ss:$24 sps:$4 sm:$0xff]   ;;  %v24102_v38 = vld [vmem:[%s25052_s23 + $0xe4c] ss:$24 sps:$4 sm:$0xff]   ;;  %v24100_v41 = vld [vmem:[%s25052_s23 + $0xe48] ss:$24 sps:$4 sm:$0xff]  }
0x2485   : > { %v24091_v43 = vld [vmem:[%s25052_s23 + $0xe70] ss:$24 sps:$4 sm:$0xff]   ;;  %v24099_v18 = vld [vmem:[%s25052_s23 + $0xea4] ss:$24 sps:$4 sm:$0xff]   ;;  %v24097_v12 = vld [vmem:[%s25052_s23 + $0xea0] ss:$24 sps:$4 sm:$0xff]  }
0x2486   : > { %16477 = vmatpush1.bf16.msra.mxu0 %v24022_v51  ;;  %v24108_v51 = vld [vmem:[%s25052_s23 + $0xe7c] ss:$24 sps:$4 sm:$0xff]  }
0x2487   : > { %16363 = vmatpush1.bf16.msra.mxu1 %v24019_v54  ;;  %16489 = vmatprep.subr.bf16.mxu0 %v24030_v19  ;;  %v24105_v54 = vld [vmem:[%s25052_s23 + $0xed4] ss:$24 sps:$4 sm:$0xff]   ;;  %v24106_v19 = vld [vmem:[%s25052_s23 + $0xe78] ss:$24 sps:$4 sm:$0xff]  }
0x2488   : > { %16364 = vmatprep.subr.bf16.mxu1 %v24027_v63  ;;  %v24103_v63 = vld [vmem:[%s25052_s23 + $0xed0] ss:$24 sps:$4 sm:$0xff]  }
0x2489   : > { %16479 = vmatmul.mubr.bf16.vlgmr.msra.gmra.mrb[8].mxu0 %v27437_v25 }
0x248a   : > { %16490 = vmatpush1.bf16.msra.mxu0 %v24028_v31  ;;  %16521 = vmatprep.mubr.bf16.mxu0 %v27447_v39  ;;  %v24111_v31 = vld [vmem:[%s25052_s23 + $0xeac] ss:$24 sps:$4 sm:$0xff]  }
0x248b   : > { %16365 = vmatpush1.bf16.msra.mxu1 %v24025_v33  ;;  %16491 = vmatprep.subr.bf16.mxu0 %v24036_v20  ;;  %v24117_v33 = vld [vmem:[%s25052_s23 + $0xf04] ss:$24 sps:$4 sm:$0xff]   ;;  %v24109_v20 = vld [vmem:[%s25052_s23 + $0xea8] ss:$24 sps:$4 sm:$0xff]  }
0x248c   : > { %16366 = vmatprep.subr.bf16.mxu1 %v24033_v46  ;;  %v24114_v46 = vld [vmem:[%s25052_s23 + $0xedc] ss:$24 sps:$4 sm:$0xff]  }
0x248e   : > { %16492 = vmatpush1.bf16.msra.mxu0 %v24034_v9  ;;  %v24115_v9 = vld [vmem:[%s25052_s23 + $0xf00] ss:$24 sps:$4 sm:$0xff]  }
0x248f   : > { %16367 = vmatpush1.bf16.msra.mxu1 %v24031_v37  ;;  %16493 = vmatprep.subr.bf16.mxu0 %v24042_v45  ;;  %v24123_v37 = vld [vmem:[%s25052_s23 + $0xf34] ss:$24 sps:$4 sm:$0xff]   ;;  %v24112_v45 = vld [vmem:[%s25052_s23 + $0xed8] ss:$24 sps:$4 sm:$0xff]  }
0x2490   : > { %16368 = vmatprep.subr.bf16.mxu1 %v24039_v36  ;;  %v24120_v36 = vld [vmem:[%s25052_s23 + $0xf0c] ss:$24 sps:$4 sm:$0xff]  }
0x2492   : > { %16494 = vmatpush1.bf16.msra.mxu0 %v24040_v11  ;;  %v24121_v11 = vld [vmem:[%s25052_s23 + $0xf30] ss:$24 sps:$4 sm:$0xff]  }
0x2493   : > { %16369 = vmatpush1.bf16.msra.mxu1 %v24037_v53  ;;  %16495 = vmatprep.subr.bf16.mxu0 %v24048_v8  ;;  %v24129_v53 = vld [vmem:[%s25052_s23 + $0xf64] ss:$24 sps:$4 sm:$0xff]   ;;  %v24118_v8 = vld [vmem:[%s25052_s23 + $0xf08] ss:$24 sps:$4 sm:$0xff]  }
0x2494   : > { %16370 = vmatprep.subr.bf16.mxu1 %v24045_v56  ;;  %v24126_v56 = vld [vmem:[%s25052_s23 + $0xf3c] ss:$24 sps:$4 sm:$0xff]  }
0x2496   : > { %16496 = vmatpush1.bf16.msra.mxu0 %v24046_v61  ;;  %v24127_v61 = vld [vmem:[%s25052_s23 + $0xf60] ss:$24 sps:$4 sm:$0xff]  }
0x2497   : > { %16371 = vmatpush1.bf16.msra.mxu1 %v24043_v32  ;;  %16497 = vmatprep.subr.bf16.mxu0 %v24054_v6  ;;  %v24135_v32 = vld [vmem:[%s25052_s23 + $0xf94] ss:$24 sps:$4 sm:$0xff]   ;;  %v24124_v6 = vld [vmem:[%s25052_s23 + $0xf38] ss:$24 sps:$4 sm:$0xff]  }
0x2498   : > { %16372 = vmatprep.subr.bf16.mxu1 %v24051_v15  ;;  %v24132_v15 = vld [vmem:[%s25052_s23 + $0xf6c] ss:$24 sps:$4 sm:$0xff]  }
0x249a   : > { %16498 = vmatpush1.bf16.msra.mxu0 %v24052_v10  ;;  %v24133_v10 = vld [vmem:[%s25052_s23 + $0xf90] ss:$24 sps:$4 sm:$0xff]  }
0x249b   : > { %16373 = vmatpush1.bf16.msra.mxu1 %v24049_v50  ;;  %16499 = vmatprep.subr.bf16.mxu0 %v24060_v30  ;;  %v24141_v50 = vld [vmem:[%s25052_s23 + $0xfc4] ss:$24 sps:$4 sm:$0xff]   ;;  %v24130_v30 = vld [vmem:[%s25052_s23 + $0xf68] ss:$24 sps:$4 sm:$0xff]  }
0x249c   : > { %16374 = vmatprep.subr.bf16.mxu1 %v24057_v22  ;;  %v24138_v22 = vld [vmem:[%s25052_s23 + $0xf9c] ss:$24 sps:$4 sm:$0xff]  }
0x249e   : > { %16500 = vmatpush1.bf16.msra.mxu0 %v24058_v14  ;;  %v24139_v14 = vld [vmem:[%s25052_s23 + $0xfc0] ss:$24 sps:$4 sm:$0xff]  }
0x249f   : > { %16375 = vmatpush1.bf16.msra.mxu1 %v24055_v23  ;;  %16501 = vmatprep.subr.bf16.mxu0 %v24066_v3  ;;  %v24147_v23 = vld [vmem:[%s25052_s23 + $0xff4] ss:$24 sps:$4 sm:$0xff]   ;;  %v24136_v3 = vld [vmem:[%s25052_s23 + $0xf98] ss:$24 sps:$4 sm:$0xff]  }
0x24a0   : > { %16376 = vmatprep.subr.bf16.mxu1 %v24063_v40  ;;  %v24144_v40 = vld [vmem:[%s25052_s23 + $0xfcc] ss:$24 sps:$4 sm:$0xff]  }
0x24a2   : > { %16502 = vmatpush1.bf16.msra.mxu0 %v24064_v24  ;;  %v24145_v24 = vld [vmem:[%s25052_s23 + $0xff0] ss:$24 sps:$4 sm:$0xff]  }
0x24a3   : > { %16377 = vmatpush1.bf16.msra.mxu1 %v24061_v28  ;;  %16503 = vmatprep.subr.bf16.mxu0 %v24072_v47  ;;  %v24153_v28 = vld [vmem:[%s25052_s23 + $0x1024] ss:$24 sps:$4 sm:$0xff]   ;;  %v24142_v47 = vld [vmem:[%s25052_s23 + $0xfc8] ss:$24 sps:$4 sm:$0xff]  }
0x24a4   : > { %16378 = vmatprep.subr.bf16.mxu1 %v24069_v59  ;;  %v24150_v59 = vld [vmem:[%s25052_s23 + $0xffc] ss:$24 sps:$4 sm:$0xff]  }
0x24a6   : > { %16504 = vmatpush1.bf16.msra.mxu0 %v24070_v17  ;;  %v24151_v17 = vld [vmem:[%s25052_s23 + $0x1020] ss:$24 sps:$4 sm:$0xff]  }
0x24a7   : > { %16379 = vmatpush1.bf16.msra.mxu1 %v24067_v44  ;;  %16505 = vmatprep.subr.bf16.mxu0 %v24078_v7  ;;  %v24159_v44 = vld [vmem:[%s25052_s23 + $0x1054] ss:$24 sps:$4 sm:$0xff]   ;;  %v24148_v7 = vld [vmem:[%s25052_s23 + $0xff8] ss:$24 sps:$4 sm:$0xff]  }
0x24a8   : > { %16380 = vmatprep.subr.bf16.mxu1 %v24075_v27  ;;  %v24156_v27 = vld [vmem:[%s25052_s23 + $0x102c] ss:$24 sps:$4 sm:$0xff]  }
0x24aa   : > { %16506 = vmatpush1.bf16.msra.mxu0 %v24076_v49  ;;  %v24157_v49 = vld [vmem:[%s25052_s23 + $0x1050] ss:$24 sps:$4 sm:$0xff]  }
0x24ab   : > { %16381 = vmatpush1.bf16.msra.mxu1 %v24073_v48  ;;  %16507 = vmatprep.subr.bf16.mxu0 %v24084_v13  ;;  %v24165_v48 = vld [vmem:[%s25052_s23 + $0x1084] ss:$24 sps:$4 sm:$0xff]   ;;  %v24154_v13 = vld [vmem:[%s25052_s23 + $0x1028] ss:$24 sps:$4 sm:$0xff]  }
0x24ac   : > { %16382 = vmatprep.subr.bf16.mxu1 %v24081_v4  ;;  %v24162_v4 = vld [vmem:[%s25052_s23 + $0x105c] ss:$24 sps:$4 sm:$0xff]  }
0x24ae   : > { %16508 = vmatpush1.bf16.msra.mxu0 %v24082_v35  ;;  %v24163_v35 = vld [vmem:[%s25052_s23 + $0x1080] ss:$24 sps:$4 sm:$0xff]  }
0x24af   : > { %16383 = vmatpush1.bf16.msra.mxu1 %v24079_v62  ;;  %16509 = vmatprep.subr.bf16.mxu0 %v24090_v58  ;;  %v24171_v62 = vld [vmem:[%s25052_s23 + $0x10b4] ss:$24 sps:$4 sm:$0xff]   ;;  %v24160_v58 = vld [vmem:[%s25052_s23 + $0x1058] ss:$24 sps:$4 sm:$0xff]  }
0x24b0   : > { %16384 = vmatprep.subr.bf16.mxu1 %v24087_v55  ;;  %v24168_v55 = vld [vmem:[%s25052_s23 + $0x108c] ss:$24 sps:$4 sm:$0xff]  }
0x24b2   : > { %16510 = vmatpush1.bf16.msra.mxu0 %v24088_v57  ;;  %v24169_v57 = vld [vmem:[%s25052_s23 + $0x10b0] ss:$24 sps:$4 sm:$0xff]  }
0x24b3   : > { %16385 = vmatpush1.bf16.msra.mxu1 %v24085_v34  ;;  %16511 = vmatprep.subr.bf16.mxu0 %v24096_v26  ;;  %v24177_v34 = vld [vmem:[%s25052_s23 + $0x10e4] ss:$24 sps:$4 sm:$0xff]   ;;  %v24166_v26 = vld [vmem:[%s25052_s23 + $0x1088] ss:$24 sps:$4 sm:$0xff]  }
0x24b4   : > { %16386 = vmatprep.subr.bf16.mxu1 %v24093_v5  ;;  %v24174_v5 = vld [vmem:[%s25052_s23 + $0x10bc] ss:$24 sps:$4 sm:$0xff]  }
0x24b6   : > { %16512 = vmatpush1.bf16.msra.mxu0 %v24094_v52  ;;  %v24175_v52 = vld [vmem:[%s25052_s23 + $0x10e0] ss:$24 sps:$4 sm:$0xff]  }
0x24b7   : > { %16387 = vmatpush1.bf16.msra.mxu1 %v24091_v43  ;;  %16513 = vmatprep.subr.bf16.mxu0 %v24102_v38  ;;  %v24183_v43 = vld [vmem:[%s25052_s23 + $0x1114] ss:$24 sps:$4 sm:$0xff]   ;;  %v24172_v38 = vld [vmem:[%s25052_s23 + $0x10b8] ss:$24 sps:$4 sm:$0xff]  }
0x24b8   : > { %16388 = vmatprep.subr.bf16.mxu1 %v24099_v18  ;;  %v24180_v18 = vld [vmem:[%s25052_s23 + $0x10ec] ss:$24 sps:$4 sm:$0xff]  }
0x24ba   : > { %16514 = vmatpush1.bf16.msra.mxu0 %v24100_v41  ;;  %v24181_v41 = vld [vmem:[%s25052_s23 + $0x1110] ss:$24 sps:$4 sm:$0xff]  }
0x24bb   : > { %16389 = vmatpush1.bf16.msra.mxu1 %v24097_v12  ;;  %16515 = vmatprep.subr.bf16.mxu0 %v24108_v51  ;;  %v24189_v12 = vld [vmem:[%s25052_s23 + $0x1144] ss:$24 sps:$4 sm:$0xff]   ;;  %v24178_v51 = vld [vmem:[%s25052_s23 + $0x10e8] ss:$24 sps:$4 sm:$0xff]  }
0x24bc   : > { %16390 = vmatprep.subr.bf16.mxu1 %v24105_v54  ;;  %v24186_v54 = vld [vmem:[%s25052_s23 + $0x111c] ss:$24 sps:$4 sm:$0xff]  }
0x24be   : > { %16516 = vmatpush1.bf16.msra.mxu0 %v24106_v19  ;;  %v24187_v19 = vld [vmem:[%s25052_s23 + $0x1140] ss:$24 sps:$4 sm:$0xff]  }
0x24bf   : > { %16391 = vmatpush1.bf16.msra.mxu1 %v24103_v63  ;;  %16517 = vmatprep.subr.bf16.mxu0 %v24111_v31  ;;  %v24195_v63 = vld [vmem:[%s25052_s23 + $0x1174] ss:$24 sps:$4 sm:$0xff]   ;;  %v24184_v31 = vld [vmem:[%s25052_s23 + $0x1118] ss:$24 sps:$4 sm:$0xff]  }
0x24c0   : > { %16403 = vmatprep.subr.bf16.mxu1 %v24117_v33  ;;  %v24192_v33 = vld [vmem:[%s25052_s23 + $0x114c] ss:$24 sps:$4 sm:$0xff]  }
0x24c2   : > { %16393 = vmatmul.mubr.bf16.vlgmr.msra.gmra.mrb[4].mxu1 %v27442_v21  ;;  %16518 = vmatpush1.bf16.msra.mxu0 %v24109_v20  ;;  %v24193_v20 = vld [vmem:[%s25052_s23 + $0x1170] ss:$24 sps:$4 sm:$0xff]  }
0x24c3   : > { %16519 = vmatprep.subr.bf16.mxu0 %v24114_v46  ;;  %16404 = vmatpush1.bf16.msra.mxu1 %v24115_v9  ;;  %v24201_v46 = vld [vmem:[%s25052_s23 + $0x11a4] ss:$24 sps:$4 sm:$0xff]   ;;  %v24190_v9 = vld [vmem:[%s25052_s23 + $0x1148] ss:$24 sps:$4 sm:$0xff]  }
0x24c4   : > { %16405 = vmatprep.subr.bf16.mxu1 %v24123_v37  ;;  %v24198_v37 = vld [vmem:[%s25052_s23 + $0x117c] ss:$24 sps:$4 sm:$0xff]  }
0x24c6   : > { %16520 = vmatpush1.bf16.msra.mxu0 %v24112_v45  ;;  %v24199_v45 = vld [vmem:[%s25052_s23 + $0x11a0] ss:$24 sps:$4 sm:$0xff]  }
0x24c7   : > { %16532 = vmatprep.subr.bf16.mxu0 %v24120_v36  ;;  %16406 = vmatpush1.bf16.msra.mxu1 %v24121_v11  ;;  %v24207_v36 = vld [vmem:[%s25052_s23 + $0x11d4] ss:$24 sps:$4 sm:$0xff]   ;;  %v24196_v11 = vld [vmem:[%s25052_s23 + $0x1178] ss:$24 sps:$4 sm:$0xff]  }
0x24c8   : > { %16407 = vmatprep.subr.bf16.mxu1 %v24129_v53  ;;  %v24204_v53 = vld [vmem:[%s25052_s23 + $0x11ac] ss:$24 sps:$4 sm:$0xff]  }
0x24c9   : > { %16522 = vmatmul.mubr.bf16.vlgmr.msra.gmra.mrb[8].mxu0 %v27442_v21 }
0x24ca   : > { %16533 = vmatpush1.bf16.msra.mxu0 %v24118_v8  ;;  %v24205_v8 = vld [vmem:[%s25052_s23 + $0x11d0] ss:$24 sps:$4 sm:$0xff]  }
0x24cb   : > { %16534 = vmatprep.subr.bf16.mxu0 %v24126_v56  ;;  %16408 = vmatpush1.bf16.msra.mxu1 %v24127_v61  ;;  %v24213_v56 = vld [vmem:[%s25052_s23 + $0x914] ss:$24 sps:$4 sm:$0xff]   ;;  %v24202_v61 = vld [vmem:[%s25052_s23 + $0x11a8] ss:$24 sps:$4 sm:$0xff]  }
0x24cc   : > { %16409 = vmatprep.subr.bf16.mxu1 %v24135_v32  ;;  %v24210_v32 = vld [vmem:[%s25052_s23 + $0x11dc] ss:$24 sps:$4 sm:$0xff]  }
0x24ce   : > { %16535 = vmatpush1.bf16.msra.mxu0 %v24124_v6  ;;  %v24208_v6 = vld [vmem:[%s25052_s23 + $0x11d8] ss:$24 sps:$4 sm:$0xff]  }
0x24cf   : > { %16536 = vmatprep.subr.bf16.mxu0 %v24132_v15  ;;  %16410 = vmatpush1.bf16.msra.mxu1 %v24133_v10  ;;  %v12600_v15 = vrot.slane %v25081_v2, %v27344_v16  ;;  %v12604_v10 = vrot.slane %v25081_v2, %v27348_v60 }
0x24d0   : > { %16411 = vmatprep.subr.bf16.mxu1 %v24141_v50 }
0x24d1   : > { %v12630_v50 = vrot.slane %v12600_v15, %v27344_v16  ;;  %v24220_v15 = vld [vmem:[%s25052_s23 + $0x9a0] ss:$24 sps:$4 sm:$0xff]  }
0x24d2   : > { %16537 = vmatpush1.bf16.msra.mxu0 %v24130_v30  ;;  %v12634_v30 = vrot.slane %v12604_v10, %v27344_v16  ;;  %v24225_v10 = vld [vmem:[%s25052_s23 + $0x9d4] ss:$24 sps:$4 sm:$0xff]  }
0x24d3   : > { %16538 = vmatprep.subr.bf16.mxu0 %v24138_v22  ;;  %16412 = vmatpush1.bf16.msra.mxu1 %v24139_v14 }
0x24d4   : > { %16413 = vmatprep.subr.bf16.mxu1 %v24147_v23 }
0x24d6   : > { %16539 = vmatpush1.bf16.msra.mxu0 %v24136_v3 }
0x24d7   : > { %16540 = vmatprep.subr.bf16.mxu0 %v24144_v40  ;;  %16414 = vmatpush1.bf16.msra.mxu1 %v24145_v24 }
0x24d8   : > { %16415 = vmatprep.subr.bf16.mxu1 %v24153_v28 }
0x24da   : > { %16541 = vmatpush1.bf16.msra.mxu0 %v24142_v47 }
0x24db   : > { %16542 = vmatprep.subr.bf16.mxu0 %v24150_v59  ;;  %16416 = vmatpush1.bf16.msra.mxu1 %v24151_v17 }
0x24dc   : > { %16417 = vmatprep.subr.bf16.mxu1 %v24159_v44 }
0x24de   : > { %16543 = vmatpush1.bf16.msra.mxu0 %v24148_v7 }
0x24df   : > { %16544 = vmatprep.subr.bf16.mxu0 %v24156_v27  ;;  %16418 = vmatpush1.bf16.msra.mxu1 %v24157_v49 }
0x24e0   : > { %16419 = vmatprep.subr.bf16.mxu1 %v24165_v48 }
0x24e2   : > { %16545 = vmatpush1.bf16.msra.mxu0 %v24154_v13 }
0x24e3   : > { %16546 = vmatprep.subr.bf16.mxu0 %v24162_v4  ;;  %16420 = vmatpush1.bf16.msra.mxu1 %v24163_v35 }
0x24e4   : > { %16421 = vmatprep.subr.bf16.mxu1 %v24171_v62 }
0x24e6   : > { %16547 = vmatpush1.bf16.msra.mxu0 %v24160_v58 }
0x24e7   : > { %16548 = vmatprep.subr.bf16.mxu0 %v24168_v55  ;;  %16422 = vmatpush1.bf16.msra.mxu1 %v24169_v57 }
0x24e8   : > { %16423 = vmatprep.subr.bf16.mxu1 %v24177_v34 }
0x24ea   : > { %16549 = vmatpush1.bf16.msra.mxu0 %v24166_v26 }
0x24eb   : > { %16550 = vmatprep.subr.bf16.mxu0 %v24174_v5  ;;  %16424 = vmatpush1.bf16.msra.mxu1 %v24175_v52 }
0x24ec   : > { %16425 = vmatprep.subr.bf16.mxu1 %v24183_v43 }
0x24ee   : > { %16551 = vmatpush1.bf16.msra.mxu0 %v24172_v38 }
0x24ef   : > { %16552 = vmatprep.subr.bf16.mxu0 %v24180_v18  ;;  %16426 = vmatpush1.bf16.msra.mxu1 %v24181_v41 }
0x24f0   : > { %16427 = vmatprep.subr.bf16.mxu1 %v24189_v12 }
0x24f2   : > { %16553 = vmatpush1.bf16.msra.mxu0 %v24178_v51 }
0x24f3   : > { %16554 = vmatprep.subr.bf16.mxu0 %v24186_v54  ;;  %16428 = vmatpush1.bf16.msra.mxu1 %v24187_v19 }
0x24f4   : > { %16429 = vmatprep.subr.bf16.mxu1 %v24195_v63 }
0x24f6   : > { %16555 = vmatpush1.bf16.msra.mxu0 %v24184_v31 }
0x24f7   : > { %16556 = vmatprep.subr.bf16.mxu0 %v24192_v33  ;;  %16430 = vmatpush1.bf16.msra.mxu1 %v24193_v20 }
0x24f8   : > { %16431 = vmatprep.subr.bf16.mxu1 %v24201_v46 }
0x24fa   : > { %16557 = vmatpush1.bf16.msra.mxu0 %v24190_v9 }
0x24fb   : > { %16558 = vmatprep.subr.bf16.mxu0 %v24198_v37  ;;  %16432 = vmatpush1.bf16.msra.mxu1 %v24199_v45 }
0x24fc   : > { %16433 = vmatprep.subr.bf16.mxu1 %v24207_v36 }
0x24fe   : > { %16559 = vmatpush1.bf16.msra.mxu0 %v24196_v11 }
0x24ff   : > { %16560 = vmatprep.subr.bf16.mxu0 %v24204_v53  ;;  %16434 = vmatpush1.bf16.msra.mxu1 %v24205_v8  ;;  %v24211_v53 = vld [vmem:[%s25052_s23 + $0x910] ss:$24 sps:$4 sm:$0xff]   ;;  %v24216_v8 = vld [vmem:[%s25052_s23 + $0x944] ss:$24 sps:$4 sm:$0xff]  }
0x2500   : > { %16575 = vmatprep.subr.bf16.mxu1 %v24213_v56  ;;  %v24214_v56 = vld [vmem:[%s25052_s23 + $0x940] ss:$24 sps:$4 sm:$0xff]  }
0x2502   : > { %16561 = vmatpush1.bf16.msra.mxu0 %v24202_v61  ;;  %v24219_v61 = vld [vmem:[%s25052_s23 + $0x974] ss:$24 sps:$4 sm:$0xff]  }
0x2503   : > { %16562 = vmatprep.subr.bf16.mxu0 %v24210_v32  ;;  %v24217_v32 = vld [vmem:[%s25052_s23 + $0x970] ss:$24 sps:$4 sm:$0xff]  }
0x2506   : > { %16563 = vmatpush1.bf16.msra.mxu0 %v24208_v6  ;;  %v24222_v6 = vld [vmem:[%s25052_s23 + $0x9a4] ss:$24 sps:$4 sm:$0xff]  }
0x251b   : > { %v14453_v22 = vpop.f32.mrb[4].mxu0 }
0x251c   : > { %v21431_v14 = vadd.f32 %v14453_v22, %v12630_v50  ;;  %v14455_v23 = vpop.f32.mrb[5].mxu0  ;;  %v24231_v22 = vld [vmem:[%s25052_s23 + $0xa34] ss:$24 sps:$4 sm:$0xff]  }
0x251d   : > { %v21432_v3 = vadd.f32 %v14455_v23, %v12634_v30  ;;  %v14457_v40 = vpop.f32.mrb[6].mxu0  ;;  %v24234_v23 = vld [vmem:[%s25052_s23 + $0xa64] ss:$24 sps:$4 sm:$0xff]  }
0x251e   : > { %v14466_v24 = vmul.f32 %v21431_v14, %v21431_v14  ;;  %v21433_v28 = vadd.f32 %v14457_v40, %v12630_v50  ;;  %v14459_v47 = vpop.f32.mrb[7].mxu0  ;;  %v24223_v50 = vld [vmem:[%s25052_s23 + $0x9d0] ss:$24 sps:$4 sm:$0xff]   ;;  %v24237_v40 = vld [vmem:[%s25052_s23 + $0xa94] ss:$24 sps:$4 sm:$0xff]  }
0x251f   : > { %v14467_v59 = vmul.f32 %v21432_v3, %v21432_v3  ;;  %v21434_v17 = vadd.f32 %v14459_v47, %v12634_v30  ;;  %v24226_v30 = vld [vmem:[%s25052_s23 + $0xa00] ss:$24 sps:$4 sm:$0xff]  }
0x2520   : > { %v14478_v44 = vmul.f32 %v21431_v14, %v14466_v24  ;;  %v14472_v7 = vmul.f32 %v21433_v28, %v21433_v28  ;;  %v24235_v24 = vld [vmem:[%s25052_s23 + $0xa90] ss:$24 sps:$4 sm:$0xff]   ;;  %v24238_v47 = vld [vmem:[%s25052_s23 + $0xac0] ss:$24 sps:$4 sm:$0xff]  }
0x2521   : > { %v14479_v27 = vmul.f32 %v21432_v3, %v14467_v59  ;;  %v14473_v49 = vmul.f32 %v21434_v17, %v21434_v17  ;;  %v24243_v59 = vld [vmem:[%s25052_s23 + $0xaf4] ss:$24 sps:$4 sm:$0xff]  }
0x2522   : > { %v14490_v48 = vmul.f32 0.044715, %v14478_v44  ;;  %v14484_v60 = vmul.f32 %v21433_v28, %v14472_v7  ;;  %v24246_v44 = vld [vmem:[%s25052_s23 + $0xb24] ss:$24 sps:$4 sm:$0xff]   ;;  %v24244_v7 = vld [vmem:[%s25052_s23 + $0xb20] ss:$24 sps:$4 sm:$0xff]  }
0x2523   : > { %v14491_v13 = vmul.f32 0.044715, %v14479_v27  ;;  %v14485_v4 = vmul.f32 %v21434_v17, %v14473_v49  ;;  %v24249_v27 = vld [vmem:[%s25052_s23 + $0xb54] ss:$24 sps:$4 sm:$0xff]   ;;  %v24247_v49 = vld [vmem:[%s25052_s23 + $0xb50] ss:$24 sps:$4 sm:$0xff]  }
0x2524   : > { %v14502_v35 = vadd.f32 %v21431_v14, %v14490_v48  ;;  %v14496_v16 = vmul.f32 0.044715, %v14484_v60  ;;  %v24252_v48 = vld [vmem:[%s25052_s23 + $0xb84] ss:$24 sps:$4 sm:$0xff]   ;;  %v24250_v60 = vld [vmem:[%s25052_s23 + $0xb80] ss:$24 sps:$4 sm:$0xff]  }
0x2525   : > { %v14503_v62 = vadd.f32 %v21432_v3, %v14491_v13  ;;  %v14497_v58 = vmul.f32 0.044715, %v14485_v4  ;;  %v24255_v13 = vld [vmem:[%s25052_s23 + $0xbb4] ss:$24 sps:$4 sm:$0xff]   ;;  %v24253_v4 = vld [vmem:[%s25052_s23 + $0xbb0] ss:$24 sps:$4 sm:$0xff]  }
0x2526   : > { %v14514_v55 = vmul.f32 0.7978846, %v14502_v35  ;;  %v14508_v57 = vadd.f32 %v21433_v28, %v14496_v16  ;;  %v24258_v35 = vld [vmem:[%s25052_s23 + $0xbe4] ss:$24 sps:$4 sm:$0xff]   ;;  %v24256_v16 = vld [vmem:[%s25052_s23 + $0xbe0] ss:$24 sps:$4 sm:$0xff]  }
0x2527   : > { %v14515_v34 = vmul.f32 0.7978846, %v14503_v62  ;;  %v14509_v26 = vadd.f32 %v21434_v17, %v14497_v58  ;;  %v24261_v62 = vld [vmem:[%s25052_s23 + $0xc14] ss:$24 sps:$4 sm:$0xff]   ;;  %v24259_v58 = vld [vmem:[%s25052_s23 + $0xc10] ss:$24 sps:$4 sm:$0xff]  }
0x2528   : > { %24371 = vtanh.f32 %v14514_v55  ;;  %v14520_v5 = vmul.f32 0.7978846, %v14508_v57  ;;  %v24264_v55 = vld [vmem:[%s25052_s23 + $0xc44] ss:$24 sps:$4 sm:$0xff]   ;;  %v24262_v57 = vld [vmem:[%s25052_s23 + $0xc40] ss:$24 sps:$4 sm:$0xff]  }
0x2529   : > { %24373 = vtanh.f32 %v14515_v34  ;;  %v14521_v52 = vmul.f32 0.7978846, %v14509_v26  ;;  %v24267_v34 = vld [vmem:[%s25052_s23 + $0xc74] ss:$24 sps:$4 sm:$0xff]   ;;  %v24265_v26 = vld [vmem:[%s25052_s23 + $0xc70] ss:$24 sps:$4 sm:$0xff]  }
0x252a   : > { %24375 = vtanh.f32 %v14520_v5  ;;  %v24270_v5 = vld [vmem:[%s25052_s23 + $0xca4] ss:$24 sps:$4 sm:$0xff]  }
0x252b   : > { %24377 = vtanh.f32 %v14521_v52  ;;  %v24268_v52 = vld [vmem:[%s25052_s23 + $0xca0] ss:$24 sps:$4 sm:$0xff]  }
0x2532   : > { %v24372_v43 = vpop.eup %24371 }
0x2533   : > { %v24374_v38 = vpop.eup %24373  ;;  %v14538_v18 = vadd.f32 1.0, %v24372_v43  ;;  %v24271_v43 = vld [vmem:[%s25052_s23 + $0xcd0] ss:$24 sps:$4 sm:$0xff]  }
0x2534   : > { %v24376_v41 = vpop.eup %24375  ;;  %v14539_v12 = vadd.f32 1.0, %v24374_v38  ;;  %v24274_v38 = vld [vmem:[%s25052_s23 + $0xd00] ss:$24 sps:$4 sm:$0xff]  }
0x2535   : > { %v24378_v51 = vpop.eup %24377  ;;  %v14550_v54 = vmul.f32 0.5, %v14538_v18  ;;  %v14544_v19 = vadd.f32 1.0, %v24376_v41  ;;  %v24279_v18 = vld [vmem:[%s25052_s23 + $0xd34] ss:$24 sps:$4 sm:$0xff]   ;;  %v24277_v41 = vld [vmem:[%s25052_s23 + $0xd30] ss:$24 sps:$4 sm:$0xff]  }
0x2536   : > { %v14545_v63 = vadd.f32 1.0, %v24378_v51  ;;  %v14551_v31 = vmul.f32 0.5, %v14539_v12  ;;  %v24282_v12 = vld [vmem:[%s25052_s23 + $0xd64] ss:$24 sps:$4 sm:$0xff]   ;;  %v24280_v51 = vld [vmem:[%s25052_s23 + $0xd60] ss:$24 sps:$4 sm:$0xff]  }
0x2537   : > { %v14556_v33 = vmul.f32 0.5, %v14544_v19  ;;  %v14562_v46 = vmul.f32 %v21431_v14, %v14550_v54  ;;  %v24229_v14 = vld [vmem:[%s25052_s23 + $0xa30] ss:$24 sps:$4 sm:$0xff]   ;;  %v24285_v54 = vld [vmem:[%s25052_s23 + $0xd94] ss:$24 sps:$4 sm:$0xff]  }
0x2538   : > { %v14557_v20 = vmul.f32 0.5, %v14545_v63  ;;  %v14563_v37 = vmul.f32 %v21432_v3, %v14551_v31  ;;  %v24232_v3 = vld [vmem:[%s25052_s23 + $0xa60] ss:$24 sps:$4 sm:$0xff]   ;;  %v24283_v19 = vld [vmem:[%s25052_s23 + $0xd90] ss:$24 sps:$4 sm:$0xff]  }
0x2539   : > { %v14568_v9 = vmul.f32 %v21433_v28, %v14556_v33  ;;  %v24240_v28 = vld [vmem:[%s25052_s23 + $0xac4] ss:$24 sps:$4 sm:$0xff]   ;;  %v24286_v31 = vld [vmem:[%s25052_s23 + $0xdc0] ss:$24 sps:$4 sm:$0xff]   ;;  %v24291_v33 = vld [vmem:[%s25052_s23 + $0xdf4] ss:$24 sps:$4 sm:$0xff]  }
0x253a   : > { %v14569_v45 = vmul.f32 %v21434_v17, %v14557_v20  ;;  %v24241_v17 = vld [vmem:[%s25052_s23 + $0xaf0] ss:$24 sps:$4 sm:$0xff]   ;;  %v24288_v63 = vld [vmem:[%s25052_s23 + $0xdc4] ss:$24 sps:$4 sm:$0xff]  }
0x253b   : > { %v27592_v36 = vpack.c.bf16 %v14568_v9, %v14562_v46  ;;  %v24289_v20 = vld [vmem:[%s25052_s23 + $0xdf0] ss:$24 sps:$4 sm:$0xff]   ;;  %v24294_v46 = vld [vmem:[%s25052_s23 + $0xe24] ss:$24 sps:$4 sm:$0xff]   ;;  %v24292_v9 = vld [vmem:[%s25052_s23 + $0xe20] ss:$24 sps:$4 sm:$0xff]  }
0x253c   : > { %v27594_v11 = vpack.c.bf16 %v14569_v45, %v14563_v37  ;;  %v24297_v37 = vld [vmem:[%s25052_s23 + $0xe54] ss:$24 sps:$4 sm:$0xff]   ;;  %v24295_v45 = vld [vmem:[%s25052_s23 + $0xe50] ss:$24 sps:$4 sm:$0xff]  }
0x253e   : > { %16435 = vmatprep.mubr.bf16.mxu1 %v27594_v11  ;;  %16564 = vmatprep.mubr.bf16.mxu0 %v27594_v11 }
0x253f   : > { %16436 = vmatmul.mubr.bf16.vlgmr.msra.gmra.mrb[4].mxu1 %v27592_v36  ;;  %16565 = vmatmul.mubr.bf16.vlgmr.msra.gmra.mrb[8].mxu0 %v27592_v36 }
0x2540   : > { %16576 = vmatpush1.bf16.msra.mxu1 %v24211_v53  ;;  %16607 = vmatprep.mubr.bf16.mxu1 %v27444_v42  ;;  %v24228_v42 = vld [vmem:[%s25052_s23 + $0xa04] ss:$24 sps:$4 sm:$0xff]  }
0x2541   : > { %16577 = vmatprep.subr.bf16.mxu1 %v24216_v8  ;;  %v24300_v53 = vld [vmem:[%s25052_s23 + $0xe84] ss:$24 sps:$4 sm:$0xff]   ;;  %v24298_v8 = vld [vmem:[%s25052_s23 + $0xe80] ss:$24 sps:$4 sm:$0xff]  }
0x2544   : > { %16578 = vmatpush1.bf16.msra.mxu1 %v24214_v56  ;;  %v24303_v56 = vld [vmem:[%s25052_s23 + $0xeb4] ss:$24 sps:$4 sm:$0xff]  }
0x2545   : > { %16579 = vmatprep.subr.bf16.mxu1 %v24219_v61  ;;  %v24301_v61 = vld [vmem:[%s25052_s23 + $0xeb0] ss:$24 sps:$4 sm:$0xff]  }
0x2548   : > { %16580 = vmatpush1.bf16.msra.mxu1 %v24217_v32  ;;  %v24306_v32 = vld [vmem:[%s25052_s23 + $0xee4] ss:$24 sps:$4 sm:$0xff]  }
0x2549   : > { %16581 = vmatprep.subr.bf16.mxu1 %v24222_v6  ;;  %v24304_v6 = vld [vmem:[%s25052_s23 + $0xee0] ss:$24 sps:$4 sm:$0xff]  }
0x254c   : > { %16582 = vmatpush1.bf16.msra.mxu1 %v24220_v15  ;;  %v24309_v15 = vld [vmem:[%s25052_s23 + $0xf14] ss:$24 sps:$4 sm:$0xff]  }
0x254d   : > { %16583 = vmatprep.subr.bf16.mxu1 %v24225_v10  ;;  %v24307_v10 = vld [vmem:[%s25052_s23 + $0xf10] ss:$24 sps:$4 sm:$0xff]  }
0x2550   : > { %16584 = vmatpush1.bf16.msra.mxu1 %v24223_v50  ;;  %v24312_v50 = vld [vmem:[%s25052_s23 + $0xf44] ss:$24 sps:$4 sm:$0xff]  }
0x2551   : > { %16585 = vmatprep.subr.bf16.mxu1 %v24228_v42  ;;  %v24310_v42 = vld [vmem:[%s25052_s23 + $0xf40] ss:$24 sps:$4 sm:$0xff]  }
0x2554   : > { %16586 = vmatpush1.bf16.msra.mxu1 %v24226_v30  ;;  %v24315_v30 = vld [vmem:[%s25052_s23 + $0xf74] ss:$24 sps:$4 sm:$0xff]  }
0x2555   : > { %16587 = vmatprep.subr.bf16.mxu1 %v24231_v22  ;;  %v24313_v22 = vld [vmem:[%s25052_s23 + $0xf70] ss:$24 sps:$4 sm:$0xff]  }
0x2558   : > { %16588 = vmatpush1.bf16.msra.mxu1 %v24229_v14  ;;  %v24318_v14 = vld [vmem:[%s25052_s23 + $0xfa4] ss:$24 sps:$4 sm:$0xff]  }
0x2559   : > { %16589 = vmatprep.subr.bf16.mxu1 %v24234_v23  ;;  %v24316_v23 = vld [vmem:[%s25052_s23 + $0xfa0] ss:$24 sps:$4 sm:$0xff]  }
0x255c   : > { %16590 = vmatpush1.bf16.msra.mxu1 %v24232_v3  ;;  %v24319_v3 = vld [vmem:[%s25052_s23 + $0xfd0] ss:$24 sps:$4 sm:$0xff]  }
0x255d   : > { %16591 = vmatprep.subr.bf16.mxu1 %v24237_v40  ;;  %v24322_v40 = vld [vmem:[%s25052_s23 + $0x1000] ss:$24 sps:$4 sm:$0xff]  }
0x2560   : > { %16592 = vmatpush1.bf16.msra.mxu1 %v24235_v24  ;;  %v24327_v24 = vld [vmem:[%s25052_s23 + $0x1034] ss:$24 sps:$4 sm:$0xff]  }
0x2561   : > { %16593 = vmatprep.subr.bf16.mxu1 %v24240_v28  ;;  %v24325_v28 = vld [vmem:[%s25052_s23 + $0x1030] ss:$24 sps:$4 sm:$0xff]  }
0x2564   : > { %16594 = vmatpush1.bf16.msra.mxu1 %v24238_v47  ;;  %v24330_v47 = vld [vmem:[%s25052_s23 + $0x1064] ss:$24 sps:$4 sm:$0xff]  }
0x2565   : > { %16595 = vmatprep.subr.bf16.mxu1 %v24243_v59  ;;  %v24328_v59 = vld [vmem:[%s25052_s23 + $0x1060] ss:$24 sps:$4 sm:$0xff]  }
0x2568   : > { %16596 = vmatpush1.bf16.msra.mxu1 %v24241_v17  ;;  %v24333_v17 = vld [vmem:[%s25052_s23 + $0x1094] ss:$24 sps:$4 sm:$0xff]  }
0x2569   : > { %16597 = vmatprep.subr.bf16.mxu1 %v24246_v44  ;;  %v24331_v44 = vld [vmem:[%s25052_s23 + $0x1090] ss:$24 sps:$4 sm:$0xff]  }
0x256c   : > { %16598 = vmatpush1.bf16.msra.mxu1 %v24244_v7  ;;  %v24336_v7 = vld [vmem:[%s25052_s23 + $0x10c4] ss:$24 sps:$4 sm:$0xff]  }
0x256d   : > { %16599 = vmatprep.subr.bf16.mxu1 %v24249_v27  ;;  %v24334_v27 = vld [vmem:[%s25052_s23 + $0x10c0] ss:$24 sps:$4 sm:$0xff]  }
0x2570   : > { %16600 = vmatpush1.bf16.msra.mxu1 %v24247_v49  ;;  %v24339_v49 = vld [vmem:[%s25052_s23 + $0x10f4] ss:$24 sps:$4 sm:$0xff]  }
0x2571   : > { %16601 = vmatprep.subr.bf16.mxu1 %v24252_v48  ;;  %v24337_v48 = vld [vmem:[%s25052_s23 + $0x10f0] ss:$24 sps:$4 sm:$0xff]  }
0x2574   : > { %16602 = vmatpush1.bf16.msra.mxu1 %v24250_v60  ;;  %v24342_v60 = vld [vmem:[%s25052_s23 + $0x1124] ss:$24 sps:$4 sm:$0xff]  }
0x2575   : > { %16603 = vmatprep.subr.bf16.mxu1 %v24255_v13  ;;  %v24340_v13 = vld [vmem:[%s25052_s23 + $0x1120] ss:$24 sps:$4 sm:$0xff]  }
0x2578   : > { %16604 = vmatpush1.bf16.msra.mxu1 %v24253_v4  ;;  %v24345_v4 = vld [vmem:[%s25052_s23 + $0x1154] ss:$24 sps:$4 sm:$0xff]  }
0x2579   : > { %16605 = vmatprep.subr.bf16.mxu1 %v24258_v35  ;;  %v24343_v35 = vld [vmem:[%s25052_s23 + $0x1150] ss:$24 sps:$4 sm:$0xff]  }
0x257c   : > { %16606 = vmatpush1.bf16.msra.mxu1 %v24256_v16  ;;  %v24348_v16 = vld [vmem:[%s25052_s23 + $0x1184] ss:$24 sps:$4 sm:$0xff]  }
0x257d   : > { %16618 = vmatprep.subr.bf16.mxu1 %v24261_v62  ;;  %v24346_v62 = vld [vmem:[%s25052_s23 + $0x1180] ss:$24 sps:$4 sm:$0xff]  }
0x257f   : > { %16608 = vmatmul.mubr.bf16.vlgmr.msra.gmra.mrb[8].mxu1 %v27437_v25  ;;  %v24273_v25 = vld [vmem:[%s25052_s23 + $0xcd4] ss:$24 sps:$4 sm:$0xff]  }
0x2580   : > { %16619 = vmatpush1.bf16.msra.mxu1 %v24259_v58  ;;  %16650 = vmatprep.mubr.bf16.mxu1 %v27447_v39  ;;  %v24276_v39 = vld [vmem:[%s25052_s23 + $0xd04] ss:$24 sps:$4 sm:$0xff]   ;;  %v24351_v58 = vld [vmem:[%s25052_s23 + $0x11b4] ss:$24 sps:$4 sm:$0xff]  }
0x2581   : > { %16620 = vmatprep.subr.bf16.mxu1 %v24264_v55  ;;  %v24349_v55 = vld [vmem:[%s25052_s23 + $0x11b0] ss:$24 sps:$4 sm:$0xff]  }
0x2584   : > { %16621 = vmatpush1.bf16.msra.mxu1 %v24262_v57  ;;  %v24354_v57 = vld [vmem:[%s25052_s23 + $0x11e4] ss:$24 sps:$4 sm:$0xff]  }
0x2585   : > { %16622 = vmatprep.subr.bf16.mxu1 %v24267_v34  ;;  %v24352_v34 = vld [vmem:[%s25052_s23 + $0x11e0] ss:$24 sps:$4 sm:$0xff]  }
0x2588   : > { %16623 = vmatpush1.bf16.msra.mxu1 %v24265_v26  ;;  %v14570_v26 = vld [vmem:[#allocation5] sm:$0xff] }
0x2589   : > { %16624 = vmatprep.subr.bf16.mxu1 %v24270_v5  ;;  %v14572_v5 = vld [vmem:[#allocation5 + $0x10] sm:$0xff] }
0x258c   : > { %16625 = vmatpush1.bf16.msra.mxu1 %v24268_v52  ;;  %v14571_v52 = vld [vmem:[#allocation5 + $0x8] sm:$0xff] }
0x258d   : > { %16626 = vmatprep.subr.bf16.mxu1 %v24273_v25  ;;  %v14573_v25 = vld [vmem:[#allocation5 + $0x18] sm:$0xff] }
0x2590   : > { %16627 = vmatpush1.bf16.msra.mxu1 %v24271_v43 }
0x2591   : > { %16628 = vmatprep.subr.bf16.mxu1 %v24276_v39 }
0x2594   : > { %16629 = vmatpush1.bf16.msra.mxu1 %v24274_v38  ;;  %v14576_v38 = vld [vmem:[#allocation5 + $0x30] sm:$0xff] }
0x2595   : > { %16630 = vmatprep.subr.bf16.mxu1 %v24279_v18  ;;  %v14578_v18 = vld [vmem:[#allocation5 + $0x40] sm:$0xff] }
0x2598   : > { %16631 = vmatpush1.bf16.msra.mxu1 %v24277_v41 }
0x2599   : > { %16632 = vmatprep.subr.bf16.mxu1 %v24282_v12 }
0x259c   : > { %16633 = vmatpush1.bf16.msra.mxu1 %v24280_v51 }
0x259d   : > { %16634 = vmatprep.subr.bf16.mxu1 %v24285_v54 }
0x25a0   : > { %16635 = vmatpush1.bf16.msra.mxu1 %v24283_v19  ;;  %v14577_v19 = vld [vmem:[#allocation5 + $0x38] sm:$0xff] }
0x25a1   : > { %16636 = vmatprep.subr.bf16.mxu1 %v24288_v63  ;;  %v14579_v63 = vld [vmem:[#allocation5 + $0x48] sm:$0xff] }
0x25a4   : > { %16637 = vmatpush1.bf16.msra.mxu1 %v24286_v31 }
0x25a5   : > { %16638 = vmatprep.subr.bf16.mxu1 %v24291_v33 }
0x25a8   : > { %16639 = vmatpush1.bf16.msra.mxu1 %v24289_v20 }
0x25a9   : > { %16640 = vmatprep.subr.bf16.mxu1 %v24294_v46 }
0x25ac   : > { %16641 = vmatpush1.bf16.msra.mxu1 %v24292_v9 }
0x25ad   : > { %16642 = vmatprep.subr.bf16.mxu1 %v24297_v37 }
0x25b0   : > { %16643 = vmatpush1.bf16.msra.mxu1 %v24295_v45 }
0x25b1   : > { %16644 = vmatprep.subr.bf16.mxu1 %v24300_v53 }
0x25b4   : > { %16645 = vmatpush1.bf16.msra.mxu1 %v24298_v8 }
0x25b5   : > { %16646 = vmatprep.subr.bf16.mxu1 %v24303_v56  ;;  %v14574_v56 = vld [vmem:[#allocation5 + $0x20] sm:$0xff] }
0x25b8   : > { %16647 = vmatpush1.bf16.msra.mxu1 %v24301_v61  ;;  %v14575_v61 = vld [vmem:[#allocation5 + $0x28] sm:$0xff] }
0x25b9   : > { %16648 = vmatprep.subr.bf16.mxu1 %v24306_v32 }
0x25bc   : > { %16649 = vmatpush1.bf16.msra.mxu1 %v24304_v6  ;;  %v14580_v6 = vld [vmem:[#allocation5 + $0x50] sm:$0xff] }
0x25bd   : > { %16661 = vmatprep.subr.bf16.mxu1 %v24309_v15 }
0x25bf   : > { %16651 = vmatmul.mubr.bf16.vlgmr.msra.gmra.mrb[8].mxu1 %v27442_v21  ;;  %v24321_v21 = vld [vmem:[%s25052_s23 + $0xfd4] ss:$24 sps:$4 sm:$0xff]  }
0x25c0   : > { %16662 = vmatpush1.bf16.msra.mxu1 %v24307_v10  ;;  %16693 = vmatprep.mubr.bf16.mxu1 %v27594_v11  ;;  %v24324_v11 = vld [vmem:[%s25052_s23 + $0x1004] ss:$24 sps:$4 sm:$0xff]  }
0x25c1   : > { %16663 = vmatprep.subr.bf16.mxu1 %v24312_v50  ;;  %v14581_v50 = vld [vmem:[#allocation5 + $0x58] sm:$0xff] }
0x25c4   : > { %16664 = vmatpush1.bf16.msra.mxu1 %v24310_v42 }
0x25c5   : > { %16665 = vmatprep.subr.bf16.mxu1 %v24315_v30 }
0x25c8   : > { %16666 = vmatpush1.bf16.msra.mxu1 %v24313_v22 }
0x25c9   : > { %16667 = vmatprep.subr.bf16.mxu1 %v24318_v14 }
0x25cc   : > { %16668 = vmatpush1.bf16.msra.mxu1 %v24316_v23 }
0x25cd   : > { %16669 = vmatprep.subr.bf16.mxu1 %v24321_v21  ;;  %v16746_v21 = vsub.s32 (!%p20756_p2), 1, %v27339_v29 }
0x25d0   : > { %16670 = vmatpush1.bf16.msra.mxu1 %v24319_v3  ;;  %v16750_v3 = vsub.s32 (!%p20756_p2), 5, %v27339_v29 }
0x25d1   : > { %16671 = vmatprep.subr.bf16.mxu1 %v24324_v11 }
0x25d4   : > { %16672 = vmatpush1.bf16.msra.mxu1 %v24322_v40  ;;  %v16747_v40 = vrot.slane (!%p20756_p2), %v25077_v0, %v16746_v21 }
0x25d5   : > { %16673 = vmatprep.subr.bf16.mxu1 %v24327_v24  ;;  %v16751_v24 = vrot.slane (!%p20756_p2), %v25077_v0, %v16750_v3 }
0x25d8   : > { %16674 = vmatpush1.bf16.msra.mxu1 %v24325_v28  ;;  %v16755_v28 = vrot.slane (!%p20756_p2), %v25079_v1, %v16746_v21 }
0x25d9   : > { %16675 = vmatprep.subr.bf16.mxu1 %v24330_v47  ;;  %v16759_v47 = vrot.slane (!%p20756_p2), %v25079_v1, %v16750_v3 }
0x25dc   : > { %16676 = vmatpush1.bf16.msra.mxu1 %v24328_v59 }
0x25dd   : > { %16677 = vmatprep.subr.bf16.mxu1 %v24333_v17 }
0x25e0   : > { %16678 = vmatpush1.bf16.msra.mxu1 %v24331_v44 }
0x25e1   : > { %16679 = vmatprep.subr.bf16.mxu1 %v24336_v7  ;;  %v16763_v7 = vrot.slane (!%p20756_p2), %v25081_v2, %v16746_v21 }
0x25e4   : > { %16680 = vmatpush1.bf16.msra.mxu1 %v24334_v27  ;;  %v16767_v27 = vrot.slane (!%p20756_p2), %v25081_v2, %v16750_v3 }
0x25e5   : > { %16681 = vmatprep.subr.bf16.mxu1 %v24339_v49 }
0x25e8   : > { %16682 = vmatpush1.bf16.msra.mxu1 %v24337_v48  ;;  %v16777_v48 = vrot.slane (!%p20756_p2), %v16747_v40, %v16746_v21  ;;  %v16821_v40 = vld [vmem:[#allocation2 + $0x58] sm:$0xff] (!%p20756_p2) }
0x25e9   : > { %16683 = vmatprep.subr.bf16.mxu1 %v24342_v60  ;;  %v16781_v60 = vrot.slane (!%p20756_p2), %v16751_v24, %v16746_v21 }
0x25ec   : > { %16684 = vmatpush1.bf16.msra.mxu1 %v24340_v13  ;;  %v16785_v13 = vrot.slane (!%p20756_p2), %v16755_v28, %v16746_v21 }
0x25ed   : > { %16685 = vmatprep.subr.bf16.mxu1 %v24345_v4  ;;  %v16789_v4 = vrot.slane (!%p20756_p2), %v16759_v47, %v16746_v21 }
0x25f0   : > { %16686 = vmatpush1.bf16.msra.mxu1 %v24343_v35 }
0x25f1   : > { %16687 = vmatprep.subr.bf16.mxu1 %v24348_v16 }
0x25f4   : > { %16688 = vmatpush1.bf16.msra.mxu1 %v24346_v62  ;;  %v16793_v62 = vrot.slane (!%p20756_p2), %v16763_v7, %v16746_v21 }
0x25f5   : > { %16689 = vmatprep.subr.bf16.mxu1 %v24351_v58  ;;  %v16797_v58 = vrot.slane (!%p20756_p2), %v16767_v27, %v16746_v21 }
0x25f8   : > { %16690 = vmatpush1.bf16.msra.mxu1 %v24349_v55  ;;  %v16810_v55 = vld [vmem:[#allocation2] sm:$0xff] (!%p20756_p2) }
0x25f9   : > { %16691 = vmatprep.subr.bf16.mxu1 %v24354_v57  ;;  %v16811_v57 = vld [vmem:[#allocation2 + $0x8] sm:$0xff] (!%p20756_p2) }
0x25fc   : > { %16692 = vmatpush1.bf16.msra.mxu1 %v24352_v34  ;;  %v16812_v34 = vld [vmem:[#allocation2 + $0x10] sm:$0xff] (!%p20756_p2) }
0x25ff   : > { %16694 = vmatmul.mubr.bf16.vlgmr.msra.gmra.mrb[8].mxu1 %v27592_v36 }
0x2612   : > { %v16437_v43 = vpop.f32.mrb[4].mxu1  ;;  %v16566_v39 = vpop.f32.mrb[8].mxu0 }
0x2613   : > { %v16704_v41 = vadd.f32 %v16437_v43, %v14570_v26  ;;  %v16706_v12 = vadd.f32 %v16566_v39, %v14572_v5  ;;  %v16439_v51 = vpop.f32.mrb[5].mxu1  ;;  %v16568_v54 = vpop.f32.mrb[9].mxu0 }
0x2614   : > { %v16705_v31 = vadd.f32 %v16439_v51, %v14571_v52  ;;  %v16707_v33 = vadd.f32 %v16568_v54, %v14573_v25  ;;  %v16441_v20 = vpop.f32.mrb[6].mxu1  ;;  %v16570_v46 = vpop.f32.mrb[10].mxu0  ;;  %v16816_v51 = vld [vmem:[#allocation2 + $0x30] sm:$0xff] (!%p20756_p2) }
0x2615   : > { %16716 = vst [vmem:[#allocation5] sm:$0xff] %v16704_v41  ;;  %16718 = vst [vmem:[#allocation5 + $0x10] sm:$0xff] %v16706_v12  ;;  %v16710_v36 = vadd.f32 %v16441_v20, %v14576_v38  ;;  %v16712_v9 = vadd.f32 %v16570_v46, %v14578_v18  ;;  %v16443_v37 = vpop.f32.mrb[7].mxu1  ;;  %v16572_v45 = vpop.f32.mrb[11].mxu0  ;;  %v16813_v18 = vld [vmem:[#allocation2 + $0x18] sm:$0xff] (!%p20756_p2)  ;;  %v16818_v46 = vld [vmem:[#allocation2 + $0x40] sm:$0xff] (!%p20756_p2) }
0x2616   : > { %16717 = vst [vmem:[#allocation5 + $0x8] sm:$0xff] %v16705_v31  ;;  %16719 = vst [vmem:[#allocation5 + $0x18] sm:$0xff] %v16707_v33  ;;  %v16711_v53 = vadd.f32 %v16443_v37, %v14577_v19  ;;  %v16713_v8 = vadd.f32 %v16572_v45, %v14579_v63  ;;  %v16817_v20 = vld [vmem:[#allocation2 + $0x38] sm:$0xff] (!%p20756_p2) }
0x2617   : > { %16722 = vst [vmem:[#allocation5 + $0x30] sm:$0xff] %v16710_v36  ;;  %16724 = vst [vmem:[#allocation5 + $0x40] sm:$0xff] %v16712_v9  ;;  %v16814_v36 = vld [vmem:[#allocation2 + $0x20] sm:$0xff] (!%p20756_p2) }
0x2618   : > { %16723 = vst [vmem:[#allocation5 + $0x38] sm:$0xff] %v16711_v53  ;;  %16725 = vst [vmem:[#allocation5 + $0x48] sm:$0xff] %v16713_v8 }
0x261c   : > { %v16732_v11 = vld [vmem:[#allocation5] sm:$0xff] (!%p20756_p2)  ;;  %v16734_v17 = vld [vmem:[#allocation5 + $0x10] sm:$0xff] (!%p20756_p2) }
0x261d   : > { %v16733_v59 = vld [vmem:[#allocation5 + $0x8] sm:$0xff] (!%p20756_p2)  ;;  %v16735_v44 = vld [vmem:[#allocation5 + $0x18] sm:$0xff] (!%p20756_p2)  ;;  %v16798_v26 = vadd.f32 (!%p20756_p2), %v16777_v48, %v16732_v11  ;;  %v16800_v52 = vadd.f32 (!%p20756_p2), %v16785_v13, %v16734_v17 }
0x261e   : > { %v16738_v35 = vld [vmem:[#allocation5 + $0x30] sm:$0xff] (!%p20756_p2)  ;;  %v16799_v5 = vadd.f32 (!%p20756_p2), %v16781_v60, %v16733_v59  ;;  %v16801_v25 = vadd.f32 (!%p20756_p2), %v16789_v4, %v16735_v44  ;;  %v16740_v43 = vld [vmem:[#allocation5 + $0x40] sm:$0xff] (!%p20756_p2) }
0x261f   : > { %v16739_v16 = vld [vmem:[#allocation5 + $0x38] sm:$0xff] (!%p20756_p2)  ;;  %v16741_v39 = vld [vmem:[#allocation5 + $0x48] sm:$0xff] (!%p20756_p2)  ;;  %v16804_v41 = vadd.f32 (!%p20756_p2), %v16777_v48, %v16738_v35  ;;  %v16822_v19 = vadd.f32 (!%p20756_p2), %v16810_v55, %v16798_v26  ;;  %v16824_v31 = vadd.f32 (!%p20756_p2), %v16812_v34, %v16800_v52  ;;  %v16806_v9 = vadd.f32 (!%p20756_p2), %v16785_v13, %v16740_v43 }
0x2620   : > { %v16805_v12 = vadd.f32 (!%p20756_p2), %v16781_v60, %v16739_v16  ;;  %v16823_v63 = vadd.f32 (!%p20756_p2), %v16811_v57, %v16799_v5  ;;  %v16807_v37 = vadd.f32 (!%p20756_p2), %v16789_v4, %v16741_v39  ;;  %v16825_v53 = vadd.f32 (!%p20756_p2), %v16813_v18, %v16801_v25 }
0x2622   : > { %v16834_v8 = vadd.f32 (!%p20756_p2), %v16823_v63, %v16822_v19 }
0x26d2   : > { %v16695_v32 = vpop.f32.mrb[8].mxu1  ;;  %16731 = sbr.rel (%p20756_p2) target bundleno = 10286 (0x282e), region = 100 }
0x26d3   : > { %v16708_v15 = vadd.f32 %v16695_v32, %v14574_v56  ;;  %v16697_v10 = vpop.f32.mrb[9].mxu1  ;;  %v16828_v32 = vadd.f32 (!%p20756_p2), %v16816_v51, %v16804_v41 }
0x26d4   : > { %v16709_v42 = vadd.f32 %v16697_v10, %v14575_v61  ;;  %v16699_v30 = vpop.f32.mrb[10].mxu1  ;;  %v16819_v61 = vld [vmem:[#allocation2 + $0x48] sm:$0xff] (!%p20756_p2)  ;;  %v16829_v10 = vadd.f32 (!%p20756_p2), %v16817_v20, %v16805_v12 }
0x26d5   : > { %16720 = vst [vmem:[#allocation5 + $0x20] sm:$0xff] %v16708_v15  ;;  %v16714_v22 = vadd.f32 %v16699_v30, %v14580_v6  ;;  %v16701_v14 = vpop.f32.mrb[11].mxu1  ;;  %v16815_v6 = vld [vmem:[#allocation2 + $0x28] sm:$0xff] (!%p20756_p2)  ;;  %v16835_v30 = vadd.f32 (!%p20756_p2), %v16834_v8, %v16824_v31 }
0x26d6   : > { %16721 = vst [vmem:[#allocation5 + $0x28] sm:$0xff] %v16709_v42  ;;  %v16715_v23 = vadd.f32 %v16701_v14, %v14581_v50  ;;  %v16830_v50 = vadd.f32 (!%p20756_p2), %v16818_v46, %v16806_v9  ;;  %v16841_v21 = vadd.f32 (!%p20756_p2), %v16829_v10, %v16828_v32 }
0x26d7   : > { %16726 = vst [vmem:[#allocation5 + $0x50] sm:$0xff] %v16714_v22  ;;  %v16820_v22 = vld [vmem:[#allocation2 + $0x50] sm:$0xff] (!%p20756_p2)  ;;  %v16836_v11 = vadd.f32 (!%p20756_p2), %v16835_v30, %v16825_v53 }
0x26d8   : > { %16727 = vst [vmem:[#allocation5 + $0x58] sm:$0xff] %v16715_v23  ;;  %v16831_v23 = vadd.f32 (!%p20756_p2), %v16819_v61, %v16807_v37  ;;  %v16842_v28 = vadd.f32 (!%p20756_p2), %v16841_v21, %v16830_v50 }
0x26da   : > { %v16843_v17 = vadd.f32 %v16842_v28, %v16831_v23 }
0x26dc   : > { %v16736_v49 = vld [vmem:[#allocation5 + $0x20] sm:$0xff] }
0x26dd   : > { %v16737_v38 = vld [vmem:[#allocation5 + $0x28] sm:$0xff]  ;;  %v16802_v54 = vadd.f32 %v16793_v62, %v16736_v49 }
0x26de   : > { %v16742_v33 = vld [vmem:[#allocation5 + $0x50] sm:$0xff]  ;;  %v16803_v45 = vadd.f32 %v16797_v58, %v16737_v38 }
0x26df   : > { %v16743_v56 = vld [vmem:[#allocation5 + $0x58] sm:$0xff]  ;;  %v16808_v15 = vadd.f32 %v16793_v62, %v16742_v33  ;;  %v16826_v42 = vadd.f32 %v16814_v36, %v16802_v54 }
0x26e0   : > { %v16809_v14 = vadd.f32 %v16797_v58, %v16743_v56  ;;  %v16827_v3 = vadd.f32 %v16815_v6, %v16803_v45 }
0x26e1   : > { %v16832_v24 = vadd.f32 %v16820_v22, %v16808_v15  ;;  %v16837_v47 = vadd.f32 %v16836_v11, %v16826_v42  ;;  %v16975_v22 = vsub.s32 3, %v27339_v29 }
0x26e2   : > { %v16833_v59 = vadd.f32 %v16821_v40, %v16809_v14  ;;  %v16979_v14 = vsub.s32 7, %v27339_v29 }
0x26e3   : > { %v16838_v44 = vadd.f32 %v16837_v47, %v16827_v3  ;;  %v16844_v7 = vadd.f32 %v16843_v17, %v16832_v24  ;;  %v16976_v47 = vrot.slane %v25077_v0, %v16975_v22 }
0x26e4   : > { %v16988_v17 = vrot.slane %v25079_v1, %v16979_v14 }
0x26e5   : > { %16839 = vadd.xlane.f32.xlu0 %v16838_v44  ;;  %v16845_v27 = vadd.f32 %v16844_v7, %v16833_v59 }
0x26e9   : > { %16846 = vadd.xlane.f32.xlu0 %v16845_v27  ;;  %v16992_v27 = vrot.slane %v25081_v2, %v16975_v22 }
0x2772   : > { %v16840_v49 = vpop.xlane.xlu0 %16839 }
0x2773   : > { %v16849_v48 = vmul.f32 0.0013020834, %v16840_v49  ;;  %v16996_v49 = vrot.slane %v25081_v2, %v16979_v14 }
0x2775   : > { %v27710_v60 = vsub.f32 %v16822_v19, %v16849_v48  ;;  %v27712_v13 = vsub.f32 %v16823_v63, %v16849_v48  ;;  %v27714_v4 = vsub.f32 %v16824_v31, %v16849_v48  ;;  %v27716_v16 = vsub.f32 %v16825_v53, %v16849_v48 }
0x2776   : > { %v16847_v35 = vpop.xlane.xlu0 %16846  ;;  %v27722_v57 = vsub.f32 %v16826_v42, %v16849_v48  ;;  %v27732_v43 = vsub.f32 %v16827_v3, %v16849_v48  ;;  %v16913_v42 = vsub.s32 6, %v27339_v29 }
0x2777   : > { %v16850_v62 = vmul.f32 0.0013020834, %v16847_v35  ;;  %v16863_v58 = vmul.f32 %v27710_v60, %v27710_v60  ;;  %v16864_v55 = vmul.f32 %v27712_v13, %v27712_v13  ;;  %v16865_v34 = vmul.f32 %v27714_v4, %v27714_v4 }
0x2778   : > { %v16866_v39 = vmul.f32 %v27716_v16, %v27716_v16  ;;  %v16867_v51 = vmul.f32 %v27722_v57, %v27722_v57  ;;  %v16868_v33 = vmul.f32 %v27732_v43, %v27732_v43  ;;  %v16914_v3 = vrot.slane %v25077_v0, %v16913_v42 }
0x2779   : > { %v16875_v26 = vadd.f32 %v16864_v55, %v16863_v58  ;;  %v27726_v5 = vsub.f32 %v16828_v32, %v16850_v62  ;;  %v27728_v52 = vsub.f32 %v16829_v10, %v16850_v62  ;;  %v27730_v25 = vsub.f32 %v16830_v50, %v16850_v62 }
0x277a   : > { %v27736_v18 = vsub.f32 %v16831_v23, %v16850_v62  ;;  %v27744_v19 = vsub.f32 %v16832_v24, %v16850_v62  ;;  %v27750_v46 = vsub.f32 %v16833_v59, %v16850_v62  ;;  %v16909_v50 = vsub.s32 2, %v27339_v29 }
0x277b   : > { %v16876_v38 = vadd.f32 %v16875_v26, %v16865_v34  ;;  %v16869_v41 = vmul.f32 %v27726_v5, %v27726_v5  ;;  %v16870_v12 = vmul.f32 %v27728_v52, %v27728_v52  ;;  %v16871_v63 = vmul.f32 %v27730_v25, %v27730_v25 }
0x277c   : > { %v16872_v36 = vmul.f32 %v27736_v18, %v27736_v18  ;;  %v16873_v45 = vmul.f32 %v27744_v19, %v27744_v19  ;;  %v16874_v8 = vmul.f32 %v27750_v46, %v27750_v46  ;;  %v16910_v21 = vrot.slane %v25077_v0, %v16909_v50 }
0x277d   : > { %v16877_v54 = vadd.f32 %v16876_v38, %v16866_v39  ;;  %v16882_v31 = vadd.f32 %v16870_v12, %v16869_v41  ;;  %v16918_v11 = vrot.slane %v25079_v1, %v16909_v50  ;;  %v16922_v40 = vrot.slane %v25079_v1, %v16913_v42 }
0x277e   : > { %v16926_v24 = vrot.slane %v25081_v2, %v16909_v50  ;;  %v16930_v28 = vrot.slane %v25081_v2, %v16913_v42  ;;  %v16980_v59 = vrot.slane %v25077_v0, %v16979_v14  ;;  %v16984_v29 = vrot.slane %v25079_v1, %v16975_v22 }
0x277f   : > { %v16878_v20 = vadd.f32 %v16877_v54, %v16867_v51  ;;  %v16883_v9 = vadd.f32 %v16882_v31, %v16871_v63  ;;  %v16940_v44 = vrot.slane %v16910_v21, %v16909_v50  ;;  %v16944_v7 = vrot.slane %v16914_v3, %v16909_v50 }
0x2780   : > { %v16948_v48 = vrot.slane %v16918_v11, %v16909_v50  ;;  %v16952_v35 = vrot.slane %v16922_v40, %v16909_v50  ;;  %v16956_v62 = vrot.slane %v16926_v24, %v16909_v50  ;;  %v16960_v58 = vrot.slane %v16930_v28, %v16909_v50 }
0x2781   : > { %v16879_v37 = vadd.f32 %v16878_v20, %v16868_v33  ;;  %v16884_v53 = vadd.f32 %v16883_v9, %v16872_v36  ;;  %v17006_v34 = vrot.slane %v16976_v47, %v16975_v22  ;;  %v17010_v26 = vrot.slane %v16980_v59, %v16975_v22 }
0x2782   : > { %v17014_v39 = vrot.slane %v16984_v29, %v16975_v22  ;;  %v17018_v38 = vrot.slane %v16988_v17, %v16975_v22  ;;  %v17022_v51 = vrot.slane %v16992_v27, %v16975_v22  ;;  %v17026_v54 = vrot.slane %v16996_v49, %v16975_v22 }
0x2783   : > { %16880 = vadd.xlane.f32.xlu1 %v16879_v37  ;;  %v16885_v56 = vadd.f32 %v16884_v53, %v16873_v45 }
0x2785   : > { %v16886_v61 = vadd.f32 %v16885_v56, %v16874_v8 }
0x2787   : > { %16887 = vadd.xlane.f32.xlu1 %v16886_v61 }
0x2810   : > { %v16881_v32 = vpop.xlane.xlu1 %16880 }
0x2811   : > { %v16889_v6 = vmul.f32 0.0013020834, %v16881_v32 }
0x2813   : > { %v16891_v15 = vadd.f32 1e-12, %v16889_v6 }
0x2814   : > { %v16888_v10 = vpop.xlane.xlu1 %16887 }
0x2815   : > { %24379 = vrsqrt.f32 %v16891_v15  ;;  %v16890_v30 = vmul.f32 0.0013020834, %v16888_v10 }
0x2817   : > { %v16892_v23 = vadd.f32 1e-12, %v16890_v30 }
0x2819   : > { %24381 = vrsqrt.f32 %v16892_v23 }
0x281f   : > { %v24380_v55 = vpop.eup %24379 }
0x2820   : > { %v16895_v0 = vmul.f32 %v24380_v55, %v27710_v60  ;;  %v16896_v41 = vmul.f32 %v24380_v55, %v27712_v13  ;;  %v16897_v1 = vmul.f32 %v24380_v55, %v27714_v4  ;;  %v16898_v12 = vmul.f32 %v24380_v55, %v27716_v16 }
0x2821   : > { %v16899_v2 = vmul.f32 %v24380_v55, %v27722_v57  ;;  %v16900_v63 = vmul.f32 %v24380_v55, %v27732_v43 }
0x2822   : > { %v16961_v31 = vmul.f32 %v16940_v44, %v16895_v0  ;;  %v16962_v33 = vmul.f32 %v16944_v7, %v16896_v41  ;;  %v16963_v20 = vmul.f32 %v16948_v48, %v16897_v1  ;;  %v16964_v36 = vmul.f32 %v16952_v35, %v16898_v12 }
0x2823   : > { %v24382_v9 = vpop.eup %24381  ;;  %v16965_v37 = vmul.f32 %v16956_v62, %v16899_v2  ;;  %v16966_v45 = vmul.f32 %v16960_v58, %v16900_v63 }
0x2824   : > { %v17027_v60 = vadd.f32 %v17006_v34, %v16961_v31  ;;  %v17028_v53 = vadd.f32 %v17010_v26, %v16962_v33  ;;  %v17029_v13 = vadd.f32 %v17014_v39, %v16963_v20  ;;  %v17030_v8 = vadd.f32 %v17018_v38, %v16964_v36 }
0x2825   : > { %v17031_v4 = vadd.f32 %v17022_v51, %v16965_v37  ;;  %v17032_v56 = vadd.f32 %v17026_v54, %v16966_v45  ;;  %v16901_v16 = vmul.f32 %v24382_v9, %v27726_v5  ;;  %v16902_v61 = vmul.f32 %v24382_v9, %v27728_v52 }
0x2826   : > { %17039 = vst [vmem:[#allocation2] sm:$0xff] %v17027_v60  ;;  %17040 = vst [vmem:[#allocation2 + $0x8] sm:$0xff] %v17028_v53  ;;  %v16903_v57 = vmul.f32 %v24382_v9, %v27730_v25  ;;  %v16904_v43 = vmul.f32 %v24382_v9, %v27736_v18  ;;  %v16905_v32 = vmul.f32 %v24382_v9, %v27744_v19 }
0x2827   : > { %17041 = vst [vmem:[#allocation2 + $0x10] sm:$0xff] %v17029_v13  ;;  %17042 = vst [vmem:[#allocation2 + $0x18] sm:$0xff] %v17030_v8  ;;  %v16906_v6 = vmul.f32 %v24382_v9, %v27750_v46  ;;  %v16967_v15 = vmul.f32 %v16940_v44, %v16901_v16  ;;  %v16968_v10 = vmul.f32 %v16944_v7, %v16902_v61 }
0x2828   : > { %17043 = vst [vmem:[#allocation2 + $0x20] sm:$0xff] %v17031_v4  ;;  %17044 = vst [vmem:[#allocation2 + $0x28] sm:$0xff] %v17032_v56  ;;  %v16969_v50 = vmul.f32 %v16948_v48, %v16903_v57  ;;  %v16970_v5 = vmul.f32 %v16952_v35, %v16904_v43  ;;  %v16971_v42 = vmul.f32 %v16956_v62, %v16905_v32 }
0x2829   : > { %v16972_v52 = vmul.f32 %v16960_v58, %v16906_v6  ;;  %v17033_v30 = vadd.f32 %v17006_v34, %v16967_v15  ;;  %v17034_v22 = vadd.f32 %v17010_v26, %v16968_v10 }
0x282a   : > { %v17035_v14 = vadd.f32 %v17014_v39, %v16969_v50  ;;  %v17036_v23 = vadd.f32 %v17018_v38, %v16970_v5  ;;  %v17037_v21 = vadd.f32 %v17022_v51, %v16971_v42 }
0x282b   : > { %v17038_v25 = vadd.f32 %v17026_v54, %v16972_v52  ;;  %17045 = vst [vmem:[#allocation2 + $0x30] sm:$0xff] %v17033_v30  ;;  %17046 = vst [vmem:[#allocation2 + $0x38] sm:$0xff] %v17034_v22 }
0x282c   : > { %17047 = vst [vmem:[#allocation2 + $0x40] sm:$0xff] %v17035_v14  ;;  %17048 = vst [vmem:[#allocation2 + $0x48] sm:$0xff] %v17036_v23 }
0x282d   : > { %17049 = vst [vmem:[#allocation2 + $0x50] sm:$0xff] %v17037_v21  ;;  %17050 = vst [vmem:[#allocation2 + $0x58] sm:$0xff] %v17038_v25 }
0x282e PF: > { %p20757_p0 = scmp.ne.s32.totalorder %s24845_s9, 11 }
0x282f   : > { %v24383_v18 = vld [vmem:[#allocation10 + $0x104] ss:$8 sps:$4 sm:$0xff] (!%p20757_p0)   ;;  %v24385_v19 = vld [vmem:[#allocation10 + $0x100] ss:$8 sps:$4 sm:$0xff] (!%p20757_p0)   ;;  %v24386_v46 = vld [vmem:[#allocation10 + $0x114] ss:$8 sps:$4 sm:$0xff] (!%p20757_p0)  }
0x2830   : > { %17054 = sbr.rel (%p20757_p0) target bundleno = 10856 (0x2a68), region = 104  ;;  %17704 = vmatprep.subr.bf16.mxu0 (!%p20757_p0), %v24383_v18  ;;  %v24388_v3 = vld [vmem:[#allocation10 + $0x110] ss:$8 sps:$4 sm:$0xff] (!%p20757_p0)   ;;  %v24389_v11 = vld [vmem:[#allocation10 + $0x124] ss:$8 sps:$4 sm:$0xff] (!%p20757_p0)  }
0x2831   : > { %17705 = vmatpush1.bf16.msra.mxu0 (!%p20757_p0), %v24385_v19  ;;  %v24391_v40 = vld [vmem:[#allocation10 + $0x120] ss:$8 sps:$4 sm:$0xff] (!%p20757_p0)   ;;  %v24392_v24 = vld [vmem:[#allocation10 + $0x134] ss:$8 sps:$4 sm:$0xff] (!%p20757_p0)   ;;  %v24394_v28 = vld [vmem:[#allocation10 + $0x130] ss:$8 sps:$4 sm:$0xff] (!%p20757_p0)  }
0x2832   : > { %17706 = vmatprep.subr.bf16.mxu0 (!%p20757_p0), %v24386_v46  ;;  %v24395_v47 = vld [vmem:[#allocation10 + $0x144] ss:$8 sps:$4 sm:$0xff] (!%p20757_p0)   ;;  %v24397_v59 = vld [vmem:[#allocation10 + $0x140] ss:$8 sps:$4 sm:$0xff] (!%p20757_p0)   ;;  %v24398_v29 = vld [vmem:[#allocation10 + $0x154] ss:$8 sps:$4 sm:$0xff] (!%p20757_p0)  }
0x2833   : > { %v24400_v17 = vld [vmem:[#allocation10 + $0x150] ss:$8 sps:$4 sm:$0xff] (!%p20757_p0)   ;;  %v24401_v44 = vld [vmem:[#allocation10 + $0x164] ss:$8 sps:$4 sm:$0xff] (!%p20757_p0)   ;;  %v24430_v27 = vld [vmem:[#allocation10] ss:$8 sps:$4 sm:$0xff] (!%p20757_p0)  }
0x2834   : > { %v24428_v7 = vld [vmem:[#allocation10 + $0x4] ss:$8 sps:$4 sm:$0xff] (!%p20757_p0)   ;;  %v24403_v49 = vld [vmem:[#allocation10 + $0x160] ss:$8 sps:$4 sm:$0xff] (!%p20757_p0)   ;;  %v24404_v48 = vld [vmem:[#allocation10 + $0x174] ss:$8 sps:$4 sm:$0xff] (!%p20757_p0)  }
0x2835   : > { %17707 = vmatpush1.bf16.msra.mxu0 (!%p20757_p0), %v24388_v3  ;;  %17661 = vmatprep.subr.bf16.mxu1 (!%p20757_p0), %v24428_v7  ;;  %v24434_v35 = vld [vmem:[#allocation10 + $0x14] ss:$8 sps:$4 sm:$0xff] (!%p20757_p0)   ;;  %v24436_v62 = vld [vmem:[#allocation10 + $0x10] ss:$8 sps:$4 sm:$0xff] (!%p20757_p0)   ;;  %v17058_v58 = vld [vmem:[#allocation2 + $0x18] sm:$0xff] (!%p20757_p0) }
0x2836   : > { %17708 = vmatprep.subr.bf16.mxu0 (!%p20757_p0), %v24389_v11  ;;  %17662 = vmatpush1.bf16.msra.mxu1 (!%p20757_p0), %v24430_v27  ;;  %v17064_v55 = vld [vmem:[#allocation2 + $0x48] sm:$0xff] (!%p20757_p0)  ;;  %v24440_v39 = vld [vmem:[#allocation10 + $0x24] ss:$8 sps:$4 sm:$0xff] (!%p20757_p0)   ;;  %v24442_v38 = vld [vmem:[#allocation10 + $0x20] ss:$8 sps:$4 sm:$0xff] (!%p20757_p0)  }
0x2837   : > { %17663 = vmatprep.subr.bf16.mxu1 %v24434_v35  ;;  %v17070_v34 = vpack.c.bf16 %v17064_v55, %v17058_v58  ;;  %v24406_v26 = vld [vmem:[#allocation10 + $0x170] ss:$8 sps:$4 sm:$0xff]   ;;  %v24407_v0 = vld [vmem:[#allocation10 + $0x184] ss:$8 sps:$4 sm:$0xff]   ;;  %v24409_v41 = vld [vmem:[#allocation10 + $0x180] ss:$8 sps:$4 sm:$0xff]  }
0x2838   : > { %v24446_v1 = vld [vmem:[#allocation10 + $0x34] ss:$8 sps:$4 sm:$0xff]   ;;  %v24448_v51 = vld [vmem:[#allocation10 + $0x30] ss:$8 sps:$4 sm:$0xff]   ;;  %v24452_v54 = vld [vmem:[#allocation10 + $0x44] ss:$8 sps:$4 sm:$0xff]  }
0x2839   : > { %17709 = vmatpush1.bf16.msra.mxu0 %v24391_v40  ;;  %17736 = vmatprep.mubr.bf16.mxu0 %v17070_v34  ;;  %v24410_v12 = vld [vmem:[#allocation10 + $0x194] ss:$8 sps:$4 sm:$0xff]   ;;  %v24412_v2 = vld [vmem:[#allocation10 + $0x190] ss:$8 sps:$4 sm:$0xff]   ;;  %v24413_v63 = vld [vmem:[#allocation10 + $0x1a4] ss:$8 sps:$4 sm:$0xff]  }
0x283a   : > { %17710 = vmatprep.subr.bf16.mxu0 %v24392_v24  ;;  %17664 = vmatpush1.bf16.msra.mxu1 %v24436_v62  ;;  %v24454_v31 = vld [vmem:[#allocation10 + $0x40] ss:$8 sps:$4 sm:$0xff]   ;;  %v24458_v33 = vld [vmem:[#allocation10 + $0x54] ss:$8 sps:$4 sm:$0xff]   ;;  %v24460_v9 = vld [vmem:[#allocation10 + $0x50] ss:$8 sps:$4 sm:$0xff]  }
0x283b   : > { %17665 = vmatprep.subr.bf16.mxu1 %v24440_v39  ;;  %v24415_v20 = vld [vmem:[#allocation10 + $0x1a0] ss:$8 sps:$4 sm:$0xff]   ;;  %v24416_v36 = vld [vmem:[#allocation10 + $0x1b4] ss:$8 sps:$4 sm:$0xff]   ;;  %v24464_v37 = vld [vmem:[#allocation10 + $0x64] ss:$8 sps:$4 sm:$0xff]  }
0x283c   : > { %v24418_v45 = vld [vmem:[#allocation10 + $0x1b0] ss:$8 sps:$4 sm:$0xff]   ;;  %v24419_v60 = vld [vmem:[#allocation10 + $0x1c4] ss:$8 sps:$4 sm:$0xff]   ;;  %v24466_v53 = vld [vmem:[#allocation10 + $0x60] ss:$8 sps:$4 sm:$0xff]  }
0x283d   : > { %17711 = vmatpush1.bf16.msra.mxu0 %v24394_v28  ;;  %v24470_v13 = vld [vmem:[#allocation10 + $0x74] ss:$8 sps:$4 sm:$0xff]   ;;  %v24421_v8 = vld [vmem:[#allocation10 + $0x1c0] ss:$8 sps:$4 sm:$0xff]   ;;  %v24472_v56 = vld [vmem:[#allocation10 + $0x70] ss:$8 sps:$4 sm:$0xff]  }
0x283e   : > { %17712 = vmatprep.subr.bf16.mxu0 %v24395_v47  ;;  %17666 = vmatpush1.bf16.msra.mxu1 %v24442_v38  ;;  %v24422_v4 = vld [vmem:[#allocation10 + $0x1d4] ss:$8 sps:$4 sm:$0xff]   ;;  %v24476_v16 = vld [vmem:[#allocation10 + $0x84] ss:$8 sps:$4 sm:$0xff]   ;;  %v24424_v61 = vld [vmem:[#allocation10 + $0x1d0] ss:$8 sps:$4 sm:$0xff]  }
0x283f   : > { %17667 = vmatprep.subr.bf16.mxu1 %v24446_v1  ;;  %v24425_v57 = vld [vmem:[#allocation10 + $0x1e4] ss:$8 sps:$4 sm:$0xff]   ;;  %v24478_v43 = vld [vmem:[#allocation10 + $0x80] ss:$8 sps:$4 sm:$0xff]   ;;  %v24482_v32 = vld [vmem:[#allocation10 + $0x94] ss:$8 sps:$4 sm:$0xff]  }
0x2840   : > { %v24427_v6 = vld [vmem:[#allocation10 + $0x1e0] ss:$8 sps:$4 sm:$0xff]   ;;  %v24431_v15 = vld [vmem:[#allocation10 + $0x1f4] ss:$8 sps:$4 sm:$0xff]   ;;  %v24484_v10 = vld [vmem:[#allocation10 + $0x90] ss:$8 sps:$4 sm:$0xff]  }
0x2841   : > { %17713 = vmatpush1.bf16.msra.mxu0 %v24397_v59  ;;  %v24488_v50 = vld [vmem:[#allocation10 + $0xa4] ss:$8 sps:$4 sm:$0xff]   ;;  %v24433_v5 = vld [vmem:[#allocation10 + $0x1f0] ss:$8 sps:$4 sm:$0xff]   ;;  %v24490_v22 = vld [vmem:[#allocation10 + $0xa0] ss:$8 sps:$4 sm:$0xff]  }
0x2842   : > { %17714 = vmatprep.subr.bf16.mxu0 %v24398_v29  ;;  %17668 = vmatpush1.bf16.msra.mxu1 %v24448_v51  ;;  %v24439_v42 = vld [vmem:[#allocation10 + $0x204] ss:$8 sps:$4 sm:$0xff]   ;;  %v17063_v30 = vld [vmem:[#allocation2 + $0x40] sm:$0xff]  ;;  %v24437_v23 = vld [vmem:[#allocation10 + $0x200] ss:$8 sps:$4 sm:$0xff]  }
0x2843   : > { %17669 = vmatprep.subr.bf16.mxu1 %v24452_v54  ;;  %v17057_v52 = vld [vmem:[#allocation2 + $0x10] sm:$0xff]  ;;  %v24494_v14 = vld [vmem:[#allocation10 + $0xb4] ss:$8 sps:$4 sm:$0xff]   ;;  %v24496_v18 = vld [vmem:[#allocation10 + $0xb0] ss:$8 sps:$4 sm:$0xff]  }
0x2844   : > { %v17069_v21 = vpack.c.bf16 %v17063_v30, %v17057_v52  ;;  %v24445_v25 = vld [vmem:[#allocation10 + $0x214] ss:$8 sps:$4 sm:$0xff]   ;;  %v24500_v19 = vld [vmem:[#allocation10 + $0xc4] ss:$8 sps:$4 sm:$0xff]   ;;  %v24443_v40 = vld [vmem:[#allocation10 + $0x210] ss:$8 sps:$4 sm:$0xff]  }
0x2845   : > { %17715 = vmatpush1.bf16.msra.mxu0 %v24400_v17  ;;  %v17056_v46 = vld [vmem:[#allocation2 + $0x8] sm:$0xff]  ;;  %v17062_v3 = vld [vmem:[#allocation2 + $0x38] sm:$0xff]  ;;  %v17061_v39 = vld [vmem:[#allocation2 + $0x30] sm:$0xff] }
0x2846   : > { %17716 = vmatprep.subr.bf16.mxu0 %v24401_v44  ;;  %17670 = vmatpush1.bf16.msra.mxu1 %v24454_v31  ;;  %v17068_v11 = vpack.c.bf16 %v17062_v3, %v17056_v46  ;;  %v17060_v24 = vld [vmem:[#allocation2 + $0x28] sm:$0xff]  ;;  %v24451_v28 = vld [vmem:[#allocation10 + $0x224] ss:$8 sps:$4 sm:$0xff]   ;;  %v24502_v47 = vld [vmem:[#allocation10 + $0xc0] ss:$8 sps:$4 sm:$0xff]  }
0x2847   : > { %17671 = vmatprep.subr.bf16.mxu1 %v24458_v33  ;;  %v17066_v59 = vld [vmem:[#allocation2 + $0x58] sm:$0xff]  ;;  %v24506_v29 = vld [vmem:[#allocation10 + $0xd4] ss:$8 sps:$4 sm:$0xff]   ;;  %v24508_v27 = vld [vmem:[#allocation10 + $0xd0] ss:$8 sps:$4 sm:$0xff]  }
0x2848   : > { %v17072_v17 = vpack.c.bf16 %v17066_v59, %v17060_v24  ;;  %v24449_v44 = vld [vmem:[#allocation10 + $0x220] ss:$8 sps:$4 sm:$0xff]   ;;  %17693 = vmatprep.mubr.bf16.mxu1 %v17068_v11  ;;  %v24457_v7 = vld [vmem:[#allocation10 + $0x234] ss:$8 sps:$4 sm:$0xff]   ;;  %v24463_v35 = vld [vmem:[#allocation10 + $0x244] ss:$8 sps:$4 sm:$0xff]   ;;  %v17171_v24 = vlaneseq }
0x2849   : > { %17717 = vmatpush1.bf16.msra.mxu0 %v24403_v49  ;;  %v24512_v49 = vld [vmem:[#allocation10 + $0xe4] ss:$8 sps:$4 sm:$0xff]   ;;  %v24514_v62 = vld [vmem:[#allocation10 + $0xe0] ss:$8 sps:$4 sm:$0xff]   ;;  %v24518_v58 = vld [vmem:[#allocation10 + $0xf4] ss:$8 sps:$4 sm:$0xff]  }
0x284a   : > { %17718 = vmatprep.subr.bf16.mxu0 %v24404_v48  ;;  %17672 = vmatpush1.bf16.msra.mxu1 %v24460_v9  ;;  %v24455_v48 = vld [vmem:[#allocation10 + $0x230] ss:$8 sps:$4 sm:$0xff]   ;;  %v24461_v55 = vld [vmem:[#allocation10 + $0x240] ss:$8 sps:$4 sm:$0xff]   ;;  %v24469_v38 = vld [vmem:[#allocation10 + $0x254] ss:$8 sps:$4 sm:$0xff]  }
0x284b   : > { %17673 = vmatprep.subr.bf16.mxu1 %v24464_v37  ;;  %v24520_v34 = vld [vmem:[#allocation10 + $0xf0] ss:$8 sps:$4 sm:$0xff]   ;;  %v24475_v51 = vld [vmem:[#allocation10 + $0x264] ss:$8 sps:$4 sm:$0xff]   ;;  %v24481_v31 = vld [vmem:[#allocation10 + $0x274] ss:$8 sps:$4 sm:$0xff]  }
0x284c   : > { %v24467_v1 = vld [vmem:[#allocation10 + $0x250] ss:$8 sps:$4 sm:$0xff]   ;;  %v24487_v9 = vld [vmem:[#allocation10 + $0x284] ss:$8 sps:$4 sm:$0xff]   ;;  %v17169_v59 = vld [vmem:[#allocation11] sm:$0x3] }
0x284d   : > { %17719 = vmatpush1.bf16.msra.mxu0 %v24406_v26  ;;  %v17055_v26 = vld [vmem:[#allocation2] sm:$0xff]  ;;  %v24533_v37 = vld [vmem:[#allocation13 + $0x58] sm:$0xff]  }
0x284e   : > { %17720 = vmatprep.subr.bf16.mxu0 %v24407_v0  ;;  %17674 = vmatpush1.bf16.msra.mxu1 %v24466_v53  ;;  %v24527_v0 = vld [vmem:[#allocation13 + $0x40] sm:$0xff]   ;;  %v24529_v54 = vld [vmem:[#allocation13 + $0x48] sm:$0xff]   ;;  %v24531_v33 = vld [vmem:[#allocation13 + $0x50] sm:$0xff]  }
0x284f   : > { %17675 = vmatprep.subr.bf16.mxu1 %v24470_v13  ;;  %v24493_v53 = vld [vmem:[#allocation10 + $0x294] ss:$8 sps:$4 sm:$0xff]   ;;  %v24535_v13 = vld [vmem:[#allocation13 + $0x60] sm:$0xff]  }
0x2850   : > { %v17059_v52 = vld [vmem:[#allocation2 + $0x20] sm:$0xff]  ;;  %v17065_v30 = vld [vmem:[#allocation2 + $0x50] sm:$0xff] }
0x2851   : > { %17721 = vmatpush1.bf16.msra.mxu0 %v24409_v41  ;;  %v17067_v41 = vpack.c.bf16 %v17061_v39, %v17055_v26 }
0x2852   : > { %17722 = vmatprep.subr.bf16.mxu0 %v24410_v12  ;;  %17676 = vmatpush1.bf16.msra.mxu1 %v24472_v56  ;;  %v24528_v12 = vld [vmem:[#allocation13] sm:$0xff]  }
0x2853   : > { %17677 = vmatprep.subr.bf16.mxu1 %v24476_v16  ;;  %v24499_v56 = vld [vmem:[#allocation10 + $0x2a4] ss:$8 sps:$4 sm:$0xff]   ;;  %v24497_v16 = vld [vmem:[#allocation10 + $0x2a0] ss:$8 sps:$4 sm:$0xff]  }
0x2855   : > { %17723 = vmatpush1.bf16.msra.mxu0 %v24412_v2  ;;  %v24473_v2 = vld [vmem:[#allocation10 + $0x260] ss:$8 sps:$4 sm:$0xff]  }
0x2856   : > { %17724 = vmatprep.subr.bf16.mxu0 %v24413_v63  ;;  %17678 = vmatpush1.bf16.msra.mxu1 %v24478_v43  ;;  %v24530_v63 = vld [vmem:[#allocation13 + $0x8] sm:$0xff]  }
0x2857   : > { %17679 = vmatprep.subr.bf16.mxu1 %v24482_v32  ;;  %v24511_v43 = vld [vmem:[#allocation10 + $0x2c4] ss:$8 sps:$4 sm:$0xff]   ;;  %v24509_v32 = vld [vmem:[#allocation10 + $0x2c0] ss:$8 sps:$4 sm:$0xff]  }
0x2859   : > { %17725 = vmatpush1.bf16.msra.mxu0 %v24415_v20  ;;  %v24479_v20 = vld [vmem:[#allocation10 + $0x270] ss:$8 sps:$4 sm:$0xff]  }
0x285a   : > { %17726 = vmatprep.subr.bf16.mxu0 %v24416_v36  ;;  %17680 = vmatpush1.bf16.msra.mxu1 %v24484_v10  ;;  %v24532_v36 = vld [vmem:[#allocation13 + $0x10] sm:$0xff]   ;;  %v24523_v10 = vld [vmem:[#allocation10 + $0x2e4] ss:$8 sps:$4 sm:$0xff]  }
0x285b   : > { %17681 = vmatprep.subr.bf16.mxu1 %v24488_v50  ;;  %v24521_v50 = vld [vmem:[#allocation10 + $0x2e0] ss:$8 sps:$4 sm:$0xff]  }
0x285d   : > { %17727 = vmatpush1.bf16.msra.mxu0 %v24418_v45  ;;  %v24485_v45 = vld [vmem:[#allocation10 + $0x280] ss:$8 sps:$4 sm:$0xff]  }
0x285e   : > { %17728 = vmatprep.subr.bf16.mxu0 %v24419_v60  ;;  %17682 = vmatpush1.bf16.msra.mxu1 %v24490_v22  ;;  %v24534_v60 = vld [vmem:[#allocation13 + $0x18] sm:$0xff]   ;;  %v17071_v22 = vpack.c.bf16 %v17065_v30, %v17059_v52 }
0x285f   : > { %17683 = vmatprep.subr.bf16.mxu1 %v24494_v14  ;;  %v24537_v14 = vld [vmem:[#allocation13 + $0x68] sm:$0xff]  }
0x2861   : > { %17729 = vmatpush1.bf16.msra.mxu0 %v24421_v8  ;;  %v24491_v8 = vld [vmem:[#allocation10 + $0x290] ss:$8 sps:$4 sm:$0xff]  }
0x2862   : > { %17730 = vmatprep.subr.bf16.mxu0 %v24422_v4  ;;  %17684 = vmatpush1.bf16.msra.mxu1 %v24496_v18  ;;  %v24536_v4 = vld [vmem:[#allocation13 + $0x20] sm:$0xff]   ;;  %v24541_v18 = vld [vmem:[#allocation13 + $0x78] sm:$0xff]  }
0x2863   : > { %17685 = vmatprep.subr.bf16.mxu1 %v24500_v19  ;;  %v24542_v19 = vld [vmem:[#allocation13 + $0x38] sm:$0xff]  }
0x2865   : > { %17731 = vmatpush1.bf16.msra.mxu0 %v24424_v61  ;;  %v24505_v61 = vld [vmem:[#allocation10 + $0x2b4] ss:$8 sps:$4 sm:$0xff]  }
0x2866   : > { %17732 = vmatprep.subr.bf16.mxu0 %v24425_v57  ;;  %17686 = vmatpush1.bf16.msra.mxu1 %v24502_v47  ;;  %v24503_v57 = vld [vmem:[#allocation10 + $0x2b0] ss:$8 sps:$4 sm:$0xff]  }
0x2867   : > { %17687 = vmatprep.subr.bf16.mxu1 %v24506_v29 }
0x2869   : > { %17733 = vmatpush1.bf16.msra.mxu0 %v24427_v6  ;;  %v24517_v6 = vld [vmem:[#allocation10 + $0x2d4] ss:$8 sps:$4 sm:$0xff]  }
0x286a   : > { %17734 = vmatprep.subr.bf16.mxu0 %v24431_v15  ;;  %17688 = vmatpush1.bf16.msra.mxu1 %v24508_v27  ;;  %v24515_v15 = vld [vmem:[#allocation10 + $0x2d0] ss:$8 sps:$4 sm:$0xff]  }
0x286b   : > { %17689 = vmatprep.subr.bf16.mxu1 %v24512_v49 }
0x286d   : > { %17735 = vmatpush1.bf16.msra.mxu0 %v24433_v5  ;;  %v24526_v5 = vld [vmem:[#allocation10 + $0x2f4] ss:$8 sps:$4 sm:$0xff]  }
0x286e   : > { %17747 = vmatprep.subr.bf16.mxu0 %v24439_v42  ;;  %17690 = vmatpush1.bf16.msra.mxu1 %v24514_v62  ;;  %v24524_v42 = vld [vmem:[#allocation10 + $0x2f0] ss:$8 sps:$4 sm:$0xff]  }
0x286f   : > { %17691 = vmatprep.subr.bf16.mxu1 %v24518_v58 }
0x2870   : > { %17737 = vmatmul.mubr.bf16.vlgmr.msra.gmra.mrb[0].mxu0 %v17069_v21  ;;  %v24539_v21 = vld [vmem:[#allocation13 + $0x70] sm:$0xff]  }
0x2871   : > { %17748 = vmatpush1.bf16.msra.mxu0 %v24437_v23  ;;  %17779 = vmatprep.mubr.bf16.mxu0 %v17072_v17  ;;  %v24538_v23 = vld [vmem:[#allocation13 + $0x28] sm:$0xff]  }
0x2872   : > { %17749 = vmatprep.subr.bf16.mxu0 %v24445_v25  ;;  %17692 = vmatpush1.bf16.msra.mxu1 %v24520_v34  ;;  %v24540_v25 = vld [vmem:[#allocation13 + $0x30] sm:$0xff]  }
0x2873   : > { %20969 = vmatprep.subr.bf16.mxu1 %v24527_v0 }
0x2875   : > { %17750 = vmatpush1.bf16.msra.mxu0 %v24443_v40  ;;  %17694 = vmatmul.mubr.bf16.vlgmr.msra.gmra.mrb[0].mxu1 %v17067_v41 }
0x2876   : > { %17751 = vmatprep.subr.bf16.mxu0 %v24451_v28  ;;  %20970 = vmatpush3.bf16.msra.mxu1 %v24528_v12  ;;  %v17172_v28 = vshrl.u32 %v17171_v24, 7  ;;  %v20854_v12 = vld [vmem:[#allocation14] ss:$0 sm:$0xff] }
0x2877   : > { %20971 = vmatprep.subr.bf16.mxu1 %v24529_v54 }
0x2878   : > { %v17173_v47 = vsub.s32 0, %v17172_v28  ;;  %v17177_v29 = vsub.s32 1, %v17172_v28 }
0x2879   : > { %17752 = vmatpush1.bf16.msra.mxu0 %v24449_v44 }
0x287a   : > { %17753 = vmatprep.subr.bf16.mxu0 %v24457_v7  ;;  %20972 = vmatpush3.bf16.msra.mxu1 %v24530_v63  ;;  %v17174_v17 = vrot.slane %v17169_v59, %v17173_v47  ;;  %v17178_v44 = vrot.slane %v17169_v59, %v17177_v29 }
0x287b   : > { %20973 = vmatprep.subr.bf16.mxu1 %v24531_v33 }
0x287d   : > { %17754 = vmatpush1.bf16.msra.mxu0 %v24455_v48 }
0x287e   : > { %17755 = vmatprep.subr.bf16.mxu0 %v24463_v35  ;;  %20974 = vmatpush3.bf16.msra.mxu1 %v24532_v36 }
0x287f   : > { %20975 = vmatprep.subr.bf16.mxu1 %v24533_v37 }
0x2881   : > { %17756 = vmatpush1.bf16.msra.mxu0 %v24461_v55 }
0x2882   : > { %17757 = vmatprep.subr.bf16.mxu0 %v24469_v38  ;;  %20976 = vmatpush3.bf16.msra.mxu1 %v24534_v60 }
0x2883   : > { %20977 = vmatprep.subr.bf16.mxu1 %v24535_v13 }
0x2885   : > { %17758 = vmatpush1.bf16.msra.mxu0 %v24467_v1 }
0x2886   : > { %17759 = vmatprep.subr.bf16.mxu0 %v24475_v51  ;;  %20978 = vmatpush3.bf16.msra.mxu1 %v24536_v4 }
0x2887   : > { %20979 = vmatprep.subr.bf16.mxu1 %v24537_v14 }
0x2889   : > { %17760 = vmatpush1.bf16.msra.mxu0 %v24473_v2 }
0x288a   : > { %17761 = vmatprep.subr.bf16.mxu0 %v24481_v31  ;;  %20980 = vmatpush3.bf16.msra.mxu1 %v24538_v23 }
0x288b   : > { %20981 = vmatprep.subr.bf16.mxu1 %v24539_v21 }
0x288d   : > { %17762 = vmatpush1.bf16.msra.mxu0 %v24479_v20 }
0x288e   : > { %17763 = vmatprep.subr.bf16.mxu0 %v24487_v9  ;;  %20982 = vmatpush3.bf16.msra.mxu1 %v24540_v25 }
0x288f   : > { %20983 = vmatprep.subr.bf16.mxu1 %v24541_v18 }
0x2891   : > { %17764 = vmatpush1.bf16.msra.mxu0 %v24485_v45 }
0x2892   : > { %17765 = vmatprep.subr.bf16.mxu0 %v24493_v53  ;;  %20984 = vmatpush3.bf16.msra.mxu1 %v24542_v19 }
0x2895   : > { %17766 = vmatpush1.bf16.msra.mxu0 %v24491_v8 }
0x2896   : > { %17767 = vmatprep.subr.bf16.mxu0 %v24499_v56 }
0x2899   : > { %17768 = vmatpush1.bf16.msra.mxu0 %v24497_v16 }
0x289a   : > { %17769 = vmatprep.subr.bf16.mxu0 %v24505_v61 }
0x289d   : > { %17770 = vmatpush1.bf16.msra.mxu0 %v24503_v57 }
0x289e   : > { %17771 = vmatprep.subr.bf16.mxu0 %v24511_v43 }
0x28a1   : > { %17772 = vmatpush1.bf16.msra.mxu0 %v24509_v32 }
0x28a2   : > { %17773 = vmatprep.subr.bf16.mxu0 %v24517_v6 }
0x28a5   : > { %17774 = vmatpush1.bf16.msra.mxu0 %v24515_v15 }
0x28a6   : > { %17775 = vmatprep.subr.bf16.mxu0 %v24523_v10 }
0x28a9   : > { %17776 = vmatpush1.bf16.msra.mxu0 %v24521_v50 }
0x28aa   : > { %17777 = vmatprep.subr.bf16.mxu0 %v24526_v5 }
0x28ad   : > { %17778 = vmatpush1.bf16.msra.mxu0 %v24524_v42 }
0x28b0   : > { %17780 = vmatmul.mubr.bf16.vlgmr.msra.gmra.mrb[0].mxu0 %v17071_v22 }
0x2948   : > { %v17695_v46 = vpop.f32.mrb[0].mxu1 }
0x2949   : > { %v17697_v3 = vpop.f32.mrb[1].mxu1  ;;  %v17696_v7 = vadd.f32 %v17695_v46, %v17174_v17 }
0x294a   : > { %v17699_v11 = vpop.f32.mrb[2].mxu1  ;;  %v17698_v27 = vadd.f32 %v17697_v3, %v17178_v44 }
0x294b   : > { %v17701_v40 = vpop.f32.mrb[3].mxu1  ;;  %v17700_v48 = vadd.f32 %v17699_v11, %v17174_v17 }
0x294c   : > { %v17702_v58 = vadd.f32 %v17701_v40, %v17178_v44 }
0x2983   : > { %v17781_v49 = vpop.f32.mrb[0].mxu0 }
0x2984   : > { %v21484_v35 = vadd.f32 %v17781_v49, %v17696_v7  ;;  %v17783_v62 = vpop.f32.mrb[1].mxu0 }
0x2985   : > { %v21486_v55 = vadd.f32 %v17783_v62, %v17698_v27  ;;  %v17785_v34 = vpop.f32.mrb[2].mxu0 }
0x2986   : > { %v21488_v26 = vadd.f32 %v17785_v34, %v17700_v48  ;;  %v17787_v39 = vpop.f32.mrb[3].mxu0 }
0x2987   : > { %v21490_v38 = vadd.f32 %v17787_v39, %v17702_v58 }
0x2988   : > { %v17790_v0 = vpack.c.bf16 %v21488_v26, %v21484_v35 }
0x2989   : > { %v17791_v41 = vpack.c.bf16 %v21490_v38, %v21486_v55 }
0x298b   : > { %17959 = vmatprep.mubr.bf16.mxu1 %v17791_v41 }
0x298c   : > { %17960 = vmatmul.mubr.bf16.vlgmr.msra.gmra.mrb[4].mxu1 %v17790_v0 }
0x2a5f   : > { %v20985_v1 = vpop.f32.mrb[4].mxu1 }
0x2a60   : > { %v20986_v51 = vpop.f32.mrb[5].mxu1 }
0x2a61   : > { %v20987_v54 = vadd.f32 %v20986_v51, %v20985_v1  ;;  %v20988_v2 = vpop.f32.mrb[6].mxu1 }
0x2a62   : > { %v20989_v63 = vpop.f32.mrb[7].mxu1 }
0x2a63   : > { %v17962_v31 = vadd.f32 %v20987_v54, %v20854_v12  ;;  %v20990_v33 = vadd.f32 %v20989_v63, %v20988_v2 }
0x2a65   : > { %17968 = vst [vmem:[%s27814_s8] sm:$0xff] %v17962_v31  ;;  %v17965_v20 = vadd.f32 %v20990_v33, %v20854_v12 }
0x2a67   : > { %17969 = vst [vmem:[%s27814_s8 + $0x8] sm:$0xff] %v17965_v20 }
0x2a68 PF: > { %p23_p6 = scmp.ge.s32.totalorder %s24966_s24, 14   ;;  %s27840_s27 = smov %s24757_s28 }
0x2a69   : > { %s27841_s28 = smov %s24761_s29  ;;  %s27842_s29 = smov %s24979_s19 }
0x2a6a   : > { %s27843_s30 = smov %s24966_s24  ;;  %25 = sbr.rel (!%p23_p6) target bundleno = 11 (0xb), region = 148 }
0x2a71   :  { %17981 = vsyncpa [#allocation7], 1 }
0x2a72   :  { %17983 = vsyncpa [#allocation7 + $0x1], 1 }
0x2a73   :  { %17984 = vsyncpa [#allocation9], 1 }
0x2a74   :  { %17986 = vsyncpa [#allocation9 + $0x1], 1 }
0x2a75   :  { %17987 = vsyncpa [#allocation12], 1 }
0x2a76   :  { %17988 = vsyncpa [#allocation15], 1 }

</bundles_post_ra>
